<compile_context>
chip_gen: v7x
topology: tpu7x:2x2x1
jax: 0.10.0
libtpu: 0.0.40
codegen_flags: <defaults>
</compile_context>

<pallas_src>
import functools

import jax
import jax.numpy as jnp
from jax.experimental import pallas as pl
from jax.experimental.pallas import tpu as pltpu


# ------------------------------- fused kernel ------------------------------ #
def _yolact_head_kernel(x_ref, wu_ref, bu_ref, wh_ref, bh_ref, o_ref,
                        xpad_ref, midpad_ref, *, H, W, coef_lo, coef_hi):
    # x_ref:      (1, H, W, Cin)        bf16, one batch element (NHWC)
    # wu_ref:     (9, Cin, Cmid)        bf16, upfeature 3x3 weights (tap major)
    # bu_ref:     (1, Cmid)             f32
    # wh_ref:     (9, Cmid, Coutp)      bf16, fused bbox|conf|coef weights, Coutp=128
    # bh_ref:     (1, Coutp)            f32
    # o_ref:      (1, H*W, Coutp)       f32 lane-dense output
    # xpad_ref:   (H+2, W+2, Cin)       bf16 VMEM scratch (zero halo)
    # midpad_ref: (H+2, W+2, Cmid)      bf16 VMEM scratch (zero halo, mid stays here)
    Cin = x_ref.shape[-1]
    Cmid = wu_ref.shape[-1]
    Coutp = wh_ref.shape[-1]

    # ---- stage 0: in-kernel halo for the input (no wrapper-side jnp.pad) ----
    xpad_ref[...] = jnp.zeros(xpad_ref.shape, xpad_ref.dtype)
    xpad_ref[1:H + 1, 1:W + 1, :] = x_ref[0]

    # ---- stage 1: upfeature 3x3 "same" conv + ReLU (bf16 MXU, f32 acc) ----
    mid = jnp.zeros((H * W, Cmid), jnp.float32)
    for dy in range(3):                       # static taps -> unrolled
        for dx in range(3):
            patch = xpad_ref[dy:dy + H, dx:dx + W, :].reshape(H * W, Cin)
            mid = mid + jnp.dot(patch, wu_ref[dy * 3 + dx],
                                preferred_element_type=jnp.float32)
    mid = jnp.maximum(mid + bu_ref[...], 0.0)                 # (H*W, Cmid) f32

    # ---- stage 2: `mid` stays resident in VMEM (never written to HBM) ----
    midpad_ref[...] = jnp.zeros(midpad_ref.shape, midpad_ref.dtype)
    midpad_ref[1:H + 1, 1:W + 1, :] = (
        mid.astype(midpad_ref.dtype).reshape(H, W, Cmid))

    # ---- stage 3: fused heads (bbox | conf | coef), Cout zero-padded to 128 ----
    acc = jnp.zeros((H * W, Coutp), jnp.float32)
    for dy in range(3):
        for dx in range(3):
            patch = midpad_ref[dy:dy + H, dx:dx + W, :].reshape(H * W, Cmid)
            acc = acc + jnp.dot(patch, wh_ref[dy * 3 + dx],
                                preferred_element_type=jnp.float32)
    acc = acc + bh_ref[...]

    # tanh only on the coef columns (static column range within the fused Cout)
    col = jax.lax.broadcasted_iota(jnp.int32, acc.shape, 1)
    acc = jnp.where((col >= coef_lo) & (col < coef_hi), jnp.tanh(acc), acc)

    o_ref[0] = acc.astype(o_ref.dtype)


# ------------------------- PredictionModule forward ------------------------ #
def prediction_module_forward(x_nchw, params, *, num_priors, num_classes, coef_dim):
    x = jnp.transpose(x_nchw, (0, 2, 3, 1))       # NCHW -> NHWC
    N, H, W, Cin = x.shape
    Cmid = params["up_w"].shape[-1]

    c_box = num_priors * 4
    c_cls = num_priors * num_classes
    c_cof = num_priors * coef_dim
    c_tot = c_box + c_cls + c_cof
    c_pad = max(128, ((c_tot + 127) // 128) * 128)    # lane-dense fused Cout

    # Upfeature weights: (3,3,Cin,Cmid) -> (9, Cin, Cmid), bf16 for the MXU.
    wu = params["up_w"].reshape(9, Cin, Cmid).astype(jnp.bfloat16)
    bu = params["up_b"].reshape(1, Cmid).astype(jnp.float32)

    # Fused head weights: concat bbox|conf|coef on Cout, zero-pad to 128 lanes.
    wh = jnp.concatenate(
        [params["bbox_w"], params["conf_w"], params["coef_w"]], axis=-1)
    wh = jnp.pad(wh, ((0, 0), (0, 0), (0, 0), (0, c_pad - c_tot)))
    wh = wh.reshape(9, Cmid, c_pad).astype(jnp.bfloat16)
    bh = jnp.concatenate([params["bbox_b"], params["conf_b"], params["coef_b"]])
    bh = jnp.pad(bh, (0, c_pad - c_tot)).reshape(1, c_pad).astype(jnp.float32)

    kernel = functools.partial(_yolact_head_kernel, H=H, W=W,
                               coef_lo=c_box + c_cls, coef_hi=c_tot)

    out = pl.pallas_call(
        kernel,
        out_shape=jax.ShapeDtypeStruct((N, H * W, c_pad), jnp.float32),
        grid_spec=pltpu.PrefetchScalarGridSpec(
            num_scalar_prefetch=0,
            grid=(N,),
            in_specs=[
                pl.BlockSpec((1, H, W, Cin), lambda n: (n, 0, 0, 0)),
                pl.BlockSpec((9, Cin, Cmid), lambda n: (0, 0, 0)),
                pl.BlockSpec((1, Cmid), lambda n: (0, 0)),
                pl.BlockSpec((9, Cmid, c_pad), lambda n: (0, 0, 0)),
                pl.BlockSpec((1, c_pad), lambda n: (0, 0)),
            ],
            out_specs=pl.BlockSpec((1, H * W, c_pad), lambda n: (n, 0, 0)),
            scratch_shapes=[
                pltpu.VMEM((H + 2, W + 2, Cin), jnp.bfloat16),   # padded x tile
                pltpu.VMEM((H + 2, W + 2, Cmid), jnp.bfloat16),  # resident mid
            ],
        ),
        compiler_params=pltpu.CompilerParams(
            dimension_semantics=("parallel",)),
    )(x.astype(jnp.bfloat16), wu, bu, wh, bh)

    # Slice the zero padding off BEFORE the (N, H*W*P, .) reshape so the
    # prior/class interleaving matches PyTorch's permute(0,2,3,1).view(...).
    bbox = out[:, :, :c_box].reshape(N, H * W * num_priors, 4)
    conf = out[:, :, c_box:c_box + c_cls].reshape(N, H * W * num_priors, num_classes)
    coef = out[:, :, c_box + c_cls:c_tot].reshape(N, H * W * num_priors, coef_dim)
    return {"box": bbox, "class": conf, "coef": coef}


# ------------------------------ reference (JAX) ----------------------------- #
def _ref_conv(x_nhwc, w, b):
    y = jax.lax.conv_general_dilated(
        x_nhwc, w, window_strides=(1, 1), padding="SAME",
        dimension_numbers=("NHWC", "HWIO", "NHWC"))
    return y + b


def _ref_forward(x_nchw, params, *, num_priors, num_classes, coef_dim):
    x = jnp.transpose(x_nchw, (0, 2, 3, 1))
    N, H, W, _ = x.shape
    mid = jnp.maximum(_ref_conv(x, params["up_w"], params["up_b"]), 0.0)
    bbox = _ref_conv(mid, params["bbox_w"], params["bbox_b"])
    conf = _ref_conv(mid, params["conf_w"], params["conf_b"])
    coef = jnp.tanh(_ref_conv(mid, params["coef_w"], params["coef_b"]))
    return {
        "box": bbox.reshape(N, H * W * num_priors, 4),
        "class": conf.reshape(N, H * W * num_priors, num_classes),
        "coef": coef.reshape(N, H * W * num_priors, coef_dim),
    }


# ----------------------------------- main ----------------------------------- #
if __name__ == "__main__":
    # Small synthetic config (stand-in for cfg):
    #   extra_head_net = [(Cmid, 3, {'padding': 1})], num_priors = 3
    N, Cin, H, W = 2, 8, 16, 16
    Cmid = 16
    num_priors, num_classes, coef_dim = 3, 5, 8

    key = jax.random.PRNGKey(0)
    ks = jax.random.split(key, 9)

    def w_init(k, shape):
        return 0.1 * jax.random.normal(k, shape, jnp.float32)

    params = {
        "up_w":   w_init(ks[0], (3, 3, Cin, Cmid)),
        "up_b":   0.01 * jax.random.normal(ks[1], (Cmid,), jnp.float32),
        "bbox_w": w_init(ks[2], (3, 3, Cmid, num_priors * 4)),
        "bbox_b": 0.01 * jax.random.normal(ks[3], (num_priors * 4,), jnp.float32),
        "conf_w": w_init(ks[4], (3, 3, Cmid, num_priors * num_classes)),
        "conf_b": 0.01 * jax.random.normal(ks[5], (num_priors * num_classes,), jnp.float32),
        "coef_w": w_init(ks[6], (3, 3, Cmid, num_priors * coef_dim)),
        "coef_b": 0.01 * jax.random.normal(ks[7], (num_priors * coef_dim,), jnp.float32),
    }

    x = jax.random.normal(ks[8], (N, Cin, H, W), jnp.float32)  # NCHW like PyTorch

    fwd = jax.jit(functools.partial(
        prediction_module_forward,
        num_priors=num_priors, num_classes=num_classes, coef_dim=coef_dim))
    out = fwd(x, params)
    jax.block_until_ready(out)

    ref = _ref_forward(x, params, num_priors=num_priors,
                       num_classes=num_classes, coef_dim=coef_dim)

    # bf16 MXU inputs with f32 accumulation -> loosen tolerance vs f32 reference.
    for k in ("box", "class", "coef"):
        assert out[k].shape == ref[k].shape, (k, out[k].shape, ref[k].shape)
        assert jnp.allclose(out[k], ref[k], atol=5e-2, rtol=5e-2), f"mismatch in {k}"

    print("KERNEL_OK")
</pallas_src>

<mosaic_0001>
module attributes {stable_mosaic.version = 11 : i64} {
  func.func @_yolact_head_kernel(%arg0: i32, %arg1: memref<1x16x16x8xbf16, #tpu.memory_space<vmem>>, %arg2: memref<9x8x16xbf16, #tpu.memory_space<vmem>>, %arg3: memref<1x16xf32, #tpu.memory_space<vmem>>, %arg4: memref<9x16x128xbf16, #tpu.memory_space<vmem>>, %arg5: memref<1x128xf32, #tpu.memory_space<vmem>>, %arg6: memref<1x256x128xf32, #tpu.memory_space<vmem>>, %arg7: memref<18x18x8xbf16, #tpu.memory_space<vmem>>, %arg8: memref<18x18x16xbf16, #tpu.memory_space<vmem>>) attributes {dimension_semantics = [#tpu.dimension_semantics<parallel>], iteration_bounds = array<i64: 2>, scalar_prefetch = 0 : i64, scratch_operands = 2 : i64, tpu.core_type = #tpu.core_type<tc>, window_params = [{transform_indices = @transform_0, window_bounds = array<i64: 1, 16, 16, 8>}, {pipeline_mode = #tpu.pipeline_mode<synchronous>, transform_indices = @transform_1, window_bounds = array<i64: 9, 8, 16>}, {pipeline_mode = #tpu.pipeline_mode<synchronous>, transform_indices = @transform_2, window_bounds = array<i64: 1, 16>}, {pipeline_mode = #tpu.pipeline_mode<synchronous>, transform_indices = @transform_3, window_bounds = array<i64: 9, 16, 128>}, {pipeline_mode = #tpu.pipeline_mode<synchronous>, transform_indices = @transform_4, window_bounds = array<i64: 1, 128>}, {transform_indices = @transform_5, window_bounds = array<i64: 1, 256, 128>}]} {
    %cst = arith.constant 0.000000e+00 : bf16
    %0 = vector.broadcast %cst : bf16 to vector<18x18x8xbf16>
    %c0 = arith.constant 0 : index
    %c0_0 = arith.constant 0 : index
    %c0_1 = arith.constant 0 : index
    %1 = vector.load %arg7[%c0, %c0_0, %c0_1] : memref<18x18x8xbf16, #tpu.memory_space<vmem>>, vector<18x18x8xbf16>
    tpu.vector_store %arg7[%c0, %c0_0, %c0_1], %0 {strides = array<i32>} : memref<18x18x8xbf16, #tpu.memory_space<vmem>>, vector<18x18x8xbf16>,
    %c0_2 = arith.constant 0 : index
    %c0_3 = arith.constant 0 : index
    %c0_4 = arith.constant 0 : index
    %c0_5 = arith.constant 0 : index
    %2 = vector.load %arg1[%c0_2, %c0_3, %c0_4, %c0_5] : memref<1x16x16x8xbf16, #tpu.memory_space<vmem>>, vector<1x16x16x8xbf16>
    %3 = vector.shape_cast %2 : vector<1x16x16x8xbf16> to vector<16x16x8xbf16>
    %c1 = arith.constant 1 : index
    %c1_6 = arith.constant 1 : index
    %c0_7 = arith.constant 0 : index
    %4 = vector.load %arg7[%c1, %c1_6, %c0_7] : memref<18x18x8xbf16, #tpu.memory_space<vmem>>, vector<16x16x8xbf16>
    tpu.vector_store %arg7[%c1, %c1_6, %c0_7], %3 {strides = array<i32>} : memref<18x18x8xbf16, #tpu.memory_space<vmem>>, vector<16x16x8xbf16>,
    %cst_8 = arith.constant 0.000000e+00 : f32
    %5 = vector.broadcast %cst_8 : f32 to vector<256x16xf32>
    %c0_9 = arith.constant 0 : index
    %c0_10 = arith.constant 0 : index
    %c0_11 = arith.constant 0 : index
    %6 = vector.load %arg7[%c0_9, %c0_10, %c0_11] : memref<18x18x8xbf16, #tpu.memory_space<vmem>>, vector<16x16x8xbf16>
    %7 = vector.shape_cast %6 : vector<16x16x8xbf16> to vector<256x8xbf16>
    %c0_12 = arith.constant 0 : index
    %c0_13 = arith.constant 0 : index
    %c0_14 = arith.constant 0 : index
    %8 = vector.load %arg2[%c0_12, %c0_13, %c0_14] : memref<9x8x16xbf16, #tpu.memory_space<vmem>>, vector<1x8x16xbf16>
    %9 = vector.shape_cast %8 : vector<1x8x16xbf16> to vector<8x16xbf16>
    %cst_15 = arith.constant dense<0.000000e+00> : vector<256x16xf32>
    %10 = tpu.matmul %7, %9, %cst_15 {dimension_numbers = #tpu.dot_dimension_numbers<[1], [0], [0], [1], [0, 0, 1, 1], [], []>} : vector<256x8xbf16>, vector<8x16xbf16>, vector<256x16xf32> -> vector<256x16xf32>
    %11 = arith.addf %5, %10 : vector<256x16xf32>
    %c0_16 = arith.constant 0 : index
    %c1_17 = arith.constant 1 : index
    %c0_18 = arith.constant 0 : index
    %12 = vector.load %arg7[%c0_16, %c1_17, %c0_18] : memref<18x18x8xbf16, #tpu.memory_space<vmem>>, vector<16x16x8xbf16>
    %13 = vector.shape_cast %12 : vector<16x16x8xbf16> to vector<256x8xbf16>
    %c1_19 = arith.constant 1 : index
    %c0_20 = arith.constant 0 : index
    %c0_21 = arith.constant 0 : index
    %14 = vector.load %arg2[%c1_19, %c0_20, %c0_21] : memref<9x8x16xbf16, #tpu.memory_space<vmem>>, vector<1x8x16xbf16>
    %15 = vector.shape_cast %14 : vector<1x8x16xbf16> to vector<8x16xbf16>
    %cst_22 = arith.constant dense<0.000000e+00> : vector<256x16xf32>
    %16 = tpu.matmul %13, %15, %cst_22 {dimension_numbers = #tpu.dot_dimension_numbers<[1], [0], [0], [1], [0, 0, 1, 1], [], []>} : vector<256x8xbf16>, vector<8x16xbf16>, vector<256x16xf32> -> vector<256x16xf32>
    %17 = arith.addf %11, %16 : vector<256x16xf32>
    %c0_23 = arith.constant 0 : index
    %c2 = arith.constant 2 : index
    %c0_24 = arith.constant 0 : index
    %18 = vector.load %arg7[%c0_23, %c2, %c0_24] : memref<18x18x8xbf16, #tpu.memory_space<vmem>>, vector<16x16x8xbf16>
    %19 = vector.shape_cast %18 : vector<16x16x8xbf16> to vector<256x8xbf16>
    %c2_25 = arith.constant 2 : index
    %c0_26 = arith.constant 0 : index
    %c0_27 = arith.constant 0 : index
    %20 = vector.load %arg2[%c2_25, %c0_26, %c0_27] : memref<9x8x16xbf16, #tpu.memory_space<vmem>>, vector<1x8x16xbf16>
    %21 = vector.shape_cast %20 : vector<1x8x16xbf16> to vector<8x16xbf16>
    %cst_28 = arith.constant dense<0.000000e+00> : vector<256x16xf32>
    %22 = tpu.matmul %19, %21, %cst_28 {dimension_numbers = #tpu.dot_dimension_numbers<[1], [0], [0], [1], [0, 0, 1, 1], [], []>} : vector<256x8xbf16>, vector<8x16xbf16>, vector<256x16xf32> -> vector<256x16xf32>
    %23 = arith.addf %17, %22 : vector<256x16xf32>
    %c1_29 = arith.constant 1 : index
    %c0_30 = arith.constant 0 : index
    %c0_31 = arith.constant 0 : index
    %24 = vector.load %arg7[%c1_29, %c0_30, %c0_31] : memref<18x18x8xbf16, #tpu.memory_space<vmem>>, vector<16x16x8xbf16>
    %25 = vector.shape_cast %24 : vector<16x16x8xbf16> to vector<256x8xbf16>
    %c3 = arith.constant 3 : index
    %c0_32 = arith.constant 0 : index
    %c0_33 = arith.constant 0 : index
    %26 = vector.load %arg2[%c3, %c0_32, %c0_33] : memref<9x8x16xbf16, #tpu.memory_space<vmem>>, vector<1x8x16xbf16>
    %27 = vector.shape_cast %26 : vector<1x8x16xbf16> to vector<8x16xbf16>
    %cst_34 = arith.constant dense<0.000000e+00> : vector<256x16xf32>
    %28 = tpu.matmul %25, %27, %cst_34 {dimension_numbers = #tpu.dot_dimension_numbers<[1], [0], [0], [1], [0, 0, 1, 1], [], []>} : vector<256x8xbf16>, vector<8x16xbf16>, vector<256x16xf32> -> vector<256x16xf32>
    %29 = arith.addf %23, %28 : vector<256x16xf32>
    %c1_35 = arith.constant 1 : index
    %c1_36 = arith.constant 1 : index
    %c0_37 = arith.constant 0 : index
    %30 = vector.load %arg7[%c1_35, %c1_36, %c0_37] : memref<18x18x8xbf16, #tpu.memory_space<vmem>>, vector<16x16x8xbf16>
    %31 = vector.shape_cast %30 : vector<16x16x8xbf16> to vector<256x8xbf16>
    %c4 = arith.constant 4 : index
    %c0_38 = arith.constant 0 : index
    %c0_39 = arith.constant 0 : index
    %32 = vector.load %arg2[%c4, %c0_38, %c0_39] : memref<9x8x16xbf16, #tpu.memory_space<vmem>>, vector<1x8x16xbf16>
    %33 = vector.shape_cast %32 : vector<1x8x16xbf16> to vector<8x16xbf16>
    %cst_40 = arith.constant dense<0.000000e+00> : vector<256x16xf32>
    %34 = tpu.matmul %31, %33, %cst_40 {dimension_numbers = #tpu.dot_dimension_numbers<[1], [0], [0], [1], [0, 0, 1, 1], [], []>} : vector<256x8xbf16>, vector<8x16xbf16>, vector<256x16xf32> -> vector<256x16xf32>
    %35 = arith.addf %29, %34 : vector<256x16xf32>
    %c1_41 = arith.constant 1 : index
    %c2_42 = arith.constant 2 : index
    %c0_43 = arith.constant 0 : index
    %36 = vector.load %arg7[%c1_41, %c2_42, %c0_43] : memref<18x18x8xbf16, #tpu.memory_space<vmem>>, vector<16x16x8xbf16>
    %37 = vector.shape_cast %36 : vector<16x16x8xbf16> to vector<256x8xbf16>
    %c5 = arith.constant 5 : index
    %c0_44 = arith.constant 0 : index
    %c0_45 = arith.constant 0 : index
    %38 = vector.load %arg2[%c5, %c0_44, %c0_45] : memref<9x8x16xbf16, #tpu.memory_space<vmem>>, vector<1x8x16xbf16>
    %39 = vector.shape_cast %38 : vector<1x8x16xbf16> to vector<8x16xbf16>
    %cst_46 = arith.constant dense<0.000000e+00> : vector<256x16xf32>
    %40 = tpu.matmul %37, %39, %cst_46 {dimension_numbers = #tpu.dot_dimension_numbers<[1], [0], [0], [1], [0, 0, 1, 1], [], []>} : vector<256x8xbf16>, vector<8x16xbf16>, vector<256x16xf32> -> vector<256x16xf32>
    %41 = arith.addf %35, %40 : vector<256x16xf32>
    %c2_47 = arith.constant 2 : index
    %c0_48 = arith.constant 0 : index
    %c0_49 = arith.constant 0 : index
    %42 = vector.load %arg7[%c2_47, %c0_48, %c0_49] : memref<18x18x8xbf16, #tpu.memory_space<vmem>>, vector<16x16x8xbf16>
    %43 = vector.shape_cast %42 : vector<16x16x8xbf16> to vector<256x8xbf16>
    %c6 = arith.constant 6 : index
    %c0_50 = arith.constant 0 : index
    %c0_51 = arith.constant 0 : index
    %44 = vector.load %arg2[%c6, %c0_50, %c0_51] : memref<9x8x16xbf16, #tpu.memory_space<vmem>>, vector<1x8x16xbf16>
    %45 = vector.shape_cast %44 : vector<1x8x16xbf16> to vector<8x16xbf16>
    %cst_52 = arith.constant dense<0.000000e+00> : vector<256x16xf32>
    %46 = tpu.matmul %43, %45, %cst_52 {dimension_numbers = #tpu.dot_dimension_numbers<[1], [0], [0], [1], [0, 0, 1, 1], [], []>} : vector<256x8xbf16>, vector<8x16xbf16>, vector<256x16xf32> -> vector<256x16xf32>
    %47 = arith.addf %41, %46 : vector<256x16xf32>
    %c2_53 = arith.constant 2 : index
    %c1_54 = arith.constant 1 : index
    %c0_55 = arith.constant 0 : index
    %48 = vector.load %arg7[%c2_53, %c1_54, %c0_55] : memref<18x18x8xbf16, #tpu.memory_space<vmem>>, vector<16x16x8xbf16>
    %49 = vector.shape_cast %48 : vector<16x16x8xbf16> to vector<256x8xbf16>
    %c7 = arith.constant 7 : index
    %c0_56 = arith.constant 0 : index
    %c0_57 = arith.constant 0 : index
    %50 = vector.load %arg2[%c7, %c0_56, %c0_57] : memref<9x8x16xbf16, #tpu.memory_space<vmem>>, vector<1x8x16xbf16>
    %51 = vector.shape_cast %50 : vector<1x8x16xbf16> to vector<8x16xbf16>
    %cst_58 = arith.constant dense<0.000000e+00> : vector<256x16xf32>
    %52 = tpu.matmul %49, %51, %cst_58 {dimension_numbers = #tpu.dot_dimension_numbers<[1], [0], [0], [1], [0, 0, 1, 1], [], []>} : vector<256x8xbf16>, vector<8x16xbf16>, vector<256x16xf32> -> vector<256x16xf32>
    %53 = arith.addf %47, %52 : vector<256x16xf32>
    %c2_59 = arith.constant 2 : index
    %c2_60 = arith.constant 2 : index
    %c0_61 = arith.constant 0 : index
    %54 = vector.load %arg7[%c2_59, %c2_60, %c0_61] : memref<18x18x8xbf16, #tpu.memory_space<vmem>>, vector<16x16x8xbf16>
    %55 = vector.shape_cast %54 : vector<16x16x8xbf16> to vector<256x8xbf16>
    %c8 = arith.constant 8 : index
    %c0_62 = arith.constant 0 : index
    %c0_63 = arith.constant 0 : index
    %56 = vector.load %arg2[%c8, %c0_62, %c0_63] : memref<9x8x16xbf16, #tpu.memory_space<vmem>>, vector<1x8x16xbf16>
    %57 = vector.shape_cast %56 : vector<1x8x16xbf16> to vector<8x16xbf16>
    %cst_64 = arith.constant dense<0.000000e+00> : vector<256x16xf32>
    %58 = tpu.matmul %55, %57, %cst_64 {dimension_numbers = #tpu.dot_dimension_numbers<[1], [0], [0], [1], [0, 0, 1, 1], [], []>} : vector<256x8xbf16>, vector<8x16xbf16>, vector<256x16xf32> -> vector<256x16xf32>
    %59 = arith.addf %53, %58 : vector<256x16xf32>
    %c0_65 = arith.constant 0 : index
    %c0_66 = arith.constant 0 : index
    %60 = vector.load %arg3[%c0_65, %c0_66] : memref<1x16xf32, #tpu.memory_space<vmem>>, vector<1x16xf32>
    %61 = vector.broadcast %60 : vector<1x16xf32> to vector<256x16xf32>
    %62 = arith.addf %59, %61 : vector<256x16xf32>
    %cst_67 = arith.constant 0.000000e+00 : f32
    %63 = vector.broadcast %cst_67 : f32 to vector<256x16xf32>
    %64 = arith.maximumf %62, %63 : vector<256x16xf32>
    %cst_68 = arith.constant 0.000000e+00 : bf16
    %65 = vector.broadcast %cst_68 : bf16 to vector<18x18x16xbf16>
    %c0_69 = arith.constant 0 : index
    %c0_70 = arith.constant 0 : index
    %c0_71 = arith.constant 0 : index
    %66 = vector.load %arg8[%c0_69, %c0_70, %c0_71] : memref<18x18x16xbf16, #tpu.memory_space<vmem>>, vector<18x18x16xbf16>
    tpu.vector_store %arg8[%c0_69, %c0_70, %c0_71], %65 {strides = array<i32>} : memref<18x18x16xbf16, #tpu.memory_space<vmem>>, vector<18x18x16xbf16>,
    %67 = arith.truncf %64 : vector<256x16xf32> to vector<256x16xbf16>
    %68 = vector.shape_cast %67 : vector<256x16xbf16> to vector<16x16x16xbf16>
    %c1_72 = arith.constant 1 : index
    %c1_73 = arith.constant 1 : index
    %c0_74 = arith.constant 0 : index
    %69 = vector.load %arg8[%c1_72, %c1_73, %c0_74] : memref<18x18x16xbf16, #tpu.memory_space<vmem>>, vector<16x16x16xbf16>
    tpu.vector_store %arg8[%c1_72, %c1_73, %c0_74], %68 {strides = array<i32>} : memref<18x18x16xbf16, #tpu.memory_space<vmem>>, vector<16x16x16xbf16>,
    %cst_75 = arith.constant 0.000000e+00 : f32
    %70 = vector.broadcast %cst_75 : f32 to vector<256x128xf32>
    %c0_76 = arith.constant 0 : index
    %c0_77 = arith.constant 0 : index
    %c0_78 = arith.constant 0 : index
    %71 = vector.load %arg8[%c0_76, %c0_77, %c0_78] : memref<18x18x16xbf16, #tpu.memory_space<vmem>>, vector<16x16x16xbf16>
    %72 = vector.shape_cast %71 : vector<16x16x16xbf16> to vector<256x16xbf16>
    %c0_79 = arith.constant 0 : index
    %c0_80 = arith.constant 0 : index
    %c0_81 = arith.constant 0 : index
    %73 = vector.load %arg4[%c0_79, %c0_80, %c0_81] : memref<9x16x128xbf16, #tpu.memory_space<vmem>>, vector<1x16x128xbf16>
    %74 = vector.shape_cast %73 : vector<1x16x128xbf16> to vector<16x128xbf16>
    %cst_82 = arith.constant dense<0.000000e+00> : vector<256x128xf32>
    %75 = tpu.matmul %72, %74, %cst_82 {dimension_numbers = #tpu.dot_dimension_numbers<[1], [0], [0], [1], [0, 0, 1, 1], [], []>} : vector<256x16xbf16>, vector<16x128xbf16>, vector<256x128xf32> -> vector<256x128xf32>
    %76 = arith.addf %70, %75 : vector<256x128xf32>
    %c0_83 = arith.constant 0 : index
    %c1_84 = arith.constant 1 : index
    %c0_85 = arith.constant 0 : index
    %77 = vector.load %arg8[%c0_83, %c1_84, %c0_85] : memref<18x18x16xbf16, #tpu.memory_space<vmem>>, vector<16x16x16xbf16>
    %78 = vector.shape_cast %77 : vector<16x16x16xbf16> to vector<256x16xbf16>
    %c1_86 = arith.constant 1 : index
    %c0_87 = arith.constant 0 : index
    %c0_88 = arith.constant 0 : index
    %79 = vector.load %arg4[%c1_86, %c0_87, %c0_88] : memref<9x16x128xbf16, #tpu.memory_space<vmem>>, vector<1x16x128xbf16>
    %80 = vector.shape_cast %79 : vector<1x16x128xbf16> to vector<16x128xbf16>
    %cst_89 = arith.constant dense<0.000000e+00> : vector<256x128xf32>
    %81 = tpu.matmul %78, %80, %cst_89 {dimension_numbers = #tpu.dot_dimension_numbers<[1], [0], [0], [1], [0, 0, 1, 1], [], []>} : vector<256x16xbf16>, vector<16x128xbf16>, vector<256x128xf32> -> vector<256x128xf32>
    %82 = arith.addf %76, %81 : vector<256x128xf32>
    %c0_90 = arith.constant 0 : index
    %c2_91 = arith.constant 2 : index
    %c0_92 = arith.constant 0 : index
    %83 = vector.load %arg8[%c0_90, %c2_91, %c0_92] : memref<18x18x16xbf16, #tpu.memory_space<vmem>>, vector<16x16x16xbf16>
    %84 = vector.shape_cast %83 : vector<16x16x16xbf16> to vector<256x16xbf16>
    %c2_93 = arith.constant 2 : index
    %c0_94 = arith.constant 0 : index
    %c0_95 = arith.constant 0 : index
    %85 = vector.load %arg4[%c2_93, %c0_94, %c0_95] : memref<9x16x128xbf16, #tpu.memory_space<vmem>>, vector<1x16x128xbf16>
    %86 = vector.shape_cast %85 : vector<1x16x128xbf16> to vector<16x128xbf16>
    %cst_96 = arith.constant dense<0.000000e+00> : vector<256x128xf32>
    %87 = tpu.matmul %84, %86, %cst_96 {dimension_numbers = #tpu.dot_dimension_numbers<[1], [0], [0], [1], [0, 0, 1, 1], [], []>} : vector<256x16xbf16>, vector<16x128xbf16>, vector<256x128xf32> -> vector<256x128xf32>
    %88 = arith.addf %82, %87 : vector<256x128xf32>
    %c1_97 = arith.constant 1 : index
    %c0_98 = arith.constant 0 : index
    %c0_99 = arith.constant 0 : index
    %89 = vector.load %arg8[%c1_97, %c0_98, %c0_99] : memref<18x18x16xbf16, #tpu.memory_space<vmem>>, vector<16x16x16xbf16>
    %90 = vector.shape_cast %89 : vector<16x16x16xbf16> to vector<256x16xbf16>
    %c3_100 = arith.constant 3 : index
    %c0_101 = arith.constant 0 : index
    %c0_102 = arith.constant 0 : index
    %91 = vector.load %arg4[%c3_100, %c0_101, %c0_102] : memref<9x16x128xbf16, #tpu.memory_space<vmem>>, vector<1x16x128xbf16>
    %92 = vector.shape_cast %91 : vector<1x16x128xbf16> to vector<16x128xbf16>
    %cst_103 = arith.constant dense<0.000000e+00> : vector<256x128xf32>
    %93 = tpu.matmul %90, %92, %cst_103 {dimension_numbers = #tpu.dot_dimension_numbers<[1], [0], [0], [1], [0, 0, 1, 1], [], []>} : vector<256x16xbf16>, vector<16x128xbf16>, vector<256x128xf32> -> vector<256x128xf32>
    %94 = arith.addf %88, %93 : vector<256x128xf32>
    %c1_104 = arith.constant 1 : index
    %c1_105 = arith.constant 1 : index
    %c0_106 = arith.constant 0 : index
    %95 = vector.load %arg8[%c1_104, %c1_105, %c0_106] : memref<18x18x16xbf16, #tpu.memory_space<vmem>>, vector<16x16x16xbf16>
    %96 = vector.shape_cast %95 : vector<16x16x16xbf16> to vector<256x16xbf16>
    %c4_107 = arith.constant 4 : index
    %c0_108 = arith.constant 0 : index
    %c0_109 = arith.constant 0 : index
    %97 = vector.load %arg4[%c4_107, %c0_108, %c0_109] : memref<9x16x128xbf16, #tpu.memory_space<vmem>>, vector<1x16x128xbf16>
    %98 = vector.shape_cast %97 : vector<1x16x128xbf16> to vector<16x128xbf16>
    %cst_110 = arith.constant dense<0.000000e+00> : vector<256x128xf32>
    %99 = tpu.matmul %96, %98, %cst_110 {dimension_numbers = #tpu.dot_dimension_numbers<[1], [0], [0], [1], [0, 0, 1, 1], [], []>} : vector<256x16xbf16>, vector<16x128xbf16>, vector<256x128xf32> -> vector<256x128xf32>
    %100 = arith.addf %94, %99 : vector<256x128xf32>
    %c1_111 = arith.constant 1 : index
    %c2_112 = arith.constant 2 : index
    %c0_113 = arith.constant 0 : index
    %101 = vector.load %arg8[%c1_111, %c2_112, %c0_113] : memref<18x18x16xbf16, #tpu.memory_space<vmem>>, vector<16x16x16xbf16>
    %102 = vector.shape_cast %101 : vector<16x16x16xbf16> to vector<256x16xbf16>
    %c5_114 = arith.constant 5 : index
    %c0_115 = arith.constant 0 : index
    %c0_116 = arith.constant 0 : index
    %103 = vector.load %arg4[%c5_114, %c0_115, %c0_116] : memref<9x16x128xbf16, #tpu.memory_space<vmem>>, vector<1x16x128xbf16>
    %104 = vector.shape_cast %103 : vector<1x16x128xbf16> to vector<16x128xbf16>
    %cst_117 = arith.constant dense<0.000000e+00> : vector<256x128xf32>
    %105 = tpu.matmul %102, %104, %cst_117 {dimension_numbers = #tpu.dot_dimension_numbers<[1], [0], [0], [1], [0, 0, 1, 1], [], []>} : vector<256x16xbf16>, vector<16x128xbf16>, vector<256x128xf32> -> vector<256x128xf32>
    %106 = arith.addf %100, %105 : vector<256x128xf32>
    %c2_118 = arith.constant 2 : index
    %c0_119 = arith.constant 0 : index
    %c0_120 = arith.constant 0 : index
    %107 = vector.load %arg8[%c2_118, %c0_119, %c0_120] : memref<18x18x16xbf16, #tpu.memory_space<vmem>>, vector<16x16x16xbf16>
    %108 = vector.shape_cast %107 : vector<16x16x16xbf16> to vector<256x16xbf16>
    %c6_121 = arith.constant 6 : index
    %c0_122 = arith.constant 0 : index
    %c0_123 = arith.constant 0 : index
    %109 = vector.load %arg4[%c6_121, %c0_122, %c0_123] : memref<9x16x128xbf16, #tpu.memory_space<vmem>>, vector<1x16x128xbf16>
    %110 = vector.shape_cast %109 : vector<1x16x128xbf16> to vector<16x128xbf16>
    %cst_124 = arith.constant dense<0.000000e+00> : vector<256x128xf32>
    %111 = tpu.matmul %108, %110, %cst_124 {dimension_numbers = #tpu.dot_dimension_numbers<[1], [0], [0], [1], [0, 0, 1, 1], [], []>} : vector<256x16xbf16>, vector<16x128xbf16>, vector<256x128xf32> -> vector<256x128xf32>
    %112 = arith.addf %106, %111 : vector<256x128xf32>
    %c2_125 = arith.constant 2 : index
    %c1_126 = arith.constant 1 : index
    %c0_127 = arith.constant 0 : index
    %113 = vector.load %arg8[%c2_125, %c1_126, %c0_127] : memref<18x18x16xbf16, #tpu.memory_space<vmem>>, vector<16x16x16xbf16>
    %114 = vector.shape_cast %113 : vector<16x16x16xbf16> to vector<256x16xbf16>
    %c7_128 = arith.constant 7 : index
    %c0_129 = arith.constant 0 : index
    %c0_130 = arith.constant 0 : index
    %115 = vector.load %arg4[%c7_128, %c0_129, %c0_130] : memref<9x16x128xbf16, #tpu.memory_space<vmem>>, vector<1x16x128xbf16>
    %116 = vector.shape_cast %115 : vector<1x16x128xbf16> to vector<16x128xbf16>
    %cst_131 = arith.constant dense<0.000000e+00> : vector<256x128xf32>
    %117 = tpu.matmul %114, %116, %cst_131 {dimension_numbers = #tpu.dot_dimension_numbers<[1], [0], [0], [1], [0, 0, 1, 1], [], []>} : vector<256x16xbf16>, vector<16x128xbf16>, vector<256x128xf32> -> vector<256x128xf32>
    %118 = arith.addf %112, %117 : vector<256x128xf32>
    %c2_132 = arith.constant 2 : index
    %c2_133 = arith.constant 2 : index
    %c0_134 = arith.constant 0 : index
    %119 = vector.load %arg8[%c2_132, %c2_133, %c0_134] : memref<18x18x16xbf16, #tpu.memory_space<vmem>>, vector<16x16x16xbf16>
    %120 = vector.shape_cast %119 : vector<16x16x16xbf16> to vector<256x16xbf16>
    %c8_135 = arith.constant 8 : index
    %c0_136 = arith.constant 0 : index
    %c0_137 = arith.constant 0 : index
    %121 = vector.load %arg4[%c8_135, %c0_136, %c0_137] : memref<9x16x128xbf16, #tpu.memory_space<vmem>>, vector<1x16x128xbf16>
    %122 = vector.shape_cast %121 : vector<1x16x128xbf16> to vector<16x128xbf16>
    %cst_138 = arith.constant dense<0.000000e+00> : vector<256x128xf32>
    %123 = tpu.matmul %120, %122, %cst_138 {dimension_numbers = #tpu.dot_dimension_numbers<[1], [0], [0], [1], [0, 0, 1, 1], [], []>} : vector<256x16xbf16>, vector<16x128xbf16>, vector<256x128xf32> -> vector<256x128xf32>
    %124 = arith.addf %118, %123 : vector<256x128xf32>
    %c0_139 = arith.constant 0 : index
    %c0_140 = arith.constant 0 : index
    %125 = vector.load %arg5[%c0_139, %c0_140] : memref<1x128xf32, #tpu.memory_space<vmem>>, vector<1x128xf32>
    %126 = vector.broadcast %125 : vector<1x128xf32> to vector<256x128xf32>
    %127 = arith.addf %124, %126 : vector<256x128xf32>
    %128 = tpu.iota {dimensions = array<i32: 1>} : vector<256x128xi32>
    %c27_i32 = arith.constant 27 : i32
    %129 = vector.broadcast %c27_i32 : i32 to vector<256x128xi32>
    %130 = arith.cmpi sge, %128, %129 : vector<256x128xi32>
    %c51_i32 = arith.constant 51 : i32
    %131 = vector.broadcast %c51_i32 : i32 to vector<256x128xi32>
    %132 = arith.cmpi slt, %128, %131 : vector<256x128xi32>
    %133 = arith.andi %130, %132 : vector<256x128xi1>
    %134 = math.tanh %127 : vector<256x128xf32>
    %135 = arith.select %133, %134, %127 : vector<256x128xi1>, vector<256x128xf32>
    %c0_141 = arith.constant 0 : index
    %c0_142 = arith.constant 0 : index
    %c0_143 = arith.constant 0 : index
    %136 = vector.load %arg6[%c0_141, %c0_142, %c0_143] : memref<1x256x128xf32, #tpu.memory_space<vmem>>, vector<1x256x128xf32>
    %137 = vector.shape_cast %136 : vector<1x256x128xf32> to vector<256x128xf32>
    %138 = vector.shape_cast %135 : vector<256x128xf32> to vector<1x256x128xf32>
    tpu.vector_store %arg6[%c0_141, %c0_142, %c0_143], %138 {strides = array<i32>} : memref<1x256x128xf32, #tpu.memory_space<vmem>>, vector<1x256x128xf32>,
    return
  }
  func.func @transform_0(%arg0: i32) -> (i32, i32, i32, i32) {
    %c0_i32 = arith.constant 0 : i32
    %c0_i32_0 = arith.constant 0 : i32
    %c0_i32_1 = arith.constant 0 : i32
    %c0_i32_2 = arith.constant 0 : i32
    return %arg0, %c0_i32, %c0_i32_0, %c0_i32_1 : i32, i32, i32, i32
  }
  func.func @transform_1(%arg0: i32) -> (i32, i32, i32) {
    %c0_i32 = arith.constant 0 : i32
    %c0_i32_0 = arith.constant 0 : i32
    %c0_i32_1 = arith.constant 0 : i32
    %c0_i32_2 = arith.constant 0 : i32
    return %c0_i32, %c0_i32_0, %c0_i32_1 : i32, i32, i32
  }
  func.func @transform_2(%arg0: i32) -> (i32, i32) {
    %c0_i32 = arith.constant 0 : i32
    %c0_i32_0 = arith.constant 0 : i32
    %c0_i32_1 = arith.constant 0 : i32
    return %c0_i32, %c0_i32_0 : i32, i32
  }
  func.func @transform_3(%arg0: i32) -> (i32, i32, i32) {
    %c0_i32 = arith.constant 0 : i32
    %c0_i32_0 = arith.constant 0 : i32
    %c0_i32_1 = arith.constant 0 : i32
    %c0_i32_2 = arith.constant 0 : i32
    return %c0_i32, %c0_i32_0, %c0_i32_1 : i32, i32, i32
  }
  func.func @transform_4(%arg0: i32) -> (i32, i32) {
    %c0_i32 = arith.constant 0 : i32
    %c0_i32_0 = arith.constant 0 : i32
    %c0_i32_1 = arith.constant 0 : i32
    return %c0_i32, %c0_i32_0 : i32, i32
  }
  func.func @transform_5(%arg0: i32) -> (i32, i32, i32) {
    %c0_i32 = arith.constant 0 : i32
    %c0_i32_0 = arith.constant 0 : i32
    %c0_i32_1 = arith.constant 0 : i32
    return %arg0, %c0_i32, %c0_i32_0 : i32, i32, i32
  }
}

</mosaic_0001>

<bundles_post_ra>
// kernel: prediction_module_forward.1
= control target key start
LH: loop header
LB: loop body
LE: loop exit
PB: predicated region body
PF: predicated region fallthrough
CT: control target
= control target key end

     0   :  { %s13216_s18 = smov 0   ;;  %s17047_s0 = inlined_call_operand.vmem [shape: bf16[2,16,16,8], index: 0, kind: input, shape index: {}]   ;;  %s17048_s1 = inlined_call_operand.vmem [shape: bf16[9,8,16], index: 1, kind: input, shape index: {}]   ;;  %s17049_s2 = inlined_call_operand.vmem [shape: f32[1,16], index: 2, kind: input, shape index: {}]   ;;  %s17050_s3 = inlined_call_operand.vmem [shape: bf16[9,16,128], index: 3, kind: input, shape index: {}]   ;;  %s17051_s4 = inlined_call_operand.vmem [shape: f32[1,128], index: 4, kind: input, shape index: {}]   ;;  %s17052_s5 = inlined_call_operand.vmem [shape: f32[2,256,128], index: 5, kind: output, shape index: {}]  }
   0x1 LB: > { %s10755_s19 = sadd.s32 4294967295, %s13183_s18   ;;  %p10759_p0 = scmp.ge.s32.totalorder %s13183_s18, 1  ;;  %s13183_s18 = sphi %s13216_s18, %s15_s18  }
   0x2   : > { %p187_p1 = scmp.lt.s32.totalorder %s13183_s18, 3 }
   0x4   : > { %p188_p2 = pnand %p10759_p0, %p187_p1 }
   0x6   : > { %191 = sbr.rel (%p188_p2) target bundleno = 1727 (0x6bf), region = 40 }
   0xd   : > { %v10764_v0 = vld [vmem:[%s17048_s1 + $0x4] sm:$0xf]  ;;  %vm1290_vm0 = vcmask 1043456   ;;  %vm226_vm1 = vcmask 60416   ;;  %vm229_vm2 = vcmask 57344   ;;  %v17053_v2 = vmov 0  }
   0xe   : > { %12969 = vmatprep.subr.msk.bf16.mxu0 %vm1290_vm0, %v10764_v0  ;;  %v1292_v1 = vsel %vm1290_vm0, %v10764_v0, 0  ;;  %227 = vst.msk [vmem:[#allocation2] sm:$0xf] %vm226_vm1, %v17053_v2  ;;  %228 = vst.msk [vmem:[#allocation2 + $0x4] sm:$0xf] %vm226_vm1, %v17053_v2  ;;  %p215_p3 = scmp.lt.s32.totalorder %s10755_s19, 1 }
   0xf   : > { %230 = vst.msk [vmem:[#allocation2 + $0x8] sm:$0x1] %vm229_vm2, %v17053_v2  ;;  %233 = vst.msk [vmem:[#allocation2 + $0x14] sm:$0x1] %vm229_vm2, %v17053_v2  ;;  %11846 = vmatpush3.bf16.msra.mxu0 %v1292_v1  ;;  %v13340_v3 = vld [vmem:[%s17048_s1] sm:$0xf] }
  0x10   : > { %231 = vst.msk [vmem:[#allocation2 + $0xc] sm:$0xf] %vm226_vm1, %v17053_v2  ;;  %232 = vst.msk [vmem:[#allocation2 + $0x10] sm:$0xf] %vm226_vm1, %v17053_v2  ;;  %vm804_vm3 = vsmask.f32 3328  ;;  %12970 = vmatprep.subr.msk.bf16.mxu0 %vm1290_vm0, %v13340_v3 }
  0x11   : > { %234 = vst.msk [vmem:[#allocation2 + $0x18] sm:$0xf] %vm226_vm1, %v17053_v2  ;;  %235 = vst.msk [vmem:[#allocation2 + $0x1c] sm:$0xf] %vm226_vm1, %v17053_v2  ;;  %vm805_vm4 = vsmask.f32 7440 }
  0x12   : > { %236 = vst.msk [vmem:[#allocation2 + $0x20] sm:$0x1] %vm229_vm2, %v17053_v2  ;;  %239 = vst.msk [vmem:[#allocation2 + $0x2c] sm:$0x1] %vm229_vm2, %v17053_v2  ;;  %s17448_s19 = smov (!%p215_p3, %s10755_s19), 1  ;;  %vm1241_vm9 = vcmask 64512  }
  0x13   : > { %237 = vst.msk [vmem:[#allocation2 + $0x24] sm:$0xf] %vm226_vm1, %v17053_v2  ;;  %238 = vst.msk [vmem:[#allocation2 + $0x28] sm:$0xf] %vm226_vm1, %v17053_v2  ;;  %vm314_vm5 = vsmask.f32 256 }
  0x14   : > { %240 = vst.msk [vmem:[#allocation2 + $0x30] sm:$0xf] %vm226_vm1, %v17053_v2  ;;  %241 = vst.msk [vmem:[#allocation2 + $0x34] sm:$0xf] %vm226_vm1, %v17053_v2  ;;  %vm315_vm6 = vsmask.f32 4368 }
  0x15   : > { %242 = vst.msk [vmem:[#allocation2 + $0x38] sm:$0x1] %vm229_vm2, %v17053_v2  ;;  %245 = vst.msk [vmem:[#allocation2 + $0x44] sm:$0x1] %vm229_vm2, %v17053_v2  ;;  %vm639_vm7 = vsmask.f32 7938 }
  0x16   : > { %243 = vst.msk [vmem:[#allocation2 + $0x3c] sm:$0xf] %vm226_vm1, %v17053_v2  ;;  %244 = vst.msk [vmem:[#allocation2 + $0x40] sm:$0xf] %vm226_vm1, %v17053_v2  ;;  %s11505_s24 = sshll.u32 %s17448_s19, 7  ;;  %v17169_v38 = vmov 0 }
  0x17   : > { %246 = vst.msk [vmem:[#allocation2 + $0x48] sm:$0xf] %vm226_vm1, %v17053_v2  ;;  %247 = vst.msk [vmem:[#allocation2 + $0x4c] sm:$0xf] %vm226_vm1, %v17053_v2  ;;  %s13354_s27 = scalar_lea.vmem %s17047_s0, %s11505_s24  ;;  %v755_v4 = vld [vmem:[#allocation2] sm:$0xf] }
  0x18   : > { %248 = vst.msk [vmem:[#allocation2 + $0x50] sm:$0x1] %vm229_vm2, %v17053_v2  ;;  %251 = vst.msk [vmem:[#allocation2 + $0x5c] sm:$0x1] %vm229_vm2, %v17053_v2  ;;  %v756_v5 = vld [vmem:[#allocation2 + $0x4] sm:$0xf] }
  0x19   : > { %249 = vst.msk [vmem:[#allocation2 + $0x54] sm:$0xf] %vm226_vm1, %v17053_v2  ;;  %250 = vst.msk [vmem:[#allocation2 + $0x58] sm:$0xf] %vm226_vm1, %v17053_v2  ;;  %v788_v6 = vld [vmem:[#allocation2 + $0x8] sm:$0x1] }
  0x1a   : > { %252 = vst.msk [vmem:[#allocation2 + $0x60] sm:$0xf] %vm226_vm1, %v17053_v2  ;;  %253 = vst.msk [vmem:[#allocation2 + $0x64] sm:$0xf] %vm226_vm1, %v17053_v2  ;;  %v808_v7 = vshrl.u32 %v755_v4, 16  ;;  %v811_v8 = vshll.u32 %v755_v4, 16 }
  0x1b   : > { %254 = vst.msk [vmem:[#allocation2 + $0x68] sm:$0x1] %vm229_vm2, %v17053_v2  ;;  %257 = vst.msk [vmem:[#allocation2 + $0x74] sm:$0x1] %vm229_vm2, %v17053_v2  ;;  %v817_v9 = vshll.u32 %v756_v5, 16  ;;  %v821_v10 = vshrl.u32 %v756_v5, 16 }
  0x1c   : > { %255 = vst.msk [vmem:[#allocation2 + $0x6c] sm:$0xf] %vm226_vm1, %v17053_v2  ;;  %256 = vst.msk [vmem:[#allocation2 + $0x70] sm:$0xf] %vm226_vm1, %v17053_v2  ;;  %v282_v11 = vld [vmem:[%s13354_s27] sm:$0xf] }
  0x1d   : > { %258 = vst.msk [vmem:[#allocation2 + $0x78] sm:$0xf] %vm226_vm1, %v17053_v2  ;;  %259 = vst.msk [vmem:[#allocation2 + $0x7c] sm:$0xf] %vm226_vm1, %v17053_v2  ;;  %v827_v12 = vshll.u32 %v788_v6, 16  ;;  %v318_v14 = vshrl.u32 %v282_v11, 16 }
  0x1e   : > { %260 = vst.msk [vmem:[#allocation2 + $0x80] sm:$0x1] %vm229_vm2, %v17053_v2  ;;  %263 = vst.msk [vmem:[#allocation2 + $0x8c] sm:$0x1] %vm229_vm2, %v17053_v2  ;;  %v283_v13 = vld [vmem:[%s13354_s27 + $0x4] sm:$0xf] }
  0x1f   : > { %261 = vst.msk [vmem:[#allocation2 + $0x84] sm:$0xf] %vm226_vm1, %v17053_v2  ;;  %262 = vst.msk [vmem:[#allocation2 + $0x88] sm:$0xf] %vm226_vm1, %v17053_v2  ;;  %v321_v15 = vshll.u32 %v282_v11, 16  ;;  %v810_v16 = vrot.slane %v808_v7, 4 }
  0x20   : > { %264 = vst.msk [vmem:[#allocation2 + $0x90] sm:$0xf] %vm226_vm1, %v17053_v2  ;;  %265 = vst.msk [vmem:[#allocation2 + $0x94] sm:$0xf] %vm226_vm1, %v17053_v2  ;;  %v813_v17 = vrot.slane %v811_v8, 5  ;;  %v819_v18 = vrot.slane %v817_v9, 5 }
  0x21   : > { %266 = vst.msk [vmem:[#allocation2 + $0x98] sm:$0x1] %vm229_vm2, %v17053_v2  ;;  %269 = vst.msk [vmem:[#allocation2 + $0xa4] sm:$0x1] %vm229_vm2, %v17053_v2  ;;  %v823_v19 = vrot.slane %v821_v10, 4  ;;  %v320_v21 = vrot.slane %v318_v14, 7 }
  0x22   : > { %267 = vst.msk [vmem:[#allocation2 + $0x9c] sm:$0xf] %vm226_vm1, %v17053_v2  ;;  %268 = vst.msk [vmem:[#allocation2 + $0xa0] sm:$0xf] %vm226_vm1, %v17053_v2  ;;  %v326_v22 = vshrl.u32 %v283_v13, 16  ;;  %v329_v23 = vshll.u32 %v283_v13, 16  ;;  %v814_v25 = vor.u32 %v813_v17, %v810_v16 }
  0x23   : > { %270 = vst.msk [vmem:[#allocation2 + $0xa8] sm:$0xf] %vm226_vm1, %v17053_v2  ;;  %271 = vst.msk [vmem:[#allocation2 + $0xac] sm:$0xf] %vm226_vm1, %v17053_v2  ;;  %v641_v24 = vld [vmem:[#allocation2 + $0xc] sm:$0xf]  ;;  %v824_v26 = vor.u32 %v823_v19, %v819_v18  ;;  %v323_v31 = vor.u32 %v321_v15, %v320_v21 }
  0x24   : > { %272 = vst.msk [vmem:[#allocation2 + $0xb0] sm:$0x1] %vm229_vm2, %v17053_v2  ;;  %275 = vst.msk [vmem:[#allocation2 + $0xbc] sm:$0x1] %vm229_vm2, %v17053_v2  ;;  %v829_v27 = vrot.slane %v827_v12, 5  ;;  %v324_v32 = vrot.slane %v320_v21, 4 }
  0x25   : > { %273 = vst.msk [vmem:[#allocation2 + $0xb4] sm:$0xf] %vm226_vm1, %v17053_v2  ;;  %274 = vst.msk [vmem:[#allocation2 + $0xb8] sm:$0xf] %vm226_vm1, %v17053_v2  ;;  %v284_v29 = vld [vmem:[%s13354_s27 + $0x8] sm:$0xf] }
  0x26   : > { %276 = vst.msk [vmem:[#allocation2 + $0xc0] sm:$0xf] %vm226_vm1, %v17053_v2  ;;  %277 = vst.msk [vmem:[#allocation2 + $0xc4] sm:$0xf] %vm226_vm1, %v17053_v2  ;;  %v285_v30 = vld [vmem:[%s13354_s27 + $0xc] sm:$0xf] }
  0x27   : > { %278 = vst.msk [vmem:[#allocation2 + $0xc8] sm:$0x1] %vm229_vm2, %v17053_v2  ;;  %281 = vst.msk [vmem:[#allocation2 + $0xd4] sm:$0x1] %vm229_vm2, %v17053_v2  ;;  %v328_v33 = vrot.slane %v326_v22, 7  ;;  %v335_v35 = vshrl.u32 %v284_v29, 16 }
  0x28   : > { %279 = vst.msk [vmem:[#allocation2 + $0xcc] sm:$0xf] %vm226_vm1, %v17053_v2  ;;  %280 = vst.msk [vmem:[#allocation2 + $0xd0] sm:$0xf] %vm226_vm1, %v17053_v2  ;;  %v815_v36 = vrot.slane %v814_v25, 4  ;;  %v825_v37 = vrot.slane %v824_v26, 4 }
  0x29   : > { %vm13360_vm8 = vmor %vm804_vm3, %vm805_vm4  ;;  %v647_v39 = vld [vmem:[#allocation2 + $0x14] sm:$0x1]  ;;  %v338_v40 = vshll.u32 %v284_v29, 16  ;;  %v343_v41 = vshrl.u32 %v285_v30, 16  ;;  %v331_v42 = vor.u32 %v329_v23, %v328_v33  ;;  %v333_v43 = vrot.slane %v328_v33, 4  ;;  %s11506_s20 = sshll.u32 %s17448_s19, 8 }
  0x2a   : > { %vm13366_vm10 = vmand %vm226_vm1, %vm639_vm7  ;;  %v337_v45 = vrot.slane %v335_v35, 7  ;;  %v286_v46 = vld [vmem:[%s13354_s27 + $0x10] sm:$0xf]  ;;  %v820_v47 = vsel %vm13360_vm8, %v815_v36, %v819_v18  ;;  %v830_v48 = vsel %vm13360_vm8, %v825_v37, %v829_v27  ;;  %v346_v50 = vshll.u32 %v285_v30, 16  ;;  %v650_v51 = vld [vmem:[#allocation2 + $0x18] sm:$0xf]  ;;  %s16921_s23 = scalar_lea.vmem %s17052_s5, %s11506_s20 }
  0x2b   : > { %vm13374_vm11 = vmand %vm229_vm2, %vm314_vm5  ;;  %v642_v44 = vsel %vm13366_vm10, %v323_v31, %v641_v24  ;;  %v345_v49 = vrot.slane %v343_v41, 7  ;;  %v287_v52 = vld [vmem:[%s13354_s27 + $0x14] sm:$0xf]  ;;  %v10765_v53 = vcombine.low %v820_v47, %v830_v48  ;;  %v654_v57 = vld [vmem:[#allocation2 + $0x20] sm:$0x1]  ;;  %v352_v62 = vshrl.u32 %v286_v46, 16 }
  0x2c   : > { %vm13380_vm12 = vmor %vm314_vm5, %vm315_vm6  ;;  %643 = vst [vmem:[#allocation2 + $0xc] sm:$0xf] %v642_v44  ;;  %v648_v55 = vsel %vm13374_vm11, %v333_v43, %v647_v39  ;;  %v340_v56 = vor.u32 %v338_v40, %v337_v45  ;;  %v288_v58 = vld [vmem:[%s13354_s27 + $0x18] sm:$0xf]  ;;  %v341_v59 = vrot.slane %v337_v45, 4  ;;  %v355_v1 = vshll.u32 %v286_v46, 16 }
  0x2d   : > { %v17170_v38 = vsel %vm13380_vm12, 4294967295, %v17169_v38  ;;  %v332_v54 = vsel %vm13380_vm12, %v324_v32, %v331_v42  ;;  %649 = vst [vmem:[#allocation2 + $0x14] sm:$0x1] %v648_v55  ;;  %v348_v60 = vor.u32 %v346_v50, %v345_v49  ;;  %v350_v61 = vrot.slane %v345_v49, 4  ;;  %v289_v63 = vld [vmem:[%s13354_s27 + $0x1c] sm:$0xf]  ;;  %11847 = vmatprep.mubr.msk.bf16.mxu0 %vm1241_vm9, %v10765_v53 }
  0x2e   : > { %17171 = vst [vmem:[#allocation4_spill] sm:$0xff] %v17170_v38  ;;  %644 = vst.msk [vmem:[#allocation2 + $0x10] sm:$0xf] %vm226_vm1, %v332_v54  ;;  %v651_v0 = vsel %vm13366_vm10, %v340_v56, %v650_v51  ;;  %v360_v4 = vshrl.u32 %v287_v52, 16  ;;  %v363_v5 = vshll.u32 %v287_v52, 16  ;;  %v354_v8 = vrot.slane %v352_v62, 7 }
  0x2f   : > { %v349_v6 = vsel %vm13380_vm12, %v341_v59, %v348_v60  ;;  %652 = vst [vmem:[#allocation2 + $0x18] sm:$0xf] %v651_v0  ;;  %v655_v7 = vsel %vm13374_vm11, %v350_v61, %v654_v57  ;;  %v369_v9 = vshrl.u32 %v288_v58, 16  ;;  %v657_v11 = vld [vmem:[#allocation2 + $0x24] sm:$0xf]  ;;  %v372_v12 = vshll.u32 %v288_v58, 16 }
  0x30   : > { %653 = vst.msk [vmem:[#allocation2 + $0x1c] sm:$0xf] %vm226_vm1, %v349_v6  ;;  %656 = vst [vmem:[#allocation2 + $0x20] sm:$0x1] %v655_v7  ;;  %v362_v10 = vrot.slane %v360_v4, 7  ;;  %v377_v13 = vshrl.u32 %v289_v63, 16  ;;  %v357_v15 = vor.u32 %v355_v1, %v354_v8 }
  0x31   : > { %v380_v14 = vshll.u32 %v289_v63, 16  ;;  %v358_v16 = vrot.slane %v354_v8, 4  ;;  %v661_v17 = vld [vmem:[#allocation2 + $0x2c] sm:$0x1]  ;;  %v371_v18 = vrot.slane %v369_v9, 7  ;;  %v13411_v21 = vsel %vm1290_vm0, %v13340_v3, 0 }
  0x32   : > { %v365_v22 = vor.u32 %v363_v5, %v362_v10  ;;  %v367_v23 = vrot.slane %v362_v10, 4  ;;  %v379_v24 = vrot.slane %v377_v13, 7  ;;  %v658_v27 = vsel %vm13366_vm10, %v357_v15, %v657_v11  ;;  %v664_v30 = vld [vmem:[#allocation2 + $0x30] sm:$0xf]  ;;  %v13418_v31 = vld [vmem:[%s13354_s27 + $0x20] sm:$0xf] }
  0x33   : > { %v13407_v19 = vld [vmem:[#allocation2 + $0xc] sm:$0xf]  ;;  %v374_v29 = vor.u32 %v372_v12, %v371_v18  ;;  %659 = vst [vmem:[#allocation2 + $0x24] sm:$0xf] %v658_v27  ;;  %v375_v36 = vrot.slane %v371_v18, 4  ;;  %v386_v46 = vshrl.u32 %v13418_v31, 16 }
  0x34   : > { %v832_v25 = vshrl.u32 %v13407_v19, 16  ;;  %v835_v26 = vshll.u32 %v13407_v19, 16  ;;  %v789_v33 = vld [vmem:[#allocation2 + $0x14] sm:$0x1]  ;;  %v366_v3 = vsel %vm13380_vm12, %v358_v16, %v365_v22  ;;  %v662_v35 = vsel %vm13374_vm11, %v367_v23, %v661_v17  ;;  %v668_v62 = vld [vmem:[#allocation2 + $0x38] sm:$0x1] }
  0x35   : > { %v13420_v32 = vld [vmem:[#allocation2 + $0x10] sm:$0xf]  ;;  %v382_v37 = vor.u32 %v380_v14, %v379_v24  ;;  %660 = vst.msk [vmem:[#allocation2 + $0x28] sm:$0xf] %vm226_vm1, %v366_v3  ;;  %663 = vst [vmem:[#allocation2 + $0x2c] sm:$0x1] %v662_v35  ;;  %v665_v53 = vsel %vm13366_vm10, %v374_v29, %v664_v30 }
  0x36   : > { %v834_v39 = vrot.slane %v832_v25, 4  ;;  %v837_v40 = vrot.slane %v835_v26, 5  ;;  %v841_v41 = vshll.u32 %v13420_v32, 16  ;;  %v845_v42 = vshrl.u32 %v13420_v32, 16  ;;  %v759_v44 = vld [vmem:[#allocation2 + $0x18] sm:$0xf] }
  0x37   : > { %v851_v43 = vshll.u32 %v789_v33, 16  ;;  %v383_v45 = vsel %vm13380_vm12, %v375_v36, %v382_v37  ;;  %v389_v47 = vshll.u32 %v13418_v31, 16  ;;  %v760_v51 = vld [vmem:[#allocation2 + $0x1c] sm:$0xf]  ;;  %v790_v52 = vld [vmem:[#allocation2 + $0x20] sm:$0x1] }
  0x38   : > { %v838_v48 = vor.u32 %v837_v40, %v834_v39  ;;  %v843_v49 = vrot.slane %v841_v41, 5  ;;  %v847_v50 = vrot.slane %v845_v42, 4  ;;  %667 = vst.msk [vmem:[#allocation2 + $0x34] sm:$0xf] %vm226_vm1, %v383_v45  ;;  %v856_v55 = vshrl.u32 %v759_v44, 16 }
  0x39   : > { %v853_v54 = vrot.slane %v851_v43, 5  ;;  %v859_v56 = vshll.u32 %v759_v44, 16  ;;  %v865_v57 = vshll.u32 %v760_v51, 16  ;;  %666 = vst [vmem:[#allocation2 + $0x30] sm:$0xf] %v665_v53  ;;  %v869_v60 = vshrl.u32 %v760_v51, 16 }
  0x3a   : > { %v839_v58 = vrot.slane %v838_v48, 4  ;;  %v848_v59 = vor.u32 %v847_v50, %v843_v49  ;;  %v875_v61 = vshll.u32 %v790_v52, 16  ;;  %v858_v63 = vrot.slane %v856_v55, 4  ;;  %v761_v9 = vld [vmem:[#allocation2 + $0x24] sm:$0xf] }
  0x3b   : > { %v861_v0 = vrot.slane %v859_v56, 5  ;;  %v867_v1 = vrot.slane %v865_v57, 5  ;;  %v384_v4 = vrot.slane %v379_v24, 4  ;;  %v871_v7 = vrot.slane %v869_v60, 4  ;;  %v291_v45 = vld [vmem:[%s13354_s27 + $0x24] sm:$0xf] }
  0x3c   : > { %v844_v5 = vsel %vm13360_vm8, %v839_v58, %v843_v49  ;;  %v849_v6 = vrot.slane %v848_v59, 4  ;;  %v877_v8 = vrot.slane %v875_v61, 5  ;;  %v762_v11 = vld [vmem:[#allocation2 + $0x28] sm:$0xf]  ;;  %v791_v12 = vld [vmem:[#allocation2 + $0x2c] sm:$0x1] }
  0x3d   : > { %v862_v10 = vor.u32 %v861_v0, %v858_v63  ;;  %v880_v13 = vshrl.u32 %v761_v9, 16  ;;  %v883_v14 = vshll.u32 %v761_v9, 16  ;;  %v669_v15 = vsel %vm13374_vm11, %v384_v4, %v668_v62  ;;  %v671_v56 = vld [vmem:[#allocation2 + $0x3c] sm:$0xf]  ;;  %v292_v61 = vld [vmem:[%s13354_s27 + $0x28] sm:$0xf] }
  0x3e   : > { %v854_v16 = vsel %vm13360_vm8, %v849_v6, %v853_v54  ;;  %v872_v17 = vor.u32 %v871_v7, %v867_v1  ;;  %v889_v18 = vshll.u32 %v762_v11, 16  ;;  %v893_v22 = vshrl.u32 %v762_v11, 16  ;;  %670 = vst [vmem:[#allocation2 + $0x38] sm:$0x1] %v669_v15  ;;  %v293_v7 = vld [vmem:[%s13354_s27 + $0x2c] sm:$0xf] }
  0x3f   : > { %v10766_v23 = vcombine.low %v844_v5, %v854_v16  ;;  %v863_v24 = vrot.slane %v862_v10, 4  ;;  %v882_v25 = vrot.slane %v880_v13, 4  ;;  %v885_v26 = vrot.slane %v883_v14, 5  ;;  %v764_v27 = vld [vmem:[#allocation2 + $0x34] sm:$0xf] }
  0x40   : > { %v873_v29 = vrot.slane %v872_v17, 4  ;;  %v891_v30 = vrot.slane %v889_v18, 5  ;;  %v895_v33 = vrot.slane %v893_v22, 4  ;;  %v899_v3 = vshll.u32 %v791_v12, 16  ;;  %v763_v35 = vld [vmem:[#allocation2 + $0x30] sm:$0xf] }
  0x41   : > { %11848 = vmatmul.mubr.msk.bf16.vlgmr.msra.gmra.mrb[0].mxu0 %vm1241_vm9, %v10766_v23  ;;  %v868_v36 = vsel %vm13360_vm8, %v863_v24, %v867_v1  ;;  %v886_v37 = vor.u32 %v885_v26, %v882_v25  ;;  %v904_v39 = vshrl.u32 %v763_v35, 16  ;;  %v907_v40 = vshll.u32 %v763_v35, 16  ;;  %v675_v11 = vld [vmem:[#allocation2 + $0x44] sm:$0x1]  ;;  %v294_v13 = vld [vmem:[%s13354_s27 + $0x30] sm:$0xf] }
  0x42   : > { %11880 = vmatpush3.bf16.msra.mxu0 %v13411_v21  ;;  %v878_v41 = vsel %vm13360_vm8, %v873_v29, %v877_v8  ;;  %v896_v42 = vor.u32 %v895_v33, %v891_v30  ;;  %v901_v43 = vrot.slane %v899_v3, 5  ;;  %v913_v44 = vshll.u32 %v764_v27, 16  ;;  %v295_v23 = vld [vmem:[%s13354_s27 + $0x34] sm:$0xf]  ;;  %v678_v26 = vld [vmem:[#allocation2 + $0x48] sm:$0xf] }
  0x43   : > { %v10767_v48 = vcombine.low %v868_v36, %v878_v41  ;;  %v887_v49 = vrot.slane %v886_v37, 4  ;;  %v906_v50 = vrot.slane %v904_v39, 4  ;;  %v909_v51 = vrot.slane %v907_v40, 5  ;;  %v682_v37 = vld [vmem:[#allocation2 + $0x50] sm:$0x1] }
  0x44   : > { %v897_v52 = vrot.slane %v896_v42, 4  ;;  %v915_v53 = vrot.slane %v913_v44, 5  ;;  %v917_v54 = vshrl.u32 %v764_v27, 16  ;;  %v388_v55 = vrot.slane %v386_v46, 7  ;;  %v14028_v34 = vld [vmem:[#allocation2 + $0x34] sm:$0xf] }
  0x45   : > { %11851 = vmatprep.mubr.msk.bf16.mxu0 %vm1241_vm9, %v10767_v48  ;;  %v892_v21 = vsel %vm13360_vm8, %v887_v49, %v891_v30  ;;  %v792_v57 = vld [vmem:[#allocation2 + $0x38] sm:$0x1]  ;;  %v910_v58 = vor.u32 %v909_v51, %v906_v50  ;;  %v394_v59 = vshrl.u32 %v291_v45, 16  ;;  %v397_v60 = vshll.u32 %v291_v45, 16 }
  0x46   : > { %v902_v62 = vsel %vm13360_vm8, %v897_v52, %v901_v43  ;;  %v919_v63 = vrot.slane %v917_v54, 4  ;;  %v923_v0 = vshll.u32 %v792_v57, 16  ;;  %v391_v46 = vor.u32 %v389_v47, %v388_v55  ;;  %v296_v30 = vld [vmem:[%s13354_s27 + $0x38] sm:$0xf]  ;;  %v297_v43 = vld [vmem:[%s13354_s27 + $0x3c] sm:$0xf] }
  0x47   : > { %v10768_v1 = vcombine.low %v892_v21, %v902_v62  ;;  %v911_v4 = vrot.slane %v910_v58, 4  ;;  %v392_v5 = vrot.slane %v388_v55, 4  ;;  %v396_v6 = vrot.slane %v394_v59, 7  ;;  %v689_v57 = vld [vmem:[#allocation2 + $0x5c] sm:$0x1] }
  0x48   : > { %v920_v8 = vor.u32 %v919_v63, %v915_v53  ;;  %v925_v9 = vrot.slane %v923_v0, 5  ;;  %v672_v10 = vsel %vm13366_vm10, %v391_v46, %v671_v56  ;;  %v403_v12 = vshrl.u32 %v292_v61, 16 }
  0x49   : > { %11852 = vmatmul.mubr.msk.bf16.gmra.mrb[4].mxu0 %vm1241_vm9, %v10768_v1  ;;  %v916_v31 = vsel %vm13360_vm8, %v911_v4, %v915_v53  ;;  %v399_v47 = vor.u32 %v397_v60, %v396_v6  ;;  %v401_v14 = vrot.slane %v396_v6, 4  ;;  %673 = vst [vmem:[#allocation2 + $0x3c] sm:$0xf] %v672_v10  ;;  %v406_v15 = vshll.u32 %v292_v61, 16  ;;  %v685_v53 = vld [vmem:[#allocation2 + $0x54] sm:$0xf] }
  0x4a   : > { %v921_v16 = vrot.slane %v920_v8, 4  ;;  %v405_v17 = vrot.slane %v403_v12, 7  ;;  %v411_v18 = vshrl.u32 %v293_v7, 16  ;;  %v414_v22 = vshll.u32 %v293_v7, 16  ;;  %v298_v6 = vld [vmem:[%s13354_s27 + $0x40] sm:$0xf] }
  0x4b   : > { %v400_v24 = vsel %vm13380_vm12, %v392_v5, %v399_v47  ;;  %v676_v25 = vsel %vm13374_vm11, %v401_v14, %v675_v11  ;;  %v420_v27 = vshrl.u32 %v294_v13, 16  ;;  %v423_v29 = vshll.u32 %v294_v13, 16  ;;  %v692_v5 = vld [vmem:[#allocation2 + $0x60] sm:$0xf] }
  0x4c   : > { %v926_v33 = vsel %vm13360_vm8, %v921_v16, %v925_v9  ;;  %674 = vst.msk [vmem:[#allocation2 + $0x40] sm:$0xf] %vm226_vm1, %v400_v24  ;;  %677 = vst [vmem:[#allocation2 + $0x44] sm:$0x1] %v676_v25  ;;  %v408_v3 = vor.u32 %v406_v15, %v405_v17  ;;  %v409_v35 = vrot.slane %v405_v17, 4  ;;  %v413_v36 = vrot.slane %v411_v18, 7 }
  0x4d   : > { %v10769_v39 = vcombine.low %v916_v31, %v926_v33  ;;  %v422_v40 = vrot.slane %v420_v27, 7  ;;  %v428_v41 = vshrl.u32 %v295_v23, 16  ;;  %v431_v42 = vshll.u32 %v295_v23, 16  ;;  %v696_v15 = vld [vmem:[#allocation2 + $0x68] sm:$0x1] }
  0x4e   : > { %v416_v44 = vor.u32 %v414_v22, %v413_v36  ;;  %v418_v45 = vrot.slane %v413_v36, 4  ;;  %v679_v48 = vsel %vm13366_vm10, %v408_v3, %v678_v26  ;;  %v437_v49 = vshrl.u32 %v296_v30, 16 }
  0x4f   : > { %11855 = vmatprep.mubr.msk.bf16.mxu0 %vm1241_vm9, %v10769_v39  ;;  %680 = vst [vmem:[#allocation2 + $0x48] sm:$0xf] %v679_v48  ;;  %v425_v50 = vor.u32 %v423_v29, %v422_v40  ;;  %v426_v51 = vrot.slane %v422_v40, 4  ;;  %v430_v52 = vrot.slane %v428_v41, 7  ;;  %v440_v54 = vshll.u32 %v296_v30, 16 }
  0x50   : > { %v765_v55 = vld [vmem:[#allocation2 + $0x3c] sm:$0xf]  ;;  %v417_v56 = vsel %vm13380_vm12, %v409_v35, %v416_v44  ;;  %v683_v21 = vsel %vm13374_vm11, %v418_v45, %v682_v37  ;;  %v439_v58 = vrot.slane %v437_v49, 7  ;;  %v445_v59 = vshrl.u32 %v297_v43, 16  ;;  %v13499_v35 = vld [vmem:[%s17048_s1 + $0x8] sm:$0xf] }
  0x51   : > { %v928_v60 = vshrl.u32 %v765_v55, 16  ;;  %v931_v61 = vshll.u32 %v765_v55, 16  ;;  %681 = vst.msk [vmem:[#allocation2 + $0x4c] sm:$0xf] %vm226_vm1, %v417_v56  ;;  %684 = vst [vmem:[#allocation2 + $0x50] sm:$0x1] %v683_v21  ;;  %v433_v62 = vor.u32 %v431_v42, %v430_v52  ;;  %v686_v0 = vsel %vm13366_vm10, %v425_v50, %v685_v53  ;;  %12971 = vmatprep.subr.msk.bf16.mxu0 %vm1290_vm0, %v13499_v35 }
  0x52   : > { %v435_v63 = vrot.slane %v430_v52, 4  ;;  %v442_v46 = vor.u32 %v440_v54, %v439_v58  ;;  %v443_v1 = vrot.slane %v439_v58, 4  ;;  %v447_v4 = vrot.slane %v445_v59, 7  ;;  %687 = vst [vmem:[#allocation2 + $0x54] sm:$0xf] %v686_v0 }
  0x53   : > { %v766_v7 = vld [vmem:[#allocation2 + $0x40] sm:$0xf]  ;;  %v793_v8 = vld [vmem:[#allocation2 + $0x44] sm:$0x1]  ;;  %v930_v9 = vrot.slane %v928_v60, 4  ;;  %v933_v10 = vrot.slane %v931_v61, 5  ;;  %v434_v11 = vsel %vm13380_vm12, %v426_v51, %v433_v62  ;;  %v10798_v58 = vcombine.low %v13407_v19, %v13420_v32 }
  0x54   : > { %v690_v12 = vsel %vm13374_vm11, %v435_v63, %v689_v57  ;;  %v937_v13 = vshll.u32 %v766_v7, 16  ;;  %v941_v31 = vshrl.u32 %v766_v7, 16  ;;  %v947_v47 = vshll.u32 %v793_v8, 16  ;;  %688 = vst.msk [vmem:[#allocation2 + $0x58] sm:$0xf] %vm226_vm1, %v434_v11 }
  0x55   : > { %691 = vst [vmem:[#allocation2 + $0x5c] sm:$0x1] %v690_v12  ;;  %v448_v14 = vshll.u32 %v297_v43, 16  ;;  %v934_v16 = vor.u32 %v933_v10, %v930_v9  ;;  %v452_v17 = vrot.slane %v447_v4, 4  ;;  %v693_v18 = vsel %vm13366_vm10, %v442_v46, %v692_v5 }
  0x56   : > { %v454_v22 = vshrl.u32 %v298_v6, 16  ;;  %v939_v23 = vrot.slane %v937_v13, 5  ;;  %v943_v24 = vrot.slane %v941_v31, 4  ;;  %v949_v25 = vrot.slane %v947_v47, 5  ;;  %v767_v26 = vld [vmem:[#allocation2 + $0x48] sm:$0xf] }
  0x57   : > { %v450_v27 = vor.u32 %v448_v14, %v447_v4  ;;  %694 = vst [vmem:[#allocation2 + $0x60] sm:$0xf] %v693_v18  ;;  %v935_v29 = vrot.slane %v934_v16, 4  ;;  %v952_v30 = vshrl.u32 %v767_v26, 16  ;;  %v955_v33 = vshll.u32 %v767_v26, 16 }
  0x58   : > { %v697_v3 = vsel %vm13374_vm11, %v452_v17, %v696_v15  ;;  %v944_v36 = vor.u32 %v943_v24, %v939_v23  ;;  %v13501_v37 = vld [vmem:[#allocation2 + $0x4c] sm:$0xf]  ;;  %v794_v39 = vld [vmem:[#allocation2 + $0x50] sm:$0x1]  ;;  %v13505_v41 = vrot.slane %v454_v22, 7  ;;  %v457_v42 = vshll.u32 %v298_v6, 16 }
  0x59   : > { %v451_v40 = vsel %vm13380_vm12, %v443_v1, %v450_v27  ;;  %698 = vst [vmem:[#allocation2 + $0x68] sm:$0x1] %v697_v3  ;;  %v940_v43 = vsel %vm13360_vm8, %v935_v29, %v939_v23  ;;  %v954_v44 = vrot.slane %v952_v30, 4  ;;  %v957_v45 = vrot.slane %v955_v33, 5  ;;  %v13514_v52 = vld [vmem:[#allocation2 + $0x54] sm:$0xf] }
  0x5a   : > { %v961_v48 = vshll.u32 %v13501_v37, 16  ;;  %695 = vst.msk [vmem:[#allocation2 + $0x64] sm:$0xf] %vm226_vm1, %v451_v40  ;;  %v945_v49 = vrot.slane %v944_v36, 4  ;;  %v965_v50 = vshrl.u32 %v13501_v37, 16  ;;  %v971_v51 = vshll.u32 %v794_v39, 16 }
  0x5b   : > { %v13517_v53 = vor.u32 %v457_v42, %v13505_v41  ;;  %v958_v54 = vor.u32 %v957_v45, %v954_v44  ;;  %v13519_v56 = vld [vmem:[#allocation2 + $0x58] sm:$0xf]  ;;  %v976_v57 = vshrl.u32 %v13514_v52, 16  ;;  %v979_v62 = vshll.u32 %v13514_v52, 16  ;;  %v299_v17 = vld [vmem:[%s13354_s27 + $0x44] sm:$0xf] }
  0x5c   : > { %v963_v55 = vrot.slane %v961_v48, 5  ;;  %v795_v21 = vld [vmem:[#allocation2 + $0x5c] sm:$0x1]  ;;  %v950_v59 = vsel %vm13360_vm8, %v945_v49, %v949_v25  ;;  %v967_v60 = vrot.slane %v965_v50, 4  ;;  %v973_v61 = vrot.slane %v971_v51, 5 }
  0x5d   : > { %v10770_v63 = vcombine.low %v940_v43, %v950_v59  ;;  %v959_v0 = vrot.slane %v958_v54, 4  ;;  %v978_v46 = vrot.slane %v976_v57, 4  ;;  %v985_v1 = vshll.u32 %v13519_v56, 16  ;;  %v699_v25 = vld [vmem:[#allocation2 + $0x6c] sm:$0xf] }
  0x5e   : > { %v13528_v4 = vld [vmem:[#allocation2 + $0x60] sm:$0xf]  ;;  %v968_v5 = vor.u32 %v967_v60, %v963_v55  ;;  %v981_v6 = vrot.slane %v979_v62, 5  ;;  %v989_v7 = vshrl.u32 %v13519_v56, 16  ;;  %v995_v8 = vshll.u32 %v795_v21, 16 }
  0x5f   : > { %11856 = vmatmul.mubr.msk.bf16.gmra.mrb[8].mxu0 %vm1241_vm9, %v10770_v63  ;;  %v964_v9 = vsel %vm13360_vm8, %v959_v0, %v963_v55  ;;  %v987_v10 = vrot.slane %v985_v1, 5  ;;  %v1000_v12 = vshrl.u32 %v13528_v4, 16  ;;  %v1003_v13 = vshll.u32 %v13528_v4, 16  ;;  %v300_v26 = vld [vmem:[%s13354_s27 + $0x48] sm:$0xf] }
  0x60   : > { %v796_v11 = vld [vmem:[#allocation2 + $0x68] sm:$0x1]  ;;  %v969_v31 = vrot.slane %v968_v5, 4  ;;  %v982_v47 = vor.u32 %v981_v6, %v978_v46  ;;  %v991_v14 = vrot.slane %v989_v7, 4  ;;  %v997_v15 = vrot.slane %v995_v8, 5 }
  0x61   : > { %v13536_v16 = vld [vmem:[#allocation2 + $0x64] sm:$0xf]  ;;  %v1002_v18 = vrot.slane %v1000_v12, 4  ;;  %v1005_v22 = vrot.slane %v1003_v13, 5  ;;  %v1019_v33 = vshll.u32 %v796_v11, 16  ;;  %v460_v48 = vrot.slane %v13505_v41, 4 }
  0x62   : > { %v1009_v23 = vshll.u32 %v13536_v16, 16  ;;  %v1013_v24 = vshrl.u32 %v13536_v16, 16  ;;  %v974_v27 = vsel %vm13360_vm8, %v969_v31, %v973_v61  ;;  %v983_v29 = vrot.slane %v982_v47, 4  ;;  %v301_v42 = vld [vmem:[%s13354_s27 + $0x4c] sm:$0xf] }
  0x63   : > { %v992_v30 = vor.u32 %v991_v14, %v987_v10  ;;  %v10771_v3 = vcombine.low %v964_v9, %v974_v27  ;;  %v1006_v36 = vor.u32 %v1005_v22, %v1002_v18  ;;  %v1021_v45 = vrot.slane %v1019_v33, 5  ;;  %v302_v55 = vld [vmem:[%s13354_s27 + $0x50] sm:$0xf]  ;;  %v703_v59 = vld [vmem:[#allocation2 + $0x74] sm:$0x1] }
  0x64   : > { %v1011_v39 = vrot.slane %v1009_v23, 5  ;;  %v1015_v40 = vrot.slane %v1013_v24, 4  ;;  %v988_v43 = vsel %vm13360_vm8, %v983_v29, %v987_v10  ;;  %v462_v51 = vshrl.u32 %v299_v17, 16  ;;  %v303_v62 = vld [vmem:[%s13354_s27 + $0x54] sm:$0xf] }
  0x65   : > { %v993_v44 = vrot.slane %v992_v30, 4  ;;  %11859 = vmatprep.mubr.msk.bf16.mxu0 %vm1241_vm9, %v10771_v3  ;;  %v1007_v49 = vrot.slane %v1006_v36, 4  ;;  %v465_v54 = vshll.u32 %v299_v17, 16  ;;  %v700_v57 = vsel %vm13366_vm10, %v13517_v53, %v699_v25  ;;  %v706_v1 = vld [vmem:[#allocation2 + $0x78] sm:$0xf] }
  0x66   : > { %v1016_v50 = vor.u32 %v1015_v40, %v1011_v39  ;;  %v471_v60 = vshrl.u32 %v300_v26, 16  ;;  %v474_v61 = vshll.u32 %v300_v26, 16  ;;  %v464_v46 = vrot.slane %v462_v51, 7  ;;  %701 = vst [vmem:[#allocation2 + $0x6c] sm:$0xf] %v700_v57 }
  0x67   : > { %v998_v21 = vsel %vm13360_vm8, %v993_v44, %v997_v15  ;;  %v1012_v63 = vsel %vm13360_vm8, %v1007_v49, %v1011_v39  ;;  %v479_v6 = vshrl.u32 %v301_v42, 16  ;;  %v482_v7 = vshll.u32 %v301_v42, 16  ;;  %v304_v9 = vld [vmem:[%s13354_s27 + $0x58] sm:$0xf]  ;;  %v710_v12 = vld [vmem:[#allocation2 + $0x80] sm:$0x1] }
  0x68   : > { %v10772_v41 = vcombine.low %v988_v43, %v998_v21  ;;  %v1017_v0 = vrot.slane %v1016_v50, 4  ;;  %v473_v5 = vrot.slane %v471_v60, 7  ;;  %v488_v8 = vshrl.u32 %v302_v55, 16  ;;  %v305_v31 = vld [vmem:[%s13354_s27 + $0x5c] sm:$0xf] }
  0x69   : > { %v467_v10 = vor.u32 %v465_v54, %v464_v46  ;;  %v469_v11 = vrot.slane %v464_v46, 4  ;;  %v491_v13 = vshll.u32 %v302_v55, 16  ;;  %v481_v17 = vrot.slane %v479_v6, 7  ;;  %v713_v25 = vld [vmem:[#allocation2 + $0x84] sm:$0xf] }
  0x6a   : > { %11860 = vmatmul.mubr.msk.bf16.gmra.mrb[12].mxu0 %vm1241_vm9, %v10772_v41  ;;  %v1022_v53 = vsel %vm13360_vm8, %v1017_v0, %v1021_v45  ;;  %v476_v14 = vor.u32 %v474_v61, %v473_v5  ;;  %v477_v15 = vrot.slane %v473_v5, 4  ;;  %v490_v23 = vrot.slane %v488_v8, 7  ;;  %v717_v44 = vld [vmem:[#allocation2 + $0x8c] sm:$0x1]  ;;  %v13581_v55 = vld [vmem:[%s13354_s27 + $0x60] sm:$0xf] }
  0x6b   : > { %v10773_v47 = vcombine.low %v1012_v63, %v1022_v53  ;;  %v468_v18 = vsel %vm13380_vm12, %v460_v48, %v467_v10  ;;  %v704_v22 = vsel %vm13374_vm11, %v469_v11, %v703_v59  ;;  %v496_v24 = vshrl.u32 %v303_v62, 16  ;;  %v720_v61 = vld [vmem:[#allocation2 + $0x90] sm:$0xf]  ;;  %v724_v46 = vld [vmem:[#allocation2 + $0x98] sm:$0x1] }
  0x6c   : > { %702 = vst.msk [vmem:[#allocation2 + $0x70] sm:$0xf] %vm226_vm1, %v468_v18  ;;  %705 = vst [vmem:[#allocation2 + $0x74] sm:$0x1] %v704_v22  ;;  %v484_v26 = vor.u32 %v482_v7, %v481_v17  ;;  %v486_v27 = vrot.slane %v481_v17, 4  ;;  %v707_v29 = vsel %vm13366_vm10, %v476_v14, %v706_v1  ;;  %v499_v30 = vshll.u32 %v303_v62, 16 }
  0x6d   : > { %11863 = vmatprep.mubr.msk.bf16.mxu0 %vm1241_vm9, %v10773_v47  ;;  %708 = vst [vmem:[#allocation2 + $0x78] sm:$0xf] %v707_v29  ;;  %v493_v33 = vor.u32 %v491_v13, %v490_v23  ;;  %v494_v3 = vrot.slane %v490_v23, 4  ;;  %v498_v36 = vrot.slane %v496_v24, 7  ;;  %v505_v39 = vshrl.u32 %v304_v9, 16 }
  0x6e   : > { %v13571_v40 = vld [vmem:[#allocation2 + $0x6c] sm:$0xf]  ;;  %v485_v42 = vsel %vm13380_vm12, %v477_v15, %v484_v26  ;;  %v711_v43 = vsel %vm13374_vm11, %v486_v27, %v710_v12  ;;  %v508_v45 = vshll.u32 %v304_v9, 16  ;;  %v513_v48 = vshrl.u32 %v305_v31, 16 }
  0x6f   : > { %v1024_v49 = vshrl.u32 %v13571_v40, 16  ;;  %v1027_v50 = vshll.u32 %v13571_v40, 16  ;;  %709 = vst.msk [vmem:[#allocation2 + $0x7c] sm:$0xf] %vm226_vm1, %v485_v42  ;;  %712 = vst [vmem:[#allocation2 + $0x80] sm:$0x1] %v711_v43  ;;  %v501_v51 = vor.u32 %v499_v30, %v498_v36  ;;  %v714_v21 = vsel %vm13366_vm10, %v493_v33, %v713_v25 }
  0x70   : > { %v503_v54 = vrot.slane %v498_v36, 4  ;;  %v507_v57 = vrot.slane %v505_v39, 7  ;;  %v515_v59 = vrot.slane %v513_v48, 7  ;;  %v516_v60 = vshll.u32 %v305_v31, 16  ;;  %715 = vst [vmem:[#allocation2 + $0x84] sm:$0xf] %v714_v21 }
  0x71   : > { %v1026_v62 = vrot.slane %v1024_v49, 4  ;;  %v1029_v41 = vrot.slane %v1027_v50, 5  ;;  %v502_v63 = vsel %vm13380_vm12, %v494_v3, %v501_v51  ;;  %v522_v10 = vshrl.u32 %v13581_v55, 16 }
  0x72   : > { %v718_v0 = vsel %vm13374_vm11, %v503_v54, %v717_v44  ;;  %716 = vst.msk [vmem:[#allocation2 + $0x88] sm:$0xf] %vm226_vm1, %v502_v63  ;;  %v510_v1 = vor.u32 %v508_v45, %v507_v57  ;;  %v511_v5 = vrot.slane %v507_v57, 4  ;;  %v518_v6 = vor.u32 %v516_v60, %v515_v59 }
  0x73   : > { %719 = vst [vmem:[#allocation2 + $0x8c] sm:$0x1] %v718_v0  ;;  %v520_v7 = vrot.slane %v515_v59, 4  ;;  %v13590_v8 = vld [vmem:[#allocation2 + $0x70] sm:$0xf]  ;;  %v1030_v53 = vor.u32 %v1029_v41, %v1026_v62  ;;  %v525_v26 = vshll.u32 %v13581_v55, 16 }
  0x74   : > { %v13592_v9 = vld [vmem:[#allocation2 + $0x74] sm:$0x1]  ;;  %v1033_v11 = vshll.u32 %v13590_v8, 16  ;;  %v1037_v12 = vshrl.u32 %v13590_v8, 16  ;;  %v13598_v31 = vld [vmem:[#allocation2 + $0x78] sm:$0xf]  ;;  %v519_v47 = vsel %vm13380_vm12, %v511_v5, %v518_v6  ;;  %v721_v18 = vsel %vm13366_vm10, %v510_v1, %v720_v61 }
  0x75   : > { %v1043_v13 = vshll.u32 %v13592_v9, 16  ;;  %v1031_v14 = vrot.slane %v1030_v53, 4  ;;  %v1048_v15 = vshrl.u32 %v13598_v31, 16  ;;  %v1051_v17 = vshll.u32 %v13598_v31, 16  ;;  %723 = vst.msk [vmem:[#allocation2 + $0x94] sm:$0xf] %vm226_vm1, %v519_v47 }
  0x76   : > { %v1035_v22 = vrot.slane %v1033_v11, 5  ;;  %v1039_v23 = vrot.slane %v1037_v12, 4  ;;  %v13607_v24 = vld [vmem:[#allocation2 + $0x7c] sm:$0xf]  ;;  %722 = vst [vmem:[#allocation2 + $0x90] sm:$0xf] %v721_v18  ;;  %v725_v25 = vsel %vm13374_vm11, %v520_v7, %v724_v46 }
  0x77   : > { %v13612_v27 = vld [vmem:[#allocation2 + $0x80] sm:$0x1]  ;;  %v1050_v29 = vrot.slane %v1048_v15, 4  ;;  %v1053_v30 = vrot.slane %v1051_v17, 5  ;;  %v1057_v33 = vshll.u32 %v13607_v24, 16  ;;  %v1061_v3 = vshrl.u32 %v13607_v24, 16 }
  0x78   : > { %726 = vst [vmem:[#allocation2 + $0x98] sm:$0x1] %v725_v25  ;;  %v1040_v36 = vor.u32 %v1039_v23, %v1035_v22  ;;  %v1045_v39 = vrot.slane %v1043_v13, 5  ;;  %v1067_v42 = vshll.u32 %v13612_v27, 16  ;;  %v13617_v43 = vld [vmem:[#allocation2 + $0x84] sm:$0xf]  ;;  %v1036_v45 = vsel %vm13360_vm8, %v1031_v14, %v1035_v22 }
  0x79   : > { %v13619_v44 = vrot.slane %v522_v10, 7  ;;  %v1054_v48 = vor.u32 %v1053_v30, %v1050_v29  ;;  %v1059_v49 = vrot.slane %v1057_v33, 5  ;;  %v1063_v50 = vrot.slane %v1061_v3, 4  ;;  %v13623_v51 = vld [vmem:[#allocation2 + $0x88] sm:$0xf] }
  0x7a   : > { %v13625_v54 = vld [vmem:[#allocation2 + $0x8c] sm:$0x1]  ;;  %v1041_v55 = vrot.slane %v1040_v36, 4  ;;  %v1069_v21 = vrot.slane %v1067_v42, 5  ;;  %v1072_v57 = vshrl.u32 %v13617_v43, 16  ;;  %v1075_v59 = vshll.u32 %v13617_v43, 16 }
  0x7b   : > { %v1055_v60 = vrot.slane %v1054_v48, 4  ;;  %v1064_v61 = vor.u32 %v1063_v50, %v1059_v49  ;;  %v1081_v62 = vshll.u32 %v13623_v51, 16  ;;  %v1085_v41 = vshrl.u32 %v13623_v51, 16  ;;  %v307_v17 = vld [vmem:[%s13354_s27 + $0x64] sm:$0xf] }
  0x7c   : > { %v1046_v63 = vsel %vm13360_vm8, %v1041_v55, %v1045_v39  ;;  %v1074_v0 = vrot.slane %v1072_v57, 4  ;;  %v1077_v46 = vrot.slane %v1075_v59, 5  ;;  %v1091_v1 = vshll.u32 %v13625_v54, 16  ;;  %v13634_v5 = vld [vmem:[#allocation2 + $0x94] sm:$0xf] }
  0x7d   : > { %v10774_v6 = vcombine.low %v1036_v45, %v1046_v63  ;;  %v1060_v7 = vsel %vm13360_vm8, %v1055_v60, %v1059_v49  ;;  %v1065_v53 = vrot.slane %v1064_v61, 4  ;;  %v1083_v10 = vrot.slane %v1081_v62, 5  ;;  %v13638_v11 = vld [vmem:[#allocation2 + $0x90] sm:$0xf]  ;;  %v727_v29 = vld [vmem:[#allocation2 + $0x9c] sm:$0xf] }
  0x7e   : > { %v1078_v12 = vor.u32 %v1077_v46, %v1074_v0  ;;  %v1087_v13 = vrot.slane %v1085_v41, 4  ;;  %v1093_v47 = vrot.slane %v1091_v1, 5  ;;  %v1096_v15 = vshrl.u32 %v13638_v11, 16  ;;  %v308_v30 = vld [vmem:[%s13354_s27 + $0x68] sm:$0xf] }
  0x7f   : > { %v13640_v14 = vld [vmem:[#allocation2 + $0x98] sm:$0x1]  ;;  %11864 = vmatmul.mubr.msk.bf16.gmra.mrb[16].mxu0 %vm1241_vm9, %v10774_v6  ;;  %v1070_v18 = vsel %vm13360_vm8, %v1065_v53, %v1069_v21  ;;  %v1099_v22 = vshll.u32 %v13638_v11, 16  ;;  %v1105_v23 = vshll.u32 %v13634_v5, 16  ;;  %v1109_v25 = vshrl.u32 %v13634_v5, 16 }
  0x80   : > { %v10775_v33 = vcombine.low %v1060_v7, %v1070_v18  ;;  %v1079_v3 = vrot.slane %v1078_v12, 4  ;;  %v1088_v36 = vor.u32 %v1087_v13, %v1083_v10  ;;  %v1098_v39 = vrot.slane %v1096_v15, 4  ;;  %v309_v50 = vld [vmem:[%s13354_s27 + $0x6c] sm:$0xf]  ;;  %v731_v1 = vld [vmem:[#allocation2 + $0xa4] sm:$0x1] }
  0x81   : > { %v1101_v42 = vrot.slane %v1099_v22, 5  ;;  %v1107_v45 = vrot.slane %v1105_v23, 5  ;;  %v1111_v48 = vrot.slane %v1109_v25, 4  ;;  %v1115_v49 = vshll.u32 %v13640_v14, 16  ;;  %v310_v12 = vld [vmem:[%s13354_s27 + $0x70] sm:$0xf] }
  0x82   : > { %11867 = vmatprep.mubr.msk.bf16.mxu0 %vm1241_vm9, %v10775_v33  ;;  %v1084_v55 = vsel %vm13360_vm8, %v1079_v3, %v1083_v10  ;;  %v1089_v21 = vrot.slane %v1088_v36, 4  ;;  %v527_v57 = vor.u32 %v525_v26, %v13619_v44  ;;  %v528_v59 = vrot.slane %v13619_v44, 4  ;;  %v734_v44 = vld [vmem:[#allocation2 + $0xa8] sm:$0xf]  ;;  %v311_v23 = vld [vmem:[%s13354_s27 + $0x74] sm:$0xf] }
  0x83   : > { %v1102_v60 = vor.u32 %v1101_v42, %v1098_v39  ;;  %v1112_v61 = vor.u32 %v1111_v48, %v1107_v45  ;;  %v1117_v62 = vrot.slane %v1115_v49, 5  ;;  %v530_v41 = vshrl.u32 %v307_v17, 16  ;;  %v738_v33 = vld [vmem:[#allocation2 + $0xb0] sm:$0x1] }
  0x84   : > { %v1094_v63 = vsel %vm13360_vm8, %v1089_v21, %v1093_v47  ;;  %v533_v0 = vshll.u32 %v307_v17, 16  ;;  %v728_v46 = vsel %vm13366_vm10, %v527_v57, %v727_v29  ;;  %v539_v6 = vshrl.u32 %v308_v30, 16 }
  0x85   : > { %v10776_v7 = vcombine.low %v1084_v55, %v1094_v63  ;;  %v1103_v53 = vrot.slane %v1102_v60, 4  ;;  %v1113_v26 = vrot.slane %v1112_v61, 4  ;;  %v532_v10 = vrot.slane %v530_v41, 7  ;;  %729 = vst [vmem:[#allocation2 + $0x9c] sm:$0xf] %v728_v46 }
  0x86   : > { %v541_v13 = vrot.slane %v539_v6, 7  ;;  %v542_v15 = vshll.u32 %v308_v30, 16  ;;  %v547_v18 = vshrl.u32 %v309_v50, 16  ;;  %v550_v22 = vshll.u32 %v309_v50, 16 }
  0x87   : > { %11868 = vmatmul.mubr.msk.bf16.gmra.mrb[20].mxu0 %vm1241_vm9, %v10776_v7  ;;  %v1108_v47 = vsel %vm13360_vm8, %v1103_v53, %v1107_v45  ;;  %v1118_v17 = vsel %vm13360_vm8, %v1113_v26, %v1117_v62  ;;  %v535_v25 = vor.u32 %v533_v0, %v532_v10  ;;  %v537_v29 = vrot.slane %v532_v10, 4  ;;  %v745_v53 = vld [vmem:[#allocation2 + $0xbc] sm:$0x1] }
  0x88   : > { %v10777_v3 = vcombine.low %v1108_v47, %v1118_v17  ;;  %v544_v36 = vor.u32 %v542_v15, %v541_v13  ;;  %v545_v39 = vrot.slane %v541_v13, 4  ;;  %v549_v42 = vrot.slane %v547_v18, 7 }
  0x89   : > { %v536_v30 = vsel %vm13380_vm12, %v528_v59, %v535_v25  ;;  %v732_v48 = vsel %vm13374_vm11, %v537_v29, %v731_v1  ;;  %v556_v49 = vshrl.u32 %v310_v12, 16  ;;  %v559_v50 = vshll.u32 %v310_v12, 16  ;;  %v741_v59 = vld [vmem:[#allocation2 + $0xb4] sm:$0xf] }
  0x8a   : > { %11871 = vmatprep.mubr.msk.bf16.mxu0 %vm1241_vm9, %v10777_v3  ;;  %730 = vst.msk [vmem:[#allocation2 + $0xa0] sm:$0xf] %vm226_vm1, %v536_v30  ;;  %733 = vst [vmem:[#allocation2 + $0xa4] sm:$0x1] %v732_v48  ;;  %v552_v45 = vor.u32 %v550_v22, %v549_v42  ;;  %v554_v55 = vrot.slane %v549_v42, 4  ;;  %v735_v21 = vsel %vm13366_vm10, %v544_v36, %v734_v44  ;;  %v564_v57 = vshrl.u32 %v311_v23, 16 }
  0x8b   : > { %736 = vst [vmem:[#allocation2 + $0xa8] sm:$0xf] %v735_v21  ;;  %v558_v60 = vrot.slane %v556_v49, 7  ;;  %v567_v61 = vshll.u32 %v311_v23, 16  ;;  %v10806_v22 = vcombine.low %v13571_v40, %v13590_v8  ;;  %v10807_v23 = vcombine.low %v13598_v31, %v13607_v24  ;;  %v13134_v48 = vld [vmem:[#allocation2 + $0x10] sm:$0xf] }
  0x8c   : > { %v13677_v62 = vld [vmem:[#allocation2 + $0x9c] sm:$0xf]  ;;  %v553_v41 = vsel %vm13380_vm12, %v545_v39, %v552_v45  ;;  %v739_v63 = vsel %vm13374_vm11, %v554_v55, %v738_v33  ;;  %v566_v0 = vrot.slane %v564_v57, 7  ;;  %v10808_v29 = vcombine.low %v13617_v43, %v13623_v51 }
  0x8d   : > { %v1120_v46 = vshrl.u32 %v13677_v62, 16  ;;  %v1123_v1 = vshll.u32 %v13677_v62, 16  ;;  %737 = vst.msk [vmem:[#allocation2 + $0xac] sm:$0xf] %vm226_vm1, %v553_v41  ;;  %740 = vst [vmem:[#allocation2 + $0xb0] sm:$0x1] %v739_v63  ;;  %v561_v6 = vor.u32 %v559_v50, %v558_v60  ;;  %v10809_v33 = vcombine.low %v13638_v11, %v13634_v5 }
  0x8e   : > { %v562_v7 = vrot.slane %v558_v60, 4  ;;  %v569_v26 = vor.u32 %v567_v61, %v566_v0  ;;  %v571_v10 = vrot.slane %v566_v0, 4  ;;  %v1807_v49 = vrot.slane %v13134_v48, 5 }
  0x8f   : > { %v1122_v44 = vrot.slane %v1120_v46, 4  ;;  %v1125_v12 = vrot.slane %v1123_v1, 5  ;;  %v742_v13 = vsel %vm13366_vm10, %v561_v6, %v741_v59  ;;  %vm1795_vm13 = vcmask 1042432  }
  0x90   : > { %v570_v15 = vsel %vm13380_vm12, %v562_v7, %v569_v26  ;;  %743 = vst [vmem:[#allocation2 + $0xb4] sm:$0xf] %v742_v13  ;;  %v746_v18 = vsel %vm13374_vm11, %v571_v10, %v745_v53  ;;  %vm1796_vm14 = vcmask 1046532   ;;  %v1870_v32 = vrot.slane %v13607_v24, 5  ;;  %v1747_v24 = vld [vmem:[#allocation2] sm:$0xe] }
  0x91   : > { %v13696_v47 = vld [vmem:[#allocation2 + $0xa0] sm:$0xf]  ;;  %v13698_v17 = vld [vmem:[#allocation2 + $0xa4] sm:$0x1]  ;;  %v1126_v25 = vor.u32 %v1125_v12, %v1122_v44  ;;  %744 = vst.msk [vmem:[#allocation2 + $0xb8] sm:$0xf] %vm226_vm1, %v570_v15  ;;  %vm13747_vm15 = vmor %vm1795_vm13, %vm1796_vm14 }
  0x92   : > { %747 = vst [vmem:[#allocation2 + $0xbc] sm:$0x1] %v746_v18  ;;  %v1129_v3 = vshll.u32 %v13696_v47, 16  ;;  %v1133_v36 = vshrl.u32 %v13696_v47, 16  ;;  %v1139_v39 = vshll.u32 %v13698_v17, 16  ;;  %v10810_v30 = vcombine.low %v13677_v62, %v13696_v47 }
  0x93   : > { %v13708_v42 = vld [vmem:[#allocation2 + $0xa8] sm:$0xf]  ;;  %v1127_v55 = vrot.slane %v1126_v25, 4  ;;  %v13148_v62 = vld [vmem:[#allocation2 + $0x20] sm:$0x1]  ;;  %vm6464_vm2 = vcmask 130048  }
  0x94   : > { %v1144_v50 = vshrl.u32 %v13708_v42, 16  ;;  %v1147_v45 = vshll.u32 %v13708_v42, 16  ;;  %v1131_v21 = vrot.slane %v1129_v3, 5  ;;  %v1135_v57 = vrot.slane %v1133_v36, 4  ;;  %v13714_v60 = vld [vmem:[#allocation2 + $0xac] sm:$0xf] }
  0x95   : > { %v13716_v61 = vld [vmem:[#allocation2 + $0xb0] sm:$0x1]  ;;  %v1153_v63 = vshll.u32 %v13714_v60, 16  ;;  %v1157_v0 = vshrl.u32 %v13714_v60, 16  ;;  %v1141_v1 = vrot.slane %v1139_v39, 5 }
  0x96   : > { %v1146_v59 = vrot.slane %v1144_v50, 4  ;;  %v1149_v41 = vrot.slane %v1147_v45, 5  ;;  %v1136_v46 = vor.u32 %v1135_v57, %v1131_v21  ;;  %v1163_v6 = vshll.u32 %v13716_v61, 16  ;;  %v1748_v50 = vld [vmem:[#allocation2 + $0xc] sm:$0xe] }
  0x97   : > { %v1155_v26 = vrot.slane %v1153_v63, 5  ;;  %v1159_v10 = vrot.slane %v1157_v0, 4  ;;  %v13723_v44 = vld [vmem:[#allocation2 + $0xb4] sm:$0xf]  ;;  %v1132_v12 = vsel %vm13360_vm8, %v1127_v55, %v1131_v21 }
  0x98   : > { %v1150_v53 = vor.u32 %v1149_v41, %v1146_v59  ;;  %v1137_v13 = vrot.slane %v1136_v46, 4  ;;  %v1165_v15 = vrot.slane %v1163_v6, 5  ;;  %v13727_v18 = vld [vmem:[#allocation2 + $0xb8] sm:$0xf]  ;;  %v1168_v39 = vshrl.u32 %v13723_v44, 16 }
  0x99   : > { %v13729_v25 = vld [vmem:[#allocation2 + $0xbc] sm:$0x1]  ;;  %v1160_v36 = vor.u32 %v1159_v10, %v1155_v26  ;;  %v1171_v48 = vshll.u32 %v13723_v44, 16  ;;  %v1177_v57 = vshll.u32 %v13727_v18, 16  ;;  %v1181_v55 = vshrl.u32 %v13727_v18, 16 }
  0x9a   : > { %v1151_v3 = vrot.slane %v1150_v53, 4  ;;  %v1142_v45 = vsel %vm13360_vm8, %v1137_v13, %v1141_v1  ;;  %v1187_v21 = vshll.u32 %v13729_v25, 16  ;;  %v1170_v0 = vrot.slane %v1168_v39, 4  ;;  %v13135_v10 = vld [vmem:[#allocation2 + $0x14] sm:$0x1] }
  0x9b   : > { %v10778_v59 = vcombine.low %v1132_v12, %v1142_v45  ;;  %v1161_v63 = vrot.slane %v1160_v36, 4  ;;  %v1173_v46 = vrot.slane %v1171_v48, 5  ;;  %v1179_v6 = vrot.slane %v1177_v57, 5 }
  0x9c   : > { %v1156_v41 = vsel %vm13360_vm8, %v1151_v3, %v1155_v26  ;;  %v1183_v53 = vrot.slane %v1181_v55, 4  ;;  %v1810_v2 = vrot.slane %v13135_v10, 5  ;;  %v1189_v13 = vrot.slane %v1187_v21, 5 }
  0x9d   : > { %11872 = vmatmul.mubr.msk.bf16.gmra.mrb[24].mxu0 %vm1241_vm9, %v10778_v59  ;;  %v1166_v1 = vsel %vm13360_vm8, %v1161_v63, %v1165_v15  ;;  %v10812_v7 = vcombine.low %v13723_v44, %v13727_v18  ;;  %v1174_v3 = vor.u32 %v1173_v46, %v1170_v0  ;;  %v10830_v39 = vrot.slane %v1748_v50, 9  ;;  %v13136_v50 = vld [vmem:[#allocation2] sm:$0xf]  ;;  %v13138_v46 = vld [vmem:[#allocation2 + $0x18] sm:$0xf] }
  0x9e   : > { %v10779_v12 = vcombine.low %v1156_v41, %v1166_v1  ;;  %v1184_v36 = vor.u32 %v1183_v53, %v1179_v6  ;;  %v1809_v48 = vrot.slane %v1807_v49, 4  ;;  %v13764_v41 = vld [vmem:[#allocation2 + $0x4] sm:$0xf]  ;;  %v13771_v53 = vld [vmem:[#allocation2 + $0x1c] sm:$0xf]  ;;  %v2009_v10 = vsel %vm1290_vm0, %v13499_v35, 0 }
  0x9f   : > { %v1175_v45 = vrot.slane %v1174_v3, 4  ;;  %v13754_v15 = vsel %vm13747_vm15, %v10830_v39, %v1807_v49  ;;  %v10797_v63 = vcombine.low %v13136_v50, %v13764_v41  ;;  %v13779_v1 = vld [vmem:[%s17048_s1 + $0xc] sm:$0xf]  ;;  %v1757_v3 = vld [vmem:[#allocation2 + $0x78] sm:$0xe] }
  0xa0   : > { %11875 = vmatprep.mubr.msk.bf16.mxu0 %vm1241_vm9, %v10779_v12  ;;  %v1185_v57 = vrot.slane %v1184_v36, 4  ;;  %v13758_v55 = vsel %vm13747_vm15, %v1809_v48, %v1810_v2  ;;  %v1756_v2 = vld [vmem:[#allocation2 + $0x6c] sm:$0xe]  ;;  %v1863_v12 = vrot.slane %v13590_v8, 5  ;;  %v1758_v36 = vld [vmem:[#allocation2 + $0x84] sm:$0xe] }
  0xa1   : > { %v1180_v21 = vsel %vm13360_vm8, %v1175_v45, %v1179_v6  ;;  %v10847_v0 = vcombine.low %v13754_v15, %v13758_v55  ;;  %v10799_v6 = vcombine.low %v13138_v46, %v13771_v53  ;;  %v1866_v48 = vrot.slane %v13592_v9, 5  ;;  %v13140_v45 = vld [vmem:[#allocation2 + $0x24] sm:$0xf]  ;;  %v13799_v50 = vld [vmem:[#allocation2 + $0x34] sm:$0xf] }
  0xa2   : > { %v1190_v59 = vsel %vm13360_vm8, %v1185_v57, %v1189_v13  ;;  %v10838_v13 = vrot.slane %v1756_v2, 9  ;;  %v1865_v39 = vrot.slane %v1863_v12, 4  ;;  %v13792_v57 = vld [vmem:[#allocation2 + $0x28] sm:$0xf]  ;;  %v10839_v19 = vrot.slane %v1757_v3, 9 }
  0xa3   : > { %v10780_v49 = vcombine.low %v1180_v21, %v1190_v59  ;;  %v10800_v21 = vcombine.low %v13140_v45, %v13792_v57  ;;  %v1759_v59 = vld [vmem:[#allocation2 + $0x90] sm:$0xe]  ;;  %v10840_v2 = vrot.slane %v1758_v36, 9  ;;  %v1877_v46 = vrot.slane %v13623_v51, 5  ;;  %v13147_v51 = vld [vmem:[#allocation2 + $0x8] sm:$0x1] }
  0xa4   : > { %v13789_v35 = vsel %vm13747_vm15, %v10838_v13, %v1863_v12  ;;  %v13804_v9 = vsel %vm13747_vm15, %v1865_v39, %v1866_v48  ;;  %v1872_v13 = vrot.slane %v1870_v32, 4  ;;  %v1880_v12 = vrot.slane %v13625_v54, 5  ;;  %v13149_v44 = vld [vmem:[#allocation2 + $0x2c] sm:$0x1]  ;;  %v1752_v15 = vld [vmem:[#allocation2 + $0x3c] sm:$0xe] }
  0xa5   : > { %11876 = vmatmul.mubr.msk.bf16.gmra.mrb[28].mxu0 %vm1241_vm9, %v10780_v49  ;;  %v13816_v3 = vsel %vm13747_vm15, %v10840_v2, %v1877_v46  ;;  %v1879_v39 = vrot.slane %v1877_v46, 4  ;;  %v10841_v48 = vrot.slane %v1759_v59, 9  ;;  %v1884_v36 = vrot.slane %v13634_v5, 5  ;;  %v13151_v55 = vld [vmem:[#allocation2 + $0x4c] sm:$0xf] }
  0xa6   : > { %11881 = vmatprep.mubr.msk.bf16.mxu0 %vm1241_vm9, %v10797_v63  ;;  %v13143_v63 = vld [vmem:[#allocation2 + $0x30] sm:$0xf]  ;;  %v1894_v54 = vrot.slane %v13698_v17, 5  ;;  %v1905_v17 = vrot.slane %v13727_v18, 5  ;;  %v1824_v18 = vrot.slane %v13149_v44, 5 }
  0xa7   : > { %v10801_v49 = vcombine.low %v13143_v63, %v13799_v50  ;;  %v1887_v63 = vrot.slane %v13640_v14, 5  ;;  %v13829_v2 = vsel %vm13747_vm15, %v1879_v39, %v1880_v12  ;;  %v13833_v59 = vsel %vm13747_vm15, %v10841_v48, %v1884_v36  ;;  %v13864_v14 = vld [vmem:[#allocation2 + $0x40] sm:$0xf] }
  0xa8   : > { %v1886_v46 = vrot.slane %v1884_v36, 4  ;;  %v1898_v48 = vrot.slane %v13714_v60, 5 }
  0xaa   : > { %v13846_v12 = vsel %vm13747_vm15, %v1886_v46, %v1887_v63  ;;  %v13144_v46 = vld [vmem:[#allocation2 + $0x3c] sm:$0xf] }
  0xab   : > { %v10802_v36 = vcombine.low %v13144_v46, %v13864_v14  ;;  %v1749_v46 = vld [vmem:[#allocation2 + $0x18] sm:$0xe] }
  0xad   : > { %11882 = vmatmul.mubr.msk.bf16.vlgmr.msra.gmra.mrb[0].mxu0 %vm1241_vm9, %v10798_v58  ;;  %v1873_v58 = vrot.slane %v13612_v27, 5  ;;  %v13811_v27 = vsel %vm13747_vm15, %v10839_v19, %v1870_v32  ;;  %v1891_v19 = vrot.slane %v13696_v47, 5  ;;  %v1761_v32 = vld [vmem:[#allocation2 + $0xa8] sm:$0xe]  ;;  %v1817_v47 = vrot.slane %v13148_v62, 5 }
  0xae   : > { %11914 = vmatpush3.bf16.msra.mxu0 %v2009_v10  ;;  %11885 = vmatprep.mubr.msk.bf16.mxu0 %vm1241_vm9, %v10799_v6  ;;  %v1760_v6 = vld [vmem:[#allocation2 + $0x9c] sm:$0xe]  ;;  %v10843_v39 = vrot.slane %v1761_v32, 9  ;;  %v1900_v32 = vrot.slane %v1898_v48, 4 }
  0xaf   : > { %12972 = vmatprep.subr.msk.bf16.mxu0 %vm1290_vm0, %v13779_v1  ;;  %v13821_v45 = vsel %vm13747_vm15, %v1872_v13, %v1873_v58  ;;  %v10842_v10 = vrot.slane %v1760_v6, 9  ;;  %v1762_v58 = vld [vmem:[#allocation2 + $0xb4] sm:$0xe]  ;;  %v1893_v13 = vrot.slane %v1891_v19, 4 }
  0xb0   : > { %v13861_v63 = vsel %vm13747_vm15, %v10843_v39, %v1898_v48 }
  0xb1   : > { %v13840_v6 = vsel %vm13747_vm15, %v10842_v10, %v1891_v19  ;;  %v13854_v10 = vsel %vm13747_vm15, %v1893_v13, %v1894_v54  ;;  %v10844_v19 = vrot.slane %v1762_v58, 9  ;;  %v1907_v58 = vrot.slane %v1905_v17, 4  ;;  %v13146_v13 = vld [vmem:[#allocation2 + $0x48] sm:$0xf] }
  0xb3   : > { %v13869_v54 = vsel %vm13747_vm15, %v10844_v19, %v1905_v17  ;;  %v313_v17 = vld [vmem:[%s13354_s27 + $0x7c] sm:$0xf] }
  0xb4   : > { %v584_v31 = vshll.u32 %v313_v17, 16 }
  0xb5   : > { %11886 = vmatmul.mubr.msk.bf16.gmra.mrb[4].mxu0 %vm1241_vm9, %v10800_v21  ;;  %v1901_v21 = vrot.slane %v13716_v61, 5  ;;  %v1908_v61 = vrot.slane %v13729_v25, 5 }
  0xb6   : > { %11889 = vmatprep.mubr.msk.bf16.mxu0 %vm1241_vm9, %v10801_v49  ;;  %v10803_v49 = vcombine.low %v13146_v13, %v13501_v37  ;;  %v10804_v37 = vcombine.low %v13514_v52, %v13519_v56  ;;  %v581_v56 = vshrl.u32 %v313_v17, 16  ;;  %v1751_v17 = vld [vmem:[#allocation2 + $0x30] sm:$0xe] }
  0xb7   : > { %v13874_v39 = vsel %vm13747_vm15, %v1900_v32, %v1901_v21  ;;  %v13880_v48 = vsel %vm13747_vm15, %v1907_v58, %v1908_v61  ;;  %v10805_v21 = vcombine.low %v13528_v4, %v13536_v16  ;;  %v1800_v4 = vrot.slane %v13764_v41, 5 }
  0xb8   : > { %v10860_v25 = vcombine.low %v13861_v63, %v13874_v39  ;;  %v10861_v19 = vcombine.low %v13869_v54, %v13880_v48  ;;  %v13911_v8 = vrot.slane %v581_v56, 7  ;;  %v10829_v32 = vrot.slane %v1747_v24, 9  ;;  %v13948_v24 = vld [vmem:[%s17048_s1 + $0x10] sm:$0xf] }
  0xb9   : > { %v1802_v61 = vrot.slane %v1800_v4, 4  ;;  %v1814_v58 = vrot.slane %v13771_v53, 5  ;;  %v1750_v53 = vld [vmem:[#allocation2 + $0x24] sm:$0xe]  ;;  %v3375_v63 = vrot.slane %v14028_v34, 5  ;;  %v12991_v48 = vld [vmem:[#allocation2 + $0x30] sm:$0xff]  }
  0xba   : > { %v586_v43 = vor.u32 %v584_v31, %v13911_v8  ;;  %v1801_v41 = vsel %vm13747_vm15, %v10829_v32, %v1800_v4  ;;  %v10832_v56 = vrot.slane %v1750_v53, 9  ;;  %v10834_v32 = vrot.slane %v1752_v15, 9 }
  0xbb   : > { %v17177_v15 = vcombine.low %v13816_v3, %v13829_v2  ;;  %v12988_v3 = vld [vmem:[#allocation2 + $0xc] sm:$0xff]   ;;  %v12990_v2 = vld [vmem:[#allocation2 + $0x24] sm:$0xff]  }
  0xbd   : > { %11890 = vmatmul.mubr.msk.bf16.gmra.mrb[8].mxu0 %vm1241_vm9, %v10802_v36  ;;  %v312_v36 = vld [vmem:[%s13354_s27 + $0x78] sm:$0xf] }
  0xbe   : > { %11893 = vmatprep.mubr.msk.bf16.mxu0 %vm1241_vm9, %v10803_v49  ;;  %v573_v52 = vshrl.u32 %v312_v36, 16  ;;  %v576_v40 = vshll.u32 %v312_v36, 16  ;;  %v748_v49 = vld [vmem:[#allocation2 + $0xc0] sm:$0xf]  ;;  %v1828_v36 = vrot.slane %v13799_v50, 5 }
  0xc0   : > { %v575_v16 = vrot.slane %v573_v52, 7 }
  0xc5   : > { %11894 = vmatmul.mubr.msk.bf16.gmra.mrb[12].mxu0 %vm1241_vm9, %v10804_v37  ;;  %v10831_v37 = vrot.slane %v1749_v46, 9 }
  0xc6   : > { %11897 = vmatprep.mubr.msk.bf16.mxu0 %vm1241_vm9, %v10805_v21  ;;  %v1816_v21 = vrot.slane %v1814_v58, 4 }
  0xcd   : > { %11898 = vmatmul.mubr.msk.bf16.gmra.mrb[16].mxu0 %vm1241_vm9, %v10806_v22  ;;  %v578_v22 = vor.u32 %v576_v40, %v575_v16  ;;  %v13150_v40 = vld [vmem:[#allocation2 + $0x38] sm:$0x1] }
  0xce   : > { %11901 = vmatprep.mubr.msk.bf16.mxu0 %vm1241_vm9, %v10807_v23  ;;  %v579_v23 = vrot.slane %v575_v16, 4  ;;  %v10833_v16 = vrot.slane %v1751_v17, 9  ;;  %v1831_v31 = vrot.slane %v13150_v40, 5 }
  0xcf   : > { %v749_v11 = vsel %vm13366_vm10, %v578_v22, %v748_v49  ;;  %v1835_v22 = vrot.slane %v13864_v14, 5 }
  0xd0   : > { %v587_v5 = vsel %vm13380_vm12, %v579_v23, %v586_v43  ;;  %750 = vst [vmem:[#allocation2 + $0xc0] sm:$0xf] %v749_v11  ;;  %v1829_v23 = vsel %vm13747_vm15, %v10833_v16, %v1828_v36 }
  0xd1   : > { %751 = vst.msk [vmem:[#allocation2 + $0xc4] sm:$0xf] %vm226_vm1, %v587_v5  ;;  %v13152_v5 = vld [vmem:[#allocation2 + $0x44] sm:$0x1]  ;;  %v1836_v46 = vsel %vm13747_vm15, %v10834_v32, %v1835_v22  ;;  %v3293_v32 = vld [vmem:[#allocation2 + $0x48] sm:$0xe] }
  0xd2   : > { %v1838_v11 = vrot.slane %v13152_v5, 5  ;;  %vm5387_vm1 = vcmask 122880  }
  0xd3   : > { %vm15128_vm4 = vmand %vm5387_vm1, %vm314_vm5 }
  0xd5   : > { %11902 = vmatmul.mubr.msk.bf16.gmra.mrb[20].mxu0 %vm1241_vm9, %v10808_v29  ;;  %v1803_v29 = vrot.slane %v13147_v51, 5  ;;  %v1753_v51 = vld [vmem:[#allocation2 + $0x48] sm:$0xe] }
  0xd6   : > { %11905 = vmatprep.mubr.msk.bf16.mxu0 %vm1241_vm9, %v10809_v33  ;;  %v17174_v33 = vcombine.low %v13708_v42, %v13714_v60  ;;  %v1821_v42 = vrot.slane %v13792_v57, 5  ;;  %v1818_v60 = vsel %vm13747_vm15, %v1816_v21, %v1817_v47  ;;  %v1830_v57 = vrot.slane %v1828_v36, 4  ;;  %v1754_v47 = vld [vmem:[#allocation2 + $0x54] sm:$0xe] }
  0xd7   : > { %v1804_v28 = vsel %vm13747_vm15, %v1802_v61, %v1803_v29  ;;  %v1837_v61 = vrot.slane %v1835_v22, 4  ;;  %v10835_v14 = vrot.slane %v1753_v51, 9  ;;  %v10836_v17 = vrot.slane %v1754_v47, 9  ;;  %v13001_v51 = vld [vmem:[#allocation2 + $0xa8] sm:$0xff]  }
  0xd8   : > { %v10846_v13 = vcombine.low %v1801_v41, %v1804_v28  ;;  %v1823_v4 = vrot.slane %v1821_v42, 4  ;;  %v1832_v43 = vsel %vm13747_vm15, %v1830_v57, %v1831_v31  ;;  %v13153_v41 = vld [vmem:[#allocation2 + $0x50] sm:$0x1] }
  0xd9   : > { %v10850_v49 = vcombine.low %v1829_v23, %v1832_v43  ;;  %v1845_v28 = vrot.slane %v13153_v41, 5  ;;  %v17175_v23 = vcombine.low %v13789_v35, %v13804_v9  ;;  %v17176_v43 = vcombine.low %v13811_v27, %v13821_v45  ;;  %v752_v9 = vld [vmem:[#allocation2 + $0xc8] sm:$0x1]  ;;  %v12989_v45 = vld [vmem:[#allocation2 + $0x18] sm:$0xff]   ;;  %v2562_v41 = vld [vmem:[#allocation2 + $0xc] sm:$0xf] }
  0xda   : > { %v1825_v50 = vsel %vm13747_vm15, %v1823_v4, %v1824_v18  ;;  %v17179_v35 = vcombine.low %v13840_v6, %v13854_v10  ;;  %v14025_v6 = vld [vmem:[%s17048_s1 + $0x14] sm:$0xf]  ;;  %v3291_v10 = vld [vmem:[#allocation2 + $0x30] sm:$0xe] }
  0xdb   : > { %v10947_v54 = vrot.slane %v3291_v10, 9  ;;  %v3297_v10 = vld [vmem:[#allocation2 + $0x78] sm:$0xe] }
  0xdd   : > { %11906 = vmatmul.mubr.msk.bf16.gmra.mrb[24].mxu0 %vm1241_vm9, %v10810_v30  ;;  %v1815_v30 = vsel %vm13747_vm15, %v10831_v37, %v1814_v58  ;;  %v1839_v58 = vsel %vm13747_vm15, %v1837_v61, %v1838_v11  ;;  %v10949_v11 = vrot.slane %v3293_v32, 9  ;;  %v10953_v32 = vrot.slane %v3297_v10, 9 }
  0xde   : > { %11909 = vmatprep.mubr.msk.bf16.mxu0 %vm1241_vm9, %v17174_v33  ;;  %v10848_v52 = vcombine.low %v1815_v30, %v1818_v60  ;;  %v1755_v60 = vld [vmem:[#allocation2 + $0x60] sm:$0xe]  ;;  %v10851_v53 = vcombine.low %v1836_v46, %v1839_v58  ;;  %v12994_v46 = vld [vmem:[#allocation2 + $0x54] sm:$0xff]   ;;  %v14059_v58 = vld [vmem:[#allocation2 + $0x10] sm:$0xf] }
  0xdf   : > { %v10837_v44 = vrot.slane %v1755_v60, 9  ;;  %v2620_v47 = vshll.u32 %v14059_v58, 16  ;;  %v14072_v60 = vld [vmem:[#allocation2 + $0x68] sm:$0x1] }
  0xe5   : > { %11910 = vmatmul.mubr.msk.bf16.gmra.mrb[28].mxu0 %vm1241_vm9, %v10812_v7  ;;  %v2367_v7 = vsel %vm1290_vm0, %v13779_v1, 0  ;;  %v1822_v1 = vsel %vm13747_vm15, %v10832_v56, %v1821_v42  ;;  %v13155_v42 = vld [vmem:[#allocation2 + $0x64] sm:$0xf]  ;;  %v13156_v56 = vld [vmem:[#allocation2 + $0x5c] sm:$0x1] }
  0xe6   : > { %11915 = vmatprep.mubr.msk.bf16.mxu0 %vm1241_vm9, %v10846_v13  ;;  %v10849_v29 = vcombine.low %v1822_v1, %v1825_v50  ;;  %v13154_v13 = vld [vmem:[#allocation2 + $0x58] sm:$0xf]  ;;  %v1856_v30 = vrot.slane %v13155_v42, 5  ;;  %v1852_v4 = vrot.slane %v13156_v56, 5  ;;  %v2624_v42 = vshrl.u32 %v14059_v58, 16 }
  0xe7   : > { %v1849_v37 = vrot.slane %v13154_v13, 5 }
  0xe8   : > { %v1858_v18 = vrot.slane %v1856_v30, 4  ;;  %v1857_v31 = vsel %vm13747_vm15, %v10837_v44, %v1856_v30  ;;  %v14070_v30 = vld [vmem:[#allocation2 + $0x64] sm:$0xf]  ;;  %v14077_v44 = vld [vmem:[#allocation2 + $0x1c] sm:$0xf] }
  0xe9   : > { %v1850_v57 = vsel %vm13747_vm15, %v10836_v17, %v1849_v37  ;;  %v3406_v17 = vrot.slane %v14072_v60, 5 }
  0xed   : > { %11916 = vmatmul.mubr.msk.bf16.vlgmr.msra.gmra.mrb[0].mxu0 %vm1241_vm9, %v10847_v0  ;;  %v1842_v0 = vrot.slane %v13151_v55, 5  ;;  %v17178_v55 = vcombine.low %v13833_v59, %v13846_v12  ;;  %v3093_v59 = vsel %vm1290_vm0, %v13948_v24, 0  ;;  %v14031_v12 = vld [vmem:[#allocation2 + $0x38] sm:$0x1] }
  0xee   : > { %11948 = vmatpush3.bf16.msra.mxu0 %v2367_v7  ;;  %11919 = vmatprep.mubr.msk.bf16.mxu0 %vm1241_vm9, %v10848_v52  ;;  %v1851_v52 = vrot.slane %v1849_v37, 4  ;;  %v13157_v7 = vld [vmem:[#allocation2 + $0x68] sm:$0x1]  ;;  %v3378_v39 = vrot.slane %v14031_v12, 5 }
  0xef   : > { %12973 = vmatprep.subr.msk.bf16.mxu0 %vm1290_vm0, %v13948_v24  ;;  %v1844_v33 = vrot.slane %v1842_v0, 4  ;;  %v1843_v21 = vsel %vm13747_vm15, %v10835_v14, %v1842_v0  ;;  %v1859_v16 = vrot.slane %v13157_v7, 5  ;;  %v588_v0 = vrot.slane %v13911_v8, 4  ;;  %v12992_v8 = vld [vmem:[#allocation2 + $0x3c] sm:$0xff]  }
  0xf0   : > { %v1853_v40 = vsel %vm13747_vm15, %v1851_v52, %v1852_v4  ;;  %v2565_v4 = vld [vmem:[#allocation2 + $0x18] sm:$0xf]  ;;  %v12995_v7 = vld [vmem:[#allocation2 + $0x60] sm:$0xff]  }
  0xf1   : > { %v1846_v62 = vsel %vm13747_vm15, %v1844_v33, %v1845_v28  ;;  %v1860_v1 = vsel %vm13747_vm15, %v1858_v18, %v1859_v16  ;;  %v10853_v50 = vcombine.low %v1850_v57, %v1853_v40  ;;  %v753_v27 = vsel %vm13374_vm11, %v588_v0, %v752_v9  ;;  %v12993_v33 = vld [vmem:[#allocation2 + $0x48] sm:$0xff]   ;;  %v14079_v16 = vld [vmem:[#allocation2 + $0x14] sm:$0x1]  ;;  %v14094_v0 = vld [vmem:[#allocation2 + $0x20] sm:$0x1] }
  0xf2   : > { %v10852_v36 = vcombine.low %v1843_v21, %v1846_v62  ;;  %v10854_v22 = vcombine.low %v1857_v31, %v1860_v1  ;;  %754 = vst [vmem:[#allocation2 + $0xc8] sm:$0x1] %v753_v27  ;;  %v2611_v21 = vshrl.u32 %v2562_v41, 16  ;;  %v2614_v62 = vshll.u32 %v2562_v41, 16  ;;  %v2568_v9 = vld [vmem:[#allocation2 + $0x24] sm:$0xf] }
  0xf3   : > { %v14081_v40 = vrot.slane %v2620_v47, 5  ;;  %v2626_v31 = vrot.slane %v2624_v42, 4  ;;  %v12997_v41 = vld [vmem:[#allocation2 + $0x78] sm:$0xff]   ;;  %v12998_v42 = vld [vmem:[#allocation2 + $0x84] sm:$0xff]  }
  0xf4   : > { %v2613_v56 = vrot.slane %v2611_v21, 4  ;;  %v2616_v57 = vrot.slane %v2614_v62, 5 }
  0xf5   : > { %11920 = vmatmul.mubr.msk.bf16.gmra.mrb[4].mxu0 %vm1241_vm9, %v10849_v29  ;;  %v14048_v29 = vld [vmem:[#allocation2 + $0x4c] sm:$0xf] }
  0xf6   : > { %11923 = vmatprep.mubr.msk.bf16.mxu0 %vm1241_vm9, %v10850_v49  ;;  %v14050_v49 = vld [vmem:[#allocation2 + $0x50] sm:$0x1]  ;;  %v3389_v61 = vrot.slane %v14048_v29, 5  ;;  %v2617_v27 = vor.u32 %v2616_v57, %v2613_v56  ;;  %v14134_v57 = vld [vmem:[#allocation2 + $0x88] sm:$0xf] }
  0xf7   : > { %v3392_v5 = vrot.slane %v14050_v49, 5 }
  0xf8   : > { %v3391_v14 = vrot.slane %v3389_v61, 4  ;;  %v14057_v28 = vsel %vm13747_vm15, %v10949_v11, %v3389_v61  ;;  %v2654_v11 = vshll.u32 %v14094_v0, 16 }
  0xf9   : > { %17182 = vst [vmem:[#allocation7_spill] sm:$0xff] %v14057_v28  ;;  %v14252_v28 = vld [vmem:[#allocation2 + $0x58] sm:$0xf] }
  0xfa   : > { %v14063_v13 = vsel %vm13747_vm15, %v3391_v14, %v3392_v5  ;;  %v2571_v14 = vld [vmem:[#allocation2 + $0x30] sm:$0xf] }
  0xfb   : > { %17183 = vst [vmem:[#allocation8_spill] sm:$0xff] %v14063_v13 }
  0xfd   : > { %11924 = vmatmul.mubr.msk.bf16.gmra.mrb[8].mxu0 %vm1241_vm9, %v10851_v53  ;;  %v3295_v53 = vld [vmem:[#allocation2 + $0x60] sm:$0xe] }
  0xfe   : > { %11927 = vmatprep.mubr.msk.bf16.mxu0 %vm1241_vm9, %v10852_v36  ;;  %v3403_v36 = vrot.slane %v14070_v30, 5  ;;  %v10951_v52 = vrot.slane %v3295_v53, 9  ;;  %v2662_v53 = vshll.u32 %v2568_v9, 16 }
 0x100   : > { %v3405_v18 = vrot.slane %v3403_v36, 4  ;;  %v14085_v1 = vsel %vm13747_vm15, %v10951_v52, %v3403_v36 }
 0x101   : > { %17184 = vst [vmem:[#allocation9_spill] sm:$0xff] %v14085_v1 }
 0x105   : > { %11928 = vmatmul.mubr.msk.bf16.gmra.mrb[12].mxu0 %vm1241_vm9, %v10853_v50  ;;  %v12996_v50 = vld [vmem:[#allocation2 + $0x6c] sm:$0xff]  }
 0x106   : > { %11931 = vmatprep.mubr.msk.bf16.mxu0 %vm1241_vm9, %v10854_v22  ;;  %v14089_v22 = vsel %vm13747_vm15, %v3405_v18, %v3406_v17  ;;  %v2686_v18 = vshll.u32 %v2571_v14, 16 }
 0x107   : > { %17185 = vst [vmem:[#allocation10_spill] sm:$0xff] %v14089_v22 }
 0x10d   : > { %11932 = vmatmul.mubr.msk.bf16.gmra.mrb[16].mxu0 %vm1241_vm9, %v17175_v23  ;;  %v2635_v23 = vshrl.u32 %v2565_v4, 16 }
 0x10e   : > { %11935 = vmatprep.mubr.msk.bf16.mxu0 %vm1241_vm9, %v17176_v43  ;;  %v2638_v43 = vshll.u32 %v2565_v4, 16  ;;  %v2683_v4 = vshrl.u32 %v2571_v14, 16  ;;  %v2688_v14 = vrot.slane %v2686_v18, 5  ;;  %v14166_v18 = vrot.slane %v2654_v11, 5  ;;  %v3301_v11 = vld [vmem:[#allocation2 + $0xa8] sm:$0xe] }
 0x115   : > { %11936 = vmatmul.mubr.msk.bf16.gmra.mrb[20].mxu0 %vm1241_vm9, %v17177_v15 }
 0x116   : > { %11939 = vmatprep.mubr.msk.bf16.mxu0 %vm1241_vm9, %v17178_v55  ;;  %v2630_v55 = vshll.u32 %v14079_v16, 16 }
 0x118   : > { %v14109_v61 = vrot.slane %v2630_v55, 5  ;;  %v3298_v55 = vld [vmem:[#allocation2 + $0x84] sm:$0xe] }
 0x11d   : > { %11940 = vmatmul.mubr.msk.bf16.gmra.mrb[24].mxu0 %vm1241_vm9, %v17179_v35  ;;  %v2644_v35 = vshll.u32 %v14077_v44, 16 }
 0x11e   : > { %11943 = vmatprep.mubr.msk.bf16.mxu0 %vm1241_vm9, %v10860_v25  ;;  %v3377_v25 = vrot.slane %v3375_v63, 4 }
 0x11f   : > { %v14111_v5 = vrot.slane %v2644_v35, 5  ;;  %v3424_v35 = vrot.slane %v14134_v57, 5 }
 0x120   : > { %v14043_v24 = vsel %vm13747_vm15, %v3377_v25, %v3378_v39  ;;  %v2637_v39 = vrot.slane %v2635_v23, 4  ;;  %v2640_v25 = vrot.slane %v2638_v43, 5  ;;  %v14141_v43 = vld [vmem:[#allocation2 + $0x98] sm:$0x1] }
 0x121   : > { %17181 = vst [vmem:[#allocation6_spill] sm:$0xff] %v14043_v24 }
 0x122   : > { %v2641_v23 = vor.u32 %v2640_v25, %v2637_v39  ;;  %v3426_v39 = vrot.slane %v3424_v35, 4 }
 0x125   : > { %11944 = vmatmul.mubr.msk.bf16.gmra.mrb[28].mxu0 %vm1241_vm9, %v10861_v19  ;;  %v14039_v19 = vsel %vm13747_vm15, %v10947_v54, %v3375_v63 }
 0x126   : > { %11949 = vmatprep.mubr.msk.bf16.mxu0 %vm1241_vm9, %v12988_v3  ;;  %17180 = vst [vmem:[#allocation5_spill] sm:$0xff] %v14039_v19  ;;  %v2627_v3 = vor.u32 %v2626_v31, %v14081_v40  ;;  %v14136_v31 = vld [vmem:[#allocation2 + $0x8c] sm:$0x1]  ;;  %v2740_v19 = vshll.u32 %v14048_v29, 16 }
 0x128   : > { %v14116_v21 = vrot.slane %v2627_v3, 4  ;;  %v10954_v3 = vrot.slane %v3298_v55, 9  ;;  %v2692_v55 = vshll.u32 %v14028_v34, 16 }
 0x12d   : > { %11950 = vmatmul.mubr.msk.bf16.vlgmr.msra.gmra.mrb[0].mxu0 %vm1241_vm9, %v12989_v45  ;;  %v2648_v45 = vshrl.u32 %v14077_v44, 16 }
 0x12e   : > { %11982 = vmatpush3.bf16.msra.mxu0 %v3093_v59  ;;  %11953 = vmatprep.mubr.msk.bf16.mxu0 %vm1241_vm9, %v12990_v2  ;;  %v14100_v2 = vld [vmem:[#allocation2 + $0x7c] sm:$0xf]  ;;  %v14102_v59 = vld [vmem:[#allocation2 + $0x80] sm:$0x1] }
 0x12f   : > { %12974 = vmatprep.subr.msk.bf16.mxu0 %vm1290_vm0, %v14025_v6  ;;  %v3417_v63 = vrot.slane %v14100_v2, 5  ;;  %v3420_v54 = vrot.slane %v14102_v59, 5  ;;  %v14118_v62 = vrot.slane %v2648_v45, 4  ;;  %v3299_v45 = vld [vmem:[#allocation2 + $0x90] sm:$0xe] }
 0x130   : > { %v10955_v25 = vrot.slane %v3299_v45, 9 }
 0x131   : > { %v14122_v47 = vsel %vm13747_vm15, %v10953_v32, %v3417_v63  ;;  %v2685_v32 = vrot.slane %v2683_v4, 4  ;;  %v13000_v4 = vld [vmem:[#allocation2 + $0x9c] sm:$0xff]   ;;  %v2651_v45 = vor.u32 %v14118_v62, %v14111_v5  ;;  %v14195_v62 = vrot.slane %v2692_v55, 5 }
 0x132   : > { %17186 = vst [vmem:[#allocation11_spill] sm:$0xff] %v14122_v47  ;;  %v14233_v47 = vld [vmem:[#allocation2 + $0xb8] sm:$0xf] }
 0x133   : > { %v14204_v37 = vrot.slane %v2651_v45, 4 }
 0x135   : > { %11954 = vmatmul.mubr.msk.bf16.gmra.mrb[4].mxu0 %vm1241_vm9, %v12991_v48  ;;  %v14107_v48 = vld [vmem:[#allocation2 + $0x28] sm:$0xf] }
 0x136   : > { %11957 = vmatprep.mubr.msk.bf16.mxu0 %vm1241_vm9, %v12992_v8  ;;  %v2659_v8 = vshrl.u32 %v2568_v9, 16  ;;  %v2668_v36 = vshll.u32 %v14107_v48, 16  ;;  %v2672_v17 = vshrl.u32 %v14107_v48, 16  ;;  %v3427_v9 = vrot.slane %v14136_v31, 5 }
 0x138   : > { %v14130_v56 = vrot.slane %v2659_v8, 4  ;;  %v2674_v8 = vrot.slane %v2672_v17, 4 }
 0x13d   : > { %11958 = vmatmul.mubr.msk.bf16.gmra.mrb[8].mxu0 %vm1241_vm9, %v12993_v33  ;;  %v3419_v33 = vrot.slane %v3417_v63, 4  ;;  %v3434_v63 = vrot.slane %v14141_v43, 5 }
 0x13e   : > { %11961 = vmatprep.mubr.msk.bf16.mxu0 %vm1241_vm9, %v12994_v46  ;;  %v14114_v46 = vrot.slane %v2617_v27, 4  ;;  %v2664_v27 = vrot.slane %v2662_v53, 5  ;;  %v14154_v53 = vld [vmem:[#allocation2 + $0x2c] sm:$0x1] }
 0x13f   : > { %v14128_v52 = vsel %vm13747_vm15, %v3419_v33, %v3420_v54  ;;  %v14148_v54 = vrot.slane %v2668_v36, 5  ;;  %v14152_v33 = vsel %vm13747_vm15, %v10954_v3, %v3424_v35  ;;  %v14160_v36 = vsel %vm13747_vm15, %v3426_v39, %v3427_v9  ;;  %v14188_v35 = vld [vmem:[#allocation2 + $0x40] sm:$0xf] }
 0x140   : > { %17187 = vst [vmem:[#allocation12_spill] sm:$0xff] %v14128_v52  ;;  %17188 = vst [vmem:[#allocation13_spill] sm:$0xff] %v14152_v33  ;;  %v14178_v9 = vrot.slane %v2641_v23, 4  ;;  %v2665_v39 = vor.u32 %v2664_v27, %v14130_v56  ;;  %v14197_v56 = vld [vmem:[#allocation2 + $0xac] sm:$0xf] }
 0x141   : > { %17189 = vst [vmem:[#allocation14_spill] sm:$0xff] %v14160_v36  ;;  %v14199_v27 = vld [vmem:[#allocation2 + $0xb0] sm:$0x1]  ;;  %v13002_v36 = vld [vmem:[#allocation2 + $0xb4] sm:$0xff]  }
 0x142   : > { %v3448_v15 = vrot.slane %v14199_v27, 5 }
 0x145   : > { %11962 = vmatmul.mubr.msk.bf16.gmra.mrb[12].mxu0 %vm1241_vm9, %v12995_v7  ;;  %v2696_v7 = vshrl.u32 %v14028_v34, 16  ;;  %v2623_v34 = vsel %vm13360_vm8, %v14114_v46, %v14081_v40  ;;  %v2633_v40 = vsel %vm13360_vm8, %v14116_v21, %v14109_v61  ;;  %v2689_v46 = vor.u32 %v2688_v14, %v2685_v32 }
 0x146   : > { %11965 = vmatprep.mubr.msk.bf16.mxu0 %vm1241_vm9, %v12996_v50  ;;  %v14138_v50 = vld [vmem:[#allocation2 + $0x94] sm:$0xf]  ;;  %v2716_v61 = vshll.u32 %v14188_v35, 16  ;;  %v2720_v21 = vshrl.u32 %v14188_v35, 16  ;;  %v10957_v32 = vrot.slane %v3301_v11, 9  ;;  %v14208_v14 = vrot.slane %v2665_v39, 4 }
 0x147   : > { %v3431_v10 = vrot.slane %v14138_v50, 5  ;;  %v2698_v23 = vrot.slane %v2696_v7, 4  ;;  %v2577_v7 = vld [vmem:[#allocation2 + $0x48] sm:$0xf]  ;;  %v14214_v38 = vrot.slane %v2689_v46, 4 }
 0x148   : > { %v2731_v33 = vshrl.u32 %v2577_v7, 16  ;;  %v14229_v46 = vrot.slane %v2716_v61, 5  ;;  %v2722_v52 = vrot.slane %v2720_v21, 4  ;;  %v14244_v61 = vld [vmem:[#allocation2 + $0xc8] sm:$0x1] }
 0x149   : > { %v14164_v17 = vsel %vm13747_vm15, %v10955_v25, %v3431_v10  ;;  %v2675_v25 = vor.u32 %v2674_v8, %v14148_v54  ;;  %v3302_v21 = vld [vmem:[#allocation2 + $0xb4] sm:$0xe] }
 0x14a   : > { %17190 = vst [vmem:[#allocation15_spill] sm:$0xff] %v14164_v17  ;;  %v2733_v1 = vrot.slane %v2731_v33, 4  ;;  %v2723_v24 = vor.u32 %v2722_v52, %v14229_v46 }
 0x14b   : > { %v14210_v55 = vrot.slane %v2675_v25, 4 }
 0x14d   : > { %11966 = vmatmul.mubr.msk.bf16.gmra.mrb[16].mxu0 %vm1241_vm9, %v12997_v41  ;;  %v3433_v41 = vrot.slane %v3431_v10, 4  ;;  %v2574_v10 = vld [vmem:[#allocation2 + $0x3c] sm:$0xf] }
 0x14e   : > { %11969 = vmatprep.mubr.msk.bf16.mxu0 %vm1241_vm9, %v12998_v42  ;;  %v12999_v42 = vld [vmem:[#allocation2 + $0x90] sm:$0xff]   ;;  %v2710_v8 = vshll.u32 %v2574_v10, 16 }
 0x14f   : > { %v14172_v3 = vsel %vm13747_vm15, %v3433_v41, %v3434_v63  ;;  %v2678_v63 = vshll.u32 %v14154_v53, 16  ;;  %v2702_v41 = vshll.u32 %v14031_v12, 16  ;;  %v2707_v12 = vshrl.u32 %v2574_v10, 16 }
 0x150   : > { %17191 = vst [vmem:[#allocation16_spill] sm:$0xff] %v14172_v3  ;;  %v2699_v3 = vor.u32 %v2698_v23, %v14195_v62  ;;  %v2712_v39 = vrot.slane %v2710_v8, 5  ;;  %v2734_v23 = vshll.u32 %v2577_v7, 16  ;;  %v10912_v8 = vcombine.low %v2623_v34, %v2633_v40 }
 0x151   : > { %v14217_v45 = vrot.slane %v2702_v41, 5  ;;  %v2709_v11 = vrot.slane %v2707_v12, 4  ;;  %v14237_v12 = vld [vmem:[#allocation2 + $0xc4] sm:$0xf]  ;;  %v3452_v7 = vrot.slane %v14233_v47, 5  ;;  %v10958_v41 = vrot.slane %v3302_v21, 9 }
 0x152   : > { %v3462_v34 = vrot.slane %v14244_v61, 5  ;;  %v2736_v13 = vrot.slane %v2734_v23, 5  ;;  %v13003_v21 = vld [vmem:[#allocation2 + $0xc0] sm:$0xff]  }
 0x153   : > { %v2713_v40 = vor.u32 %v2712_v39, %v2709_v11  ;;  %v2744_v39 = vshrl.u32 %v14048_v29, 16  ;;  %v2657_v29 = vsel %vm13360_vm8, %v14204_v37, %v14166_v18 }
 0x155   : > { %11970 = vmatmul.mubr.msk.bf16.gmra.mrb[20].mxu0 %vm1241_vm9, %v12999_v42  ;;  %v3445_v42 = vrot.slane %v14197_v56, 5  ;;  %v2714_v18 = vrot.slane %v2713_v40, 4 }
 0x156   : > { %11973 = vmatprep.mubr.msk.bf16.mxu0 %vm1241_vm9, %v13000_v4  ;;  %v14212_v4 = vrot.slane %v2678_v63, 5  ;;  %v14227_v63 = vld [vmem:[#allocation2 + $0x44] sm:$0x1] }
 0x157   : > { %v3447_v10 = vrot.slane %v3445_v42, 4  ;;  %v14221_v17 = vsel %vm13747_vm15, %v10957_v32, %v3445_v42  ;;  %v14235_v42 = vld [vmem:[#allocation2 + $0xbc] sm:$0x1] }
 0x158   : > { %17192 = vst [vmem:[#allocation17_spill] sm:$0xff] %v14221_v17  ;;  %v3455_v32 = vrot.slane %v14235_v42, 5  ;;  %v2726_v17 = vshll.u32 %v14227_v63, 16 }
 0x159   : > { %v14225_v25 = vsel %vm13747_vm15, %v3447_v10, %v3448_v15  ;;  %v2647_v15 = vsel %vm13360_vm8, %v14178_v9, %v14111_v5  ;;  %v2700_v10 = vrot.slane %v2699_v3, 4  ;;  %v2580_v5 = vld [vmem:[#allocation2 + $0x54] sm:$0xf]  ;;  %v3454_v9 = vrot.slane %v3452_v7, 4 }
 0x15a   : > { %17193 = vst [vmem:[#allocation18_spill] sm:$0xff] %v14225_v25  ;;  %v3303_v25 = vld [vmem:[#allocation2 + $0xc0] sm:$0xe]  ;;  %v2758_v52 = vshll.u32 %v2580_v5, 16 }
 0x15b   : > { %v10959_v22 = vrot.slane %v3303_v25, 9  ;;  %v14262_v11 = vsel %vm13747_vm15, %v3454_v9, %v3455_v32  ;;  %v2755_v25 = vshrl.u32 %v2580_v5, 16  ;;  %v2768_v32 = vshrl.u32 %v14252_v28, 16 }
 0x15c   : > { %v2705_v37 = vsel %vm13360_vm8, %v2700_v10, %v14217_v45  ;;  %v2728_v5 = vrot.slane %v2726_v17, 5  ;;  %v14300_v9 = vrot.slane %v2740_v19, 5  ;;  %v10913_v17 = vcombine.low %v2647_v15, %v2657_v29  ;;  %v2589_v29 = vld [vmem:[#allocation2 + $0x78] sm:$0xf] }
 0x15d   : > { %11974 = vmatmul.mubr.msk.bf16.gmra.mrb[24].mxu0 %vm1241_vm9, %v13001_v51  ;;  %v3459_v51 = vrot.slane %v14237_v12, 5  ;;  %v2757_v23 = vrot.slane %v2755_v25, 4  ;;  %v3563_v19 = vsel %vm1290_vm0, %v14025_v6, 0 }
 0x15e   : > { %11977 = vmatprep.mubr.msk.bf16.mxu0 %vm1241_vm9, %v13002_v36  ;;  %v14256_v36 = vsel %vm13747_vm15, %v10958_v41, %v3452_v7  ;;  %v2764_v7 = vshll.u32 %v14252_v28, 16 }
 0x15f   : > { %v3461_v3 = vrot.slane %v3459_v51, 4  ;;  %v14266_v33 = vsel %vm13747_vm15, %v10959_v22, %v3459_v51  ;;  %v2671_v22 = vsel %vm13360_vm8, %v14208_v14, %v14148_v54  ;;  %v2681_v51 = vsel %vm13360_vm8, %v14210_v55, %v14212_v4  ;;  %v2583_v54 = vld [vmem:[#allocation2 + $0x60] sm:$0xf] }
 0x160   : > { %v2724_v14 = vrot.slane %v2723_v24, 4  ;;  %v2746_v55 = vrot.slane %v2744_v39, 4  ;;  %v2750_v4 = vshll.u32 %v14050_v49, 16  ;;  %v2779_v45 = vshrl.u32 %v2583_v54, 16 }
 0x161   : > { %v14273_v41 = vsel %vm13747_vm15, %v3461_v3, %v3462_v34  ;;  %v2695_v34 = vsel %vm13360_vm8, %v14214_v38, %v14195_v62  ;;  %v2737_v3 = vor.u32 %v2736_v13, %v2733_v1  ;;  %v2760_v38 = vrot.slane %v2758_v52, 5  ;;  %v2586_v52 = vld [vmem:[#allocation2 + $0x6c] sm:$0xf] }
 0x162   : > { %17194 = vst [vmem:[#allocation19_spill] sm:$0xff] %v14273_v41  ;;  %v14303_v62 = vrot.slane %v2764_v7, 5  ;;  %v14305_v41 = vld [vmem:[#allocation2 + $0x5c] sm:$0x1]  ;;  %v2782_v10 = vshll.u32 %v2583_v54, 16  ;;  %v2788_v13 = vshll.u32 %v14070_v30, 16  ;;  %v10914_v24 = vcombine.low %v2671_v22, %v2681_v51 }
 0x163   : > { %v2792_v1 = vshrl.u32 %v14070_v30, 16  ;;  %v2719_v49 = vsel %vm13360_vm8, %v2714_v18, %v14229_v46  ;;  %v14314_v40 = vrot.slane %v2737_v3, 4  ;;  %v2747_v39 = vor.u32 %v2746_v55, %v14300_v9  ;;  %v14319_v7 = vld [vmem:[#allocation2 + $0x70] sm:$0xf] }
 0x164   : > { %v14317_v25 = vrot.slane %v2750_v4, 5  ;;  %v2729_v30 = vsel %vm13360_vm8, %v2724_v14, %v2728_v5  ;;  %v2761_v15 = vor.u32 %v2760_v38, %v2757_v23  ;;  %v2781_v22 = vrot.slane %v2779_v45, 4 }
 0x165   : > { %11978 = vmatmul.mubr.msk.bf16.gmra.mrb[28].mxu0 %vm1241_vm9, %v13003_v21  ;;  %v2770_v21 = vrot.slane %v2768_v32, 4  ;;  %v2774_v32 = vshll.u32 %v14305_v41, 16  ;;  %v2784_v46 = vrot.slane %v2782_v10, 5  ;;  %v14325_v51 = vrot.slane %v2788_v13, 5 }
 0x166   : > { %11983 = vmatprep.mubr.msk.bf16.mxu0 %vm1241_vm9, %v10912_v8  ;;  %v10915_v8 = vcombine.low %v2695_v34, %v2705_v37  ;;  %v2794_v34 = vrot.slane %v2792_v1, 4  ;;  %v14330_v37 = vld [vmem:[%s17048_s1 + $0x18] sm:$0xf]  ;;  %v2803_v18 = vshrl.u32 %v2586_v52, 16  ;;  %v2806_v5 = vshll.u32 %v2586_v52, 16 }
 0x167   : > { %v2771_v6 = vor.u32 %v2770_v21, %v14303_v62  ;;  %v2812_v23 = vshll.u32 %v14319_v7, 16  ;;  %v2816_v3 = vshrl.u32 %v14319_v7, 16  ;;  %v10916_v54 = vcombine.low %v2719_v49, %v2729_v30 }
 0x168   : > { %v2748_v14 = vrot.slane %v2747_v39, 4  ;;  %v2827_v55 = vshrl.u32 %v2589_v29, 16  ;;  %v2830_v4 = vshll.u32 %v2589_v29, 16  ;;  %v2762_v38 = vrot.slane %v2761_v15, 4 }
 0x169   : > { %v2776_v21 = vrot.slane %v2774_v32, 5  ;;  %v2836_v45 = vshll.u32 %v14100_v2, 16  ;;  %v2840_v10 = vshrl.u32 %v14100_v2, 16  ;;  %v2772_v13 = vrot.slane %v2771_v6, 4  ;;  %v14351_v6 = vld [vmem:[#allocation2 + $0x74] sm:$0x1] }
 0x16a   : > { %v2785_v1 = vor.u32 %v2784_v46, %v2781_v22  ;;  %v2805_v49 = vrot.slane %v2803_v18, 4  ;;  %v2808_v39 = vrot.slane %v2806_v5, 5  ;;  %v14342_v52 = vrot.slane %v2812_v23, 5 }
 0x16b   : > { %v2818_v30 = vrot.slane %v2816_v3, 4  ;;  %v2743_v2 = vsel %vm13360_vm8, %v14314_v40, %v14300_v9  ;;  %v2753_v15 = vsel %vm13360_vm8, %v2748_v14, %v14317_v25  ;;  %v2829_v32 = vrot.slane %v2827_v55, 4 }
 0x16c   : > { %v2832_v29 = vrot.slane %v2830_v4, 5  ;;  %v2842_v22 = vrot.slane %v2840_v10, 4  ;;  %v2767_v18 = vsel %vm13360_vm8, %v2762_v38, %v14303_v62  ;;  %v2777_v9 = vsel %vm13360_vm8, %v2772_v13, %v2776_v21 }
 0x16d   : > { %11984 = vmatmul.mubr.msk.bf16.vlgmr.msra.gmra.mrb[0].mxu0 %vm1241_vm9, %v10913_v17  ;;  %v2795_v17 = vor.u32 %v2794_v34, %v14325_v51  ;;  %v2786_v40 = vrot.slane %v2785_v1, 4  ;;  %v2809_v23 = vor.u32 %v2808_v39, %v2805_v49  ;;  %v2819_v3 = vor.u32 %v2818_v30, %v14342_v52  ;;  %v2598_v49 = vld [vmem:[#allocation2 + $0x9c] sm:$0xf] }
 0x16e   : > { %12016 = vmatpush3.bf16.msra.mxu0 %v3563_v19  ;;  %11987 = vmatprep.mubr.msk.bf16.mxu0 %vm1241_vm9, %v10914_v24  ;;  %v2798_v19 = vshll.u32 %v14072_v60, 16  ;;  %v2592_v24 = vld [vmem:[#allocation2 + $0x84] sm:$0xf]  ;;  %v14353_v60 = vrot.slane %v2836_v45, 5  ;;  %v2822_v14 = vshll.u32 %v14351_v6, 16  ;;  %v2846_v55 = vshll.u32 %v14102_v59, 16 }
 0x16f   : > { %12975 = vmatprep.subr.msk.bf16.mxu0 %vm1290_vm0, %v14330_v37  ;;  %v2851_v46 = vshrl.u32 %v2592_v24, 16  ;;  %v2854_v34 = vshll.u32 %v2592_v24, 16  ;;  %v2796_v25 = vrot.slane %v2795_v17, 4  ;;  %v2860_v4 = vshll.u32 %v14134_v57, 16 }
 0x170   : > { %v2800_v5 = vrot.slane %v2798_v19, 5  ;;  %v2864_v62 = vshrl.u32 %v14134_v57, 16  ;;  %v2833_v38 = vor.u32 %v2832_v29, %v2829_v32  ;;  %v2843_v21 = vor.u32 %v2842_v22, %v14353_v60  ;;  %v14375_v29 = vld [vmem:[#allocation2 + $0xa0] sm:$0xf] }
 0x171   : > { %v2853_v45 = vrot.slane %v2851_v46, 4  ;;  %v2856_v10 = vrot.slane %v2854_v34, 5  ;;  %v10917_v13 = vcombine.low %v2743_v2, %v2753_v15  ;;  %v10918_v1 = vcombine.low %v2767_v18, %v2777_v9 }
 0x172   : > { %v2791_v17 = vsel %vm13360_vm8, %v2786_v40, %v14325_v51  ;;  %v2810_v59 = vrot.slane %v2809_v23, 4  ;;  %v2820_v19 = vrot.slane %v2819_v3, 4  ;;  %v2824_v24 = vrot.slane %v2822_v14, 5 }
 0x173   : > { %v14373_v57 = vrot.slane %v2860_v4, 5  ;;  %v2866_v39 = vrot.slane %v2864_v62, 4  ;;  %v2834_v2 = vrot.slane %v2833_v38, 4  ;;  %v2844_v15 = vrot.slane %v2843_v21, 4 }
 0x174   : > { %v2848_v22 = vrot.slane %v2846_v55, 5  ;;  %v2857_v46 = vor.u32 %v2856_v10, %v2853_v45  ;;  %v2884_v51 = vshll.u32 %v14138_v50, 16  ;;  %v2888_v34 = vshrl.u32 %v14138_v50, 16 }
 0x175   : > { %11988 = vmatmul.mubr.msk.bf16.gmra.mrb[4].mxu0 %vm1241_vm9, %v10915_v8  ;;  %v2595_v8 = vld [vmem:[#allocation2 + $0x90] sm:$0xf]  ;;  %v2899_v18 = vshrl.u32 %v2598_v49, 16  ;;  %v2902_v9 = vshll.u32 %v2598_v49, 16  ;;  %v2815_v40 = vsel %vm13360_vm8, %v2810_v59, %v14342_v52  ;;  %v2912_v23 = vshrl.u32 %v14375_v29, 16 }
 0x176   : > { %11991 = vmatprep.mubr.msk.bf16.mxu0 %vm1241_vm9, %v10916_v54  ;;  %v2801_v54 = vsel %vm13360_vm8, %v2796_v25, %v2800_v5  ;;  %v2875_v30 = vshrl.u32 %v2595_v8, 16  ;;  %v2878_v32 = vshll.u32 %v2595_v8, 16  ;;  %v2825_v5 = vsel %vm13360_vm8, %v2820_v19, %v2824_v24  ;;  %v2601_v19 = vld [vmem:[#allocation2 + $0xa8] sm:$0xf] }
 0x177   : > { %v2908_v25 = vshll.u32 %v14375_v29, 16  ;;  %v2867_v3 = vor.u32 %v2866_v39, %v14373_v57  ;;  %v2870_v50 = vshll.u32 %v14136_v31, 16  ;;  %v2839_v4 = vsel %vm13360_vm8, %v2834_v2, %v14353_v60 }
 0x178   : > { %v2877_v14 = vrot.slane %v2875_v30, 4  ;;  %v2880_v55 = vrot.slane %v2878_v32, 5  ;;  %v2849_v52 = vsel %vm13360_vm8, %v2844_v15, %v2848_v22  ;;  %v2858_v62 = vrot.slane %v2857_v46, 4  ;;  %v2604_v46 = vld [vmem:[#allocation2 + $0xb4] sm:$0xf] }
 0x179   : > { %v14395_v38 = vrot.slane %v2884_v51, 5  ;;  %v2890_v21 = vrot.slane %v2888_v34, 4  ;;  %v2901_v45 = vrot.slane %v2899_v18, 4  ;;  %v2904_v10 = vrot.slane %v2902_v9, 5 }
 0x17a   : > { %v10919_v8 = vcombine.low %v2791_v17, %v2801_v54  ;;  %v2910_v31 = vrot.slane %v2908_v25, 5  ;;  %v2914_v59 = vrot.slane %v2912_v23, 4  ;;  %v2868_v24 = vrot.slane %v2867_v3, 4 }
 0x17b   : > { %v2872_v49 = vrot.slane %v2870_v50, 5  ;;  %v2881_v39 = vor.u32 %v2880_v55, %v2877_v14  ;;  %v2894_v60 = vshll.u32 %v14141_v43, 16  ;;  %v10921_v30 = vcombine.low %v2839_v4, %v2849_v52 }
 0x17c   : > { %v2891_v32 = vor.u32 %v2890_v21, %v14395_v38  ;;  %v2905_v2 = vor.u32 %v2904_v10, %v2901_v45  ;;  %v2923_v22 = vshrl.u32 %v2601_v19, 16  ;;  %v2915_v17 = vor.u32 %v2914_v59, %v2910_v31  ;;  %v2607_v59 = vld [vmem:[#allocation2 + $0xc0] sm:$0xf] }
 0x17d   : > { %11992 = vmatmul.mubr.msk.bf16.gmra.mrb[8].mxu0 %vm1241_vm9, %v10917_v13  ;;  %v10920_v13 = vcombine.low %v2815_v40, %v2825_v5  ;;  %v2926_v54 = vshll.u32 %v2601_v19, 16  ;;  %v2932_v51 = vshll.u32 %v14197_v56, 16  ;;  %v2936_v34 = vshrl.u32 %v14197_v56, 16 }
 0x17e   : > { %11995 = vmatprep.mubr.msk.bf16.mxu0 %vm1241_vm9, %v10918_v1  ;;  %v14397_v1 = vld [vmem:[#allocation2 + $0xa4] sm:$0x1]  ;;  %v2863_v43 = vsel %vm13360_vm8, %v2858_v62, %v14373_v57  ;;  %v2873_v18 = vsel %vm13360_vm8, %v2868_v24, %v2872_v49  ;;  %v2882_v9 = vrot.slane %v2881_v39, 4  ;;  %v2896_v40 = vrot.slane %v2894_v60, 5 }
 0x17f   : > { %v2918_v15 = vshll.u32 %v14397_v1, 16  ;;  %v2947_v5 = vshrl.u32 %v2604_v46, 16  ;;  %v2950_v25 = vshll.u32 %v2604_v46, 16  ;;  %v2956_v23 = vshll.u32 %v14233_v47, 16 }
 0x180   : > { %v2960_v3 = vshrl.u32 %v14233_v47, 16  ;;  %v2892_v50 = vrot.slane %v2891_v32, 4  ;;  %v2906_v14 = vrot.slane %v2905_v2, 4  ;;  %v2925_v55 = vrot.slane %v2923_v22, 4 }
 0x181   : > { %v2920_v56 = vrot.slane %v2918_v15, 5  ;;  %v2916_v4 = vrot.slane %v2915_v17, 4  ;;  %v2928_v52 = vrot.slane %v2926_v54, 5  ;;  %v2934_v21 = vrot.slane %v2932_v51, 5 }
 0x182   : > { %v2938_v45 = vrot.slane %v2936_v34, 4  ;;  %v10922_v57 = vcombine.low %v2863_v43, %v2873_v18  ;;  %v2949_v62 = vrot.slane %v2947_v5, 4  ;;  %v2952_v10 = vrot.slane %v2950_v25, 5 }
 0x183   : > { %v2887_v19 = vsel %vm13360_vm8, %v2882_v9, %v14395_v38  ;;  %v2897_v47 = vsel %vm13360_vm8, %v2892_v50, %v2896_v40  ;;  %v2942_v24 = vshll.u32 %v14199_v27, 16  ;;  %v2911_v49 = vsel %vm13360_vm8, %v2906_v14, %v2910_v31 }
 0x184   : > { %v2921_v39 = vsel %vm13360_vm8, %v2916_v4, %v2920_v56  ;;  %v2929_v60 = vor.u32 %v2928_v52, %v2925_v55  ;;  %v2939_v32 = vor.u32 %v2938_v45, %v2934_v21  ;;  %v2971_v2 = vshrl.u32 %v2607_v59, 16  ;;  %v3288_v52 = vld [vmem:[#allocation2 + $0xc] sm:$0xe] }
 0x185   : > { %11996 = vmatmul.mubr.msk.bf16.gmra.mrb[12].mxu0 %vm1241_vm9, %v10919_v8  ;;  %v2958_v8 = vrot.slane %v2956_v23, 5  ;;  %v2974_v15 = vshll.u32 %v2607_v59, 16  ;;  %v2980_v38 = vshll.u32 %v14237_v12, 16  ;;  %v2984_v22 = vshrl.u32 %v14237_v12, 16 }
 0x186   : > { %11999 = vmatprep.mubr.msk.bf16.mxu0 %vm1241_vm9, %v10920_v13  ;;  %v2962_v13 = vrot.slane %v2960_v3, 4  ;;  %v2953_v46 = vor.u32 %v2952_v10, %v2949_v62  ;;  %v10923_v17 = vcombine.low %v2887_v19, %v2897_v47  ;;  %v10924_v54 = vcombine.low %v2911_v49, %v2921_v39  ;;  %v3289_v49 = vld [vmem:[#allocation2 + $0x18] sm:$0xe]  ;;  %v3290_v39 = vld [vmem:[#allocation2 + $0x24] sm:$0xe] }
 0x187   : > { %v2930_v31 = vrot.slane %v2929_v60, 4  ;;  %v2940_v51 = vrot.slane %v2939_v32, 4  ;;  %v2944_v34 = vrot.slane %v2942_v24, 5  ;;  %v2973_v43 = vrot.slane %v2971_v2, 4 }
 0x188   : > { %v2963_v27 = vor.u32 %v2962_v13, %v2958_v8  ;;  %v2976_v18 = vrot.slane %v2974_v15, 5  ;;  %v2982_v9 = vrot.slane %v2980_v38, 5  ;;  %v2986_v40 = vrot.slane %v2984_v22, 4 }
 0x189   : > { %v2954_v5 = vrot.slane %v2953_v46, 4  ;;  %v2935_v12 = vsel %vm13360_vm8, %v2930_v31, %v2934_v21  ;;  %v2990_v14 = vshll.u32 %v14244_v61, 16  ;;  %v3354_v4 = vrot.slane %v14059_v58, 5 }
 0x18a   : > { %v2964_v25 = vrot.slane %v2963_v27, 4  ;;  %v2977_v3 = vor.u32 %v2976_v18, %v2973_v43  ;;  %v2987_v50 = vor.u32 %v2986_v40, %v2982_v9  ;;  %v10944_v13 = vrot.slane %v3288_v52, 9 }
 0x18b   : > { %v2959_v56 = vsel %vm13360_vm8, %v2954_v5, %v2958_v8  ;;  %v2992_v10 = vrot.slane %v2990_v14, 5  ;;  %v3356_v59 = vrot.slane %v3354_v4, 4  ;;  %v3357_v19 = vrot.slane %v14079_v16, 5 }
 0x18c   : > { %v2988_v62 = vrot.slane %v2987_v50, 4  ;;  %v3361_v8 = vrot.slane %v14077_v44, 5  ;;  %v3355_v47 = vsel %vm13747_vm15, %v10944_v13, %v3354_v4  ;;  %v3368_v16 = vrot.slane %v14107_v48, 5 }
 0x18d   : > { %12000 = vmatmul.mubr.msk.bf16.gmra.mrb[16].mxu0 %vm1241_vm9, %v10921_v30  ;;  %v2966_v30 = vshll.u32 %v14235_v42, 16  ;;  %v2945_v42 = vsel %vm13360_vm8, %v2940_v51, %v2944_v34  ;;  %v3358_v24 = vsel %vm13747_vm15, %v3356_v59, %v3357_v19  ;;  %v10945_v2 = vrot.slane %v3289_v49, 9  ;;  %v17201_v59 = vld [vmem:[#allocation9_spill] sm:$0xff]  ;;  %v17202_v19 = vld [vmem:[#allocation10_spill] sm:$0xff]  ;;  %v17204_v49 = vld [vmem:[#allocation11_spill] sm:$0xff] }
 0x18e   : > { %12003 = vmatprep.mubr.msk.bf16.mxu0 %vm1241_vm9, %v10922_v57  ;;  %v10925_v45 = vcombine.low %v2935_v12, %v2945_v42  ;;  %v2978_v57 = vrot.slane %v2977_v3, 4  ;;  %v2993_v58 = vsel %vm13360_vm8, %v2988_v62, %v2992_v10  ;;  %v10961_v32 = vcombine.low %v3355_v47, %v3358_v24  ;;  %v17195_v42 = vld [vmem:[#allocation5_spill] sm:$0xff]  ;;  %v17196_v3 = vld [vmem:[#allocation6_spill] sm:$0xff] }
 0x18f   : > { %v2968_v23 = vrot.slane %v2966_v30, 5  ;;  %v3363_v15 = vrot.slane %v3361_v8, 4  ;;  %v3364_v38 = vrot.slane %v14094_v0, 5  ;;  %v10946_v22 = vrot.slane %v3290_v39, 9 }
 0x190   : > { %v2983_v61 = vsel %vm13360_vm8, %v2978_v57, %v2982_v9  ;;  %v3370_v46 = vrot.slane %v3368_v16, 4  ;;  %v3371_v44 = vrot.slane %v14154_v53, 5  ;;  %v3362_v27 = vsel %vm13747_vm15, %v10945_v2, %v3361_v8  ;;  %v11026_v9 = vld [vmem:[%s17048_s1 + $0x1c] sm:$0xf]  ;;  %v17199_v57 = vld [vmem:[#allocation8_spill] sm:$0xff] }
 0x191   : > { %v2969_v55 = vsel %vm13360_vm8, %v2964_v25, %v2968_v23  ;;  %v10927_v60 = vcombine.low %v2983_v61, %v2993_v58  ;;  %v3365_v48 = vsel %vm13747_vm15, %v3363_v15, %v3364_v38  ;;  %v3369_v30 = vsel %vm13747_vm15, %v10946_v22, %v3368_v16  ;;  %v3300_v58 = vld [vmem:[#allocation2 + $0x9c] sm:$0xe]  ;;  %v17205_v16 = vld [vmem:[#allocation12_spill] sm:$0xff]  ;;  %v17210_v22 = vld [vmem:[#allocation15_spill] sm:$0xff] }
 0x192   : > { %v10926_v21 = vcombine.low %v2959_v56, %v2969_v55  ;;  %v3372_v0 = vsel %vm13747_vm15, %v3370_v46, %v3371_v44  ;;  %v10962_v53 = vcombine.low %v3362_v27, %v3365_v48  ;;  %v3922_v51 = vsel %vm1290_vm0, %v14330_v37, 0  ;;  %v3296_v55 = vld [vmem:[#allocation2 + $0x6c] sm:$0xe]  ;;  %v17211_v46 = vld [vmem:[#allocation16_spill] sm:$0xff]  ;;  %v17213_v44 = vld [vmem:[#allocation17_spill] sm:$0xff] }
 0x193   : > { %v10963_v31 = vcombine.low %v3369_v30, %v3372_v0  ;;  %v3385_v18 = vrot.slane %v14227_v63, 5  ;;  %v3396_v37 = vrot.slane %v14252_v28, 5  ;;  %v3294_v63 = vld [vmem:[#allocation2 + $0x54] sm:$0xe]  ;;  %v3399_v12 = vrot.slane %v14305_v41, 5  ;;  %v17214_v27 = vld [vmem:[#allocation18_spill] sm:$0xff] }
 0x194   : > { %v10950_v25 = vrot.slane %v3294_v63, 9  ;;  %v17197_v50 = vcombine.low %v17195_v42, %v17196_v3  ;;  %v3410_v56 = vrot.slane %v14319_v7, 5  ;;  %v10952_v52 = vrot.slane %v3296_v55, 9  ;;  %v13004_v0 = vld [vmem:[#allocation2 + $0x18] sm:$0xff]   ;;  %v14567_v42 = vld [vmem:[#allocation2 + $0x70] sm:$0xf] }
 0x195   : > { %12004 = vmatmul.mubr.msk.bf16.gmra.mrb[20].mxu0 %vm1241_vm9, %v10923_v17  ;;  %v3382_v17 = vrot.slane %v14188_v35, 5  ;;  %v3398_v23 = vrot.slane %v3396_v37, 4  ;;  %v3413_v41 = vrot.slane %v14351_v6, 5  ;;  %v17203_v61 = vcombine.low %v17201_v59, %v17202_v19  ;;  %v13009_v63 = vld [vmem:[#allocation2 + $0x54] sm:$0xff]  }
 0x196   : > { %12007 = vmatprep.mubr.msk.bf16.mxu0 %vm1241_vm9, %v10924_v54  ;;  %v3292_v54 = vld [vmem:[#allocation2 + $0x3c] sm:$0xe]  ;;  %v3397_v14 = vsel %vm13747_vm15, %v10950_v25, %v3396_v37  ;;  %v3411_v10 = vsel %vm13747_vm15, %v10952_v52, %v3410_v56  ;;  %v3438_v6 = vrot.slane %v14375_v29, 5  ;;  %v10956_v8 = vrot.slane %v3300_v58, 9  ;;  %v13010_v25 = vld [vmem:[#allocation2 + $0x60] sm:$0xff]  }
 0x197   : > { %v10948_v34 = vrot.slane %v3292_v54, 9  ;;  %v3384_v43 = vrot.slane %v3382_v17, 4  ;;  %v3400_v28 = vsel %vm13747_vm15, %v3398_v23, %v3399_v12  ;;  %v3441_v24 = vrot.slane %v14397_v1, 5  ;;  %v14569_v3 = vld [vmem:[#allocation2 + $0x74] sm:$0x1] }
 0x198   : > { %v10967_v4 = vcombine.low %v3397_v14, %v3400_v28  ;;  %v3440_v47 = vrot.slane %v3438_v6, 4  ;;  %v17206_v39 = vcombine.low %v17204_v49, %v17205_v16  ;;  %v3439_v15 = vsel %vm13747_vm15, %v10956_v8, %v3438_v6  ;;  %v4117_v52 = vld [vmem:[#allocation2 + $0x18] sm:$0xf]  ;;  %v14591_v6 = vld [vmem:[#allocation2 + $0x8c] sm:$0x1] }
 0x199   : > { %v3383_v35 = vsel %vm13747_vm15, %v10948_v34, %v3382_v17  ;;  %v3386_v40 = vsel %vm13747_vm15, %v3384_v43, %v3385_v18  ;;  %v17212_v1 = vcombine.low %v17210_v22, %v17211_v46  ;;  %v17215_v48 = vcombine.low %v17213_v44, %v17214_v27  ;;  %v17217_v17 = vld [vmem:[#allocation19_spill] sm:$0xff]  ;;  %v14542_v34 = vld [vmem:[%s17048_s1 + $0x20] sm:$0xf]  ;;  %v14551_v43 = vld [vmem:[#allocation2 + $0x5c] sm:$0x1] }
 0x19a   : > { %v10965_v5 = vcombine.low %v3383_v35, %v3386_v40  ;;  %v3442_v29 = vsel %vm13747_vm15, %v3440_v47, %v3441_v24  ;;  %v17216_v30 = vcombine.low %v14256_v36, %v14262_v11  ;;  %v17218_v54 = vcombine.low %v14266_v33, %v17217_v17  ;;  %v13007_v36 = vld [vmem:[#allocation2 + $0x3c] sm:$0xff]   ;;  %v13008_v11 = vld [vmem:[#allocation2 + $0x48] sm:$0xff]   ;;  %v14549_v33 = vld [vmem:[#allocation2 + $0x58] sm:$0xf] }
 0x19b   : > { %v10973_v38 = vcombine.low %v3439_v15, %v3442_v29  ;;  %v4848_v18 = vld [vmem:[#allocation2 + $0x54] sm:$0xe]  ;;  %v4947_v35 = vrot.slane %v14551_v43, 5  ;;  %v4958_v14 = vrot.slane %v14567_v42, 5  ;;  %v4961_v28 = vrot.slane %v14569_v3, 5 }
 0x19c   : > { %v11064_v40 = vrot.slane %v4848_v18, 9  ;;  %v4852_v47 = vld [vmem:[#allocation2 + $0x84] sm:$0xe]  ;;  %v4975_v49 = vrot.slane %v14591_v6, 5  ;;  %v14596_v16 = vld [vmem:[#allocation2 + $0x28] sm:$0xf] }
 0x19d   : > { %12008 = vmatmul.mubr.msk.bf16.gmra.mrb[24].mxu0 %vm1241_vm9, %v10925_v45  ;;  %v3412_v45 = vrot.slane %v3410_v56, 4  ;;  %v4960_v55 = vrot.slane %v4958_v14, 4  ;;  %v14598_v15 = vld [vmem:[#allocation2 + $0x20] sm:$0x1]  ;;  %v14704_v17 = vld [vmem:[#allocation2 + $0xd4] sm:$0x1] }
 0x19e   : > { %12011 = vmatprep.mubr.msk.bf16.mxu0 %vm1241_vm9, %v10926_v21  ;;  %v17198_v21 = vld [vmem:[#allocation7_spill] sm:$0xff]  ;;  %v14621_v18 = vld [vmem:[#allocation2 + $0xa0] sm:$0xf] }
 0x19f   : > { %v17200_v62 = vcombine.low %v17198_v21, %v17199_v57  ;;  %v3414_v13 = vsel %vm13747_vm15, %v3412_v45, %v3413_v41  ;;  %v13012_v41 = vld [vmem:[#allocation2 + $0x78] sm:$0xff]   ;;  %v14582_v57 = vsel %vm13747_vm15, %v4960_v55, %v4961_v28 }
 0x1a0   : > { %v10969_v7 = vcombine.low %v3411_v10, %v3414_v13  ;;  %v14578_v21 = vld [vmem:[#allocation2 + $0x1c] sm:$0xf]  ;;  %17219 = vst [vmem:[#allocation5_spill] sm:$0xff] %v14582_v57  ;;  %v4166_v13 = vshrl.u32 %v4117_v52, 16  ;;  %v13019_v10 = vld [vmem:[#allocation2 + $0xcc] sm:$0xff]  }
 0x1a1   : > { %v4175_v59 = vshll.u32 %v14578_v21, 16  ;;  %v4179_v19 = vshrl.u32 %v14578_v21, 16  ;;  %v13015_v55 = vld [vmem:[#allocation2 + $0x9c] sm:$0xff]  }
 0x1a3   : > { %v4181_v22 = vrot.slane %v4179_v19, 4 }
 0x1a5   : > { %12012 = vmatmul.mubr.msk.bf16.gmra.mrb[28].mxu0 %vm1241_vm9, %v10927_v60  ;;  %v17207_v60 = vld [vmem:[#allocation13_spill] sm:$0xff] }
 0x1a6   : > { %12017 = vmatprep.mubr.msk.bf16.mxu0 %vm1241_vm9, %v10961_v32  ;;  %v17208_v32 = vld [vmem:[#allocation14_spill] sm:$0xff] }
 0x1a7   : > { %v17209_v2 = vcombine.low %v17207_v60, %v17208_v32  ;;  %v4168_v60 = vrot.slane %v4166_v13, 4 }
 0x1ad   : > { %12018 = vmatmul.mubr.msk.bf16.vlgmr.msra.gmra.mrb[0].mxu0 %vm1241_vm9, %v10962_v53  ;;  %v13005_v53 = vld [vmem:[#allocation2 + $0x24] sm:$0xff]  }
 0x1ae   : > { %12050 = vmatpush3.bf16.msra.mxu0 %v3922_v51  ;;  %12021 = vmatprep.mubr.msk.bf16.mxu0 %vm1241_vm9, %v10963_v31  ;;  %v13006_v31 = vld [vmem:[#allocation2 + $0x30] sm:$0xff]   ;;  %v4648_v51 = vsel %vm1290_vm0, %v11026_v9, 0 }
 0x1af   : > { %12976 = vmatprep.subr.msk.bf16.mxu0 %vm1290_vm0, %v11026_v9  ;;  %v4944_v9 = vrot.slane %v14549_v33, 5 }
 0x1b1   : > { %v4946_v37 = vrot.slane %v4944_v9, 4 }
 0x1b3   : > { %v14562_v23 = vsel %vm13747_vm15, %v4946_v37, %v4947_v35  ;;  %v4854_v37 = vld [vmem:[#allocation2 + $0x9c] sm:$0xe] }
 0x1b5   : > { %12022 = vmatmul.mubr.msk.bf16.gmra.mrb[4].mxu0 %vm1241_vm9, %v17197_v50  ;;  %v4850_v50 = vld [vmem:[#allocation2 + $0x6c] sm:$0xe] }
 0x1b6   : > { %12025 = vmatprep.mubr.msk.bf16.mxu0 %vm1241_vm9, %v10965_v5  ;;  %v14558_v5 = vsel %vm13747_vm15, %v11064_v40, %v4944_v9  ;;  %v11066_v56 = vrot.slane %v4850_v50, 9  ;;  %v14623_v9 = vld [vmem:[#allocation2 + $0xa4] sm:$0x1] }
 0x1b8   : > { %v14576_v45 = vsel %vm13747_vm15, %v11066_v56, %v4958_v14  ;;  %v11070_v56 = vrot.slane %v4854_v37, 9 }
 0x1bd   : > { %12026 = vmatmul.mubr.msk.bf16.gmra.mrb[8].mxu0 %vm1241_vm9, %v17200_v62  ;;  %v4120_v62 = vld [vmem:[#allocation2 + $0x24] sm:$0xf] }
 0x1be   : > { %12029 = vmatprep.mubr.msk.bf16.mxu0 %vm1241_vm9, %v10967_v4  ;;  %v13011_v4 = vld [vmem:[#allocation2 + $0x6c] sm:$0xff]   ;;  %v4190_v58 = vshrl.u32 %v4120_v62, 16  ;;  %v4193_v8 = vshll.u32 %v4120_v62, 16 }
 0x1c0   : > { %v4192_v44 = vrot.slane %v4190_v58, 4  ;;  %v4195_v27 = vrot.slane %v4193_v8, 5  ;;  %v13016_v58 = vld [vmem:[#allocation2 + $0xa8] sm:$0xff]  }
 0x1c2   : > { %v4196_v35 = vor.u32 %v4195_v27, %v4192_v44 }
 0x1c5   : > { %12030 = vmatmul.mubr.msk.bf16.gmra.mrb[12].mxu0 %vm1241_vm9, %v17203_v61  ;;  %v14589_v61 = vld [vmem:[#allocation2 + $0x88] sm:$0xf] }
 0x1c6   : > { %12033 = vmatprep.mubr.msk.bf16.mxu0 %vm1241_vm9, %v10969_v7  ;;  %v4169_v7 = vshll.u32 %v4117_v52, 16  ;;  %v4972_v24 = vrot.slane %v14589_v61, 5 }
 0x1c8   : > { %v4974_v32 = vrot.slane %v4972_v24, 4  ;;  %v4171_v29 = vrot.slane %v4169_v7, 5  ;;  %v4126_v7 = vld [vmem:[#allocation2 + $0x3c] sm:$0xf] }
 0x1c9   : > { %v4241_v44 = vshll.u32 %v4126_v7, 16 }
 0x1cd   : > { %12034 = vmatmul.mubr.msk.bf16.gmra.mrb[16].mxu0 %vm1241_vm9, %v17206_v39  ;;  %v11068_v39 = vrot.slane %v4852_v47, 9 }
 0x1ce   : > { %12037 = vmatprep.mubr.msk.bf16.mxu0 %vm1241_vm9, %v17209_v2  ;;  %v13013_v2 = vld [vmem:[#allocation2 + $0x84] sm:$0xff]  }
 0x1cf   : > { %v14604_v46 = vsel %vm13747_vm15, %v11068_v39, %v4972_v24  ;;  %v14639_v24 = vrot.slane %v4196_v35, 4  ;;  %v4856_v35 = vld [vmem:[#allocation2 + $0xb4] sm:$0xe] }
 0x1d0   : > { %17220 = vst [vmem:[#allocation6_spill] sm:$0xff] %v14604_v46 }
 0x1d5   : > { %12038 = vmatmul.mubr.msk.bf16.gmra.mrb[20].mxu0 %vm1241_vm9, %v17212_v1  ;;  %v13014_v1 = vld [vmem:[#allocation2 + $0x90] sm:$0xff]  }
 0x1d6   : > { %12041 = vmatprep.mubr.msk.bf16.mxu0 %vm1241_vm9, %v10973_v38  ;;  %v14600_v38 = vrot.slane %v4175_v59, 5  ;;  %v14633_v59 = vld [vmem:[#allocation2 + $0x40] sm:$0xf] }
 0x1d7   : > { %v4247_v27 = vshll.u32 %v14633_v59, 16 }
 0x1dd   : > { %12042 = vmatmul.mubr.msk.bf16.gmra.mrb[24].mxu0 %vm1241_vm9, %v17215_v48  ;;  %v4199_v48 = vshll.u32 %v14596_v16, 16 }
 0x1de   : > { %12045 = vmatprep.mubr.msk.bf16.mxu0 %vm1241_vm9, %v17216_v30  ;;  %v14609_v30 = vsel %vm13747_vm15, %v4974_v32, %v4975_v49 }
 0x1df   : > { %17221 = vst [vmem:[#allocation7_spill] sm:$0xff] %v14609_v30  ;;  %v14626_v40 = vrot.slane %v4199_v48, 5 }
 0x1e5   : > { %12046 = vmatmul.mubr.msk.bf16.gmra.mrb[28].mxu0 %vm1241_vm9, %v17218_v54  ;;  %v4185_v54 = vshll.u32 %v14598_v15, 16 }
 0x1e6   : > { %12051 = vmatprep.mubr.msk.bf16.mxu0 %vm1241_vm9, %v13004_v0  ;;  %v4203_v0 = vshrl.u32 %v14596_v16, 16 }
 0x1e7   : > { %v4187_v47 = vrot.slane %v4185_v54, 5  ;;  %v14655_v54 = vld [vmem:[#allocation2 + $0xb8] sm:$0xf] }
 0x1e8   : > { %v4205_v50 = vrot.slane %v4203_v0, 4  ;;  %v4251_v0 = vshrl.u32 %v14633_v59, 16  ;;  %v5000_v37 = vrot.slane %v14655_v54, 5 }
 0x1ea   : > { %v4206_v39 = vor.u32 %v4205_v50, %v14626_v40 }
 0x1ec   : > { %v14669_v50 = vrot.slane %v4206_v39, 4  ;;  %v13018_v39 = vld [vmem:[#allocation2 + $0xc0] sm:$0xff]  }
 0x1ed   : > { %12052 = vmatmul.mubr.msk.bf16.vlgmr.msra.gmra.mrb[0].mxu0 %vm1241_vm9, %v13005_v53  ;;  %v14615_v53 = vld [vmem:[#allocation2 + $0x2c] sm:$0x1] }
 0x1ee   : > { %12084 = vmatpush3.bf16.msra.mxu0 %v4648_v51  ;;  %12055 = vmatprep.mubr.msk.bf16.mxu0 %vm1241_vm9, %v13006_v31  ;;  %v4123_v31 = vld [vmem:[#allocation2 + $0x30] sm:$0xf]  ;;  %v4172_v51 = vor.u32 %v4171_v29, %v4168_v60  ;;  %v14648_v29 = vld [vmem:[#allocation2 + $0x38] sm:$0x1] }
 0x1ef   : > { %12977 = vmatprep.subr.msk.bf16.mxu0 %vm1290_vm0, %v14542_v34  ;;  %v4214_v14 = vshrl.u32 %v4123_v31, 16  ;;  %v4217_v28 = vshll.u32 %v4123_v31, 16  ;;  %v14657_v31 = vld [vmem:[#allocation2 + $0xbc] sm:$0x1] }
 0x1f0   : > { %v4173_v62 = vrot.slane %v4172_v51, 4 }
 0x1f1   : > { %v4216_v60 = vrot.slane %v4214_v14, 4  ;;  %v4219_v32 = vrot.slane %v4217_v28, 5  ;;  %v4129_v28 = vld [vmem:[#allocation2 + $0x48] sm:$0xf] }
 0x1f2   : > { %v4178_v51 = vsel %vm13360_vm8, %v4173_v62, %v14600_v38  ;;  %v13017_v62 = vld [vmem:[#allocation2 + $0xb4] sm:$0xff]  }
 0x1f3   : > { %v4220_v14 = vor.u32 %v4219_v32, %v4216_v60  ;;  %v4262_v32 = vshrl.u32 %v4129_v28, 16 }
 0x1f5   : > { %12056 = vmatmul.mubr.msk.bf16.gmra.mrb[4].mxu0 %vm1241_vm9, %v13007_v36  ;;  %v4182_v36 = vor.u32 %v4181_v22, %v14600_v38  ;;  %v14672_v38 = vld [vmem:[#allocation2 + $0x4c] sm:$0xf] }
 0x1f6   : > { %12059 = vmatprep.mubr.msk.bf16.mxu0 %vm1241_vm9, %v13008_v11  ;;  %v14619_v11 = vld [vmem:[#allocation2 + $0x34] sm:$0xf] }
 0x1f7   : > { %v4223_v52 = vshll.u32 %v14619_v11, 16  ;;  %v4227_v13 = vshrl.u32 %v14619_v11, 16  ;;  %v4183_v8 = vrot.slane %v4182_v36, 4 }
 0x1f9   : > { %v14650_v22 = vrot.slane %v4223_v52, 5  ;;  %v4229_v48 = vrot.slane %v4227_v13, 4 }
 0x1fb   : > { %v4230_v13 = vor.u32 %v4229_v48, %v14650_v22  ;;  %v4271_v48 = vshll.u32 %v14672_v38, 16 }
 0x1fd   : > { %12060 = vmatmul.mubr.msk.bf16.gmra.mrb[8].mxu0 %vm1241_vm9, %v13009_v63  ;;  %v4986_v63 = vrot.slane %v14621_v18, 5 }
 0x1fe   : > { %12063 = vmatprep.mubr.msk.bf16.mxu0 %vm1241_vm9, %v13010_v25  ;;  %v4989_v25 = vrot.slane %v14623_v9, 5 }
 0x1ff   : > { %v14637_v19 = vsel %vm13747_vm15, %v11070_v56, %v4986_v63  ;;  %v11072_v56 = vrot.slane %v4856_v35, 9 }
 0x200   : > { %17222 = vst [vmem:[#allocation8_spill] sm:$0xff] %v14637_v19 }
 0x205   : > { %12064 = vmatmul.mubr.msk.bf16.gmra.mrb[12].mxu0 %vm1241_vm9, %v13011_v4  ;;  %v4209_v4 = vshll.u32 %v14615_v53, 16 }
 0x206   : > { %12067 = vmatprep.mubr.msk.bf16.mxu0 %vm1241_vm9, %v13012_v41  ;;  %v4988_v41 = vrot.slane %v4986_v63, 4  ;;  %v5003_v63 = vrot.slane %v14657_v31, 5 }
 0x207   : > { %v14663_v36 = vrot.slane %v4209_v4, 5  ;;  %v5002_v4 = vrot.slane %v5000_v37, 4 }
 0x208   : > { %v14643_v49 = vsel %vm13747_vm15, %v4988_v41, %v4989_v25  ;;  %v4188_v25 = vsel %vm13360_vm8, %v4183_v8, %v4187_v47  ;;  %v4243_v41 = vrot.slane %v4241_v44, 5  ;;  %v4253_v8 = vrot.slane %v4251_v0, 4  ;;  %v4132_v44 = vld [vmem:[#allocation2 + $0x54] sm:$0xf] }
 0x209   : > { %17223 = vst [vmem:[#allocation9_spill] sm:$0xff] %v14643_v49  ;;  %v14681_v47 = vsel %vm13747_vm15, %v11072_v56, %v5000_v37  ;;  %v11027_v60 = vcombine.low %v4178_v51, %v4188_v25  ;;  %v14685_v35 = vsel %vm13747_vm15, %v5002_v4, %v5003_v63  ;;  %v4275_v0 = vshrl.u32 %v14672_v38, 16  ;;  %v14709_v37 = vld [vmem:[#allocation2 + $0x50] sm:$0x1] }
 0x20a   : > { %17224 = vst [vmem:[#allocation10_spill] sm:$0xff] %v14681_v47  ;;  %17225 = vst [vmem:[#allocation11_spill] sm:$0xff] %v14685_v35  ;;  %v4221_v51 = vrot.slane %v4220_v14, 4  ;;  %v4212_v63 = vsel %vm13360_vm8, %v14669_v50, %v14663_v36  ;;  %v4286_v4 = vshrl.u32 %v4132_v44, 16  ;;  %v4264_v14 = vrot.slane %v4262_v32, 4 }
 0x20b   : > { %v14711_v36 = vrot.slane %v4271_v48, 5  ;;  %v4277_v50 = vrot.slane %v4275_v0, 4  ;;  %v4295_v47 = vshll.u32 %v14549_v33, 16  ;;  %v4299_v48 = vshrl.u32 %v14549_v33, 16  ;;  %v4135_v0 = vld [vmem:[#allocation2 + $0x60] sm:$0xf] }
 0x20c   : > { %v4226_v12 = vsel %vm13360_vm8, %v4221_v51, %v14650_v22  ;;  %v4310_v19 = vshrl.u32 %v4135_v0, 16  ;;  %v4313_v30 = vshll.u32 %v4135_v0, 16 }
 0x20d   : > { %12068 = vmatmul.mubr.msk.bf16.gmra.mrb[16].mxu0 %vm1241_vm9, %v13013_v2  ;;  %v14702_v2 = vld [vmem:[#allocation2 + $0xd0] sm:$0xf] }
 0x20e   : > { %12071 = vmatprep.mubr.msk.bf16.mxu0 %vm1241_vm9, %v13014_v1  ;;  %v4238_v1 = vshrl.u32 %v4126_v7, 16  ;;  %v14675_v7 = vld [vmem:[#allocation2 + $0x44] sm:$0x1] }
 0x20f   : > { %v4257_v56 = vshll.u32 %v14675_v7, 16 }
 0x210   : > { %v4240_v52 = vrot.slane %v4238_v1, 4  ;;  %v4265_v1 = vshll.u32 %v4129_v28, 16 }
 0x211   : > { %v14718_v32 = vrot.slane %v4257_v56, 5 }
 0x212   : > { %v4244_v28 = vor.u32 %v4243_v41, %v4240_v52  ;;  %v4858_v52 = vld [vmem:[#allocation2 + $0xcc] sm:$0xe]  ;;  %v5014_v41 = vrot.slane %v14702_v2, 5 }
 0x215   : > { %12072 = vmatmul.mubr.msk.bf16.gmra.mrb[20].mxu0 %vm1241_vm9, %v13015_v55  ;;  %v4233_v55 = vshll.u32 %v14648_v29, 16 }
 0x216   : > { %12075 = vmatprep.mubr.msk.bf16.mxu0 %vm1241_vm9, %v13016_v58  ;;  %v14677_v58 = vrot.slane %v4247_v27, 5  ;;  %v4202_v27 = vsel %vm13360_vm8, %v14639_v24, %v14626_v40  ;;  %v4231_v40 = vrot.slane %v4230_v13, 4  ;;  %v4289_v13 = vshll.u32 %v4132_v44, 16  ;;  %v14724_v44 = vld [vmem:[#allocation2 + $0x64] sm:$0xf] }
 0x217   : > { %v4235_v25 = vrot.slane %v4233_v55, 5  ;;  %v4267_v55 = vrot.slane %v4265_v1, 5  ;;  %v5016_v1 = vrot.slane %v5014_v41, 4 }
 0x218   : > { %v4254_v24 = vor.u32 %v4253_v8, %v14677_v58  ;;  %v11074_v8 = vrot.slane %v4858_v52, 9  ;;  %v4291_v33 = vrot.slane %v4289_v13, 5 }
 0x219   : > { %v4236_v35 = vsel %vm13360_vm8, %v4231_v40, %v4235_v25  ;;  %v4268_v51 = vor.u32 %v4267_v55, %v4264_v14  ;;  %v4278_v25 = vor.u32 %v4277_v50, %v14711_v36  ;;  %v4288_v40 = vrot.slane %v4286_v4, 4 }
 0x21a   : > { %v14728_v52 = vsel %vm13747_vm15, %v11074_v8, %v5014_v41  ;;  %v14730_v22 = vrot.slane %v4254_v24, 4  ;;  %v4319_v41 = vshll.u32 %v14724_v44, 16  ;;  %v4323_v24 = vshrl.u32 %v14724_v44, 16 }
 0x21b   : > { %17226 = vst [vmem:[#allocation12_spill] sm:$0xff] %v14728_v52  ;;  %v11028_v14 = vcombine.low %v4202_v27, %v4212_v63  ;;  %v5118_v55 = vsel %vm1290_vm0, %v14542_v34, 0  ;;  %v4301_v50 = vrot.slane %v4299_v48, 4  ;;  %v11029_v4 = vcombine.low %v4226_v12, %v4236_v35  ;;  %v14756_v63 = vld [vmem:[#allocation2 + $0x68] sm:$0x1] }
 0x21c   : > { %v4138_v34 = vld [vmem:[#allocation2 + $0x6c] sm:$0xf]  ;;  %v4279_v8 = vrot.slane %v4278_v25, 4  ;;  %v4141_v12 = vld [vmem:[#allocation2 + $0x78] sm:$0xf]  ;;  %v4312_v35 = vrot.slane %v4310_v19, 4 }
 0x21d   : > { %12076 = vmatmul.mubr.msk.bf16.gmra.mrb[24].mxu0 %vm1241_vm9, %v13017_v62  ;;  %v5017_v62 = vrot.slane %v14704_v17, 5  ;;  %v4315_v48 = vrot.slane %v4313_v30, 5  ;;  %v14759_v0 = vrot.slane %v4319_v41, 5  ;;  %v4347_v25 = vshrl.u32 %v14567_v42, 16  ;;  %v4144_v52 = vld [vmem:[#allocation2 + $0x84] sm:$0xf] }
 0x21e   : > { %12079 = vmatprep.mubr.msk.bf16.mxu0 %vm1241_vm9, %v13018_v39  ;;  %v14716_v39 = vrot.slane %v4244_v28, 4  ;;  %v4281_v28 = vshll.u32 %v14709_v37, 16  ;;  %vm5384_vm0 = vcmask 125952  }
 0x21f   : > { %v14735_v56 = vsel %vm13747_vm15, %v5016_v1, %v5017_v62  ;;  %v14745_v62 = vrot.slane %v4295_v47, 5  ;;  %v4269_v47 = vrot.slane %v4268_v51, 4  ;;  %v4292_v1 = vor.u32 %v4291_v33, %v4288_v40  ;;  %vm15121_vm3 = vmand %vm5384_vm0, %vm639_vm7 }
 0x220   : > { %17227 = vst [vmem:[#allocation13_spill] sm:$0xff] %v14735_v56  ;;  %v4250_v13 = vsel %vm13360_vm8, %v14716_v39, %v14677_v58  ;;  %v4283_v27 = vrot.slane %v4281_v28, 5  ;;  %v4325_v58 = vrot.slane %v4323_v24, 4  ;;  %v14761_v39 = vld [vmem:[#allocation2 + $0x7c] sm:$0xf]  ;;  %v4337_v28 = vshll.u32 %v4138_v34, 16 }
 0x221   : > { %v4302_v49 = vor.u32 %v4301_v50, %v14745_v62  ;;  %v4343_v51 = vshll.u32 %v14567_v42, 16  ;;  %v4358_v40 = vshrl.u32 %v4141_v12, 16  ;;  %v4274_v30 = vsel %vm13360_vm8, %v4269_v47, %v14711_v36 }
 0x222   : > { %v4284_v19 = vsel %vm13360_vm8, %v4279_v8, %v4283_v27  ;;  %v4367_v33 = vshll.u32 %v14761_v39, 16  ;;  %v4371_v41 = vshrl.u32 %v14761_v39, 16  ;;  %v4293_v24 = vrot.slane %v4292_v1, 4  ;;  %v14779_v1 = vld [vmem:[#allocation2 + $0x80] sm:$0x1] }
 0x223   : > { %v4326_v56 = vor.u32 %v4325_v58, %v14759_v0  ;;  %v4303_v42 = vrot.slane %v4302_v49, 4  ;;  %v4339_v57 = vrot.slane %v4337_v28, 5  ;;  %v14777_v36 = vrot.slane %v4343_v51, 5 }
 0x224   : > { %v4349_v27 = vrot.slane %v4347_v25, 4  ;;  %v4360_v47 = vrot.slane %v4358_v40, 4  ;;  %v4385_v58 = vshll.u32 %v4144_v52, 16  ;;  %v4298_v28 = vsel %vm13360_vm8, %v4293_v24, %v14745_v62 }
 0x225   : > { %12080 = vmatmul.mubr.msk.bf16.gmra.mrb[28].mxu0 %vm1241_vm9, %v13019_v10  ;;  %v4260_v10 = vsel %vm13360_vm8, %v14730_v22, %v14718_v32  ;;  %v4329_v32 = vshll.u32 %v14756_v63, 16  ;;  %v4334_v22 = vshrl.u32 %v4138_v34, 16  ;;  %v4316_v34 = vor.u32 %v4315_v48, %v4312_v35 }
 0x226   : > { %12085 = vmatprep.mubr.msk.bf16.mxu0 %vm1241_vm9, %v11027_v60  ;;  %v4305_v60 = vshll.u32 %v14551_v43, 16  ;;  %v4361_v43 = vshll.u32 %v4141_v12, 16  ;;  %v4373_v35 = vrot.slane %v4371_v41, 4  ;;  %v4382_v48 = vshrl.u32 %v4144_v52, 16 }
 0x227   : > { %v4331_v12 = vrot.slane %v4329_v32, 5  ;;  %v4336_v46 = vrot.slane %v4334_v22, 4  ;;  %v4327_v49 = vrot.slane %v4326_v56, 4  ;;  %v4391_v32 = vshll.u32 %v14589_v61, 16 }
 0x228   : > { %v4307_v50 = vrot.slane %v4305_v60, 5  ;;  %v4363_v8 = vrot.slane %v4361_v43, 5  ;;  %v14781_v60 = vrot.slane %v4367_v33, 5  ;;  %v11030_v22 = vcombine.low %v4250_v13, %v4260_v10  ;;  %v4147_v43 = vld [vmem:[#allocation2 + $0x90] sm:$0xf] }
 0x229   : > { %v4340_v25 = vor.u32 %v4339_v57, %v4336_v46  ;;  %v4350_v40 = vor.u32 %v4349_v27, %v14777_v36  ;;  %v4353_v52 = vshll.u32 %v14569_v3, 16  ;;  %v4377_v56 = vshll.u32 %v14779_v1, 16  ;;  %v14793_v33 = vld [vmem:[#allocation2 + $0x94] sm:$0xf] }
 0x22a   : > { %v4308_v51 = vsel %vm13360_vm8, %v4303_v42, %v4307_v50  ;;  %v4374_v13 = vor.u32 %v4373_v35, %v14781_v60  ;;  %v4384_v10 = vrot.slane %v4382_v48, 4  ;;  %v4332_v57 = vsel %vm13360_vm8, %v4327_v49, %v4331_v12  ;;  %v4150_v48 = vld [vmem:[#allocation2 + $0x9c] sm:$0xf] }
 0x22b   : > { %v14801_v46 = vrot.slane %v4391_v32, 5  ;;  %v4409_v41 = vshll.u32 %v4147_v43, 16  ;;  %v4415_v24 = vshll.u32 %v14793_v33, 16  ;;  %v4419_v50 = vshrl.u32 %v14793_v33, 16  ;;  %v14809_v32 = vld [vmem:[#allocation2 + $0x98] sm:$0x1] }
 0x22c   : > { %v4351_v42 = vrot.slane %v4350_v40, 4  ;;  %v4355_v27 = vrot.slane %v4353_v52, 5  ;;  %v4401_v35 = vshll.u32 %v14591_v6, 16  ;;  %v4430_v6 = vshrl.u32 %v4150_v48, 16 }
 0x22d   : > { %12086 = vmatmul.mubr.msk.bf16.vlgmr.msra.gmra.mrb[0].mxu0 %vm1241_vm9, %v11028_v14  ;;  %v4317_v14 = vrot.slane %v4316_v34, 4  ;;  %v4341_v34 = vrot.slane %v4340_v25, 4  ;;  %v4433_v52 = vshll.u32 %v4150_v48, 16  ;;  %v14840_v48 = vld [vmem:[#allocation2 + $0xb0] sm:$0x1] }
 0x22e   : > { %12118 = vmatpush3.bf16.msra.mxu0 %v5118_v55  ;;  %12089 = vmatprep.mubr.msk.bf16.mxu0 %vm1241_vm9, %v11029_v4  ;;  %v4395_v55 = vshrl.u32 %v14589_v61, 16  ;;  %v11031_v4 = vcombine.low %v4274_v30, %v4284_v19  ;;  %v4364_v61 = vor.u32 %v4363_v8, %v4360_v47  ;;  %v4387_v30 = vrot.slane %v4385_v58, 5 }
 0x22f   : > { %v4322_v62 = vsel %vm13360_vm8, %v4317_v14, %v14759_v0  ;;  %v4406_v19 = vshrl.u32 %v4147_v43, 16  ;;  %v4379_v0 = vrot.slane %v4377_v56, 5  ;;  %v4375_v8 = vrot.slane %v4374_v13, 4 }
 0x230   : > { %v4397_v3 = vrot.slane %v4395_v55, 4  ;;  %v4365_v47 = vrot.slane %v4364_v61, 4  ;;  %v4388_v12 = vor.u32 %v4387_v30, %v4384_v10  ;;  %v11032_v58 = vcombine.low %v4298_v28, %v4308_v51  ;;  %v4153_v28 = vld [vmem:[#allocation2 + $0xa8] sm:$0xf]  ;;  %v14818_v51 = vld [vmem:[#allocation2 + $0xac] sm:$0xf] }
 0x231   : > { %v11033_v14 = vcombine.low %v4322_v62, %v4332_v57  ;;  %v4408_v55 = vrot.slane %v4406_v19, 4  ;;  %v14811_v43 = vrot.slane %v4415_v24, 5  ;;  %v4346_v25 = vsel %vm13360_vm8, %v4341_v34, %v14777_v36 }
 0x232   : > { %v4398_v49 = vor.u32 %v4397_v3, %v14801_v46  ;;  %v4356_v40 = vsel %vm13360_vm8, %v4351_v42, %v4355_v27  ;;  %v4370_v56 = vsel %vm13360_vm8, %v4365_v47, %v14781_v60  ;;  %v4380_v61 = vsel %vm13360_vm8, %v4375_v8, %v4379_v0 }
 0x233   : > { %v4389_v13 = vrot.slane %v4388_v12, 4  ;;  %v4403_v10 = vrot.slane %v4401_v35, 5  ;;  %v4425_v36 = vshll.u32 %v14809_v32, 16  ;;  %v4439_v62 = vshll.u32 %v14621_v18, 16 }
 0x234   : > { %v4399_v30 = vrot.slane %v4398_v49, 4  ;;  %v4443_v57 = vshrl.u32 %v14621_v18, 16  ;;  %v4454_v3 = vshrl.u32 %v4153_v28, 16  ;;  %v4457_v19 = vshll.u32 %v4153_v28, 16 }
 0x235   : > { %12090 = vmatmul.mubr.msk.bf16.gmra.mrb[4].mxu0 %vm1241_vm9, %v11030_v22  ;;  %v4411_v22 = vrot.slane %v4409_v41, 5  ;;  %v4463_v41 = vshll.u32 %v14818_v51, 16  ;;  %v4467_v60 = vshrl.u32 %v14818_v51, 16  ;;  %v4432_v34 = vrot.slane %v4430_v6, 4 }
 0x236   : > { %12093 = vmatprep.mubr.msk.bf16.mxu0 %vm1241_vm9, %v11031_v4  ;;  %v4421_v4 = vrot.slane %v4419_v50, 4  ;;  %v4435_v42 = vrot.slane %v4433_v52, 5  ;;  %v11034_v27 = vcombine.low %v4346_v25, %v4356_v40  ;;  %v11035_v0 = vcombine.low %v4370_v56, %v4380_v61 }
 0x237   : > { %v4412_v24 = vor.u32 %v4411_v22, %v4408_v55  ;;  %v4394_v18 = vsel %vm13360_vm8, %v4389_v13, %v14801_v46  ;;  %v4404_v47 = vsel %vm13360_vm8, %v4399_v30, %v4403_v10  ;;  %v4427_v8 = vrot.slane %v4425_v36, 5  ;;  %v4156_v22 = vld [vmem:[#allocation2 + $0xb4] sm:$0xf]  ;;  %v4159_v13 = vld [vmem:[#allocation2 + $0xc0] sm:$0xf] }
 0x238   : > { %v4422_v50 = vor.u32 %v4421_v4, %v14811_v43  ;;  %v14838_v12 = vrot.slane %v4439_v62, 5  ;;  %v4445_v35 = vrot.slane %v4443_v57, 4  ;;  %v4465_v49 = vrot.slane %v4463_v41, 5  ;;  %v14845_v10 = vld [vmem:[#allocation2 + $0xc4] sm:$0xf] }
 0x239   : > { %v4469_v55 = vrot.slane %v4467_v60, 4  ;;  %v4413_v4 = vrot.slane %v4412_v24, 4  ;;  %v4436_v40 = vor.u32 %v4435_v42, %v4432_v34  ;;  %v4449_v6 = vshll.u32 %v14623_v9, 16 }
 0x23a   : > { %v4423_v25 = vrot.slane %v4422_v50, 4  ;;  %v4473_v46 = vshll.u32 %v14840_v48, 16  ;;  %v11036_v52 = vcombine.low %v4394_v18, %v4404_v47  ;;  %v4446_v28 = vor.u32 %v4445_v35, %v14838_v12 }
 0x23b   : > { %v4478_v56 = vshrl.u32 %v4156_v22, 16  ;;  %v4481_v61 = vshll.u32 %v4156_v22, 16  ;;  %v4470_v36 = vor.u32 %v4469_v55, %v4465_v49  ;;  %v4487_v62 = vshll.u32 %v14655_v54, 16 }
 0x23c   : > { %v4491_v57 = vshrl.u32 %v14655_v54, 16  ;;  %v4418_v9 = vsel %vm13360_vm8, %v4413_v4, %v14811_v43  ;;  %v4451_v41 = vrot.slane %v4449_v6, 5  ;;  %v4502_v60 = vshrl.u32 %v4159_v13, 16  ;;  %v4162_v4 = vld [vmem:[#allocation2 + $0xcc] sm:$0xf] }
 0x23d   : > { %12094 = vmatmul.mubr.msk.bf16.gmra.mrb[8].mxu0 %vm1241_vm9, %v11032_v58  ;;  %v4456_v58 = vrot.slane %v4454_v3, 4  ;;  %v4428_v3 = vsel %vm13360_vm8, %v4423_v25, %v4427_v8  ;;  %v4505_v24 = vshll.u32 %v4159_v13, 16  ;;  %v4511_v50 = vshll.u32 %v14845_v10, 16 }
 0x23e   : > { %12097 = vmatprep.mubr.msk.bf16.mxu0 %vm1241_vm9, %v11033_v14  ;;  %v4459_v14 = vrot.slane %v4457_v19, 5  ;;  %v4437_v19 = vrot.slane %v4436_v40, 4  ;;  %v4515_v34 = vshrl.u32 %v14845_v10, 16  ;;  %v4447_v42 = vrot.slane %v4446_v28, 4 }
 0x23f   : > { %v4480_v54 = vrot.slane %v4478_v56, 4  ;;  %v4483_v18 = vrot.slane %v4481_v61, 5  ;;  %v4471_v47 = vrot.slane %v4470_v36, 4  ;;  %v4489_v35 = vrot.slane %v4487_v62, 5 }
 0x240   : > { %v4460_v30 = vor.u32 %v4459_v14, %v4456_v58  ;;  %v4493_v58 = vrot.slane %v4491_v57, 4  ;;  %v11037_v43 = vcombine.low %v4418_v9, %v4428_v3  ;;  %v4504_v14 = vrot.slane %v4502_v60, 4 }
 0x241   : > { %v4507_v55 = vrot.slane %v4505_v24, 5  ;;  %v4513_v8 = vrot.slane %v4511_v50, 5  ;;  %v4517_v22 = vrot.slane %v4515_v34, 4  ;;  %v4442_v25 = vsel %vm13360_vm8, %v4437_v19, %v14838_v12 }
 0x242   : > { %v4452_v40 = vsel %vm13360_vm8, %v4447_v42, %v4451_v41  ;;  %v4484_v6 = vor.u32 %v4483_v18, %v4480_v54  ;;  %v4494_v61 = vor.u32 %v4493_v58, %v4489_v35  ;;  %v4497_v13 = vshll.u32 %v14657_v31, 16 }
 0x243   : > { %v4526_v12 = vshrl.u32 %v4162_v4, 16  ;;  %v4535_v36 = vshll.u32 %v14702_v2, 16  ;;  %v4539_v62 = vshrl.u32 %v14702_v2, 16  ;;  %v4508_v57 = vor.u32 %v4507_v55, %v4504_v14 }
 0x244   : > { %v4518_v9 = vor.u32 %v4517_v22, %v4513_v8  ;;  %v11038_v3 = vcombine.low %v4442_v25, %v4452_v40  ;;  %v4485_v19 = vrot.slane %v4484_v6, 4  ;;  %v4495_v41 = vrot.slane %v4494_v61, 4  ;;  %v4843_v22 = vld [vmem:[#allocation2 + $0x18] sm:$0xe] }
 0x245   : > { %12098 = vmatmul.mubr.msk.bf16.gmra.mrb[12].mxu0 %vm1241_vm9, %v11034_v27  ;;  %v4475_v27 = vrot.slane %v4473_v46, 5  ;;  %v14863_v46 = vld [vmem:[#allocation2 + $0xc8] sm:$0x1]  ;;  %v4499_v60 = vrot.slane %v4497_v13, 5  ;;  %v4528_v24 = vrot.slane %v4526_v12, 4  ;;  %v4537_v31 = vrot.slane %v4535_v36, 5 }
 0x246   : > { %12101 = vmatprep.mubr.msk.bf16.mxu0 %vm1241_vm9, %v11035_v0  ;;  %v4461_v0 = vrot.slane %v4460_v30, 4  ;;  %v4529_v30 = vshll.u32 %v4162_v4, 16  ;;  %v4541_v34 = vrot.slane %v4539_v62, 4  ;;  %v4509_v42 = vrot.slane %v4508_v57, 4  ;;  %v4845_v36 = vld [vmem:[#allocation2 + $0x30] sm:$0xe] }
 0x247   : > { %v4476_v56 = vsel %vm13360_vm8, %v4471_v47, %v4475_v27  ;;  %v4519_v27 = vrot.slane %v4518_v9, 4  ;;  %v4490_v2 = vsel %vm13360_vm8, %v4485_v19, %v4489_v35  ;;  %v4500_v18 = vsel %vm13360_vm8, %v4495_v41, %v4499_v60 }
 0x248   : > { %v4466_v28 = vsel %vm13360_vm8, %v4461_v0, %v4465_v49  ;;  %v4531_v50 = vrot.slane %v4529_v30, 5  ;;  %v4542_v47 = vor.u32 %v4541_v34, %v4537_v31  ;;  %v4545_v58 = vshll.u32 %v14704_v17, 16  ;;  %v4844_v30 = vld [vmem:[#allocation2 + $0x24] sm:$0xe] }
 0x249   : > { %v11039_v49 = vcombine.low %v4466_v28, %v4476_v56  ;;  %v4909_v55 = vrot.slane %v14578_v21, 5  ;;  %v11040_v4 = vcombine.low %v4490_v2, %v4500_v18  ;;  %v11059_v28 = vrot.slane %v4843_v22, 9 }
 0x24a   : > { %v4532_v0 = vor.u32 %v4531_v50, %v4528_v24  ;;  %v4543_v40 = vrot.slane %v4542_v47, 4  ;;  %v4547_v6 = vrot.slane %v4545_v58, 5  ;;  %v4912_v61 = vrot.slane %v14598_v15, 5  ;;  %v4846_v50 = vld [vmem:[#allocation2 + $0x3c] sm:$0xe] }
 0x24b   : > { %v4911_v56 = vrot.slane %v4909_v55, 4  ;;  %v4910_v13 = vsel %vm13747_vm15, %v11059_v28, %v4909_v55  ;;  %v4923_v15 = vrot.slane %v14619_v11, 5  ;;  %v11060_v9 = vrot.slane %v4844_v30, 9 }
 0x24c   : > { %v4533_v25 = vrot.slane %v4532_v0, 4  ;;  %v4548_v21 = vsel %vm13360_vm8, %v4543_v40, %v4547_v6  ;;  %v4930_v60 = vrot.slane %v14633_v59, 5  ;;  %v4933_v2 = vrot.slane %v14675_v7, 5 }
 0x24d   : > { %12102 = vmatmul.mubr.msk.bf16.gmra.mrb[16].mxu0 %vm1241_vm9, %v11036_v52  ;;  %v4521_v52 = vshll.u32 %v14863_v46, 16  ;;  %v4913_v12 = vsel %vm13747_vm15, %v4911_v56, %v4912_v61  ;;  %v4925_v19 = vrot.slane %v4923_v15, 4  ;;  %v4940_v59 = vrot.slane %v14709_v37, 5 }
 0x24e   : > { %12105 = vmatprep.mubr.msk.bf16.mxu0 %vm1241_vm9, %v11037_v43  ;;  %v4514_v43 = vsel %vm13360_vm8, %v4509_v42, %v4513_v8  ;;  %v4538_v17 = vsel %vm13360_vm8, %v4533_v25, %v4537_v31  ;;  %v4916_v8 = vrot.slane %v14596_v16, 5  ;;  %v11076_v57 = vcombine.low %v4910_v13, %v4913_v12  ;;  %v4847_v31 = vld [vmem:[#allocation2 + $0x48] sm:$0xe]  ;;  %v4853_v13 = vld [vmem:[#allocation2 + $0x90] sm:$0xe] }
 0x24f   : > { %v4523_v54 = vrot.slane %v4521_v52, 5  ;;  %v11042_v62 = vcombine.low %v4538_v17, %v4548_v21  ;;  %v4926_v16 = vrot.slane %v14648_v29, 5  ;;  %v4937_v29 = vrot.slane %v14672_v38, 5 }
 0x250   : > { %v4918_v52 = vrot.slane %v4916_v8, 4  ;;  %v4917_v41 = vsel %vm13747_vm15, %v11060_v9, %v4916_v8  ;;  %v11063_v18 = vrot.slane %v4847_v31, 9  ;;  %v4965_v6 = vrot.slane %v14761_v39, 5 }
 0x251   : > { %v4524_v14 = vsel %vm13360_vm8, %v4519_v27, %v4523_v54  ;;  %v11062_v27 = vrot.slane %v4846_v50, 9  ;;  %v4932_v54 = vrot.slane %v4930_v60, 4  ;;  %v4939_v0 = vrot.slane %v4937_v29, 4  ;;  %v17234_v50 = vld [vmem:[#allocation8_spill] sm:$0xff] }
 0x252   : > { %v11041_v35 = vcombine.low %v4514_v43, %v4524_v14  ;;  %v4938_v58 = vsel %vm13747_vm15, %v11063_v18, %v4937_v29  ;;  %v4951_v43 = vrot.slane %v14724_v44, 5  ;;  %v4849_v14 = vld [vmem:[#allocation2 + $0x60] sm:$0xe]  ;;  %v4851_v44 = vld [vmem:[#allocation2 + $0x78] sm:$0xe]  ;;  %v4967_v61 = vrot.slane %v4965_v6, 4 }
 0x253   : > { %v4931_v47 = vsel %vm13747_vm15, %v11062_v27, %v4930_v60  ;;  %v4934_v38 = vsel %vm13747_vm15, %v4932_v54, %v4933_v2  ;;  %v4941_v7 = vsel %vm13747_vm15, %v4939_v0, %v4940_v59  ;;  %v11065_v22 = vrot.slane %v4849_v14, 9  ;;  %v17235_v29 = vld [vmem:[#allocation9_spill] sm:$0xff]  ;;  %v17237_v27 = vld [vmem:[#allocation10_spill] sm:$0xff]  ;;  %v17238_v54 = vld [vmem:[#allocation11_spill] sm:$0xff] }
 0x254   : > { %v11079_v37 = vcombine.low %v4931_v47, %v4934_v38  ;;  %v11080_v55 = vcombine.low %v4938_v58, %v4941_v7  ;;  %v11067_v56 = vrot.slane %v4851_v44, 9  ;;  %v4968_v17 = vrot.slane %v14779_v1, 5  ;;  %v17241_v18 = vld [vmem:[#allocation13_spill] sm:$0xff] }
 0x255   : > { %12106 = vmatmul.mubr.msk.bf16.gmra.mrb[20].mxu0 %vm1241_vm9, %v11038_v3  ;;  %v4919_v3 = vrot.slane %v14615_v53, 5  ;;  %v4927_v53 = vsel %vm13747_vm15, %v4925_v19, %v4926_v16  ;;  %v4952_v25 = vsel %vm13747_vm15, %v11065_v22, %v4951_v43  ;;  %v4979_v39 = vrot.slane %v14793_v33, 5 }
 0x256   : > { %12109 = vmatprep.mubr.msk.bf16.mxu0 %vm1241_vm9, %v11039_v49  ;;  %v11061_v49 = vrot.slane %v4845_v36, 9  ;;  %v4966_v21 = vsel %vm13747_vm15, %v11067_v56, %v4965_v6  ;;  %v4969_v8 = vsel %vm13747_vm15, %v4967_v61, %v4968_v17  ;;  %v11069_v30 = vrot.slane %v4853_v13, 9 }
 0x257   : > { %v4920_v11 = vsel %vm13747_vm15, %v4918_v52, %v4919_v3  ;;  %v11084_v12 = vcombine.low %v4966_v21, %v4969_v8  ;;  %v4982_v1 = vrot.slane %v14809_v32, 5  ;;  %v4993_v33 = vrot.slane %v14818_v51, 5  ;;  %v15106_v8 = vld [vmem:[%s17050_s3] sm:$0xff]  }
 0x258   : > { %v4924_v24 = vsel %vm13747_vm15, %v11061_v49, %v4923_v15  ;;  %v11077_v34 = vcombine.low %v4917_v41, %v4920_v11  ;;  %v4981_v15 = vrot.slane %v4979_v39, 4  ;;  %v4980_v36 = vsel %vm13747_vm15, %v11069_v30, %v4979_v39  ;;  %v17231_v49 = vld [vmem:[#allocation6_spill] sm:$0xff] }
 0x259   : > { %v11078_v42 = vcombine.low %v4924_v24, %v4927_v53  ;;  %v4995_v3 = vrot.slane %v4993_v33, 4  ;;  %v4996_v32 = vrot.slane %v14840_v48, 5  ;;  %v5007_v51 = vrot.slane %v14845_v10, 5  ;;  %v4857_v11 = vld [vmem:[#allocation2 + $0xc0] sm:$0xe] }
 0x25a   : > { %v11073_v24 = vrot.slane %v4857_v11, 9  ;;  %v5010_v48 = vrot.slane %v14863_v46, 5  ;;  %v17236_v31 = vcombine.low %v17234_v50, %v17235_v29  ;;  %v17239_v2 = vcombine.low %v17237_v27, %v17238_v54  ;;  %v17240_v46 = vld [vmem:[#allocation12_spill] sm:$0xff]  ;;  %v15112_v39 = vld [vmem:[%s17049_s2] ss:$0 sm:$0xff] }
 0x25b   : > { %v4997_v41 = vsel %vm13747_vm15, %v4995_v3, %v4996_v32  ;;  %v5009_v53 = vrot.slane %v5007_v51, 4  ;;  %v17242_v0 = vcombine.low %v17240_v46, %v17241_v18  ;;  %v17243_v59 = vmov 0  }
 0x25c   : > { %5392 = vst.msk [vmem:[#allocation3 + $0x18] sm:$0xf] %vm5384_vm0, %v17243_v59  ;;  %5385 = vst.msk [vmem:[#allocation3] sm:$0xf] %vm5384_vm0, %v17243_v59 }
 0x25d   : > { %12110 = vmatmul.mubr.msk.bf16.gmra.mrb[24].mxu0 %vm1241_vm9, %v11040_v4  ;;  %v4953_v4 = vrot.slane %v4951_v43, 4  ;;  %5386 = vst.msk [vmem:[#allocation3 + $0x4] sm:$0xf] %vm5384_vm0, %v17243_v59  ;;  %5389 = vst.msk [vmem:[#allocation3 + $0xc] sm:$0xf] %vm5384_vm0, %v17243_v59 }
 0x25e   : > { %12113 = vmatprep.mubr.msk.bf16.mxu0 %vm1241_vm9, %v11041_v35  ;;  %v4954_v35 = vrot.slane %v14756_v63, 5  ;;  %v17228_v63 = vcombine.low %v14558_v5, %v14562_v23  ;;  %v17229_v5 = vld [vmem:[#allocation5_spill] sm:$0xff]  ;;  %5390 = vst.msk [vmem:[#allocation3 + $0x10] sm:$0xf] %vm5384_vm0, %v17243_v59  ;;  %5393 = vst.msk [vmem:[#allocation3 + $0x1c] sm:$0xf] %vm5384_vm0, %v17243_v59 }
 0x25f   : > { %v17230_v23 = vcombine.low %v14576_v45, %v17229_v5  ;;  %v17232_v45 = vld [vmem:[#allocation7_spill] sm:$0xff]  ;;  %5395 = vst.msk [vmem:[#allocation3 + $0x24] sm:$0xf] %vm5384_vm0, %v17243_v59  ;;  %5396 = vst.msk [vmem:[#allocation3 + $0x28] sm:$0xf] %vm5384_vm0, %v17243_v59 }
 0x260   : > { %v4955_v40 = vsel %vm13747_vm15, %v4953_v4, %v4954_v35  ;;  %v17233_v19 = vcombine.low %v17231_v49, %v17232_v45  ;;  %5398 = vst.msk [vmem:[#allocation3 + $0x30] sm:$0xf] %vm5384_vm0, %v17243_v59  ;;  %5399 = vst.msk [vmem:[#allocation3 + $0x34] sm:$0xf] %vm5384_vm0, %v17243_v59 }
 0x261   : > { %v11082_v28 = vcombine.low %v4952_v25, %v4955_v40  ;;  %5401 = vst.msk [vmem:[#allocation3 + $0x3c] sm:$0xf] %vm5384_vm0, %v17243_v59  ;;  %5402 = vst.msk [vmem:[#allocation3 + $0x40] sm:$0xf] %vm5384_vm0, %v17243_v59 }
 0x262   : > { %5404 = vst.msk [vmem:[#allocation3 + $0x48] sm:$0xf] %vm5384_vm0, %v17243_v59  ;;  %5405 = vst.msk [vmem:[#allocation3 + $0x4c] sm:$0xf] %vm5384_vm0, %v17243_v59 }
 0x263   : > { %5407 = vst.msk [vmem:[#allocation3 + $0x54] sm:$0xf] %vm5384_vm0, %v17243_v59  ;;  %5408 = vst.msk [vmem:[#allocation3 + $0x58] sm:$0xf] %vm5384_vm0, %v17243_v59  ;;  %v5973_v47 = vld [vmem:[#allocation3] sm:$0xf] }
 0x264   : > { %5410 = vst.msk [vmem:[#allocation3 + $0x60] sm:$0xf] %vm5384_vm0, %v17243_v59  ;;  %5411 = vst.msk [vmem:[#allocation3 + $0x64] sm:$0xf] %vm5384_vm0, %v17243_v59  ;;  %v5974_v38 = vld [vmem:[#allocation3 + $0x4] sm:$0xf] }
 0x265   : > { %12114 = vmatmul.mubr.msk.bf16.gmra.mrb[28].mxu0 %vm1241_vm9, %v11042_v62  ;;  %v4983_v62 = vsel %vm13747_vm15, %v4981_v15, %v4982_v1  ;;  %5413 = vst.msk [vmem:[#allocation3 + $0x6c] sm:$0xf] %vm5384_vm0, %v17243_v59  ;;  %5414 = vst.msk [vmem:[#allocation3 + $0x70] sm:$0xf] %vm5384_vm0, %v17243_v59  ;;  %v6024_v58 = vshrl.u32 %v5973_v47, 16  ;;  %v6027_v7 = vshll.u32 %v5973_v47, 16 }
 0x266   : > { %12119 = vmatprep.mubr.msk.bf16.mxu0 %vm1241_vm9, %v11076_v57  ;;  %v4855_v57 = vld [vmem:[#allocation2 + $0xa8] sm:$0xe]  ;;  %v11086_v9 = vcombine.low %v4980_v36, %v4983_v62  ;;  %5416 = vst.msk [vmem:[#allocation3 + $0x78] sm:$0xf] %vm5384_vm0, %v17243_v59  ;;  %5417 = vst.msk [vmem:[#allocation3 + $0x7c] sm:$0xf] %vm5384_vm0, %v17243_v59 }
 0x267   : > { %v11071_v52 = vrot.slane %v4855_v57, 9  ;;  %5419 = vst.msk [vmem:[#allocation3 + $0x84] sm:$0xf] %vm5384_vm0, %v17243_v59  ;;  %5420 = vst.msk [vmem:[#allocation3 + $0x88] sm:$0xf] %vm5384_vm0, %v17243_v59  ;;  %v6033_v43 = vshll.u32 %v5974_v38, 16 }
 0x268   : > { %5422 = vst.msk [vmem:[#allocation3 + $0x90] sm:$0xf] %vm5384_vm0, %v17243_v59  ;;  %5423 = vst.msk [vmem:[#allocation3 + $0x94] sm:$0xf] %vm5384_vm0, %v17243_v59  ;;  %v6037_v14 = vshrl.u32 %v5974_v38, 16  ;;  %v6029_v22 = vrot.slane %v6027_v7, 5 }
 0x269   : > { %v4994_v16 = vsel %vm13747_vm15, %v11071_v52, %v4993_v33  ;;  %5425 = vst.msk [vmem:[#allocation3 + $0x9c] sm:$0xf] %vm5384_vm0, %v17243_v59  ;;  %5426 = vst.msk [vmem:[#allocation3 + $0xa0] sm:$0xf] %vm5384_vm0, %v17243_v59  ;;  %v6035_v4 = vrot.slane %v6033_v43, 5 }
 0x26a   : > { %v11088_v60 = vcombine.low %v4994_v16, %v4997_v41  ;;  %5428 = vst.msk [vmem:[#allocation3 + $0xa8] sm:$0xf] %vm5384_vm0, %v17243_v59  ;;  %5429 = vst.msk [vmem:[#allocation3 + $0xac] sm:$0xf] %vm5384_vm0, %v17243_v59  ;;  %v6039_v25 = vrot.slane %v6037_v14, 4 }
 0x26b   : > { %5431 = vst.msk [vmem:[#allocation3 + $0xb4] sm:$0xf] %vm5384_vm0, %v17243_v59  ;;  %5432 = vst.msk [vmem:[#allocation3 + $0xb8] sm:$0xf] %vm5384_vm0, %v17243_v59  ;;  %v5868_v29 = vld [vmem:[#allocation3 + $0x18] sm:$0xf] }
 0x26c   : > { %5434 = vst.msk [vmem:[#allocation3 + $0xc0] sm:$0xf] %vm5384_vm0, %v17243_v59  ;;  %5435 = vst.msk [vmem:[#allocation3 + $0xc4] sm:$0xf] %vm5384_vm0, %v17243_v59  ;;  %v6040_v44 = vor.u32 %v6039_v25, %v6035_v4  ;;  %v5859_v46 = vld [vmem:[#allocation3 + $0xc] sm:$0xf] }
 0x26d   : > { %12120 = vmatmul.mubr.msk.bf16.vlgmr.msra.gmra.mrb[0].mxu0 %vm1241_vm9, %v11077_v34  ;;  %v5008_v34 = vsel %vm13747_vm15, %v11073_v24, %v5007_v51  ;;  %5437 = vst.msk [vmem:[#allocation3 + $0xcc] sm:$0xf] %vm5384_vm0, %v17243_v59  ;;  %5438 = vst.msk [vmem:[#allocation3 + $0xd0] sm:$0xf] %vm5384_vm0, %v17243_v59 }
 0x26e   : > { %12123 = vmatprep.mubr.msk.bf16.mxu0 %vm1241_vm9, %v11078_v42  ;;  %v5011_v42 = vsel %vm13747_vm15, %v5009_v53, %v5010_v48  ;;  %5394 = vst.msk [vmem:[#allocation3 + $0x20] sm:$0x1] %vm5387_vm1, %v17243_v59  ;;  %5388 = vst.msk [vmem:[#allocation3 + $0x8] sm:$0x1] %vm5387_vm1, %v17243_v59  ;;  %v6041_v61 = vrot.slane %v6040_v44, 4 }
 0x26f   : > { %v11090_v10 = vcombine.low %v5008_v34, %v5011_v42  ;;  %5391 = vst.msk [vmem:[#allocation3 + $0x14] sm:$0x1] %vm5387_vm1, %v17243_v59  ;;  %5397 = vst.msk [vmem:[#allocation3 + $0x2c] sm:$0x1] %vm5387_vm1, %v17243_v59 }
 0x270   : > { %5400 = vst.msk [vmem:[#allocation3 + $0x38] sm:$0x1] %vm5387_vm1, %v17243_v59  ;;  %5403 = vst.msk [vmem:[#allocation3 + $0x44] sm:$0x1] %vm5387_vm1, %v17243_v59 }
 0x271   : > { %5406 = vst.msk [vmem:[#allocation3 + $0x50] sm:$0x1] %vm5387_vm1, %v17243_v59  ;;  %5409 = vst.msk [vmem:[#allocation3 + $0x5c] sm:$0x1] %vm5387_vm1, %v17243_v59 }
 0x272   : > { %5412 = vst.msk [vmem:[#allocation3 + $0x68] sm:$0x1] %vm5387_vm1, %v17243_v59  ;;  %5415 = vst.msk [vmem:[#allocation3 + $0x74] sm:$0x1] %vm5387_vm1, %v17243_v59 }
 0x273   : > { %5418 = vst.msk [vmem:[#allocation3 + $0x80] sm:$0x1] %vm5387_vm1, %v17243_v59  ;;  %5421 = vst.msk [vmem:[#allocation3 + $0x8c] sm:$0x1] %vm5387_vm1, %v17243_v59 }
 0x274   : > { %5424 = vst.msk [vmem:[#allocation3 + $0x98] sm:$0x1] %vm5387_vm1, %v17243_v59  ;;  %5427 = vst.msk [vmem:[#allocation3 + $0xa4] sm:$0x1] %vm5387_vm1, %v17243_v59 }
 0x275   : > { %12124 = vmatmul.mubr.msk.bf16.gmra.mrb[4].mxu0 %vm1241_vm9, %v11079_v37  ;;  %5430 = vst.msk [vmem:[#allocation3 + $0xb0] sm:$0x1] %vm5387_vm1, %v17243_v59  ;;  %5433 = vst.msk [vmem:[#allocation3 + $0xbc] sm:$0x1] %vm5387_vm1, %v17243_v59  ;;  %v13020_v37 = vld [vmem:[%s17050_s3 + $0x8] sm:$0xff]  }
 0x276   : > { %12127 = vmatprep.mubr.msk.bf16.mxu0 %vm1241_vm9, %v11080_v55  ;;  %5436 = vst.msk [vmem:[#allocation3 + $0xc8] sm:$0x1] %vm5387_vm1, %v17243_v59  ;;  %5439 = vst.msk [vmem:[#allocation3 + $0xd4] sm:$0x1] %vm5387_vm1, %v17243_v59  ;;  %v6026_v55 = vrot.slane %v6024_v58, 4  ;;  %12151 = vmatprep.subr.bf16.mxu1 %v13020_v37 }
 0x277   : > { %v6007_v35 = vld [vmem:[#allocation3 + $0x8] sm:$0x1]  ;;  %12152 = vmatpush3.bf16.msra.mxu1 %v13020_v37  ;;  %v5872_v7 = vld [vmem:[#allocation3 + $0x20] sm:$0x1] }
 0x278   : > { %v6030_v40 = vor.u32 %v6029_v22, %v6026_v55  ;;  %v6043_v6 = vshll.u32 %v6007_v35, 16  ;;  %12185 = vmatprep.subr.bf16.mxu1 %v15106_v8 }
 0x27a   : > { %v6045_v56 = vrot.slane %v6043_v6, 5 }
 0x27d   : > { %12128 = vmatmul.mubr.msk.bf16.gmra.mrb[8].mxu0 %vm1241_vm9, %v17228_v63  ;;  %v6046_v63 = vsel %vm13360_vm8, %v6041_v61, %v6045_v56 }
 0x27e   : > { %12131 = vmatprep.mubr.msk.bf16.mxu0 %vm1241_vm9, %v11082_v28  ;;  %v6031_v28 = vrot.slane %v6030_v40, 4 }
 0x280   : > { %v6036_v17 = vsel %vm13360_vm8, %v6031_v28, %v6035_v4  ;;  %v5865_v4 = vld [vmem:[#allocation3 + $0x14] sm:$0x1] }
 0x281   : > { %v11143_v21 = vcombine.low %v6036_v17, %v6046_v63 }
 0x283   : > { %12153 = vmatprep.mubr.msk.bf16.mxu1 %vm6464_vm2, %v11143_v21 }
 0x285   : > { %12132 = vmatmul.mubr.msk.bf16.gmra.mrb[12].mxu0 %vm1241_vm9, %v17230_v23 }
 0x286   : > { %12135 = vmatprep.mubr.msk.bf16.mxu0 %vm1241_vm9, %v11084_v12 }
 0x28d   : > { %12136 = vmatmul.mubr.msk.bf16.gmra.mrb[16].mxu0 %vm1241_vm9, %v17233_v19 }
 0x28e   : > { %12139 = vmatprep.mubr.msk.bf16.mxu0 %vm1241_vm9, %v11086_v9 }
 0x295   : > { %12140 = vmatmul.mubr.msk.bf16.gmra.mrb[20].mxu0 %vm1241_vm9, %v17236_v31 }
 0x296   : > { %12143 = vmatprep.mubr.msk.bf16.mxu0 %vm1241_vm9, %v11088_v60 }
 0x29d   : > { %12144 = vmatmul.mubr.msk.bf16.gmra.mrb[24].mxu0 %vm1241_vm9, %v17239_v2 }
 0x29e   : > { %12147 = vmatprep.mubr.msk.bf16.mxu0 %vm1241_vm9, %v11090_v10 }
 0x2a5   : > { %12148 = vmatmul.mubr.msk.bf16.gmra.mrb[28].mxu0 %vm1241_vm9, %v17242_v0 }
 0x340   : > { %v12121_v13 = vpop.f32.mrb[0].mxu0 }
 0x341   : > { %v5322_v12 = vadd.f32 %v12121_v13, %v15112_v39  ;;  %v5154_v30 = vpop.f32.mrb[1].mxu0 }
 0x342   : > { %v5320_v15 = vadd.f32 %v15112_v39, %v5154_v30  ;;  %v12122_v1 = vpop.f32.mrb[2].mxu0 }
 0x343   : > { %v5354_v5 = vmax.f32 %v5322_v12, 0.0  ;;  %v5323_v23 = vadd.f32 %v12122_v1, %v15112_v39  ;;  %v5157_v36 = vpop.f32.mrb[3].mxu0 }
 0x344   : > { %v5352_v62 = vmax.f32 %v5320_v15, 0.0  ;;  %v5321_v33 = vadd.f32 %v15112_v39, %v5157_v36 }
 0x345   : > { %v11509_v57 = vpack.c.bf16 %v5354_v5, %v5354_v5  ;;  %v5355_v9 = vmax.f32 %v5323_v23, 0.0 }
 0x346   : > { %v11507_v52 = vpack.c.bf16 %v5352_v62, %v5352_v62  ;;  %v5353_v3 = vmax.f32 %v5321_v33, 0.0  ;;  %v5882_v62 = vld [vmem:[#allocation3 + $0x30] sm:$0xf] }
 0x347   : > { %v5554_v32 = vshrl.u32 %v11509_v57, 16  ;;  %v11510_v49 = vpack.c.bf16 %v5355_v9, %v5355_v9  ;;  %v5557_v45 = vshll.u32 %v11509_v57, 16 }
 0x348   : > { %v5537_v19 = vshrl.u32 %v11507_v52, 16  ;;  %v5540_v16 = vshll.u32 %v11507_v52, 16  ;;  %v11508_v41 = vpack.c.bf16 %v5353_v3, %v5353_v3  ;;  %v12125_v51 = vpop.f32.mrb[4].mxu0 }
 0x349   : > { %v5556_v11 = vrot.slane %v5554_v32, 7  ;;  %v5562_v60 = vshrl.u32 %v11510_v49, 16  ;;  %v5565_v24 = vshll.u32 %v11510_v49, 16  ;;  %v5326_v53 = vadd.f32 %v12125_v51, %v15112_v39  ;;  %v5170_v48 = vpop.f32.mrb[5].mxu0  ;;  %v5875_v49 = vld [vmem:[#allocation3 + $0x24] sm:$0xf] }
 0x34a   : > { %v5539_v31 = vrot.slane %v5537_v19, 7  ;;  %v5545_v34 = vshrl.u32 %v11508_v41, 16  ;;  %v5548_v42 = vshll.u32 %v11508_v41, 16  ;;  %v5324_v10 = vadd.f32 %v15112_v39, %v5170_v48  ;;  %v12126_v27 = vpop.f32.mrb[6].mxu0 }
 0x34b   : > { %v5559_v54 = vor.u32 %v5557_v45, %v5556_v11  ;;  %v5560_v2 = vrot.slane %v5556_v11, 4  ;;  %v5564_v18 = vrot.slane %v5562_v60, 7  ;;  %v5358_v0 = vmax.f32 %v5326_v53, 0.0  ;;  %v5173_v59 = vpop.f32.mrb[7].mxu0 }
 0x34c   : > { %v5542_v47 = vor.u32 %v5540_v16, %v5539_v31  ;;  %v5543_v38 = vrot.slane %v5539_v31, 4  ;;  %v5547_v43 = vrot.slane %v5545_v34, 7  ;;  %v5356_v14 = vmax.f32 %v5324_v10, 0.0 }
 0x34d   : > { %v5869_v37 = vsel %vm15121_vm3, %v5559_v54, %v5868_v29  ;;  %v5567_v55 = vor.u32 %v5565_v24, %v5564_v18  ;;  %v5569_v22 = vrot.slane %v5564_v18, 4  ;;  %v11513_v35 = vpack.c.bf16 %v5358_v0, %v5358_v0  ;;  %v5886_v18 = vld [vmem:[#allocation3 + $0x38] sm:$0x1]  ;;  %v5879_v0 = vld [vmem:[#allocation3 + $0x2c] sm:$0x1] }
 0x34e   : > { %5870 = vst [vmem:[#allocation3 + $0x18] sm:$0xf] %v5869_v37  ;;  %v5860_v25 = vsel %vm15121_vm3, %v5542_v47, %v5859_v46  ;;  %v5550_v40 = vor.u32 %v5548_v42, %v5547_v43  ;;  %v5552_v6 = vrot.slane %v5547_v43, 4  ;;  %v11511_v44 = vpack.c.bf16 %v5356_v14, %v5356_v14 }
 0x34f   : > { %5861 = vst [vmem:[#allocation3 + $0xc] sm:$0xf] %v5860_v25  ;;  %v5568_v56 = vsel %vm13380_vm12, %v5560_v2, %v5567_v55  ;;  %v5873_v61 = vsel %vm15128_vm4, %v5569_v22, %v5872_v7  ;;  %v5588_v17 = vshrl.u32 %v11513_v35, 16  ;;  %v5591_v13 = vshll.u32 %v11513_v35, 16  ;;  %v5896_v25 = vld [vmem:[#allocation3 + $0x48] sm:$0xf] }
 0x350   : > { %5871 = vst.msk [vmem:[#allocation3 + $0x1c] sm:$0xf] %vm5384_vm0, %v5568_v56  ;;  %5874 = vst [vmem:[#allocation3 + $0x20] sm:$0x1] %v5873_v61  ;;  %v5551_v63 = vsel %vm13380_vm12, %v5543_v38, %v5550_v40  ;;  %v5866_v21 = vsel %vm15128_vm4, %v5552_v6, %v5865_v4  ;;  %v5571_v12 = vshrl.u32 %v11511_v44, 16  ;;  %v12129_v30 = vpop.f32.mrb[8].mxu0  ;;  %v5327_v1 = vadd.f32 %v12126_v27, %v15112_v39 }
 0x351   : > { %5862 = vst.msk [vmem:[#allocation3 + $0x10] sm:$0xf] %vm5384_vm0, %v5551_v63  ;;  %5867 = vst [vmem:[#allocation3 + $0x14] sm:$0x1] %v5866_v21  ;;  %v15146_v15 = vrot.slane %v5588_v17, 7  ;;  %v5325_v5 = vadd.f32 %v15112_v39, %v5173_v59  ;;  %v5330_v23 = vadd.f32 %v12129_v30, %v15112_v39  ;;  %v5186_v36 = vpop.f32.mrb[9].mxu0 }
 0x352   : > { %v5573_v33 = vrot.slane %v5571_v12, 7  ;;  %v5574_v57 = vshll.u32 %v11511_v44, 16  ;;  %v5328_v9 = vadd.f32 %v15112_v39, %v5186_v36  ;;  %v12130_v52 = vpop.f32.mrb[10].mxu0  ;;  %v5359_v45 = vmax.f32 %v5327_v1, 0.0 }
 0x353   : > { %v5593_v3 = vor.u32 %v5591_v13, %v15146_v15  ;;  %v5594_v32 = vrot.slane %v15146_v15, 4  ;;  %v5357_v19 = vmax.f32 %v5325_v5, 0.0  ;;  %v5189_v16 = vpop.f32.mrb[11].mxu0  ;;  %v5362_v11 = vmax.f32 %v5330_v23, 0.0  ;;  %v5889_v13 = vld [vmem:[#allocation3 + $0x3c] sm:$0xf] }
 0x354   : > { %v5576_v41 = vor.u32 %v5574_v57, %v5573_v33  ;;  %v5577_v51 = vrot.slane %v5573_v33, 4  ;;  %v5360_v60 = vmax.f32 %v5328_v9, 0.0  ;;  %v11514_v53 = vpack.c.bf16 %v5359_v45, %v5359_v45 }
 0x355   : > { %v5883_v24 = vsel %vm15121_vm3, %v5593_v3, %v5882_v62  ;;  %v11512_v48 = vpack.c.bf16 %v5357_v19, %v5357_v19  ;;  %v5331_v29 = vadd.f32 %v12130_v52, %v15112_v39  ;;  %v11517_v34 = vpack.c.bf16 %v5362_v11, %v5362_v11 }
 0x356   : > { %5884 = vst [vmem:[#allocation3 + $0x30] sm:$0xf] %v5883_v24  ;;  %v5876_v31 = vsel %vm15121_vm3, %v5576_v41, %v5875_v49  ;;  %v11515_v42 = vpack.c.bf16 %v5360_v60, %v5360_v60  ;;  %v5329_v10 = vadd.f32 %v15112_v39, %v5189_v16  ;;  %v5596_v27 = vshrl.u32 %v11514_v53, 16  ;;  %v5900_v24 = vld [vmem:[#allocation3 + $0x50] sm:$0x1] }
 0x357   : > { %5877 = vst [vmem:[#allocation3 + $0x24] sm:$0xf] %v5876_v31  ;;  %v5599_v54 = vshll.u32 %v11514_v53, 16  ;;  %v5579_v2 = vshrl.u32 %v11512_v48, 16  ;;  %v5582_v46 = vshll.u32 %v11512_v48, 16  ;;  %v5622_v59 = vshrl.u32 %v11517_v34, 16 }
 0x358   : > { %v5625_v47 = vshll.u32 %v11517_v34, 16  ;;  %v5605_v38 = vshrl.u32 %v11515_v42, 16  ;;  %v5608_v7 = vshll.u32 %v11515_v42, 16  ;;  %v12133_v43 = vpop.f32.mrb[12].mxu0  ;;  %v5598_v14 = vrot.slane %v5596_v27, 7 }
 0x359   : > { %v5581_v37 = vrot.slane %v5579_v2, 7  ;;  %v5363_v55 = vmax.f32 %v5331_v29, 0.0  ;;  %v5361_v22 = vmax.f32 %v5329_v10, 0.0  ;;  %v5202_v4 = vpop.f32.mrb[13].mxu0  ;;  %v15160_v35 = vrot.slane %v5622_v59, 7 }
 0x35a   : > { %v15162_v40 = vrot.slane %v5605_v38, 7  ;;  %v5334_v6 = vadd.f32 %v12133_v43, %v15112_v39  ;;  %v5332_v44 = vadd.f32 %v15112_v39, %v5202_v4  ;;  %v12134_v56 = vpop.f32.mrb[14].mxu0  ;;  %v5601_v61 = vor.u32 %v5599_v54, %v5598_v14  ;;  %v5893_v27 = vld [vmem:[#allocation3 + $0x44] sm:$0x1] }
 0x35b   : > { %v5603_v17 = vrot.slane %v5598_v14, 4  ;;  %v5584_v63 = vor.u32 %v5582_v46, %v5581_v37  ;;  %v5586_v21 = vrot.slane %v5581_v37, 4  ;;  %v5205_v12 = vpop.f32.mrb[15].mxu0  ;;  %v5627_v30 = vor.u32 %v5625_v47, %v15160_v35 }
 0x35c   : > { %v5628_v15 = vrot.slane %v15160_v35, 4  ;;  %v5610_v1 = vor.u32 %v5608_v7, %v15162_v40  ;;  %v5611_v5 = vrot.slane %v15162_v40, 4  ;;  %v5602_v23 = vsel %vm13380_vm12, %v5594_v32, %v5601_v61  ;;  %v5903_v61 = vld [vmem:[#allocation3 + $0x54] sm:$0xf] }
 0x35d   : > { %v5887_v36 = vsel %vm15128_vm4, %v5603_v17, %v5886_v18  ;;  %v5585_v62 = vsel %vm13380_vm12, %v5577_v51, %v5584_v63  ;;  %v5880_v33 = vsel %vm15128_vm4, %v5586_v21, %v5879_v0  ;;  %5885 = vst.msk [vmem:[#allocation3 + $0x34] sm:$0xf] %vm5384_vm0, %v5602_v23  ;;  %v5897_v57 = vsel %vm15121_vm3, %v5627_v30, %v5896_v25 }
 0x35e   : > { %5888 = vst [vmem:[#allocation3 + $0x38] sm:$0x1] %v5887_v36  ;;  %5878 = vst.msk [vmem:[#allocation3 + $0x28] sm:$0xf] %vm5384_vm0, %v5585_v62  ;;  %v5890_v9 = vsel %vm15121_vm3, %v5610_v1, %v5889_v13  ;;  %v11518_v52 = vpack.c.bf16 %v5363_v55, %v5363_v55  ;;  %v11516_v3 = vpack.c.bf16 %v5361_v22, %v5361_v22  ;;  %v5366_v32 = vmax.f32 %v5334_v6, 0.0 }
 0x35f   : > { %5881 = vst [vmem:[#allocation3 + $0x2c] sm:$0x1] %v5880_v33  ;;  %5898 = vst [vmem:[#allocation3 + $0x48] sm:$0xf] %v5897_v57  ;;  %v5364_v49 = vmax.f32 %v5332_v44, 0.0  ;;  %v5335_v45 = vadd.f32 %v12134_v56, %v15112_v39  ;;  %v5333_v19 = vadd.f32 %v15112_v39, %v5205_v12 }
 0x360   : > { %5891 = vst [vmem:[#allocation3 + $0x3c] sm:$0xf] %v5890_v9  ;;  %v5630_v16 = vshrl.u32 %v11518_v52, 16  ;;  %v5633_v41 = vshll.u32 %v11518_v52, 16  ;;  %v5613_v51 = vshrl.u32 %v11516_v3, 16  ;;  %v5616_v11 = vshll.u32 %v11516_v3, 16 }
 0x361   : > { %v12137_v60 = vpop.f32.mrb[16].mxu0  ;;  %v11521_v53 = vpack.c.bf16 %v5366_v32, %v5366_v32  ;;  %v11519_v48 = vpack.c.bf16 %v5364_v49, %v5364_v49  ;;  %v5367_v29 = vmax.f32 %v5335_v45, 0.0  ;;  %v5365_v31 = vmax.f32 %v5333_v19, 0.0  ;;  %v5910_v56 = vld [vmem:[#allocation3 + $0x60] sm:$0xf] }
 0x362   : > { %v5218_v34 = vpop.f32.mrb[17].mxu0  ;;  %v5632_v42 = vrot.slane %v5630_v16, 7  ;;  %v5615_v10 = vrot.slane %v5613_v51, 7  ;;  %v5338_v54 = vadd.f32 %v12137_v60, %v15112_v39  ;;  %v5975_v12 = vld [vmem:[#allocation3 + $0xc] sm:$0xf] }
 0x363   : > { %v5336_v2 = vadd.f32 %v15112_v39, %v5218_v34  ;;  %v12138_v46 = vpop.f32.mrb[18].mxu0  ;;  %v5656_v18 = vshrl.u32 %v11521_v53, 16  ;;  %v5659_v0 = vshll.u32 %v11521_v53, 16  ;;  %v5639_v59 = vshrl.u32 %v11519_v48, 16  ;;  %v5914_v33 = vld [vmem:[#allocation3 + $0x68] sm:$0x1] }
 0x364   : > { %v5642_v47 = vshll.u32 %v11519_v48, 16  ;;  %v5221_v38 = vpop.f32.mrb[19].mxu0  ;;  %v5635_v7 = vor.u32 %v5633_v41, %v5632_v42  ;;  %v5637_v43 = vrot.slane %v5632_v42, 4  ;;  %v5618_v14 = vor.u32 %v5616_v11, %v5615_v10  ;;  %v5907_v57 = vld [vmem:[#allocation3 + $0x5c] sm:$0x1] }
 0x365   : > { %v5620_v37 = vrot.slane %v5615_v10, 4  ;;  %v5658_v55 = vrot.slane %v5656_v18, 7  ;;  %v5641_v22 = vrot.slane %v5639_v59, 7  ;;  %v11522_v4 = vpack.c.bf16 %v5367_v29, %v5367_v29  ;;  %v5976_v11 = vld [vmem:[#allocation3 + $0x10] sm:$0xf] }
 0x366   : > { %v11520_v35 = vpack.c.bf16 %v5365_v31, %v5365_v31  ;;  %v5636_v25 = vsel %vm13380_vm12, %v5628_v15, %v5635_v7  ;;  %v5901_v40 = vsel %vm15128_vm4, %v5637_v43, %v5900_v24  ;;  %v5619_v6 = vsel %vm13380_vm12, %v5611_v5, %v5618_v14  ;;  %v5924_v59 = vld [vmem:[#allocation3 + $0x78] sm:$0xf] }
 0x367   : > { %v5894_v44 = vsel %vm15128_vm4, %v5620_v37, %v5893_v27  ;;  %5899 = vst.msk [vmem:[#allocation3 + $0x4c] sm:$0xf] %vm5384_vm0, %v5636_v25  ;;  %5902 = vst [vmem:[#allocation3 + $0x50] sm:$0x1] %v5901_v40  ;;  %v5661_v17 = vor.u32 %v5659_v0, %v5658_v55  ;;  %v5662_v63 = vrot.slane %v5658_v55, 4  ;;  %v5644_v21 = vor.u32 %v5642_v47, %v5641_v22 }
 0x368   : > { %5892 = vst.msk [vmem:[#allocation3 + $0x40] sm:$0xf] %vm5384_vm0, %v5619_v6  ;;  %5895 = vst [vmem:[#allocation3 + $0x44] sm:$0x1] %v5894_v44  ;;  %v5645_v13 = vrot.slane %v5641_v22, 4  ;;  %v5664_v30 = vshrl.u32 %v11522_v4, 16  ;;  %v5339_v45 = vadd.f32 %v12138_v46, %v15112_v39  ;;  %v5337_v19 = vadd.f32 %v15112_v39, %v5221_v38 }
 0x369   : > { %v5667_v15 = vshll.u32 %v11522_v4, 16  ;;  %v5647_v1 = vshrl.u32 %v11520_v35, 16  ;;  %v5650_v5 = vshll.u32 %v11520_v35, 16  ;;  %v15198_v23 = vpop.f32.mrb[20].mxu0  ;;  %v5911_v36 = vsel %vm15121_vm3, %v5661_v17, %v5910_v56  ;;  %v5917_v47 = vld [vmem:[#allocation3 + $0x6c] sm:$0xf] }
 0x36a   : > { %v5904_v62 = vsel %vm15121_vm3, %v5644_v21, %v5903_v61  ;;  %v5370_v9 = vmax.f32 %v5338_v54, 0.0  ;;  %v5368_v52 = vmax.f32 %v5336_v2, 0.0  ;;  %v15204_v3 = vpop.f32.mrb[21].mxu0  ;;  %5912 = vst [vmem:[#allocation3 + $0x60] sm:$0xf] %v5911_v36  ;;  %v5666_v32 = vrot.slane %v5664_v30, 7 }
 0x36b   : > { %5905 = vst [vmem:[#allocation3 + $0x54] sm:$0xf] %v5904_v62  ;;  %v5649_v49 = vrot.slane %v5647_v1, 7  ;;  %v15208_v16 = vpop.f32.mrb[22].mxu0  ;;  %v6048_v60 = vshrl.u32 %v5975_v12, 16  ;;  %v6051_v24 = vshll.u32 %v5975_v12, 16 }
 0x36c   : > { %v11525_v41 = vpack.c.bf16 %v5370_v9, %v5370_v9  ;;  %v11523_v51 = vpack.c.bf16 %v5368_v52, %v5368_v52  ;;  %v15210_v53 = vpop.f32.mrb[23].mxu0  ;;  %v5669_v48 = vor.u32 %v5667_v15, %v5666_v32  ;;  %v5671_v29 = vrot.slane %v5666_v32, 4  ;;  %v6008_v37 = vld [vmem:[#allocation3 + $0x14] sm:$0x1]  ;;  %v5977_v21 = vld [vmem:[#allocation3 + $0x18] sm:$0xf] }
 0x36d   : > { %v5652_v31 = vor.u32 %v5650_v5, %v5649_v49  ;;  %v5654_v34 = vrot.slane %v5649_v49, 4  ;;  %v5371_v43 = vmax.f32 %v5339_v45, 0.0  ;;  %v5369_v14 = vmax.f32 %v5337_v19, 0.0  ;;  %v5978_v5 = vld [vmem:[#allocation3 + $0x1c] sm:$0xf] }
 0x36e   : > { %v5690_v42 = vshrl.u32 %v11525_v41, 16  ;;  %v5693_v10 = vshll.u32 %v11525_v41, 16  ;;  %v5673_v27 = vshrl.u32 %v11523_v51, 16  ;;  %v5676_v54 = vshll.u32 %v11523_v51, 16  ;;  %v5928_v41 = vld [vmem:[#allocation3 + $0x80] sm:$0x1] }
 0x36f   : > { %v5670_v2 = vsel %vm13380_vm12, %v5662_v63, %v5669_v48  ;;  %v5915_v46 = vsel %vm15128_vm4, %v5671_v29, %v5914_v33  ;;  %v5653_v18 = vsel %vm13380_vm12, %v5645_v13, %v5652_v31  ;;  %v5908_v0 = vsel %vm15128_vm4, %v5654_v34, %v5907_v57 }
 0x370   : > { %5913 = vst.msk [vmem:[#allocation3 + $0x64] sm:$0xf] %vm5384_vm0, %v5670_v2  ;;  %5916 = vst [vmem:[#allocation3 + $0x68] sm:$0x1] %v5915_v46  ;;  %v5692_v38 = vrot.slane %v5690_v42, 7  ;;  %v5675_v7 = vrot.slane %v5673_v27, 7  ;;  %v11526_v56 = vpack.c.bf16 %v5371_v43, %v5371_v43  ;;  %v11524_v61 = vpack.c.bf16 %v5369_v14, %v5369_v14 }
 0x371   : > { %5906 = vst.msk [vmem:[#allocation3 + $0x58] sm:$0xf] %vm5384_vm0, %v5653_v18  ;;  %5909 = vst [vmem:[#allocation3 + $0x5c] sm:$0x1] %v5908_v0  ;;  %v6050_v55 = vrot.slane %v6048_v60, 4  ;;  %v6053_v22 = vrot.slane %v6051_v24, 5 }
 0x372   : > { %v6057_v4 = vshll.u32 %v5976_v11, 16  ;;  %v6061_v35 = vshrl.u32 %v5976_v11, 16  ;;  %v15222_v25 = vpop.f32.mrb[24].mxu0  ;;  %v5695_v40 = vor.u32 %v5693_v10, %v5692_v38  ;;  %v5678_v6 = vor.u32 %v5676_v54, %v5675_v7  ;;  %v5921_v24 = vld [vmem:[#allocation3 + $0x74] sm:$0x1] }
 0x373   : > { %v15224_v44 = vpop.f32.mrb[25].mxu0  ;;  %v6054_v17 = vor.u32 %v6053_v22, %v6050_v55  ;;  %v6067_v1 = vshll.u32 %v6008_v37, 16  ;;  %v5696_v62 = vrot.slane %v5692_v38, 4  ;;  %v5679_v33 = vrot.slane %v5675_v7, 4  ;;  %v6009_v2 = vld [vmem:[#allocation3 + $0x20] sm:$0x1] }
 0x374   : > { %v6059_v63 = vrot.slane %v6057_v4, 5  ;;  %v15226_v13 = vpop.f32.mrb[26].mxu0  ;;  %v5925_v12 = vsel %vm15121_vm3, %v5695_v40, %v5924_v59  ;;  %v5918_v30 = vsel %vm15121_vm3, %v5678_v6, %v5917_v47  ;;  %v6063_v15 = vrot.slane %v6061_v35, 4  ;;  %v5979_v38 = vld [vmem:[#allocation3 + $0x24] sm:$0xf] }
 0x375   : > { %v15232_v36 = vpop.f32.mrb[27].mxu0  ;;  %5926 = vst [vmem:[#allocation3 + $0x78] sm:$0xf] %v5925_v12  ;;  %5919 = vst [vmem:[#allocation3 + $0x6c] sm:$0xf] %v5918_v30  ;;  %v5698_v57 = vshrl.u32 %v11526_v56, 16  ;;  %v5341_v12 = vadd.f32 %v15112_v39, %v15210_v53 }
 0x376   : > { %v5681_v9 = vshrl.u32 %v11524_v61, 16  ;;  %v5701_v52 = vshll.u32 %v11526_v56, 16  ;;  %v5684_v32 = vshll.u32 %v11524_v61, 16  ;;  %v6055_v49 = vrot.slane %v6054_v17, 4  ;;  %v15259_v61 = vld [vmem:[%s17050_s3 + $0x10] sm:$0xff]  }
 0x377   : > { %v6064_v45 = vor.u32 %v6063_v15, %v6059_v63  ;;  %v5700_v19 = vrot.slane %v5698_v57, 7  ;;  %v6069_v11 = vrot.slane %v6067_v1, 5  ;;  %v6072_v60 = vshrl.u32 %v5977_v21, 16  ;;  %v15269_v30 = vld [vmem:[#allocation3 + $0x28] sm:$0xf] }
 0x378   : > { %v5683_v51 = vrot.slane %v5681_v9, 7  ;;  %v6060_v48 = vsel %vm13360_vm8, %v6055_v49, %v6059_v63  ;;  %v6075_v31 = vshll.u32 %v5977_v21, 16  ;;  %v6081_v34 = vshll.u32 %v5978_v5, 16  ;;  %v15236_v46 = vpop.f32.mrb[28].mxu0 }
 0x379   : > { %v6065_v29 = vrot.slane %v6064_v45, 4  ;;  %v5703_v42 = vor.u32 %v5701_v52, %v5700_v19  ;;  %v5705_v10 = vrot.slane %v5700_v19, 4  ;;  %v6074_v0 = vrot.slane %v6072_v60, 4  ;;  %v15240_v7 = vpop.f32.mrb[29].mxu0 }
 0x37a   : > { %v5686_v27 = vor.u32 %v5684_v32, %v5683_v51  ;;  %v5688_v54 = vrot.slane %v5683_v51, 4  ;;  %v6077_v59 = vrot.slane %v6075_v31, 5  ;;  %v6083_v47 = vrot.slane %v6081_v34, 5  ;;  %v15250_v22 = vpop.f32.mrb[30].mxu0  ;;  %v5938_v34 = vld [vmem:[#allocation3 + $0x90] sm:$0xf] }
 0x37b   : > { %v6070_v18 = vsel %vm13360_vm8, %v6065_v29, %v6069_v11  ;;  %v5704_v43 = vsel %vm13380_vm12, %v5696_v62, %v5703_v42  ;;  %v5929_v14 = vsel %vm15128_vm4, %v5705_v10, %v5928_v41  ;;  %v6085_v40 = vshrl.u32 %v5978_v5, 16  ;;  %v15254_v56 = vpop.f32.mrb[31].mxu0  ;;  %v5931_v42 = vld [vmem:[#allocation3 + $0x84] sm:$0xf] }
 0x37c   : > { %v5687_v37 = vsel %vm13380_vm12, %v5679_v33, %v5686_v27  ;;  %v5922_v55 = vsel %vm15128_vm4, %v5688_v54, %v5921_v24  ;;  %5927 = vst.msk [vmem:[#allocation3 + $0x7c] sm:$0xf] %vm5384_vm0, %v5704_v43  ;;  %5930 = vst [vmem:[#allocation3 + $0x80] sm:$0x1] %v5929_v14  ;;  %v11144_v4 = vcombine.low %v6060_v48, %v6070_v18  ;;  %v6091_v6 = vshll.u32 %v6009_v2, 16 }
 0x37d   : > { %5920 = vst.msk [vmem:[#allocation3 + $0x70] sm:$0xf] %vm5384_vm0, %v5687_v37  ;;  %5923 = vst [vmem:[#allocation3 + $0x74] sm:$0x1] %v5922_v55  ;;  %v6078_v35 = vor.u32 %v6077_v59, %v6074_v0  ;;  %v5342_v17 = vadd.f32 %v15198_v23, %v15112_v39  ;;  %v5340_v63 = vadd.f32 %v15112_v39, %v15204_v3  ;;  %v6087_v1 = vrot.slane %v6085_v40, 4 }
 0x37e   : > { %v5343_v21 = vadd.f32 %v15208_v16, %v15112_v39  ;;  %12154 = vmatmul.mubr.msk.bf16.vlgmr.msra.gmra.mrb[0].mxu1 %vm6464_vm2, %v11144_v4  ;;  %v6093_v5 = vrot.slane %v6091_v6, 5  ;;  %v6096_v62 = vshrl.u32 %v5979_v38, 16  ;;  %v5373_v3 = vmax.f32 %v5341_v12, 0.0  ;;  %v5942_v59 = vld [vmem:[#allocation3 + $0x98] sm:$0x1] }
 0x37f   : > { %v6079_v15 = vrot.slane %v6078_v35, 4  ;;  %12186 = vmatpush3.bf16.msra.mxu1 %v15106_v8  ;;  %v5374_v23 = vmax.f32 %v5342_v17, 0.0  ;;  %v5372_v33 = vmax.f32 %v5340_v63, 0.0  ;;  %v6088_v9 = vor.u32 %v6087_v1, %v6083_v47  ;;  %v5935_v14 = vld [vmem:[#allocation3 + $0x8c] sm:$0x1] }
 0x380   : > { %v5375_v57 = vmax.f32 %v5343_v21, 0.0  ;;  %v6098_v52 = vrot.slane %v6096_v62, 4  ;;  %v6099_v53 = vshll.u32 %v5979_v38, 16  ;;  %12219 = vmatprep.subr.bf16.mxu1 %v15259_v61  ;;  %v11528_v19 = vpack.c.bf16 %v5373_v3, %v5373_v3  ;;  %v15281_v1 = vld [vmem:[#allocation3 + $0x30] sm:$0xf] }
 0x381   : > { %v6084_v16 = vsel %vm13360_vm8, %v6079_v15, %v6083_v47  ;;  %v11529_v32 = vpack.c.bf16 %v5374_v23, %v5374_v23  ;;  %v11527_v49 = vpack.c.bf16 %v5372_v33, %v5372_v33  ;;  %v6089_v41 = vrot.slane %v6088_v9, 4  ;;  %v6010_v15 = vld [vmem:[#allocation3 + $0x2c] sm:$0x1]  ;;  %v6011_v3 = vld [vmem:[#allocation3 + $0x38] sm:$0x1] }
 0x382   : > { %v11530_v45 = vpack.c.bf16 %v5375_v57, %v5375_v57  ;;  %v6101_v51 = vrot.slane %v6099_v53, 5  ;;  %v6105_v8 = vshll.u32 %v15269_v30, 16  ;;  %v6109_v11 = vshrl.u32 %v15269_v30, 16  ;;  %v15287_v57 = vld [vmem:[#allocation3 + $0x34] sm:$0xf] }
 0x383   : > { %v5724_v60 = vshrl.u32 %v11529_v32, 16  ;;  %v5727_v24 = vshll.u32 %v11529_v32, 16  ;;  %v5707_v48 = vshrl.u32 %v11527_v49, 16  ;;  %v5710_v29 = vshll.u32 %v11527_v49, 16  ;;  %v15402_v50 = vld [vmem:[#allocation3 + $0x6c] sm:$0xf] }
 0x384   : > { %v6094_v31 = vsel %vm13360_vm8, %v6089_v41, %v6093_v5  ;;  %v5732_v10 = vshrl.u32 %v11530_v45, 16  ;;  %v5735_v27 = vshll.u32 %v11530_v45, 16  ;;  %v5715_v54 = vshrl.u32 %v11528_v19, 16 }
 0x385   : > { %v11145_v2 = vcombine.low %v6084_v16, %v6094_v31  ;;  %v5726_v18 = vrot.slane %v5724_v60, 7  ;;  %v5709_v0 = vrot.slane %v5707_v48, 7  ;;  %v5718_v47 = vshll.u32 %v11528_v19, 16 }
 0x386   : > { %v5734_v38 = vrot.slane %v5732_v10, 7  ;;  %v5717_v43 = vrot.slane %v5715_v54, 7  ;;  %v6102_v37 = vor.u32 %v6101_v51, %v6098_v52  ;;  %v6107_v55 = vrot.slane %v6105_v8, 5 }
 0x387   : > { %12157 = vmatprep.mubr.msk.bf16.mxu1 %vm6464_vm2, %v11145_v2  ;;  %v5729_v4 = vor.u32 %v5727_v24, %v5726_v18  ;;  %v5730_v35 = vrot.slane %v5726_v18, 4  ;;  %v5712_v40 = vor.u32 %v5710_v29, %v5709_v0  ;;  %v5713_v6 = vrot.slane %v5709_v0, 4 }
 0x388   : > { %v5737_v17 = vor.u32 %v5735_v27, %v5734_v38  ;;  %v5739_v63 = vrot.slane %v5734_v38, 4  ;;  %v5720_v21 = vor.u32 %v5718_v47, %v5717_v43  ;;  %v5722_v12 = vrot.slane %v5717_v43, 4  ;;  %v15307_v27 = vld [vmem:[#allocation3 + $0x3c] sm:$0xf] }
 0x389   : > { %v5939_v5 = vsel %vm15121_vm3, %v5729_v4, %v5938_v34  ;;  %v5932_v62 = vsel %vm15121_vm3, %v5712_v40, %v5931_v42  ;;  %v6103_v23 = vrot.slane %v6102_v37, 4  ;;  %v6111_v33 = vrot.slane %v6109_v11, 4 }
 0x38a   : > { %5940 = vst [vmem:[#allocation3 + $0x90] sm:$0xf] %v5939_v5  ;;  %5933 = vst [vmem:[#allocation3 + $0x84] sm:$0xf] %v5932_v62  ;;  %v5738_v16 = vsel %vm13380_vm12, %v5730_v35, %v5737_v17  ;;  %v5943_v9 = vsel %vm15128_vm4, %v5739_v63, %v5942_v59  ;;  %v5721_v52 = vsel %vm13380_vm12, %v5713_v6, %v5720_v21  ;;  %v6115_v45 = vshll.u32 %v6010_v15, 16 }
 0x38b   : > { %v5936_v53 = vsel %vm15128_vm4, %v5722_v12, %v5935_v14  ;;  %5941 = vst.msk [vmem:[#allocation3 + $0x94] sm:$0xf] %vm5384_vm0, %v5738_v16  ;;  %5944 = vst [vmem:[#allocation3 + $0x98] sm:$0x1] %v5943_v9  ;;  %v6108_v32 = vsel %vm13360_vm8, %v6103_v23, %v6107_v55  ;;  %v6112_v49 = vor.u32 %v6111_v33, %v6107_v55  ;;  %v6120_v19 = vshrl.u32 %v15281_v1, 16 }
 0x38c   : > { %5934 = vst.msk [vmem:[#allocation3 + $0x88] sm:$0xf] %vm5384_vm0, %v5721_v52  ;;  %5937 = vst [vmem:[#allocation3 + $0x8c] sm:$0x1] %v5936_v53  ;;  %v6123_v41 = vshll.u32 %v15281_v1, 16  ;;  %v6129_v51 = vshll.u32 %v15287_v57, 16  ;;  %v5346_v29 = vadd.f32 %v15222_v25, %v15112_v39  ;;  %v5344_v18 = vadd.f32 %v15112_v39, %v15224_v44 }
 0x38d   : > { %v6133_v8 = vshrl.u32 %v15287_v57, 16  ;;  %v6139_v11 = vshll.u32 %v6011_v3, 16  ;;  %v6113_v60 = vrot.slane %v6112_v49, 4  ;;  %v6117_v24 = vrot.slane %v6115_v45, 5  ;;  %v15324_v3 = vld [vmem:[#allocation3 + $0x40] sm:$0xf] }
 0x38e   : > { %v6122_v48 = vrot.slane %v6120_v19, 4  ;;  %v6125_v31 = vrot.slane %v6123_v41, 5  ;;  %v6131_v34 = vrot.slane %v6129_v51, 5  ;;  %v5378_v2 = vmax.f32 %v5346_v29, 0.0  ;;  %v5945_v16 = vld [vmem:[#allocation3 + $0x9c] sm:$0xf] }
 0x38f   : > { %v6135_v42 = vrot.slane %v6133_v8, 4  ;;  %v6141_v10 = vrot.slane %v6139_v11, 5  ;;  %v6118_v54 = vsel %vm13360_vm8, %v6113_v60, %v6117_v24  ;;  %v5347_v0 = vadd.f32 %v15226_v13, %v15112_v39  ;;  %v5956_v41 = vld [vmem:[#allocation3 + $0xb0] sm:$0x1]  ;;  %v5949_v51 = vld [vmem:[#allocation3 + $0xa4] sm:$0x1] }
 0x390   : > { %v11146_v59 = vcombine.low %v6108_v32, %v6118_v54  ;;  %v6126_v47 = vor.u32 %v6125_v31, %v6122_v48  ;;  %v5345_v25 = vadd.f32 %v15112_v39, %v15232_v36  ;;  %v11533_v43 = vpack.c.bf16 %v5378_v2, %v5378_v2  ;;  %v5952_v36 = vld [vmem:[#allocation3 + $0xa8] sm:$0xf] }
 0x391   : > { %v6136_v38 = vor.u32 %v6135_v42, %v6131_v34  ;;  %v5376_v14 = vmax.f32 %v5344_v18, 0.0  ;;  %v5379_v37 = vmax.f32 %v5347_v0, 0.0  ;;  %v6144_v55 = vshrl.u32 %v15307_v27, 16  ;;  %v15329_v29 = vld [vmem:[#allocation3 + $0x48] sm:$0xf] }
 0x392   : > { %12158 = vmatmul.mubr.msk.bf16.gmra.mrb[4].mxu1 %vm6464_vm2, %v11146_v59  ;;  %v6127_v4 = vrot.slane %v6126_v47, 4  ;;  %v5377_v40 = vmax.f32 %v5345_v25, 0.0  ;;  %v6147_v44 = vshll.u32 %v15307_v27, 16  ;;  %v5758_v6 = vshrl.u32 %v11533_v43, 16  ;;  %v15335_v47 = vld [vmem:[#allocation3 + $0x4c] sm:$0xf] }
 0x393   : > { %v6137_v35 = vrot.slane %v6136_v38, 4  ;;  %v5761_v13 = vshll.u32 %v11533_v43, 16  ;;  %v11531_v17 = vpack.c.bf16 %v5376_v14, %v5376_v14  ;;  %v11534_v63 = vpack.c.bf16 %v5379_v37, %v5379_v37  ;;  %v15339_v37 = vld [vmem:[#allocation3 + $0x50] sm:$0x1] }
 0x394   : > { %v6132_v21 = vsel %vm13360_vm8, %v6127_v4, %v6131_v34  ;;  %v11532_v12 = vpack.c.bf16 %v5377_v40, %v5377_v40  ;;  %v6146_v15 = vrot.slane %v6144_v55, 4  ;;  %v5760_v62 = vrot.slane %v5758_v6, 7 }
 0x395   : > { %v6142_v39 = vsel %vm13360_vm8, %v6137_v35, %v6141_v10  ;;  %v5741_v23 = vshrl.u32 %v11531_v17, 16  ;;  %v5744_v33 = vshll.u32 %v11531_v17, 16  ;;  %v5766_v9 = vshrl.u32 %v11534_v63, 16  ;;  %v15333_v10 = vld [vmem:[#allocation3 + $0x44] sm:$0x1] }
 0x396   : > { %v11147_v5 = vcombine.low %v6132_v21, %v6142_v39  ;;  %v5769_v52 = vshll.u32 %v11534_v63, 16  ;;  %v5749_v53 = vshrl.u32 %v11532_v12, 16  ;;  %v5752_v32 = vshll.u32 %v11532_v12, 16 }
 0x397   : > { %v5763_v49 = vor.u32 %v5761_v13, %v5760_v62  ;;  %v5764_v45 = vrot.slane %v5760_v62, 4  ;;  %v5743_v19 = vrot.slane %v5741_v23, 7  ;;  %v6149_v8 = vrot.slane %v6147_v44, 5  ;;  %v13158_v62 = vld [vmem:[%s17049_s2] ss:$0 sm:$0xff] }
 0x398   : > { %12161 = vmatprep.mubr.msk.bf16.mxu1 %vm6464_vm2, %v11147_v5  ;;  %v5768_v11 = vrot.slane %v5766_v9, 7  ;;  %v5751_v60 = vrot.slane %v5749_v53, 7  ;;  %v6153_v24 = vshll.u32 %v15324_v3, 16  ;;  %v6157_v48 = vshrl.u32 %v15324_v3, 16  ;;  %v15363_v53 = vld [vmem:[#allocation3 + $0x54] sm:$0xf] }
 0x399   : > { %v5953_v31 = vsel %vm15121_vm3, %v5763_v49, %v5952_v36  ;;  %v5746_v34 = vor.u32 %v5744_v33, %v5743_v19  ;;  %v5747_v42 = vrot.slane %v5743_v19, 4  ;;  %v6150_v54 = vor.u32 %v6149_v8, %v6146_v15 }
 0x39a   : > { %5954 = vst [vmem:[#allocation3 + $0xa8] sm:$0xf] %v5953_v31  ;;  %v5771_v2 = vor.u32 %v5769_v52, %v5768_v11  ;;  %v5773_v18 = vrot.slane %v5768_v11, 4  ;;  %v5754_v0 = vor.u32 %v5752_v32, %v5751_v60  ;;  %v5756_v59 = vrot.slane %v5751_v60, 4 }
 0x39b   : > { %v5946_v38 = vsel %vm15121_vm3, %v5746_v34, %v5945_v16  ;;  %v6151_v25 = vrot.slane %v6150_v54, 4  ;;  %v6155_v43 = vrot.slane %v6153_v24, 5  ;;  %v6159_v14 = vrot.slane %v6157_v48, 4 }
 0x39c   : > { %5947 = vst [vmem:[#allocation3 + $0x9c] sm:$0xf] %v5946_v38  ;;  %v5772_v55 = vsel %vm13380_vm12, %v5764_v45, %v5771_v2  ;;  %v5957_v4 = vsel %vm15128_vm4, %v5773_v18, %v5956_v41  ;;  %v5755_v35 = vsel %vm13380_vm12, %v5747_v42, %v5754_v0  ;;  %v5950_v40 = vsel %vm15128_vm4, %v5756_v59, %v5949_v51  ;;  %v5966_v59 = vld [vmem:[#allocation3 + $0xc0] sm:$0xf] }
 0x39d   : > { %5955 = vst.msk [vmem:[#allocation3 + $0xac] sm:$0xf] %vm5384_vm0, %v5772_v55  ;;  %5958 = vst [vmem:[#allocation3 + $0xb0] sm:$0x1] %v5957_v4  ;;  %v6156_v44 = vsel %vm13360_vm8, %v6151_v25, %v6155_v43  ;;  %v6160_v6 = vor.u32 %v6159_v14, %v6155_v43  ;;  %v6163_v13 = vshll.u32 %v15333_v10, 16  ;;  %v6168_v17 = vshrl.u32 %v15329_v29, 16 }
 0x39e   : > { %5948 = vst.msk [vmem:[#allocation3 + $0xa0] sm:$0xf] %vm5384_vm0, %v5755_v35  ;;  %5951 = vst [vmem:[#allocation3 + $0xa4] sm:$0x1] %v5950_v40  ;;  %v6171_v63 = vshll.u32 %v15329_v29, 16  ;;  %v6177_v21 = vshll.u32 %v15335_v47, 16  ;;  %v5350_v23 = vadd.f32 %v13158_v62, %v15236_v46  ;;  %v5348_v45 = vadd.f32 %v13158_v62, %v15240_v7 }
 0x39f   : > { %v6181_v39 = vshrl.u32 %v15335_v47, 16  ;;  %v6187_v36 = vshll.u32 %v15339_v37, 16  ;;  %v6161_v12 = vrot.slane %v6160_v6, 4  ;;  %v6165_v15 = vrot.slane %v6163_v13, 5  ;;  %v15377_v25 = vld [vmem:[#allocation3 + $0x58] sm:$0xf] }
 0x3a0   : > { %v6170_v5 = vrot.slane %v6168_v17, 4  ;;  %v6173_v33 = vrot.slane %v6171_v63, 5  ;;  %v6179_v16 = vrot.slane %v6177_v21, 5  ;;  %v5382_v49 = vmax.f32 %v5350_v23, 0.0  ;;  %v5959_v40 = vld [vmem:[#allocation3 + $0xb4] sm:$0xf] }
 0x3a1   : > { %v6183_v9 = vrot.slane %v6181_v39, 4  ;;  %v6189_v52 = vrot.slane %v6187_v36, 5  ;;  %v6166_v32 = vsel %vm13360_vm8, %v6161_v12, %v6165_v15  ;;  %v5351_v19 = vadd.f32 %v13158_v62, %v15250_v22  ;;  %v5970_v15 = vld [vmem:[#allocation3 + $0xc8] sm:$0x1] }
 0x3a2   : > { %v11148_v41 = vcombine.low %v6156_v44, %v6166_v32  ;;  %v6174_v51 = vor.u32 %v6173_v33, %v6170_v5  ;;  %v5349_v11 = vadd.f32 %v13158_v62, %v15254_v56  ;;  %v11537_v46 = vpack.c.bf16 %v5382_v49, %v5382_v49  ;;  %v15384_v49 = vld [vmem:[#allocation3 + $0x60] sm:$0xf] }
 0x3a3   : > { %v6184_v8 = vor.u32 %v6183_v9, %v6179_v16  ;;  %v5380_v60 = vmax.f32 %v5348_v45, 0.0  ;;  %v5383_v24 = vmax.f32 %v5351_v19, 0.0  ;;  %v6192_v48 = vshrl.u32 %v15363_v53, 16 }
 0x3a4   : > { %12162 = vmatmul.mubr.msk.bf16.gmra.mrb[8].mxu1 %vm6464_vm2, %v11148_v41  ;;  %v6175_v31 = vrot.slane %v6174_v51, 4  ;;  %v5381_v42 = vmax.f32 %v5349_v11, 0.0  ;;  %v6195_v54 = vshll.u32 %v15363_v53, 16  ;;  %v5792_v7 = vshrl.u32 %v11537_v46, 16  ;;  %v15388_v11 = vld [vmem:[#allocation3 + $0x64] sm:$0xf] }
 0x3a5   : > { %v6185_v34 = vrot.slane %v6184_v8, 4  ;;  %v5795_v2 = vshll.u32 %v11537_v46, 16  ;;  %v11535_v22 = vpack.c.bf16 %v5380_v60, %v5380_v60  ;;  %v11538_v18 = vpack.c.bf16 %v5383_v24, %v5383_v24  ;;  %v15386_v8 = vld [vmem:[#allocation3 + $0x5c] sm:$0x1] }
 0x3a6   : > { %v6180_v0 = vsel %vm13360_vm8, %v6175_v31, %v6179_v16  ;;  %v11536_v38 = vpack.c.bf16 %v5381_v42, %v5381_v42  ;;  %v6194_v43 = vrot.slane %v6192_v48, 4  ;;  %v5794_v55 = vrot.slane %v5792_v7, 7  ;;  %v15392_v31 = vld [vmem:[#allocation3 + $0x68] sm:$0x1] }
 0x3a7   : > { %v6190_v56 = vsel %vm13360_vm8, %v6185_v34, %v6189_v52  ;;  %v5775_v4 = vshrl.u32 %v11535_v22, 16  ;;  %v5778_v35 = vshll.u32 %v11535_v22, 16  ;;  %v5800_v44 = vshrl.u32 %v11538_v18, 16  ;;  %v5963_v52 = vld [vmem:[#allocation3 + $0xbc] sm:$0x1] }
 0x3a8   : > { %v11149_v14 = vcombine.low %v6180_v0, %v6190_v56  ;;  %v5803_v6 = vshll.u32 %v11538_v18, 16  ;;  %v5783_v13 = vshrl.u32 %v11536_v38, 16  ;;  %v5786_v17 = vshll.u32 %v11536_v38, 16 }
 0x3a9   : > { %v5797_v63 = vor.u32 %v5795_v2, %v5794_v55  ;;  %v5798_v21 = vrot.slane %v5794_v55, 4  ;;  %v5777_v39 = vrot.slane %v5775_v4, 7  ;;  %v6197_v36 = vrot.slane %v6195_v54, 5  ;;  %v15404_v2 = vld [vmem:[#allocation3 + $0x70] sm:$0xf] }
 0x3aa   : > { %12165 = vmatprep.mubr.msk.bf16.mxu1 %vm6464_vm2, %v11149_v14  ;;  %v5802_v12 = vrot.slane %v5800_v44, 7  ;;  %v5785_v5 = vrot.slane %v5783_v13, 7  ;;  %v6201_v62 = vshll.u32 %v15377_v25, 16  ;;  %v6205_v23 = vshrl.u32 %v15377_v25, 16 }
 0x3ab   : > { %v5967_v33 = vsel %vm15121_vm3, %v5797_v63, %v5966_v59  ;;  %v5780_v16 = vor.u32 %v5778_v35, %v5777_v39  ;;  %v5781_v9 = vrot.slane %v5777_v39, 4  ;;  %v6198_v32 = vor.u32 %v6197_v36, %v6194_v43  ;;  %v15416_v43 = vld [vmem:[#allocation3 + $0x78] sm:$0xf]  ;;  %v15418_v35 = vld [vmem:[#allocation3 + $0x74] sm:$0x1] }
 0x3ac   : > { %5968 = vst [vmem:[#allocation3 + $0xc0] sm:$0xf] %v5967_v33  ;;  %v5805_v45 = vor.u32 %v5803_v6, %v5802_v12  ;;  %v5807_v19 = vrot.slane %v5802_v12, 4  ;;  %v5788_v41 = vor.u32 %v5786_v17, %v5785_v5  ;;  %v5790_v51 = vrot.slane %v5785_v5, 4 }
 0x3ad   : > { %v5960_v46 = vsel %vm15121_vm3, %v5780_v16, %v5959_v40  ;;  %v6199_v60 = vrot.slane %v6198_v32, 4  ;;  %v6203_v24 = vrot.slane %v6201_v62, 5  ;;  %v6207_v48 = vrot.slane %v6205_v23, 4  ;;  %v15426_v23 = vld [vmem:[#allocation3 + $0x7c] sm:$0xf] }
 0x3ae   : > { %5961 = vst [vmem:[#allocation3 + $0xb4] sm:$0xf] %v5960_v46  ;;  %v5806_v34 = vsel %vm13380_vm12, %v5798_v21, %v5805_v45  ;;  %v5971_v42 = vsel %vm15128_vm4, %v5807_v19, %v5970_v15  ;;  %v5789_v54 = vsel %vm13380_vm12, %v5781_v9, %v5788_v41  ;;  %v5964_v7 = vsel %vm15128_vm4, %v5790_v51, %v5963_v52  ;;  %v15431_v41 = vld [vmem:[#allocation3 + $0x80] sm:$0x1] }
 0x3af   : > { %5969 = vst.msk [vmem:[#allocation3 + $0xc4] sm:$0xf] %vm5384_vm0, %v5806_v34  ;;  %5972 = vst [vmem:[#allocation3 + $0xc8] sm:$0x1] %v5971_v42  ;;  %v6204_v22 = vsel %vm13360_vm8, %v6199_v60, %v6203_v24  ;;  %v6208_v18 = vor.u32 %v6207_v48, %v6203_v24  ;;  %v6211_v28 = vshll.u32 %v15386_v8, 16  ;;  %v6216_v0 = vshrl.u32 %v15384_v49, 16 }
 0x3b0   : > { %5962 = vst.msk [vmem:[#allocation3 + $0xb8] sm:$0xf] %vm5384_vm0, %v5789_v54  ;;  %5965 = vst [vmem:[#allocation3 + $0xbc] sm:$0x1] %v5964_v7  ;;  %v6219_v58 = vshll.u32 %v15384_v49, 16  ;;  %v6225_v56 = vshll.u32 %v15388_v11, 16 }
 0x3b1   : > { %v6229_v59 = vshrl.u32 %v15388_v11, 16  ;;  %v6235_v38 = vshll.u32 %v15392_v31, 16  ;;  %v6209_v14 = vrot.slane %v6208_v18, 4  ;;  %v6213_v55 = vrot.slane %v6211_v28, 5  ;;  %v15435_v34 = vld [vmem:[#allocation3 + $0x84] sm:$0xf] }
 0x3b2   : > { %v6218_v4 = vrot.slane %v6216_v0, 4  ;;  %v6240_v40 = vshrl.u32 %v15402_v50, 16  ;;  %v6221_v44 = vrot.slane %v6219_v58, 5  ;;  %v6227_v6 = vrot.slane %v6225_v56, 5  ;;  %v15441_v18 = vld [vmem:[#allocation3 + $0x88] sm:$0xf] }
 0x3b3   : > { %v6231_v13 = vrot.slane %v6229_v59, 4  ;;  %v6237_v17 = vrot.slane %v6235_v38, 5  ;;  %v6214_v63 = vsel %vm13360_vm8, %v6209_v14, %v6213_v55  ;;  %v6243_v39 = vshll.u32 %v15402_v50, 16  ;;  %v15444_v59 = vld [vmem:[#allocation3 + $0x8c] sm:$0x1] }
 0x3b4   : > { %v6242_v21 = vrot.slane %v6240_v40, 4  ;;  %v6249_v36 = vshll.u32 %v15404_v2, 16  ;;  %v11150_v12 = vcombine.low %v6204_v22, %v6214_v63  ;;  %v6222_v15 = vor.u32 %v6221_v44, %v6218_v4 }
 0x3b5   : > { %v6232_v5 = vor.u32 %v6231_v13, %v6227_v6  ;;  %v6253_v62 = vshrl.u32 %v15404_v2, 16  ;;  %v6245_v33 = vrot.slane %v6243_v39, 5  ;;  %v6259_v9 = vshll.u32 %v15418_v35, 16 }
 0x3b6   : > { %v6251_v16 = vrot.slane %v6249_v36, 5  ;;  %v6264_v52 = vshrl.u32 %v15416_v43, 16  ;;  %12166 = vmatmul.mubr.msk.bf16.gmra.mrb[12].mxu1 %vm6464_vm2, %v11150_v12  ;;  %v6223_v32 = vrot.slane %v6222_v15, 4  ;;  %v6267_v51 = vshll.u32 %v15416_v43, 16  ;;  %v15457_v12 = vld [vmem:[#allocation3 + $0x94] sm:$0xf] }
 0x3b7   : > { %v6233_v45 = vrot.slane %v6232_v5, 4  ;;  %v6255_v19 = vrot.slane %v6253_v62, 4  ;;  %v6246_v46 = vor.u32 %v6245_v33, %v6242_v21  ;;  %v6261_v60 = vrot.slane %v6259_v9, 5 }
 0x3b8   : > { %v6266_v24 = vrot.slane %v6264_v52, 4  ;;  %v6273_v48 = vshll.u32 %v15426_v23, 16  ;;  %v6228_v42 = vsel %vm13360_vm8, %v6223_v32, %v6227_v6  ;;  %v6269_v22 = vrot.slane %v6267_v51, 5  ;;  %v15463_v32 = vld [vmem:[#allocation3 + $0x98] sm:$0x1] }
 0x3b9   : > { %v6238_v54 = vsel %vm13360_vm8, %v6233_v45, %v6237_v17  ;;  %v6256_v7 = vor.u32 %v6255_v19, %v6251_v16  ;;  %v6247_v0 = vrot.slane %v6246_v46, 4  ;;  %v6277_v56 = vshrl.u32 %v15426_v23, 16  ;;  %v15453_v17 = vld [vmem:[#allocation3 + $0x90] sm:$0xf] }
 0x3ba   : > { %v11151_v28 = vcombine.low %v6228_v42, %v6238_v54  ;;  %v6275_v58 = vrot.slane %v6273_v48, 5  ;;  %v6270_v14 = vor.u32 %v6269_v22, %v6266_v24  ;;  %v6283_v55 = vshll.u32 %v15431_v41, 16  ;;  %v15469_v24 = vld [vmem:[#allocation3 + $0x9c] sm:$0xf]  ;;  %v15472_v22 = vld [vmem:[#allocation3 + $0xa0] sm:$0xf] }
 0x3bb   : > { %v6257_v38 = vrot.slane %v6256_v7, 4  ;;  %v6288_v4 = vshrl.u32 %v15435_v34, 16  ;;  %v6252_v40 = vsel %vm13360_vm8, %v6247_v0, %v6251_v16  ;;  %v6279_v44 = vrot.slane %v6277_v56, 4 }
 0x3bc   : > { %12169 = vmatprep.mubr.msk.bf16.mxu1 %vm6464_vm2, %v11151_v28  ;;  %v6291_v6 = vshll.u32 %v15435_v34, 16  ;;  %v6297_v13 = vshll.u32 %v15441_v18, 16  ;;  %v6271_v21 = vrot.slane %v6270_v14, 4  ;;  %v6285_v39 = vrot.slane %v6283_v55, 5 }
 0x3bd   : > { %v6262_v63 = vsel %vm13360_vm8, %v6257_v38, %v6261_v60  ;;  %v6290_v36 = vrot.slane %v6288_v4, 4  ;;  %v6280_v5 = vor.u32 %v6279_v44, %v6275_v58  ;;  %v6301_v9 = vshrl.u32 %v15441_v18, 16 }
 0x3be   : > { %v11152_v15 = vcombine.low %v6252_v40, %v6262_v63  ;;  %v6293_v62 = vrot.slane %v6291_v6, 5  ;;  %v6299_v33 = vrot.slane %v6297_v13, 5  ;;  %v6276_v16 = vsel %vm13360_vm8, %v6271_v21, %v6275_v58  ;;  %v15479_v6 = vld [vmem:[#allocation3 + $0xa4] sm:$0x1] }
 0x3bf   : > { %v6307_v52 = vshll.u32 %v15444_v59, 16  ;;  %v6312_v45 = vshrl.u32 %v15453_v17, 16  ;;  %v6281_v19 = vrot.slane %v6280_v5, 4  ;;  %v6315_v46 = vshll.u32 %v15453_v17, 16  ;;  %v15485_v5 = vld [vmem:[#allocation3 + $0xa8] sm:$0xf] }
 0x3c0   : > { %12170 = vmatmul.mubr.msk.bf16.gmra.mrb[16].mxu1 %vm6464_vm2, %v11152_v15  ;;  %v6294_v51 = vor.u32 %v6293_v62, %v6290_v36  ;;  %v6321_v60 = vshll.u32 %v15457_v12, 16  ;;  %v6303_v48 = vrot.slane %v6301_v9, 4  ;;  %v6325_v7 = vshrl.u32 %v15457_v12, 16 }
 0x3c1   : > { %v6309_v42 = vrot.slane %v6307_v52, 5  ;;  %v6314_v54 = vrot.slane %v6312_v45, 4  ;;  %v6286_v28 = vsel %vm13360_vm8, %v6281_v19, %v6285_v39  ;;  %v6317_v58 = vrot.slane %v6315_v46, 5  ;;  %v15488_v52 = vld [vmem:[#allocation3 + $0xac] sm:$0xf] }
 0x3c2   : > { %v6295_v0 = vrot.slane %v6294_v51, 4  ;;  %v6323_v56 = vrot.slane %v6321_v60, 5  ;;  %v11153_v38 = vcombine.low %v6276_v16, %v6286_v28  ;;  %v6304_v14 = vor.u32 %v6303_v48, %v6299_v33  ;;  %v15493_v60 = vld [vmem:[#allocation3 + $0xb0] sm:$0x1]  ;;  %v15495_v48 = vld [vmem:[#allocation3 + $0xb4] sm:$0xf] }
 0x3c3   : > { %v6327_v55 = vrot.slane %v6325_v7, 4  ;;  %v6331_v4 = vshll.u32 %v15463_v32, 16  ;;  %v6318_v44 = vor.u32 %v6317_v58, %v6314_v54  ;;  %v6336_v13 = vshrl.u32 %v15469_v24, 16 }
 0x3c4   : > { %v6300_v40 = vsel %vm13360_vm8, %v6295_v0, %v6299_v33  ;;  %v6339_v63 = vshll.u32 %v15469_v24, 16  ;;  %12173 = vmatprep.mubr.msk.bf16.mxu1 %vm6464_vm2, %v11153_v38  ;;  %v6305_v21 = vrot.slane %v6304_v14, 4  ;;  %v6345_v15 = vshll.u32 %v15472_v22, 16  ;;  %v15503_v14 = vld [vmem:[#allocation3 + $0xb8] sm:$0xf] }
 0x3c5   : > { %v6328_v39 = vor.u32 %v6327_v55, %v6323_v56  ;;  %v6333_v36 = vrot.slane %v6331_v4, 5  ;;  %v6319_v62 = vrot.slane %v6318_v44, 4  ;;  %v6338_v16 = vrot.slane %v6336_v13, 4 }
 0x3c6   : > { %v6341_v9 = vrot.slane %v6339_v63, 5  ;;  %v6349_v33 = vshrl.u32 %v15472_v22, 16  ;;  %v6310_v45 = vsel %vm13360_vm8, %v6305_v21, %v6309_v42  ;;  %v6347_v51 = vrot.slane %v6345_v15, 5 }
 0x3c7   : > { %v6329_v19 = vrot.slane %v6328_v39, 4  ;;  %v6355_v46 = vshll.u32 %v15479_v6, 16  ;;  %v11154_v54 = vcombine.low %v6300_v40, %v6310_v45  ;;  %v6324_v0 = vsel %vm13360_vm8, %v6319_v62, %v6323_v56  ;;  %v15513_v45 = vld [vmem:[#allocation3 + $0xbc] sm:$0x1] }
 0x3c8   : > { %v6342_v7 = vor.u32 %v6341_v9, %v6338_v16  ;;  %v6351_v28 = vrot.slane %v6349_v33, 4  ;;  %v6360_v38 = vshrl.u32 %v15485_v5, 16  ;;  %v6363_v42 = vshll.u32 %v15485_v5, 16 }
 0x3c9   : > { %v6334_v58 = vsel %vm13360_vm8, %v6329_v19, %v6333_v36  ;;  %12174 = vmatmul.mubr.msk.bf16.gmra.mrb[20].mxu1 %vm6464_vm2, %v11154_v54  ;;  %v6369_v40 = vshll.u32 %v15488_v52, 16  ;;  %v6357_v13 = vrot.slane %v6355_v46, 5  ;;  %v6373_v56 = vshrl.u32 %v15488_v52, 16 }
 0x3ca   : > { %v11155_v55 = vcombine.low %v6324_v0, %v6334_v58  ;;  %v6343_v4 = vrot.slane %v6342_v7, 4  ;;  %v6352_v44 = vor.u32 %v6351_v28, %v6347_v51  ;;  %v6362_v63 = vrot.slane %v6360_v38, 4 }
 0x3cb   : > { %v6365_v21 = vrot.slane %v6363_v42, 5  ;;  %v6371_v36 = vrot.slane %v6369_v40, 5  ;;  %v6379_v15 = vshll.u32 %v15493_v60, 16  ;;  %v6384_v62 = vshrl.u32 %v15495_v48, 16 }
 0x3cc   : > { %12177 = vmatprep.mubr.msk.bf16.mxu1 %vm6464_vm2, %v11155_v55  ;;  %v6353_v39 = vrot.slane %v6352_v44, 4  ;;  %v6348_v16 = vsel %vm13360_vm8, %v6343_v4, %v6347_v51  ;;  %v6375_v33 = vrot.slane %v6373_v56, 4  ;;  %v6387_v19 = vshll.u32 %v15495_v48, 16 }
 0x3cd   : > { %v6366_v9 = vor.u32 %v6365_v21, %v6362_v63  ;;  %v6386_v54 = vrot.slane %v6384_v62, 4  ;;  %v6393_v7 = vshll.u32 %v15503_v14, 16  ;;  %v6397_v28 = vshrl.u32 %v15503_v14, 16 }
 0x3ce   : > { %v6358_v46 = vsel %vm13360_vm8, %v6353_v39, %v6357_v13  ;;  %v6376_v38 = vor.u32 %v6375_v33, %v6371_v36  ;;  %v6389_v42 = vrot.slane %v6387_v19, 5  ;;  %v6403_v4 = vshll.u32 %v15513_v45, 16 }
 0x3cf   : > { %v11156_v0 = vcombine.low %v6348_v16, %v6358_v46  ;;  %v6367_v58 = vrot.slane %v6366_v9, 4  ;;  %v6395_v55 = vrot.slane %v6393_v7, 5  ;;  %v6399_v51 = vrot.slane %v6397_v28, 4  ;;  %v6981_v28 = vld [vmem:[#allocation3 + $0x90] sm:$0xe] }
 0x3d0   : > { %v6377_v44 = vrot.slane %v6376_v38, 4  ;;  %v6381_v40 = vrot.slane %v6379_v15, 5  ;;  %v6390_v63 = vor.u32 %v6389_v42, %v6386_v54  ;;  %v6405_v9 = vrot.slane %v6403_v4, 5  ;;  %v13159_v38 = vld [vmem:[#allocation3] sm:$0xf] }
 0x3d1   : > { %12178 = vmatmul.mubr.msk.bf16.gmra.mrb[24].mxu1 %vm6464_vm2, %v11156_v0  ;;  %v6400_v21 = vor.u32 %v6399_v51, %v6395_v55  ;;  %v6372_v13 = vsel %vm13360_vm8, %v6367_v58, %v6371_v36  ;;  %v11183_v33 = vcombine.low %v15363_v53, %v15377_v25  ;;  %v11184_v19 = vcombine.low %v15384_v49, %v15388_v11  ;;  %v15545_v42 = vld [vmem:[#allocation3 + $0x4] sm:$0xf]  ;;  %v6982_v7 = vld [vmem:[#allocation3 + $0x9c] sm:$0xe] }
 0x3d2   : > { %v6382_v56 = vsel %vm13360_vm8, %v6377_v44, %v6381_v40  ;;  %v6391_v39 = vrot.slane %v6390_v63, 4  ;;  %v13161_v44 = vld [vmem:[#allocation3 + $0xc] sm:$0xf]  ;;  %v15554_v40 = vld [vmem:[#allocation3 + $0x10] sm:$0xf]  ;;  %v11181_v4 = vcombine.low %v15307_v27, %v15324_v3  ;;  %v7078_v51 = vrot.slane %v15392_v31, 5 }
 0x3d3   : > { %v11157_v62 = vcombine.low %v6372_v13, %v6382_v56  ;;  %v6401_v16 = vrot.slane %v6400_v21, 4  ;;  %v11177_v63 = vcombine.low %v13161_v44, %v15554_v40  ;;  %v15560_v21 = vld [vmem:[%s17050_s3 + $0x18] sm:$0xff]   ;;  %v6976_v13 = vld [vmem:[#allocation3 + $0x54] sm:$0xe]  ;;  %v13163_v56 = vld [vmem:[#allocation3 + $0x18] sm:$0xf]  ;;  %v17251_v53 = vcombine.low %v15435_v34, %v15441_v18 }
 0x3d4   : > { %v6396_v15 = vsel %vm13360_vm8, %v6391_v39, %v6395_v55  ;;  %v11176_v55 = vcombine.low %v13159_v38, %v15545_v42  ;;  %v15562_v39 = vld [vmem:[#allocation3 + $0x1c] sm:$0xf]  ;;  %v11216_v38 = vrot.slane %v6976_v13, 9  ;;  %v7071_v44 = vrot.slane %v15386_v8, 5 }
 0x3d5   : > { %12181 = vmatprep.mubr.msk.bf16.mxu1 %vm6464_vm2, %v11157_v62  ;;  %v6406_v54 = vsel %vm13360_vm8, %v6401_v16, %v6405_v9  ;;  %v11178_v62 = vcombine.low %v13163_v56, %v15562_v39  ;;  %v7068_v16 = vrot.slane %v15377_v25, 5  ;;  %v6977_v9 = vld [vmem:[#allocation3 + $0x60] sm:$0xe]  ;;  %v11180_v56 = vcombine.low %v15281_v1, %v15287_v57  ;;  %v6979_v1 = vld [vmem:[#allocation3 + $0x78] sm:$0xe] }
 0x3d6   : > { %v11158_v58 = vcombine.low %v6396_v15, %v6406_v54  ;;  %v6978_v15 = vld [vmem:[#allocation3 + $0x6c] sm:$0xe]  ;;  %v13165_v54 = vld [vmem:[#allocation3 + $0x24] sm:$0xf]  ;;  %v7082_v13 = vrot.slane %v15404_v2, 5  ;;  %v11219_v0 = vrot.slane %v6979_v1, 9  ;;  %v17252_v25 = vcombine.low %v15453_v17, %v15457_v12 }
 0x3d7   : > { %v11218_v8 = vrot.slane %v6978_v15, 9  ;;  %v7085_v15 = vrot.slane %v15418_v35, 5  ;;  %v7113_v31 = vrot.slane %v15479_v6, 5  ;;  %v7120_v36 = vrot.slane %v15493_v60, 5 }
 0x3d8   : > { %v7019_v49 = vrot.slane %v15545_v42, 5  ;;  %v7026_v17 = vrot.slane %v15554_v40, 5 }
 0x3d9   : > { %12182 = vmatmul.mubr.msk.bf16.gmra.mrb[28].mxu1 %vm6464_vm2, %v11158_v58  ;;  %v11179_v58 = vcombine.low %v13165_v54, %v15269_v30 }
 0x3da   : > { %12187 = vmatprep.mubr.msk.bf16.mxu1 %vm6464_vm2, %v11176_v55  ;;  %v7070_v55 = vrot.slane %v7068_v16, 4 }
 0x3dc   : > { %v15583_v30 = vsel %vm13747_vm15, %v7070_v55, %v7071_v44  ;;  %v7084_v55 = vrot.slane %v7082_v13, 4  ;;  %v7089_v44 = vrot.slane %v15426_v23, 5 }
 0x3e1   : > { %12188 = vmatmul.mubr.msk.bf16.vlgmr.msra.gmra.mrb[0].mxu1 %vm6464_vm2, %v11177_v63  ;;  %v11217_v63 = vrot.slane %v6977_v9, 9 }
 0x3e2   : > { %12220 = vmatpush3.bf16.msra.mxu1 %v15259_v61  ;;  %12191 = vmatprep.mubr.msk.bf16.mxu1 %vm6464_vm2, %v11178_v62  ;;  %v7075_v61 = vrot.slane %v15388_v11, 5  ;;  %v15579_v62 = vsel %vm13747_vm15, %v11216_v38, %v7068_v16  ;;  %v6980_v16 = vld [vmem:[#allocation3 + $0x84] sm:$0xe]  ;;  %v15595_v38 = vsel %vm13747_vm15, %v11218_v8, %v7082_v13  ;;  %v15609_v8 = vsel %vm13747_vm15, %v7084_v55, %v7085_v15  ;;  %v6969_v11 = vld [vmem:[#allocation3] sm:$0xe] }
 0x3e3   : > { %12253 = vmatprep.subr.bf16.mxu1 %v15560_v21  ;;  %v7091_v13 = vrot.slane %v7089_v44, 4  ;;  %v11220_v35 = vrot.slane %v6980_v16, 9  ;;  %v15620_v55 = vsel %vm13747_vm15, %v11219_v0, %v7089_v44  ;;  %v11221_v15 = vrot.slane %v6981_v28, 9  ;;  %v6983_v44 = vld [vmem:[#allocation3 + $0xa8] sm:$0xe] }
 0x3e4   : > { %v15590_v9 = vsel %vm13747_vm15, %v11217_v63, %v7075_v61  ;;  %v7077_v54 = vrot.slane %v7075_v61, 4  ;;  %v7092_v63 = vrot.slane %v15431_v41, 5  ;;  %v7096_v61 = vrot.slane %v15441_v18, 5  ;;  %v6984_v28 = vld [vmem:[#allocation3 + $0xb4] sm:$0xe] }
 0x3e5   : > { %v7110_v0 = vrot.slane %v15472_v22, 5 }
 0x3e6   : > { %v15601_v57 = vsel %vm13747_vm15, %v7077_v54, %v7078_v51  ;;  %v11182_v51 = vcombine.low %v15329_v29, %v15335_v47  ;;  %v7098_v1 = vrot.slane %v7096_v61, 4  ;;  %v7099_v54 = vrot.slane %v15444_v59, 5 }
 0x3e7   : > { %v15624_v16 = vsel %vm13747_vm15, %v7091_v13, %v7092_v63  ;;  %v15628_v29 = vsel %vm13747_vm15, %v11220_v35, %v7096_v61  ;;  %v7106_v61 = vrot.slane %v15463_v32, 5  ;;  %v11222_v35 = vrot.slane %v6982_v7, 9 }
 0x3e8   : > { %v7112_v59 = vrot.slane %v7110_v0, 4  ;;  %v11223_v32 = vrot.slane %v6983_v44, 9  ;;  %v7124_v7 = vrot.slane %v15503_v14, 5 }
 0x3e9   : > { %12192 = vmatmul.mubr.msk.bf16.gmra.mrb[4].mxu1 %vm6464_vm2, %v11179_v58  ;;  %v7103_v58 = vrot.slane %v15457_v12, 5  ;;  %v15653_v63 = vsel %vm13747_vm15, %v11222_v35, %v7110_v0  ;;  %v7127_v0 = vrot.slane %v15513_v45, 5  ;;  %v7033_v12 = vrot.slane %v15562_v39, 5  ;;  %v6971_v35 = vld [vmem:[#allocation3 + $0x18] sm:$0xe] }
 0x3ea   : > { %12195 = vmatprep.mubr.msk.bf16.mxu1 %vm6464_vm2, %v11180_v56  ;;  %v15635_v56 = vsel %vm13747_vm15, %v7098_v1, %v7099_v54  ;;  %v7117_v1 = vrot.slane %v15488_v52, 5  ;;  %v15660_v6 = vsel %vm13747_vm15, %v7112_v59, %v7113_v31  ;;  %v7126_v46 = vrot.slane %v7124_v7, 4  ;;  %v13169_v39 = vld [vmem:[#allocation3 + $0x28] sm:$0xf] }
 0x3eb   : > { %v7105_v13 = vrot.slane %v7103_v58, 4  ;;  %v15643_v41 = vsel %vm13747_vm15, %v11221_v15, %v7103_v58 }
 0x3ec   : > { %v7119_v15 = vrot.slane %v7117_v1, 4  ;;  %v15672_v44 = vsel %vm13747_vm15, %v11223_v32, %v7117_v1  ;;  %v15687_v27 = vsel %vm13747_vm15, %v7126_v46, %v7127_v0  ;;  %v17250_v46 = vcombine.low %v15416_v43, %v15426_v23  ;;  %v13168_v1 = vld [vmem:[#allocation3 + $0x20] sm:$0x1] }
 0x3ed   : > { %v15649_v54 = vsel %vm13747_vm15, %v7105_v13, %v7106_v61  ;;  %v11224_v61 = vrot.slane %v6984_v28, 9  ;;  %v17253_v43 = vcombine.low %v15469_v24, %v15472_v22  ;;  %v17254_v23 = vcombine.low %v15485_v5, %v15488_v52  ;;  %v6970_v22 = vld [vmem:[#allocation3 + $0xc] sm:$0xe]  ;;  %v13167_v52 = vld [vmem:[#allocation3 + $0x14] sm:$0x1] }
 0x3ee   : > { %v15676_v31 = vsel %vm13747_vm15, %v7119_v15, %v7120_v36  ;;  %v17249_v36 = vcombine.low %v15402_v50, %v15404_v2  ;;  %v13166_v50 = vld [vmem:[#allocation3 + $0x8] sm:$0x1]  ;;  %v17255_v24 = vcombine.low %v15495_v48, %v15503_v14  ;;  %v7035_v5 = vrot.slane %v7033_v12, 4  ;;  %v13170_v14 = vld [vmem:[#allocation3 + $0x34] sm:$0xf] }
 0x3ef   : > { %v15683_v45 = vsel %vm13747_vm15, %v11224_v61, %v7124_v7  ;;  %v7022_v2 = vrot.slane %v13166_v50, 5  ;;  %v7029_v59 = vrot.slane %v13167_v52, 5  ;;  %v7036_v28 = vrot.slane %v13168_v1, 5  ;;  %v6975_v1 = vld [vmem:[#allocation3 + $0x48] sm:$0xe] }
 0x3f0   : > { %v11210_v32 = vrot.slane %v6970_v22, 9  ;;  %v7040_v7 = vrot.slane %v13169_v39, 5  ;;  %v11211_v15 = vrot.slane %v6971_v35, 9  ;;  %v7047_v61 = vrot.slane %v13170_v14, 5  ;;  %v15927_v13 = vld [vmem:[#allocation3 + $0xac] sm:$0xf] }
 0x3f1   : > { %12196 = vmatmul.mubr.msk.bf16.gmra.mrb[8].mxu1 %vm6464_vm2, %v11181_v4  ;;  %v7037_v48 = vsel %vm13747_vm15, %v7035_v5, %v7036_v28 }
 0x3f2   : > { %12199 = vmatprep.mubr.msk.bf16.mxu1 %vm6464_vm2, %v11182_v51  ;;  %v7028_v51 = vrot.slane %v7026_v17, 4  ;;  %v7027_v0 = vsel %vm13747_vm15, %v11210_v32, %v7026_v17  ;;  %v7049_v50 = vrot.slane %v7047_v61, 4  ;;  %v7054_v17 = vrot.slane %v15324_v3, 5 }
 0x3f3   : > { %v7057_v3 = vrot.slane %v15333_v10, 5  ;;  %v15776_v10 = vld [vmem:[#allocation3 + $0x28] sm:$0xf] }
 0x3f4   : > { %v7030_v40 = vsel %vm13747_vm15, %v7028_v51, %v7029_v59  ;;  %v7056_v52 = vrot.slane %v7054_v17, 4  ;;  %v6974_v59 = vld [vmem:[#allocation3 + $0x3c] sm:$0xe] }
 0x3f5   : > { %v11214_v28 = vrot.slane %v6974_v59, 9 }
 0x3f6   : > { %v7058_v32 = vsel %vm13747_vm15, %v7056_v52, %v7057_v3  ;;  %v15821_v52 = vld [vmem:[#allocation3 + $0x5c] sm:$0x1] }
 0x3f9   : > { %12200 = vmatmul.mubr.msk.bf16.gmra.mrb[12].mxu1 %vm6464_vm2, %v11183_v33  ;;  %v11209_v33 = vrot.slane %v6969_v11, 9  ;;  %v6972_v11 = vld [vmem:[#allocation3 + $0x24] sm:$0xe] }
 0x3fa   : > { %12203 = vmatprep.mubr.msk.bf16.mxu1 %vm6464_vm2, %v11184_v19  ;;  %v7021_v19 = vrot.slane %v7019_v49, 4 }
 0x3fb   : > { %v7020_v34 = vsel %vm13747_vm15, %v11209_v33, %v7019_v49  ;;  %v7042_v49 = vrot.slane %v7040_v7, 4 }
 0x3fc   : > { %v7023_v18 = vsel %vm13747_vm15, %v7021_v19, %v7022_v2  ;;  %v13171_v2 = vld [vmem:[#allocation3 + $0x2c] sm:$0x1]  ;;  %v6973_v19 = vld [vmem:[#allocation3 + $0x30] sm:$0xe] }
 0x3fd   : > { %v11227_v42 = vcombine.low %v7020_v34, %v7023_v18  ;;  %v7043_v33 = vrot.slane %v13171_v2, 5  ;;  %v11212_v34 = vrot.slane %v6972_v11, 9  ;;  %v17256_v11 = vcombine.low %v15579_v62, %v15583_v30  ;;  %v15801_v62 = vld [vmem:[#allocation3 + $0x50] sm:$0x1] }
 0x3ff   : > { %v7044_v18 = vsel %vm13747_vm15, %v7042_v49, %v7043_v33  ;;  %v7041_v51 = vsel %vm13747_vm15, %v11212_v34, %v7040_v7  ;;  %v7055_v7 = vsel %vm13747_vm15, %v11214_v28, %v7054_v17  ;;  %v8599_v49 = vrot.slane %v15776_v10, 5  ;;  %v8524_v17 = vld [vmem:[#allocation3 + $0x48] sm:$0xe]  ;;  %v15830_v28 = vld [vmem:[#allocation3 + $0x68] sm:$0x1] }
 0x400   : > { %v11335_v3 = vrot.slane %v8524_v17, 9 }
 0x401   : > { %12204 = vmatmul.mubr.msk.bf16.gmra.mrb[16].mxu1 %vm6464_vm2, %v17249_v36  ;;  %v11228_v36 = vcombine.low %v7027_v0, %v7030_v40  ;;  %v11215_v40 = vrot.slane %v6975_v1, 9  ;;  %v15780_v0 = vld [vmem:[#allocation3 + $0x2c] sm:$0x1] }
 0x402   : > { %12207 = vmatprep.mubr.msk.bf16.mxu1 %vm6464_vm2, %v17250_v46  ;;  %v7034_v46 = vsel %vm13747_vm15, %v11211_v15, %v7033_v12  ;;  %v11213_v12 = vrot.slane %v6973_v19, 9  ;;  %v11232_v15 = vcombine.low %v7055_v7, %v7058_v32  ;;  %v8523_v19 = vld [vmem:[#allocation3 + $0x3c] sm:$0xe]  ;;  %v8602_v34 = vrot.slane %v15780_v0, 5  ;;  %v15911_v32 = vld [vmem:[#allocation3 + $0xa0] sm:$0xf] }
 0x404   : > { %v7048_v22 = vsel %vm13747_vm15, %v11213_v12, %v7047_v61  ;;  %v8521_v61 = vld [vmem:[#allocation3 + $0x24] sm:$0xe]  ;;  %v15799_v12 = vld [vmem:[#allocation3 + $0x44] sm:$0x1] }
 0x405   : > { %v11332_v2 = vrot.slane %v8521_v61, 9  ;;  %v8616_v7 = vrot.slane %v15799_v12, 5 }
 0x407   : > { %v15805_v30 = vsel %vm13747_vm15, %v11332_v2, %v8599_v49 }
 0x408   : > { %17258 = vst [vmem:[#allocation14_spill] sm:$0xff] %v15805_v30 }
 0x409   : > { %12208 = vmatmul.mubr.msk.bf16.gmra.mrb[20].mxu1 %vm6464_vm2, %v17251_v53  ;;  %v15746_v53 = vld [vmem:[%s17050_s3 + $0x20] sm:$0xff]  }
 0x40a   : > { %12211 = vmatprep.mubr.msk.bf16.mxu1 %vm6464_vm2, %v17252_v25  ;;  %v11229_v25 = vcombine.low %v7034_v46, %v7037_v48  ;;  %v15782_v46 = vld [vmem:[#allocation3 + $0x38] sm:$0x1] }
 0x411   : > { %12212 = vmatmul.mubr.msk.bf16.gmra.mrb[24].mxu1 %vm6464_vm2, %v17253_v43  ;;  %v13172_v43 = vld [vmem:[#allocation3 + $0x38] sm:$0x1] }
 0x412   : > { %12215 = vmatprep.mubr.msk.bf16.mxu1 %vm6464_vm2, %v17254_v23  ;;  %v7050_v23 = vrot.slane %v13172_v43, 5  ;;  %v17257_v43 = vcombine.low %v15590_v9, %v15601_v57  ;;  %v15810_v57 = vld [vmem:[#allocation3 + $0x64] sm:$0xf] }
 0x419   : > { %12216 = vmatmul.mubr.msk.bf16.gmra.mrb[28].mxu1 %vm6464_vm2, %v17255_v24  ;;  %v11230_v24 = vcombine.low %v7041_v51, %v7044_v18  ;;  %v15808_v51 = vld [vmem:[#allocation3 + $0x58] sm:$0xf] }
 0x41a   : > { %12221 = vmatprep.mubr.msk.bf16.mxu1 %vm6464_vm2, %v11227_v42  ;;  %v7051_v42 = vsel %vm13747_vm15, %v7049_v50, %v7050_v23  ;;  %v15791_v50 = vld [vmem:[#allocation3 + $0x4c] sm:$0xf]  ;;  %v8601_v23 = vrot.slane %v8599_v49, 4  ;;  %v8627_v49 = vrot.slane %v15808_v51, 5 }
 0x41b   : > { %v11231_v5 = vcombine.low %v7048_v22, %v7051_v42  ;;  %v11334_v22 = vrot.slane %v8523_v19, 9  ;;  %v8620_v1 = vrot.slane %v15791_v50, 5  ;;  %v8634_v19 = vrot.slane %v15810_v57, 5 }
 0x41c   : > { %v15814_v9 = vsel %vm13747_vm15, %v8601_v23, %v8602_v34  ;;  %v17265_v23 = vcombine.low %v15595_v38, %v15609_v8  ;;  %v15857_v34 = vld [vmem:[#allocation3 + $0x7c] sm:$0xf]  ;;  %v15869_v38 = vld [vmem:[#allocation3 + $0x74] sm:$0x1]  ;;  %v15871_v8 = vld [vmem:[#allocation3 + $0x80] sm:$0x1] }
 0x41d   : > { %17259 = vst [vmem:[#allocation15_spill] sm:$0xff] %v15814_v9  ;;  %v8622_v61 = vrot.slane %v8620_v1, 4 }
 0x421   : > { %12222 = vmatmul.mubr.msk.bf16.vlgmr.msra.gmra.mrb[0].mxu1 %vm6464_vm2, %v11228_v36  ;;  %v8522_v36 = vld [vmem:[#allocation3 + $0x30] sm:$0xe] }
 0x422   : > { %12254 = vmatpush3.bf16.msra.mxu1 %v15560_v21  ;;  %12225 = vmatprep.mubr.msk.bf16.mxu1 %vm6464_vm2, %v11229_v25  ;;  %v7061_v21 = vrot.slane %v15335_v47, 5  ;;  %v7064_v47 = vrot.slane %v15339_v37, 5  ;;  %v15778_v37 = vld [vmem:[#allocation3 + $0x34] sm:$0xf]  ;;  %v15784_v25 = vld [vmem:[#allocation3 + $0x40] sm:$0xf] }
 0x423   : > { %12287 = vmatprep.subr.bf16.mxu1 %v15746_v53  ;;  %v8606_v33 = vrot.slane %v15778_v37, 5  ;;  %v11333_v18 = vrot.slane %v8522_v36, 9  ;;  %v8623_v36 = vrot.slane %v15801_v62, 5 }
 0x424   : > { %v7063_v35 = vrot.slane %v7061_v21, 4  ;;  %v7062_v48 = vsel %vm13747_vm15, %v11215_v40, %v7061_v21  ;;  %v8609_v21 = vrot.slane %v15782_v46, 5 }
 0x425   : > { %v8608_v42 = vrot.slane %v8606_v33, 4  ;;  %v15863_v17 = vsel %vm13747_vm15, %v8622_v61, %v8623_v36 }
 0x426   : > { %v7065_v39 = vsel %vm13747_vm15, %v7063_v35, %v7064_v47  ;;  %v8525_v47 = vld [vmem:[#allocation3 + $0x54] sm:$0xe]  ;;  %17266 = vst [vmem:[#allocation6_spill] sm:$0xff] %v15863_v17 }
 0x427   : > { %v11233_v14 = vcombine.low %v7062_v48, %v7065_v39  ;;  %v15827_v35 = vsel %vm13747_vm15, %v8608_v42, %v8609_v21  ;;  %v15839_v48 = vld [vmem:[#allocation3 + $0x70] sm:$0xf]  ;;  %v11336_v2 = vrot.slane %v8525_v47, 9  ;;  %v8629_v42 = vrot.slane %v8627_v49, 4 }
 0x428   : > { %17261 = vst [vmem:[#allocation17_spill] sm:$0xff] %v15827_v35  ;;  %v8636_v47 = vrot.slane %v8634_v19, 4  ;;  %v8641_v36 = vrot.slane %v15839_v48, 5 }
 0x429   : > { %12226 = vmatmul.mubr.msk.bf16.gmra.mrb[4].mxu1 %vm6464_vm2, %v11230_v24  ;;  %v15818_v24 = vsel %vm13747_vm15, %v11333_v18, %v8606_v33  ;;  %v8630_v33 = vrot.slane %v15821_v52, 5  ;;  %v8530_v18 = vld [vmem:[#allocation3 + $0x90] sm:$0xe] }
 0x42a   : > { %12229 = vmatprep.mubr.msk.bf16.mxu1 %vm6464_vm2, %v11231_v5  ;;  %17260 = vst [vmem:[#allocation16_spill] sm:$0xff] %v15818_v24  ;;  %v8613_v5 = vrot.slane %v15784_v25, 5 }
 0x42c   : > { %v15836_v40 = vsel %vm13747_vm15, %v11334_v22, %v8613_v5  ;;  %v8615_v39 = vrot.slane %v8613_v5, 4  ;;  %v8528_v22 = vld [vmem:[#allocation3 + $0x78] sm:$0xe]  ;;  %v17267_v5 = vcombine.low %v15620_v55, %v15624_v16  ;;  %v15886_v55 = vsel %vm13747_vm15, %v8629_v42, %v8630_v33  ;;  %v8529_v42 = vld [vmem:[#allocation3 + $0x84] sm:$0xe] }
 0x42d   : > { %17262 = vst [vmem:[#allocation18_spill] sm:$0xff] %v15836_v40  ;;  %17269 = vst [vmem:[#allocation8_spill] sm:$0xff] %v15886_v55  ;;  %v8648_v33 = vrot.slane %v15857_v34, 5  ;;  %v7923_v40 = vshrl.u32 %v15778_v37, 16 }
 0x431   : > { %12230 = vmatmul.mubr.msk.bf16.gmra.mrb[8].mxu1 %vm6464_vm2, %v11232_v15  ;;  %v8526_v15 = vld [vmem:[#allocation3 + $0x60] sm:$0xe] }
 0x432   : > { %12233 = vmatprep.mubr.msk.bf16.mxu1 %vm6464_vm2, %v11233_v14  ;;  %v15843_v14 = vsel %vm13747_vm15, %v11335_v3, %v8620_v1  ;;  %v11337_v21 = vrot.slane %v8526_v15, 9  ;;  %v15877_v1 = vsel %vm13747_vm15, %v11336_v2, %v8627_v49  ;;  %v15882_v15 = vld [vmem:[#allocation3 + $0x94] sm:$0xf]  ;;  %v15893_v49 = vld [vmem:[#allocation3 + $0x8c] sm:$0x1]  ;;  %v8644_v2 = vrot.slane %v15869_v38, 5 }
 0x433   : > { %17263 = vst [vmem:[#allocation19_spill] sm:$0xff] %v15843_v14  ;;  %17268 = vst [vmem:[#allocation7_spill] sm:$0xff] %v15877_v1  ;;  %v15902_v3 = vld [vmem:[#allocation3 + $0x98] sm:$0x1]  ;;  %v8658_v4 = vrot.slane %v15893_v49, 5  ;;  %v8662_v60 = vrot.slane %v15882_v15, 5 }
 0x434   : > { %v15890_v16 = vsel %vm13747_vm15, %v11337_v21, %v8634_v19  ;;  %v8643_v21 = vrot.slane %v8641_v36, 4  ;;  %v15919_v19 = vld [vmem:[#allocation3 + $0xa4] sm:$0x1]  ;;  %v7798_v14 = vld [vmem:[#allocation3 + $0x30] sm:$0xf] }
 0x435   : > { %17270 = vst [vmem:[#allocation9_spill] sm:$0xff] %v15890_v16  ;;  %v8531_v16 = vld [vmem:[#allocation3 + $0x9c] sm:$0xe]  ;;  %v8664_v55 = vrot.slane %v8662_v60, 4 }
 0x439   : > { %12234 = vmatmul.mubr.msk.bf16.gmra.mrb[12].mxu1 %vm6464_vm2, %v17256_v11  ;;  %v15849_v11 = vsel %vm13747_vm15, %v8615_v39, %v8616_v7  ;;  %v8637_v39 = vrot.slane %v15830_v28, 5  ;;  %v15880_v7 = vld [vmem:[#allocation3 + $0x88] sm:$0xf] }
 0x43a   : > { %12237 = vmatprep.mubr.msk.bf16.mxu1 %vm6464_vm2, %v17257_v43  ;;  %17264 = vst [vmem:[#allocation5_spill] sm:$0xff] %v15849_v11  ;;  %v8527_v43 = vld [vmem:[#allocation3 + $0x6c] sm:$0xe]  ;;  %v8655_v59 = vrot.slane %v15880_v7, 5 }
 0x43b   : > { %v11338_v61 = vrot.slane %v8527_v43, 9  ;;  %v13042_v11 = vld [vmem:[#allocation3 + $0x6c] sm:$0xff]  }
 0x43c   : > { %v8657_v58 = vrot.slane %v8655_v59, 4 }
 0x43d   : > { %v15908_v43 = vsel %vm13747_vm15, %v11338_v61, %v8641_v36  ;;  %v15923_v61 = vsel %vm13747_vm15, %v8643_v21, %v8644_v2  ;;  %v11340_v36 = vrot.slane %v8529_v42, 9  ;;  %v17276_v2 = vcombine.low %v15628_v29, %v15635_v56  ;;  %v15939_v42 = vld [vmem:[#allocation3 + $0xb0] sm:$0x1] }
 0x43e   : > { %17272 = vst [vmem:[#allocation11_spill] sm:$0xff] %v15908_v43  ;;  %17274 = vst [vmem:[#allocation13_spill] sm:$0xff] %v15923_v61  ;;  %v8532_v61 = vld [vmem:[#allocation3 + $0xa8] sm:$0xe]  ;;  %v15958_v56 = vsel %vm13747_vm15, %v8657_v58, %v8658_v4  ;;  %v8533_v58 = vld [vmem:[#allocation3 + $0xb4] sm:$0xe] }
 0x43f   : > { %v15954_v29 = vsel %vm13747_vm15, %v11340_v36, %v8655_v59  ;;  %17279 = vst [vmem:[#allocation21_spill] sm:$0xff] %v15958_v56  ;;  %v11342_v59 = vrot.slane %v8531_v16, 9  ;;  %v8676_v36 = vrot.slane %v15927_v13, 5  ;;  %v7836_v4 = vld [vmem:[#allocation3 + $0xc8] sm:$0x1] }
 0x440   : > { %17278 = vst [vmem:[#allocation20_spill] sm:$0xff] %v15954_v29 }
 0x441   : > { %12238 = vmatmul.mubr.msk.bf16.gmra.mrb[16].mxu1 %vm6464_vm2, %v17265_v23  ;;  %v15899_v23 = vsel %vm13747_vm15, %v8636_v47, %v8637_v39  ;;  %v8650_v47 = vrot.slane %v8648_v33, 4  ;;  %v8651_v39 = vrot.slane %v15871_v8, 5 }
 0x442   : > { %12241 = vmatprep.mubr.msk.bf16.mxu1 %vm6464_vm2, %v17267_v5  ;;  %17271 = vst [vmem:[#allocation10_spill] sm:$0xff] %v15899_v23  ;;  %v11339_v5 = vrot.slane %v8528_v22, 9  ;;  %v11341_v23 = vrot.slane %v8530_v18, 9  ;;  %v15948_v18 = vld [vmem:[#allocation3 + $0xb8] sm:$0xf] }
 0x443   : > { %v8683_v16 = vrot.slane %v15948_v18, 5 }
 0x444   : > { %v15915_v22 = vsel %vm13747_vm15, %v11339_v5, %v8648_v33  ;;  %v15933_v33 = vsel %vm13747_vm15, %v8650_v47, %v8651_v39  ;;  %v8665_v5 = vrot.slane %v15902_v3, 5  ;;  %v17277_v47 = vcombine.low %v15643_v41, %v15649_v54  ;;  %v15950_v39 = vld [vmem:[#allocation3 + $0xbc] sm:$0x1]  ;;  %v15965_v54 = vld [vmem:[#allocation3 + $0xc4] sm:$0xf] }
 0x445   : > { %17273 = vst [vmem:[#allocation12_spill] sm:$0xff] %v15915_v22  ;;  %17275 = vst [vmem:[#allocation4_spill] sm:$0xff] %v15933_v33  ;;  %v8669_v41 = vrot.slane %v15911_v32, 5  ;;  %v8672_v33 = vrot.slane %v15919_v19, 5  ;;  %v11343_v22 = vrot.slane %v8532_v61, 9  ;;  %v8690_v61 = vrot.slane %v15965_v54, 5 }
 0x446   : > { %v15971_v21 = vsel %vm13747_vm15, %v8664_v55, %v8665_v5  ;;  %v8679_v55 = vrot.slane %v15939_v42, 5  ;;  %v8534_v5 = vld [vmem:[#allocation3 + $0xc0] sm:$0xe]  ;;  %v8686_v29 = vrot.slane %v15950_v39, 5 }
 0x447   : > { %17281 = vst [vmem:[#allocation23_spill] sm:$0xff] %v15971_v21  ;;  %v15979_v43 = vsel %vm13747_vm15, %v11342_v59, %v8669_v41  ;;  %v11344_v21 = vrot.slane %v8533_v58, 9  ;;  %v8692_v1 = vrot.slane %v8690_v61, 4 }
 0x448   : > { %17282 = vst [vmem:[#allocation24_spill] sm:$0xff] %v15979_v43 }
 0x449   : > { %12242 = vmatmul.mubr.msk.bf16.gmra.mrb[20].mxu1 %vm6464_vm2, %v17276_v2  ;;  %v15962_v2 = vsel %vm13747_vm15, %v11341_v23, %v8662_v60  ;;  %v8671_v23 = vrot.slane %v8669_v41, 4  ;;  %v15989_v60 = vsel %vm13747_vm15, %v11343_v22, %v8676_v36  ;;  %v8693_v22 = vrot.slane %v7836_v4, 5  ;;  %v7795_v41 = vld [vmem:[#allocation3 + $0x24] sm:$0xf] }
 0x44a   : > { %12245 = vmatprep.mubr.msk.bf16.mxu1 %vm6464_vm2, %v17277_v47  ;;  %17280 = vst [vmem:[#allocation22_spill] sm:$0xff] %v15962_v2  ;;  %v8678_v47 = vrot.slane %v8676_v36, 4  ;;  %17284 = vst [vmem:[#allocation26_spill] sm:$0xff] %v15989_v60  ;;  %v8685_v2 = vrot.slane %v8683_v16, 4  ;;  %v17286_v36 = vcombine.low %v15653_v63, %v15660_v6  ;;  %v16007_v58 = vsel %vm13747_vm15, %v11344_v21, %v8683_v16  ;;  %v13036_v16 = vld [vmem:[#allocation3 + $0x24] sm:$0xff]  }
 0x44b   : > { %v15985_v56 = vsel %vm13747_vm15, %v8671_v23, %v8672_v33  ;;  %v11345_v23 = vrot.slane %v8534_v5, 9  ;;  %17287 = vst [vmem:[#allocation28_spill] sm:$0xff] %v16007_v58  ;;  %v16025_v6 = vsel %vm13747_vm15, %v8692_v1, %v8693_v22  ;;  %v7789_v1 = vld [vmem:[#allocation3 + $0xc] sm:$0xf]  ;;  %v16042_v5 = vld [vmem:[#allocation3 + $0x10] sm:$0xf] }
 0x44c   : > { %17283 = vst [vmem:[#allocation25_spill] sm:$0xff] %v15985_v56  ;;  %v15996_v59 = vsel %vm13747_vm15, %v8678_v47, %v8679_v55  ;;  %v16011_v47 = vsel %vm13747_vm15, %v8685_v2, %v8686_v29  ;;  %v17289_v55 = vcombine.low %v15672_v44, %v15676_v31  ;;  %17291 = vst [vmem:[#allocation31_spill] sm:$0xff] %v16025_v6  ;;  %v13033_v29 = vld [vmem:[#allocation3 + $0xc] sm:$0xff]   ;;  %v13035_v31 = vld [vmem:[#allocation3 + $0x18] sm:$0xff]  }
 0x44d   : > { %17285 = vst [vmem:[#allocation27_spill] sm:$0xff] %v15996_v59  ;;  %17288 = vst [vmem:[#allocation29_spill] sm:$0xff] %v16011_v47  ;;  %v16021_v63 = vsel %vm13747_vm15, %v11345_v23, %v8690_v61  ;;  %v17292_v44 = vcombine.low %v15683_v45, %v15687_v27  ;;  %v16037_v2 = vld [vmem:[%s17050_s3 + $0x28] sm:$0xff]   ;;  %v7838_v45 = vshrl.u32 %v7789_v1, 16  ;;  %v7841_v27 = vshll.u32 %v7789_v1, 16 }
 0x44e   : > { %17290 = vst [vmem:[#allocation30_spill] sm:$0xff] %v16021_v63  ;;  %v7847_v61 = vshll.u32 %v16042_v5, 16  ;;  %v7851_v23 = vshrl.u32 %v16042_v5, 16  ;;  %v7792_v22 = vld [vmem:[#allocation3 + $0x18] sm:$0xf] }
 0x44f   : > { %v16053_v6 = vld [vmem:[#allocation3 + $0x14] sm:$0x1] }
 0x450   : > { %v7849_v21 = vrot.slane %v7847_v61, 5  ;;  %v7853_v4 = vrot.slane %v7851_v23, 4  ;;  %17294 = vst [vmem:[#allocation33_spill] sm:$0xff] %v16053_v6  ;;  %v7889_v61 = vshll.u32 %v7795_v41, 16  ;;  %v13040_v23 = vld [vmem:[#allocation3 + $0x54] sm:$0xff]   ;;  %v7857_v60 = vshll.u32 %v16053_v6, 16 }
 0x451   : > { %12246 = vmatmul.mubr.msk.bf16.gmra.mrb[24].mxu1 %vm6464_vm2, %v17286_v36  ;;  %v13037_v36 = vld [vmem:[#allocation3 + $0x30] sm:$0xff]   ;;  %v10095_v6 = vld [vmem:[#allocation3 + $0x84] sm:$0xe] }
 0x452   : > { %12249 = vmatprep.mubr.msk.bf16.mxu1 %vm6464_vm2, %v17289_v55  ;;  %v16047_v55 = vld [vmem:[#allocation3 + $0x1c] sm:$0xf]  ;;  %v7854_v59 = vor.u32 %v7853_v4, %v7849_v21  ;;  %v7859_v43 = vrot.slane %v7857_v60, 5  ;;  %v7913_v60 = vshll.u32 %v7798_v14, 16 }
 0x453   : > { %17293 = vst [vmem:[#allocation32_spill] sm:$0xff] %v16047_v55  ;;  %v7871_v1 = vshll.u32 %v16047_v55, 16  ;;  %v7875_v33 = vshrl.u32 %v16047_v55, 16  ;;  %v13049_v55 = vld [vmem:[#allocation3 + $0xc0] sm:$0xff]  }
 0x459   : > { %12250 = vmatmul.mubr.msk.bf16.gmra.mrb[28].mxu1 %vm6464_vm2, %v17292_v44  ;;  %v7843_v44 = vrot.slane %v7841_v27, 5  ;;  %v13039_v27 = vld [vmem:[#allocation3 + $0x48] sm:$0xff]  }
 0x45a   : > { %12255 = vmatprep.mubr.msk.bf16.mxu1 %vm6464_vm2, %v13033_v29  ;;  %v13038_v29 = vld [vmem:[#allocation3 + $0x3c] sm:$0xff]  }
 0x461   : > { %12256 = vmatmul.mubr.msk.bf16.vlgmr.msra.gmra.mrb[0].mxu1 %vm6464_vm2, %v13035_v31  ;;  %v7862_v31 = vshrl.u32 %v7792_v22, 16 }
 0x462   : > { %12288 = vmatpush3.bf16.msra.mxu1 %v15746_v53  ;;  %12259 = vmatprep.mubr.msk.bf16.mxu1 %vm6464_vm2, %v13036_v16  ;;  %v7840_v53 = vrot.slane %v7838_v45, 4  ;;  %v7865_v16 = vshll.u32 %v7792_v22, 16  ;;  %v7877_v45 = vrot.slane %v7875_v33, 4  ;;  %v16057_v22 = vld [vmem:[#allocation3 + $0x20] sm:$0x1] }
 0x463   : > { %12321 = vmatprep.subr.bf16.mxu1 %v16037_v2  ;;  %v7864_v63 = vrot.slane %v7862_v31, 4  ;;  %17295 = vst [vmem:[#allocation34_spill] sm:$0xff] %v16057_v22 }
 0x464   : > { %v7867_v47 = vrot.slane %v7865_v16, 5  ;;  %v7844_v58 = vor.u32 %v7843_v44, %v7840_v53  ;;  %v7855_v16 = vrot.slane %v7854_v59, 4  ;;  %v7881_v53 = vshll.u32 %v16057_v22, 16 }
 0x465   : > { %v7891_v44 = vrot.slane %v7889_v61, 5  ;;  %v7905_v59 = vshll.u32 %v15780_v0, 16 }
 0x466   : > { %v7868_v56 = vor.u32 %v7867_v47, %v7864_v63  ;;  %v7845_v31 = vrot.slane %v7844_v58, 4  ;;  %v7860_v47 = vsel %vm13360_vm8, %v7855_v16, %v7859_v43  ;;  %v13041_v58 = vld [vmem:[#allocation3 + $0x60] sm:$0xff]  }
 0x467   : > { %v16084_v16 = vrot.slane %v7905_v59, 5 }
 0x468   : > { %v7869_v17 = vrot.slane %v7868_v56, 4  ;;  %v7919_v56 = vshll.u32 %v15778_v37, 16  ;;  %v7947_v37 = vshrl.u32 %v15784_v25, 16 }
 0x469   : > { %12260 = vmatmul.mubr.msk.bf16.gmra.mrb[4].mxu1 %vm6464_vm2, %v13037_v36  ;;  %v16055_v36 = vrot.slane %v7871_v1, 5  ;;  %v7895_v1 = vshll.u32 %v15776_v10, 16 }
 0x46a   : > { %12263 = vmatprep.mubr.msk.bf16.mxu1 %vm6464_vm2, %v13038_v29  ;;  %v7886_v29 = vshrl.u32 %v7795_v41, 16  ;;  %v7899_v41 = vshrl.u32 %v15776_v10, 16  ;;  %v7910_v10 = vshrl.u32 %v7798_v14, 16  ;;  %v7943_v14 = vshll.u32 %v15784_v25, 16 }
 0x46b   : > { %v7878_v4 = vor.u32 %v7877_v45, %v16055_v36  ;;  %v7850_v45 = vsel %vm13360_vm8, %v7845_v31, %v7849_v21  ;;  %v16071_v61 = vrot.slane %v7895_v1, 5  ;;  %v7874_v0 = vsel %vm13360_vm8, %v7869_v17, %v16055_v36  ;;  %v7801_v21 = vld [vmem:[#allocation3 + $0x3c] sm:$0xf]  ;;  %v7807_v36 = vld [vmem:[#allocation3 + $0x54] sm:$0xf] }
 0x46c   : > { %v7888_v33 = vrot.slane %v7886_v29, 4  ;;  %v16076_v43 = vcombine.low %v7850_v45, %v7860_v47  ;;  %v7971_v17 = vshrl.u32 %v15791_v50, 16  ;;  %v7912_v1 = vrot.slane %v7910_v10, 4 }
 0x46d   : > { %v7879_v63 = vrot.slane %v7878_v4, 4  ;;  %v7804_v4 = vld [vmem:[#allocation3 + $0x48] sm:$0xf]  ;;  %v7925_v47 = vrot.slane %v7923_v40, 4  ;;  %v16093_v45 = vrot.slane %v7943_v14, 5  ;;  %v7949_v25 = vrot.slane %v7947_v37, 4 }
 0x46e   : > { %v7892_v29 = vor.u32 %v7891_v44, %v7888_v33  ;;  %v7967_v44 = vshll.u32 %v15791_v50, 16  ;;  %v7958_v59 = vshrl.u32 %v7804_v4, 16  ;;  %v7985_v35 = vshll.u32 %v7807_v36, 16 }
 0x46f   : > { %v7973_v9 = vrot.slane %v7971_v17, 4  ;;  %v7991_v50 = vshll.u32 %v15808_v51, 16  ;;  %v7995_v10 = vshrl.u32 %v15808_v51, 16  ;;  %v7950_v17 = vor.u32 %v7949_v25, %v16093_v45 }
 0x470   : > { %v16095_v24 = vrot.slane %v7967_v44, 5  ;;  %v7987_v22 = vrot.slane %v7985_v35, 5  ;;  %v7977_v25 = vshll.u32 %v15801_v62, 16 }
 0x471   : > { %12264 = vmatmul.mubr.msk.bf16.gmra.mrb[8].mxu1 %vm6464_vm2, %v13039_v27  ;;  %v7883_v27 = vrot.slane %v7881_v53, 5  ;;  %v7893_v53 = vrot.slane %v7892_v29, 4  ;;  %v7982_v29 = vshrl.u32 %v7807_v36, 16  ;;  %v7960_v36 = vrot.slane %v7958_v59, 4 }
 0x472   : > { %12267 = vmatprep.mubr.msk.bf16.mxu1 %vm6464_vm2, %v13040_v23  ;;  %v7901_v23 = vrot.slane %v7899_v41, 4  ;;  %v16091_v41 = vrot.slane %v7919_v56, 5 }
 0x473   : > { %v7884_v31 = vsel %vm13360_vm8, %v7879_v63, %v7883_v27  ;;  %v7934_v63 = vshrl.u32 %v7801_v21, 16  ;;  %v7937_v27 = vshll.u32 %v7801_v21, 16  ;;  %v7984_v51 = vrot.slane %v7982_v29, 4 }
 0x474   : > { %v7902_v33 = vor.u32 %v7901_v23, %v16071_v61  ;;  %v13043_v23 = vld [vmem:[#allocation3 + $0x78] sm:$0xff]   ;;  %v7926_v21 = vor.u32 %v7925_v47, %v16091_v41  ;;  %v16103_v44 = vcombine.low %v7874_v0, %v7884_v31  ;;  %v7810_v47 = vld [vmem:[#allocation3 + $0x60] sm:$0xf] }
 0x475   : > { %v7936_v14 = vrot.slane %v7934_v63, 4  ;;  %v7939_v37 = vrot.slane %v7937_v27, 5  ;;  %v7953_v27 = vshll.u32 %v15799_v12, 16  ;;  %v8009_v29 = vshll.u32 %v7810_v47, 16 }
 0x476   : > { %v7903_v56 = vrot.slane %v7902_v33, 4  ;;  %v7898_v33 = vsel %vm13360_vm8, %v7893_v53, %v16071_v61  ;;  %v7927_v31 = vrot.slane %v7926_v21, 4  ;;  %v7951_v61 = vrot.slane %v7950_v17, 4 }
 0x477   : > { %v7940_v35 = vor.u32 %v7939_v37, %v7936_v14  ;;  %v7988_v53 = vor.u32 %v7987_v22, %v7984_v51  ;;  %v8001_v14 = vshll.u32 %v15821_v52, 16  ;;  %v7813_v37 = vld [vmem:[#allocation3 + $0x6c] sm:$0xf]  ;;  %v16136_v17 = vrot.slane %v8009_v29, 5 }
 0x478   : > { %v7908_v63 = vsel %vm13360_vm8, %v7903_v56, %v16084_v16  ;;  %v8019_v16 = vshrl.u32 %v15810_v57, 16  ;;  %v13046_v56 = vld [vmem:[#allocation3 + $0x9c] sm:$0xff]   ;;  %v16207_v29 = vld [vmem:[#allocation3 + $0x4c] sm:$0xf] }
 0x479   : > { %12268 = vmatmul.mubr.msk.bf16.gmra.mrb[12].mxu1 %vm6464_vm2, %v13041_v58  ;;  %v7961_v58 = vshll.u32 %v7804_v4, 16  ;;  %v7929_v4 = vshll.u32 %v15782_v46, 16  ;;  %v7974_v46 = vor.u32 %v7973_v9, %v16095_v24  ;;  %v8006_v9 = vshrl.u32 %v7810_v47, 16  ;;  %17303 = vst [vmem:[#allocation42_spill] sm:$0xff] %v16207_v29 }
 0x47a   : > { %12271 = vmatprep.mubr.msk.bf16.mxu1 %vm6464_vm2, %v13042_v11  ;;  %v7915_v11 = vrot.slane %v7913_v60, 5  ;;  %v13044_v60 = vld [vmem:[#allocation3 + $0x84] sm:$0xff]   ;;  %v7941_v22 = vrot.slane %v7940_v35, 4  ;;  %v16144_v52 = vrot.slane %v8019_v16, 4  ;;  %v8033_v47 = vshll.u32 %v7813_v37, 16 }
 0x47b   : > { %v7963_v30 = vrot.slane %v7961_v58, 5  ;;  %v7931_v59 = vrot.slane %v7929_v4, 5  ;;  %v7979_v4 = vrot.slane %v7977_v25, 5  ;;  %v16158_v25 = vrot.slane %v8001_v14, 5  ;;  %v16194_v14 = vld [vmem:[#allocation3 + $0x2c] sm:$0x1] }
 0x47c   : > { %v7916_v40 = vor.u32 %v7915_v11, %v7912_v1  ;;  %v16110_v1 = vrot.slane %v7991_v50, 5  ;;  %v7997_v11 = vrot.slane %v7995_v10, 4  ;;  %v7975_v50 = vrot.slane %v7974_v46, 4  ;;  %17300 = vst [vmem:[#allocation39_spill] sm:$0xff] %v16194_v14 }
 0x47d   : > { %v7964_v58 = vor.u32 %v7963_v30, %v7960_v36  ;;  %v7932_v62 = vsel %vm13360_vm8, %v7927_v31, %v7931_v59  ;;  %v7955_v30 = vrot.slane %v7953_v27, 5  ;;  %v16132_v36 = vrot.slane %v7988_v53, 4  ;;  %v16148_v31 = vld [vmem:[#allocation3 + $0x1c] sm:$0xf]  ;;  %v13047_v27 = vld [vmem:[#allocation3 + $0xa8] sm:$0xff]   ;;  %v13048_v53 = vld [vmem:[#allocation3 + $0xb4] sm:$0xff]  }
 0x47e   : > { %v7917_v0 = vrot.slane %v7916_v40, 4  ;;  %v7998_v10 = vor.u32 %v7997_v11, %v16110_v1  ;;  %v16120_v40 = vcombine.low %v7898_v33, %v7908_v63  ;;  %v7980_v51 = vsel %vm13360_vm8, %v7975_v50, %v7979_v4  ;;  %17296 = vst [vmem:[#allocation35_spill] sm:$0xff] %v16148_v31  ;;  %v10086_v50 = vld [vmem:[#allocation3 + $0x18] sm:$0xe] }
 0x47f   : > { %v7965_v21 = vrot.slane %v7964_v58, 4  ;;  %v8030_v11 = vshrl.u32 %v7813_v37, 16  ;;  %v8039_v63 = vshll.u32 %v15839_v48, 16  ;;  %v7946_v35 = vsel %vm13360_vm8, %v7941_v22, %v16093_v45  ;;  %v16197_v37 = vld [vmem:[#allocation3 + $0x38] sm:$0x1] }
 0x480   : > { %v7922_v12 = vsel %vm13360_vm8, %v7917_v0, %v16091_v41  ;;  %v16134_v41 = vrot.slane %v8006_v9, 4  ;;  %v16140_v33 = vrot.slane %v7998_v10, 4  ;;  %v8043_v0 = vshrl.u32 %v15839_v48, 16  ;;  %17301 = vst [vmem:[#allocation40_spill] sm:$0xff] %v16197_v37  ;;  %v16222_v45 = vld [vmem:[#allocation3 + $0x44] sm:$0x1] }
 0x481   : > { %12272 = vmatmul.mubr.msk.bf16.gmra.mrb[16].mxu1 %vm6464_vm2, %v13043_v23  ;;  %v13045_v23 = vld [vmem:[#allocation3 + $0x90] sm:$0xff]   ;;  %v16150_v59 = vcombine.low %v7922_v12, %v7932_v62  ;;  %v7970_v58 = vsel %vm13360_vm8, %v7965_v21, %v16095_v24  ;;  %v16174_v24 = vld [vmem:[#allocation3 + $0x28] sm:$0xf]  ;;  %v10152_v12 = vrot.slane %v16148_v31, 5  ;;  %v10087_v62 = vld [vmem:[#allocation3 + $0x24] sm:$0xe] }
 0x482   : > { %12275 = vmatprep.mubr.msk.bf16.mxu1 %vm6464_vm2, %v13044_v60  ;;  %v8015_v60 = vshll.u32 %v15810_v57, 16  ;;  %v7956_v57 = vsel %vm13360_vm8, %v7951_v61, %v7955_v30  ;;  %v16160_v61 = vld [vmem:[#allocation3 + $0x78] sm:$0xf]  ;;  %v16164_v48 = vcombine.low %v7970_v58, %v7980_v51  ;;  %17298 = vst [vmem:[#allocation37_spill] sm:$0xff] %v16174_v24  ;;  %v16186_v30 = vrot.slane %v8030_v11, 4  ;;  %17306 = vst [vmem:[#allocation45_spill] sm:$0xff] %v16222_v45 }
 0x483   : > { %v16162_v9 = vcombine.low %v7946_v35, %v7956_v57  ;;  %v16188_v22 = vrot.slane %v8033_v47, 5  ;;  %v16190_v21 = vrot.slane %v8039_v63, 5  ;;  %v16192_v4 = vrot.slane %v8043_v0, 4  ;;  %v16199_v57 = vld [vmem:[#allocation3 + $0x40] sm:$0xf] }
 0x484   : > { %v16142_v46 = vrot.slane %v8015_v60, 5  ;;  %17302 = vst [vmem:[#allocation41_spill] sm:$0xff] %v16199_v57  ;;  %v11451_v51 = vrot.slane %v10086_v50, 9  ;;  %v10154_v35 = vrot.slane %v10152_v12, 4  ;;  %v10159_v11 = vrot.slane %v16174_v24, 5 }
 0x485   : > { %v8063_v0 = vshll.u32 %v15857_v34, 16  ;;  %v11452_v16 = vrot.slane %v10087_v62, 9  ;;  %v10089_v47 = vld [vmem:[#allocation3 + $0x3c] sm:$0xe]  ;;  %v10090_v24 = vld [vmem:[#allocation3 + $0x48] sm:$0xe] }
 0x486   : > { %v16211_v50 = vsel %vm13747_vm15, %v11451_v51, %v10152_v12  ;;  %v10161_v60 = vrot.slane %v10159_v11, 4  ;;  %v16240_v31 = vld [vmem:[#allocation3 + $0x5c] sm:$0x1] }
 0x487   : > { %17304 = vst [vmem:[#allocation43_spill] sm:$0xff] %v16211_v50  ;;  %17311 = vst [vmem:[#allocation50_spill] sm:$0xff] %v16240_v31  ;;  %v10169_v50 = vrot.slane %v16197_v37, 5 }
 0x489   : > { %12276 = vmatmul.mubr.msk.bf16.gmra.mrb[20].mxu1 %vm6464_vm2, %v13045_v23  ;;  %v16172_v23 = vld [vmem:[#allocation3 + $0x20] sm:$0x1] }
 0x48a   : > { %12279 = vmatprep.mubr.msk.bf16.mxu1 %vm6464_vm2, %v13046_v56  ;;  %17297 = vst [vmem:[#allocation36_spill] sm:$0xff] %v16172_v23  ;;  %v16183_v56 = vld [vmem:[#allocation3 + $0x34] sm:$0xf]  ;;  %v10155_v58 = vrot.slane %v16172_v23, 5  ;;  %v16224_v23 = vld [vmem:[#allocation3 + $0x50] sm:$0x1] }
 0x48b   : > { %17299 = vst [vmem:[#allocation38_spill] sm:$0xff] %v16183_v56  ;;  %17307 = vst [vmem:[#allocation46_spill] sm:$0xff] %v16224_v23  ;;  %v10166_v51 = vrot.slane %v16183_v56, 5  ;;  %v11454_v56 = vrot.slane %v10089_v47, 9 }
 0x48c   : > { %v16215_v10 = vsel %vm13747_vm15, %v10154_v35, %v10155_v58  ;;  %v16229_v35 = vld [vmem:[#allocation3 + $0x58] sm:$0xf]  ;;  %v16233_v58 = vsel %vm13747_vm15, %v11452_v16, %v10159_v11  ;;  %v16245_v16 = vrot.slane %v8063_v0, 5  ;;  %v11455_v0 = vrot.slane %v10090_v24, 9 }
 0x48d   : > { %17305 = vst [vmem:[#allocation44_spill] sm:$0xff] %v16215_v10  ;;  %17308 = vst [vmem:[#allocation47_spill] sm:$0xff] %v16229_v35  ;;  %v10168_v10 = vrot.slane %v10166_v51, 4  ;;  %v10187_v24 = vrot.slane %v16229_v35, 5  ;;  %v16290_v35 = vld [vmem:[#allocation3 + $0x80] sm:$0x1] }
 0x48e   : > { %17309 = vst [vmem:[#allocation48_spill] sm:$0xff] %v16233_v58  ;;  %v10092_v58 = vld [vmem:[#allocation3 + $0x60] sm:$0xe]  ;;  %17321 = vst [vmem:[#allocation60_spill] sm:$0xff] %v16290_v35 }
 0x48f   : > { %v16256_v12 = vsel %vm13747_vm15, %v10168_v10, %v10169_v50 }
 0x490   : > { %17314 = vst [vmem:[#allocation53_spill] sm:$0xff] %v16256_v12  ;;  %v10093_v12 = vld [vmem:[#allocation3 + $0x6c] sm:$0xe] }
 0x491   : > { %12280 = vmatmul.mubr.msk.bf16.gmra.mrb[24].mxu1 %vm6464_vm2, %v13047_v27  ;;  %v10088_v27 = vld [vmem:[#allocation3 + $0x30] sm:$0xe] }
 0x492   : > { %12283 = vmatprep.mubr.msk.bf16.mxu1 %vm6464_vm2, %v13048_v53  ;;  %v10162_v53 = vrot.slane %v16194_v14, 5  ;;  %v11453_v62 = vrot.slane %v10088_v27, 9  ;;  %v10173_v14 = vrot.slane %v16199_v57, 5  ;;  %v10176_v27 = vrot.slane %v16222_v45, 5  ;;  %v16252_v57 = vld [vmem:[#allocation3 + $0x64] sm:$0xf] }
 0x493   : > { %17313 = vst [vmem:[#allocation52_spill] sm:$0xff] %v16252_v57  ;;  %v10190_v45 = vrot.slane %v16240_v31, 5  ;;  %v16335_v31 = vld [vmem:[#allocation3 + $0x98] sm:$0x1] }
 0x494   : > { %v16237_v63 = vsel %vm13747_vm15, %v10161_v60, %v10162_v53  ;;  %v16249_v60 = vsel %vm13747_vm15, %v11453_v62, %v10166_v51  ;;  %v10175_v11 = vrot.slane %v10173_v14, 4  ;;  %v10091_v53 = vld [vmem:[#allocation3 + $0x54] sm:$0xe]  ;;  %v16260_v47 = vsel %vm13747_vm15, %v11454_v56, %v10173_v14  ;;  %v16264_v62 = vld [vmem:[#allocation3 + $0x68] sm:$0x1]  ;;  %17330 = vst [vmem:[#allocation69_spill] sm:$0xff] %v16335_v31 }
 0x495   : > { %17310 = vst [vmem:[#allocation49_spill] sm:$0xff] %v16237_v63  ;;  %17312 = vst [vmem:[#allocation51_spill] sm:$0xff] %v16249_v60  ;;  %v10180_v63 = vrot.slane %v16207_v29, 5  ;;  %v16266_v51 = vld [vmem:[#allocation3 + $0x70] sm:$0xf]  ;;  %v10183_v56 = vrot.slane %v16224_v23, 5 }
 0x496   : > { %17315 = vst [vmem:[#allocation54_spill] sm:$0xff] %v16260_v47  ;;  %17316 = vst [vmem:[#allocation55_spill] sm:$0xff] %v16264_v62  ;;  %v16272_v10 = vsel %vm13747_vm15, %v10175_v11, %v10176_v27  ;;  %v16278_v14 = vld [vmem:[#allocation3 + $0x7c] sm:$0xf]  ;;  %v11456_v29 = vrot.slane %v10091_v53, 9  ;;  %v10189_v27 = vrot.slane %v10187_v24, 4 }
 0x497   : > { %17317 = vst [vmem:[#allocation56_spill] sm:$0xff] %v16266_v51  ;;  %17318 = vst [vmem:[#allocation57_spill] sm:$0xff] %v16272_v10  ;;  %v10182_v50 = vrot.slane %v10180_v63, 4  ;;  %v16283_v60 = vld [vmem:[#allocation3 + $0x74] sm:$0x1]  ;;  %v16287_v11 = vsel %vm13747_vm15, %v11455_v0, %v10180_v63  ;;  %v11457_v23 = vrot.slane %v10092_v58, 9 }
 0x498   : > { %17319 = vst [vmem:[#allocation58_spill] sm:$0xff] %v16283_v60  ;;  %17320 = vst [vmem:[#allocation59_spill] sm:$0xff] %v16287_v11  ;;  %v16298_v53 = vsel %vm13747_vm15, %v11456_v29, %v10187_v24  ;;  %v10197_v10 = vrot.slane %v16264_v62, 5  ;;  %v10201_v47 = vrot.slane %v16266_v51, 5  ;;  %v10094_v63 = vld [vmem:[#allocation3 + $0x78] sm:$0xe] }
 0x499   : > { %12284 = vmatmul.mubr.msk.bf16.gmra.mrb[28].mxu1 %vm6464_vm2, %v13049_v55  ;;  %v16294_v55 = vsel %vm13747_vm15, %v10182_v50, %v10183_v56  ;;  %17323 = vst [vmem:[#allocation62_spill] sm:$0xff] %v16298_v53  ;;  %v16302_v0 = vld [vmem:[#allocation3 + $0x88] sm:$0xf]  ;;  %v16304_v58 = vld [vmem:[#allocation3 + $0x94] sm:$0xf]  ;;  %v16310_v56 = vsel %vm13747_vm15, %v10189_v27, %v10190_v45  ;;  %v10204_v37 = vrot.slane %v16283_v60, 5 }
 0x49a   : > { %12289 = vmatprep.mubr.msk.bf16.mxu1 %vm6464_vm2, %v16076_v43  ;;  %v10194_v43 = vrot.slane %v16252_v57, 5  ;;  %17322 = vst [vmem:[#allocation61_spill] sm:$0xff] %v16294_v55  ;;  %17324 = vst [vmem:[#allocation63_spill] sm:$0xff] %v16304_v58  ;;  %v11458_v57 = vrot.slane %v10093_v12, 9  ;;  %v16312_v29 = vld [vmem:[#allocation3 + $0x8c] sm:$0x1] }
 0x49b   : > { %17325 = vst [vmem:[#allocation64_spill] sm:$0xff] %v16310_v56  ;;  %17326 = vst [vmem:[#allocation65_spill] sm:$0xff] %v16312_v29  ;;  %v10203_v51 = vrot.slane %v10201_v47, 4  ;;  %v16324_v45 = vld [vmem:[%s17050_s3 + $0x30] sm:$0xff]   ;;  %v11459_v24 = vrot.slane %v10094_v63, 9  ;;  %v10218_v11 = vrot.slane %v16312_v29, 5 }
 0x49c   : > { %v10196_v50 = vrot.slane %v10194_v43, 4  ;;  %v16318_v62 = vsel %vm13747_vm15, %v11457_v23, %v10194_v43  ;;  %v16332_v27 = vsel %vm13747_vm15, %v11458_v57, %v10201_v47  ;;  %v10208_v23 = vrot.slane %v16278_v14, 5  ;;  %v10096_v43 = vld [vmem:[#allocation3 + $0x90] sm:$0xe]  ;;  %v16337_v56 = vld [vmem:[#allocation3 + $0xa0] sm:$0xf] }
 0x49d   : > { %17327 = vst [vmem:[#allocation66_spill] sm:$0xff] %v16318_v62  ;;  %17329 = vst [vmem:[#allocation68_spill] sm:$0xff] %v16332_v27  ;;  %v16343_v55 = vsel %vm13747_vm15, %v10203_v51, %v10204_v37  ;;  %v10215_v57 = vrot.slane %v16302_v0, 5  ;;  %v10097_v60 = vld [vmem:[#allocation3 + $0x9c] sm:$0xe]  ;;  %v11461_v53 = vrot.slane %v10096_v43, 9 }
 0x49e   : > { %v16328_v12 = vsel %vm13747_vm15, %v10196_v50, %v10197_v10  ;;  %17331 = vst [vmem:[#allocation70_spill] sm:$0xff] %v16337_v56  ;;  %17332 = vst [vmem:[#allocation71_spill] sm:$0xff] %v16343_v55  ;;  %v10211_v10 = vrot.slane %v16290_v35, 5  ;;  %v10210_v63 = vrot.slane %v10208_v23, 4  ;;  %v11460_v50 = vrot.slane %v10095_v6, 9  ;;  %v17421_v20 = vld [vmem:[#allocation54_spill] sm:$0xff] }
 0x49f   : > { %17328 = vst [vmem:[#allocation67_spill] sm:$0xff] %v16328_v12  ;;  %v16355_v37 = vld [vmem:[#allocation3 + $0xa4] sm:$0x1]  ;;  %v16359_v51 = vsel %vm13747_vm15, %v11459_v24, %v10208_v23  ;;  %v10222_v47 = vrot.slane %v16304_v58, 5  ;;  %v16363_v6 = vld [vmem:[#allocation3 + $0xac] sm:$0xf] }
 0x4a0   : > { %v9394_v55 = vld [vmem:[#allocation3 + $0xb0] sm:$0x1]  ;;  %v10225_v24 = vrot.slane %v16335_v31, 5  ;;  %v10229_v23 = vrot.slane %v16337_v56, 5  ;;  %v16375_v43 = vld [vmem:[#allocation3 + $0xb8] sm:$0xf] }
 0x4a1   : > { %12290 = vmatmul.mubr.msk.bf16.vlgmr.msra.gmra.mrb[0].mxu1 %vm6464_vm2, %v16103_v44  ;;  %v10217_v44 = vrot.slane %v10215_v57, 4  ;;  %v10224_v62 = vrot.slane %v10222_v47, 4  ;;  %v8067_v29 = vshrl.u32 %v15857_v34, 16  ;;  %v10232_v31 = vrot.slane %v16355_v37, 5  ;;  %v10099_v56 = vld [vmem:[#allocation3 + $0xb4] sm:$0xe] }
 0x4a2   : > { %12322 = vmatpush3.bf16.msra.mxu1 %v16037_v2  ;;  %12293 = vmatprep.mubr.msk.bf16.mxu1 %vm6464_vm2, %v16120_v40  ;;  %v16367_v2 = vsel %vm13747_vm15, %v10210_v63, %v10211_v10  ;;  %v16371_v40 = vsel %vm13747_vm15, %v11460_v50, %v10215_v57  ;;  %v11462_v10 = vrot.slane %v10097_v60, 9  ;;  %v10098_v63 = vld [vmem:[#allocation3 + $0xa8] sm:$0xe]  ;;  %v10231_v50 = vrot.slane %v10229_v23, 4  ;;  %v9397_v35 = vld [vmem:[#allocation3 + $0xbc] sm:$0x1] }
 0x4a3   : > { %12355 = vmatprep.subr.bf16.mxu1 %v16324_v45  ;;  %17333 = vst [vmem:[#allocation72_spill] sm:$0xff] %v16367_v2  ;;  %17334 = vst [vmem:[#allocation73_spill] sm:$0xff] %v16371_v40  ;;  %v16381_v12 = vsel %vm13747_vm15, %v10217_v44, %v10218_v11  ;;  %v16387_v58 = vld [vmem:[#allocation3 + $0xc4] sm:$0xf]  ;;  %v16391_v27 = vsel %vm13747_vm15, %v11461_v53, %v10222_v47  ;;  %v16395_v60 = vsel %vm13747_vm15, %v10224_v62, %v10225_v24  ;;  %v10100_v47 = vld [vmem:[#allocation3 + $0xc0] sm:$0xe] }
 0x4a4   : > { %17335 = vst [vmem:[#allocation74_spill] sm:$0xff] %v16381_v12  ;;  %17336 = vst [vmem:[#allocation75_spill] sm:$0xff] %v16395_v60  ;;  %v16399_v34 = vsel %vm13747_vm15, %v11462_v10, %v10229_v23  ;;  %v10236_v11 = vrot.slane %v16363_v6, 5  ;;  %v16406_v57 = vsel %vm13747_vm15, %v10231_v50, %v10232_v31  ;;  %v11463_v12 = vrot.slane %v10098_v63, 9  ;;  %v9400_v40 = vld [vmem:[#allocation3 + $0xc8] sm:$0x1] }
 0x4a5   : > { %v10243_v53 = vrot.slane %v16375_v43, 5  ;;  %v10239_v23 = vrot.slane %v9394_v55, 5  ;;  %v11464_v10 = vrot.slane %v10099_v56, 9  ;;  %v8069_v2 = vrot.slane %v8067_v29, 4  ;;  %v7819_v56 = vld [vmem:[#allocation3 + $0x84] sm:$0xf] }
 0x4a6   : > { %v10238_v24 = vrot.slane %v10236_v11, 4  ;;  %v10246_v60 = vrot.slane %v9397_v35, 5  ;;  %v10250_v31 = vrot.slane %v16387_v58, 5  ;;  %v16418_v63 = vsel %vm13747_vm15, %v11463_v12, %v10236_v11 }
 0x4a7   : > { %v10245_v44 = vrot.slane %v10243_v53, 4  ;;  %v16426_v55 = vsel %vm13747_vm15, %v11464_v10, %v10243_v53  ;;  %v10253_v12 = vrot.slane %v9400_v40, 5  ;;  %v17337_v11 = vor.u32 %v16136_v17, %v16134_v41 }
 0x4a8   : > { %v16422_v50 = vsel %vm13747_vm15, %v10238_v24, %v10239_v23  ;;  %v10252_v29 = vrot.slane %v10250_v31, 4  ;;  %v8049_v23 = vshll.u32 %v15869_v38, 16  ;;  %v17338_v53 = vshrl.u32 %v16160_v61, 16 }
 0x4a9   : > { %12294 = vmatmul.mubr.msk.bf16.gmra.mrb[4].mxu1 %vm6464_vm2, %v16150_v59  ;;  %v11465_v59 = vrot.slane %v10100_v47, 9  ;;  %v8013_v24 = vrot.slane %v17337_v11, 4  ;;  %v8087_v35 = vshll.u32 %v15880_v7, 16  ;;  %v8091_v62 = vshrl.u32 %v15880_v7, 16 }
 0x4aa   : > { %12297 = vmatprep.mubr.msk.bf16.mxu1 %vm6464_vm2, %v16162_v9  ;;  %v16432_v9 = vsel %vm13747_vm15, %v10245_v44, %v10246_v60  ;;  %v8056_v10 = vrot.slane %v17338_v53, 4  ;;  %v16450_v41 = vsel %vm13747_vm15, %v10252_v29, %v10253_v12  ;;  %v17339_v38 = vshll.u32 %v16160_v61, 16 }
 0x4ab   : > { %v11482_v47 = vcombine.low %v16426_v55, %v16432_v9  ;;  %v16446_v60 = vsel %vm13747_vm15, %v11465_v59, %v10250_v31  ;;  %v8078_v40 = vshrl.u32 %v7819_v56, 16  ;;  %v8081_v44 = vshll.u32 %v7819_v56, 16 }
 0x4ac   : > { %v8059_v17 = vrot.slane %v17339_v38, 5  ;;  %v11483_v11 = vcombine.low %v16446_v60, %v16450_v41  ;;  %v17340_v53 = vor.u32 %v16144_v52, %v16142_v46  ;;  %v17341_v31 = vor.u32 %v16188_v22, %v16186_v30 }
 0x4ad   : > { %v17342_v29 = vor.u32 %v16192_v4, %v16190_v21  ;;  %v8070_v61 = vor.u32 %v8069_v2, %v16245_v16  ;;  %v17343_v56 = vsel %vm13360_vm8, %v16140_v33, %v16158_v25  ;;  %v17344_v52 = vsel %vm13360_vm8, %v16132_v36, %v16110_v1 }
 0x4ae   : > { %v8023_v7 = vrot.slane %v17340_v53, 4  ;;  %v8037_v59 = vrot.slane %v17341_v31, 4  ;;  %v11303_v38 = vcombine.low %v17344_v52, %v17343_v56  ;;  %v17345_v30 = vshll.u32 %v15830_v28, 16 }
 0x4af   : > { %v8047_v12 = vrot.slane %v17342_v29, 4  ;;  %v8051_v4 = vrot.slane %v8049_v23, 5  ;;  %v8073_v2 = vshll.u32 %v15871_v8, 16  ;;  %v16481_v53 = vrot.slane %v8087_v35, 5  ;;  %v7822_v29 = vld [vmem:[#allocation3 + $0x90] sm:$0xf] }
 0x4b0   : > { %v8027_v22 = vrot.slane %v17345_v30, 5  ;;  %v8093_v31 = vrot.slane %v8091_v62, 4  ;;  %v8018_v1 = vsel %vm13360_vm8, %v8013_v24, %v16142_v46  ;;  %v8060_v36 = vor.u32 %v8059_v17, %v8056_v10  ;;  %v7825_v24 = vld [vmem:[#allocation3 + $0x9c] sm:$0xf] }
 0x4b1   : > { %12298 = vmatmul.mubr.msk.bf16.gmra.mrb[8].mxu1 %vm6464_vm2, %v16164_v48  ;;  %v8080_v33 = vrot.slane %v8078_v40, 4  ;;  %v8083_v28 = vrot.slane %v8081_v44, 5  ;;  %v8042_v8 = vsel %vm13360_vm8, %v8037_v59, %v16190_v21  ;;  %v8052_v48 = vsel %vm13360_vm8, %v8047_v12, %v8051_v4 }
 0x4b2   : > { %12301 = vmatprep.mubr.msk.bf16.mxu1 %vm6464_vm2, %v11303_v38  ;;  %v8028_v25 = vsel %vm13360_vm8, %v8023_v7, %v8027_v22  ;;  %v8071_v62 = vrot.slane %v8070_v61, 4  ;;  %v8102_v35 = vshrl.u32 %v7822_v29, 16  ;;  %v8105_v23 = vshll.u32 %v7822_v29, 16 }
 0x4b3   : > { %v8111_v56 = vshll.u32 %v15882_v15, 16  ;;  %v8115_v46 = vshrl.u32 %v15882_v15, 16  ;;  %v8075_v10 = vrot.slane %v8073_v2, 5  ;;  %v8094_v17 = vor.u32 %v8093_v31, %v16481_v53 }
 0x4b4   : > { %v8135_v40 = vshll.u32 %v15911_v32, 16  ;;  %v8139_v44 = vshrl.u32 %v15911_v32, 16  ;;  %v11304_v7 = vcombine.low %v8018_v1, %v8028_v25  ;;  %v11305_v21 = vcombine.low %v8042_v8, %v8052_v48  ;;  %v7828_v8 = vld [vmem:[#allocation3 + $0xa8] sm:$0xf] }
 0x4b5   : > { %v8061_v59 = vrot.slane %v8060_v36, 4  ;;  %v8084_v52 = vor.u32 %v8083_v28, %v8080_v33  ;;  %v8076_v12 = vsel %vm13360_vm8, %v8071_v62, %v8075_v10  ;;  %v8097_v61 = vshll.u32 %v15893_v49, 16 }
 0x4b6   : > { %v8126_v38 = vshrl.u32 %v7825_v24, 16  ;;  %v8129_v30 = vshll.u32 %v7825_v24, 16  ;;  %v8104_v15 = vrot.slane %v8102_v35, 4  ;;  %v8107_v22 = vrot.slane %v8105_v23, 5 }
 0x4b7   : > { %v8113_v4 = vrot.slane %v8111_v56, 5  ;;  %v8117_v2 = vrot.slane %v8115_v46, 4  ;;  %v8095_v31 = vrot.slane %v8094_v17, 4  ;;  %v8137_v29 = vrot.slane %v8135_v40, 5  ;;  %v7831_v56 = vld [vmem:[#allocation3 + $0xb4] sm:$0xf] }
 0x4b8   : > { %v8141_v32 = vrot.slane %v8139_v44, 4  ;;  %v8066_v1 = vsel %vm13360_vm8, %v8061_v59, %v16245_v16  ;;  %v8085_v36 = vrot.slane %v8084_v52, 4  ;;  %v8099_v49 = vrot.slane %v8097_v61, 5 }
 0x4b9   : > { %12302 = vmatmul.mubr.msk.bf16.gmra.mrb[12].mxu1 %vm6464_vm2, %v11304_v7  ;;  %v11306_v33 = vcombine.low %v8066_v1, %v8076_v12  ;;  %v8128_v28 = vrot.slane %v8126_v38, 4  ;;  %v8131_v25 = vrot.slane %v8129_v30, 5  ;;  %v8108_v48 = vor.u32 %v8107_v22, %v8104_v15 }
 0x4ba   : > { %12305 = vmatprep.mubr.msk.bf16.mxu1 %vm6464_vm2, %v11305_v21  ;;  %v8118_v62 = vor.u32 %v8117_v2, %v8113_v4  ;;  %v8159_v35 = vshll.u32 %v15927_v13, 16  ;;  %v8163_v23 = vshrl.u32 %v15927_v13, 16  ;;  %v8100_v46 = vsel %vm13360_vm8, %v8095_v31, %v8099_v49  ;;  %v7834_v49 = vld [vmem:[#allocation3 + $0xc0] sm:$0xf] }
 0x4bb   : > { %v8142_v24 = vor.u32 %v8141_v32, %v8137_v29  ;;  %v8183_v10 = vshll.u32 %v15948_v18, 16  ;;  %v8187_v16 = vshrl.u32 %v15948_v18, 16  ;;  %v8090_v17 = vsel %vm13360_vm8, %v8085_v36, %v16481_v53 }
 0x4bc   : > { %v8121_v40 = vshll.u32 %v15902_v3, 16  ;;  %v8150_v44 = vshrl.u32 %v7828_v8, 16  ;;  %v8153_v7 = vshll.u32 %v7828_v8, 16  ;;  %v8132_v21 = vor.u32 %v8131_v25, %v8128_v28 }
 0x4bd   : > { %v8145_v13 = vshll.u32 %v15919_v19, 16  ;;  %v8174_v59 = vshrl.u32 %v7831_v56, 16  ;;  %v8177_v52 = vshll.u32 %v7831_v56, 16  ;;  %v11307_v12 = vcombine.low %v8090_v17, %v8100_v46 }
 0x4be   : > { %v8119_v61 = vrot.slane %v8118_v62, 4  ;;  %v8161_v38 = vrot.slane %v8159_v35, 5  ;;  %v8165_v30 = vrot.slane %v8163_v23, 4  ;;  %v8109_v18 = vrot.slane %v8108_v48, 4 }
 0x4bf   : > { %v8143_v15 = vrot.slane %v8142_v24, 4  ;;  %v8185_v22 = vrot.slane %v8183_v10, 5  ;;  %v8189_v2 = vrot.slane %v8187_v16, 4  ;;  %v8123_v3 = vrot.slane %v8121_v40, 5 }
 0x4c0   : > { %v8152_v53 = vrot.slane %v8150_v44, 4  ;;  %v8155_v31 = vrot.slane %v8153_v7, 5  ;;  %v8133_v32 = vrot.slane %v8132_v21, 4  ;;  %v8147_v1 = vrot.slane %v8145_v13, 5 }
 0x4c1   : > { %12306 = vmatmul.mubr.msk.bf16.gmra.mrb[16].mxu1 %vm6464_vm2, %v11306_v33  ;;  %v8176_v19 = vrot.slane %v8174_v59, 4  ;;  %v8179_v36 = vrot.slane %v8177_v52, 5  ;;  %v8124_v28 = vsel %vm13360_vm8, %v8119_v61, %v8123_v3  ;;  %v8166_v25 = vor.u32 %v8165_v30, %v8161_v38  ;;  %v13173_v3 = vld [vmem:[#allocation3 + $0xc8] sm:$0x1] }
 0x4c2   : > { %12309 = vmatprep.mubr.msk.bf16.mxu1 %vm6464_vm2, %v11307_v12  ;;  %v8207_v33 = vshll.u32 %v15965_v54, 16  ;;  %v8211_v8 = vshrl.u32 %v15965_v54, 16  ;;  %v8114_v48 = vsel %vm13360_vm8, %v8109_v18, %v8113_v4  ;;  %v8148_v62 = vsel %vm13360_vm8, %v8143_v15, %v8147_v1 }
 0x4c3   : > { %v8190_v35 = vor.u32 %v8189_v2, %v8185_v22  ;;  %v8156_v23 = vor.u32 %v8155_v31, %v8152_v53  ;;  %v8169_v56 = vshll.u32 %v15939_v42, 16  ;;  %v8198_v46 = vshrl.u32 %v7834_v49, 16 }
 0x4c4   : > { %v8201_v24 = vshll.u32 %v7834_v49, 16  ;;  %v11308_v10 = vcombine.low %v8114_v48, %v8124_v28  ;;  %v8138_v16 = vsel %vm13360_vm8, %v8133_v32, %v8137_v29  ;;  %v8180_v17 = vor.u32 %v8179_v36, %v8176_v19 }
 0x4c5   : > { %v8193_v40 = vshll.u32 %v15950_v39, 16  ;;  %v11309_v54 = vcombine.low %v8138_v16, %v8148_v62  ;;  %v8167_v44 = vrot.slane %v8166_v25, 4  ;;  %v8209_v7 = vrot.slane %v8207_v33, 5  ;;  %v17346_v25 = vld [vmem:[#allocation33_spill] sm:$0xff]  ;;  %v17348_v16 = vld [vmem:[#allocation34_spill] sm:$0xff] }
 0x4c6   : > { %v8213_v4 = vrot.slane %v8211_v8, 4  ;;  %v8191_v21 = vrot.slane %v8190_v35, 4  ;;  %v8157_v13 = vrot.slane %v8156_v23, 4  ;;  %v8171_v42 = vrot.slane %v8169_v56, 5  ;;  %v17347_v8 = vld [vmem:[#allocation32_spill] sm:$0xff] }
 0x4c7   : > { %v8200_v59 = vrot.slane %v8198_v46, 4  ;;  %v8203_v52 = vrot.slane %v8201_v24, 5  ;;  %v8181_v12 = vrot.slane %v8180_v17, 4  ;;  %v8195_v61 = vrot.slane %v8193_v40, 5 }
 0x4c8   : > { %v8172_v29 = vsel %vm13360_vm8, %v8167_v44, %v8171_v42  ;;  %v8214_v30 = vor.u32 %v8213_v4, %v8209_v7  ;;  %v8585_v18 = vrot.slane %v16042_v5, 5  ;;  %v8162_v15 = vsel %vm13360_vm8, %v8157_v13, %v8161_v38  ;;  %v8519_v5 = vld [vmem:[#allocation3 + $0xc] sm:$0xe]  ;;  %v13053_v4 = vld [vmem:[%s17050_s3 + $0x38] sm:$0xff]   ;;  %v17350_v13 = vld [vmem:[#allocation15_spill] sm:$0xff] }
 0x4c9   : > { %12310 = vmatmul.mubr.msk.bf16.gmra.mrb[20].mxu1 %vm6464_vm2, %v11308_v10  ;;  %v8196_v39 = vsel %vm13360_vm8, %v8191_v21, %v8195_v61  ;;  %v8204_v2 = vor.u32 %v8203_v52, %v8200_v59  ;;  %v8217_v53 = vshll.u32 %v13173_v3, 16  ;;  %v11310_v31 = vcombine.low %v8162_v15, %v8172_v29  ;;  %v8520_v10 = vld [vmem:[#allocation3 + $0x18] sm:$0xe]  ;;  %v17349_v21 = vld [vmem:[#allocation14_spill] sm:$0xff]  ;;  %v17353_v52 = vld [vmem:[#allocation17_spill] sm:$0xff] }
 0x4ca   : > { %12313 = vmatprep.mubr.msk.bf16.mxu1 %vm6464_vm2, %v11309_v54  ;;  %v8186_v32 = vsel %vm13360_vm8, %v8181_v12, %v8185_v22  ;;  %v8215_v19 = vrot.slane %v8214_v30, 4  ;;  %v8587_v36 = vrot.slane %v8585_v18, 4  ;;  %v8588_v33 = vrot.slane %v17346_v25, 5  ;;  %v17352_v59 = vld [vmem:[#allocation16_spill] sm:$0xff]  ;;  %v17355_v61 = vld [vmem:[#allocation18_spill] sm:$0xff]  ;;  %v17356_v29 = vld [vmem:[#allocation5_spill] sm:$0xff] }
 0x4cb   : > { %v11311_v1 = vcombine.low %v8186_v32, %v8196_v39  ;;  %v8205_v49 = vrot.slane %v8204_v2, 4  ;;  %v8219_v28 = vrot.slane %v8217_v53, 5  ;;  %v8592_v48 = vrot.slane %v17347_v8, 5  ;;  %v17358_v39 = vld [vmem:[#allocation19_spill] sm:$0xff]  ;;  %v17362_v2 = vld [vmem:[#allocation8_spill] sm:$0xff]  ;;  %v17364_v53 = vld [vmem:[#allocation9_spill] sm:$0xff] }
 0x4cc   : > { %v11330_v62 = vrot.slane %v8519_v5, 9  ;;  %v8589_v22 = vsel %vm13747_vm15, %v8587_v36, %v8588_v33  ;;  %v8595_v17 = vrot.slane %v17348_v16, 5  ;;  %v11331_v40 = vrot.slane %v8520_v10, 9  ;;  %v17373_v25 = vld [vmem:[#allocation20_spill] sm:$0xff]  ;;  %v17374_v33 = vld [vmem:[#allocation21_spill] sm:$0xff]  ;;  %v17376_v8 = vld [vmem:[#allocation22_spill] sm:$0xff] }
 0x4cd   : > { %v8220_v38 = vsel %vm13360_vm8, %v8215_v19, %v8219_v28  ;;  %v8210_v35 = vsel %vm13360_vm8, %v8205_v49, %v8209_v7  ;;  %v8594_v24 = vrot.slane %v8592_v48, 4  ;;  %v17351_v42 = vcombine.low %v17349_v21, %v17350_v13  ;;  %v17368_v19 = vld [vmem:[#allocation13_spill] sm:$0xff]  ;;  %v17370_v49 = vld [vmem:[#allocation12_spill] sm:$0xff]  ;;  %v16627_v13 = vld [vmem:[%s17050_s3 + $0x40] sm:$0xff]  }
 0x4ce   : > { %v11312_v23 = vcombine.low %v8210_v35, %v8220_v38  ;;  %v8586_v56 = vsel %vm13747_vm15, %v11330_v62, %v8585_v18  ;;  %v8593_v44 = vsel %vm13747_vm15, %v11331_v40, %v8592_v48  ;;  %v17354_v12 = vcombine.low %v17352_v59, %v17353_v52  ;;  %v17359_v18 = vld [vmem:[#allocation6_spill] sm:$0xff]  ;;  %v17371_v28 = vld [vmem:[#allocation4_spill] sm:$0xff]  ;;  %v17377_v48 = vld [vmem:[#allocation23_spill] sm:$0xff] }
 0x4cf   : > { %v11348_v46 = vcombine.low %v8586_v56, %v8589_v22  ;;  %v8596_v54 = vsel %vm13747_vm15, %v8594_v24, %v8595_v17  ;;  %v17357_v30 = vcombine.low %v17355_v61, %v17356_v29  ;;  %v17360_v15 = vcombine.low %v17358_v39, %v17359_v18  ;;  %v17379_v22 = vld [vmem:[#allocation24_spill] sm:$0xff]  ;;  %v17380_v35 = vld [vmem:[#allocation25_spill] sm:$0xff]  ;;  %v17382_v56 = vld [vmem:[#allocation26_spill] sm:$0xff] }
 0x4d0   : > { %v11349_v7 = vcombine.low %v8593_v44, %v8596_v54  ;;  %v17372_v5 = vcombine.low %v17370_v49, %v17371_v28  ;;  %v17375_v38 = vcombine.low %v17373_v25, %v17374_v33  ;;  %v17378_v62 = vcombine.low %v17376_v8, %v17377_v48  ;;  %v17385_v10 = vld [vmem:[#allocation28_spill] sm:$0xff]  ;;  %v17386_v16 = vld [vmem:[#allocation29_spill] sm:$0xff]  ;;  %v17388_v54 = vld [vmem:[#allocation30_spill] sm:$0xff] }
 0x4d1   : > { %12314 = vmatmul.mubr.msk.bf16.gmra.mrb[24].mxu1 %vm6464_vm2, %v11310_v31  ;;  %v17365_v31 = vld [vmem:[#allocation10_spill] sm:$0xff]  ;;  %v17387_v17 = vcombine.low %v17385_v10, %v17386_v16  ;;  %v13052_v40 = vld [vmem:[#allocation3 + $0x18] sm:$0xff]   ;;  %v17389_v44 = vld [vmem:[#allocation31_spill] sm:$0xff] }
 0x4d2   : > { %12317 = vmatprep.mubr.msk.bf16.mxu1 %vm6464_vm2, %v11311_v1  ;;  %v17366_v32 = vcombine.low %v17364_v53, %v17365_v31  ;;  %v17367_v1 = vld [vmem:[#allocation11_spill] sm:$0xff]  ;;  %v13054_v21 = vld [vmem:[#allocation3 + $0x24] sm:$0xff]   ;;  %v13056_v59 = vld [vmem:[#allocation3 + $0x3c] sm:$0xff]  }
 0x4d3   : > { %v17369_v36 = vcombine.low %v17367_v1, %v17368_v19  ;;  %v13057_v52 = vld [vmem:[#allocation3 + $0x48] sm:$0xff]   ;;  %v13059_v61 = vld [vmem:[#allocation3 + $0x60] sm:$0xff]   ;;  %v17391_v39 = vld [vmem:[#allocation35_spill] sm:$0xff] }
 0x4d4   : > { %v13060_v29 = vld [vmem:[#allocation3 + $0x6c] sm:$0xff]   ;;  %v9414_v18 = vshll.u32 %v17391_v39, 16 }
 0x4d5   : > { %v13063_v31 = vld [vmem:[#allocation3 + $0x90] sm:$0xff]  }
 0x4d9   : > { %12318 = vmatmul.mubr.msk.bf16.gmra.mrb[28].mxu1 %vm6464_vm2, %v11312_v23  ;;  %v17381_v23 = vcombine.low %v17379_v22, %v17380_v35  ;;  %v13064_v22 = vld [vmem:[#allocation3 + $0x9c] sm:$0xff]  }
 0x4da   : > { %12323 = vmatprep.mubr.msk.bf16.mxu1 %vm6464_vm2, %v11348_v46  ;;  %v17383_v46 = vld [vmem:[#allocation27_spill] sm:$0xff] }
 0x4db   : > { %v17384_v24 = vcombine.low %v17382_v56, %v17383_v46  ;;  %v13065_v46 = vld [vmem:[#allocation3 + $0xa8] sm:$0xff]  }
 0x4e1   : > { %12324 = vmatmul.mubr.msk.bf16.vlgmr.msra.gmra.mrb[0].mxu1 %vm6464_vm2, %v11349_v7  ;;  %v17390_v7 = vcombine.low %v17388_v54, %v17389_v44  ;;  %v17394_v44 = vld [vmem:[#allocation38_spill] sm:$0xff] }
 0x4e2   : > { %12356 = vmatpush3.bf16.msra.mxu1 %v16324_v45  ;;  %12327 = vmatprep.mubr.msk.bf16.mxu1 %vm6464_vm2, %v17351_v42  ;;  %v17361_v45 = vld [vmem:[#allocation7_spill] sm:$0xff] }
 0x4e3   : > { %12389 = vmatprep.subr.bf16.mxu1 %v13053_v4  ;;  %v17363_v3 = vcombine.low %v17361_v45, %v17362_v2  ;;  %v13055_v42 = vld [vmem:[#allocation3 + $0x30] sm:$0xff]   ;;  %v9359_v45 = vld [vmem:[#allocation3 + $0x24] sm:$0xf] }
 0x4e4   : > { %v13062_v2 = vld [vmem:[#allocation3 + $0x84] sm:$0xff]   ;;  %v9429_v19 = vshrl.u32 %v9359_v45, 16 }
 0x4e9   : > { %12328 = vmatmul.mubr.msk.bf16.gmra.mrb[4].mxu1 %vm6464_vm2, %v17354_v12  ;;  %v13058_v12 = vld [vmem:[#allocation3 + $0x54] sm:$0xff]  }
 0x4ea   : > { %12331 = vmatprep.mubr.msk.bf16.mxu1 %vm6464_vm2, %v17357_v30  ;;  %v13061_v30 = vld [vmem:[#allocation3 + $0x78] sm:$0xff]  }
 0x4f1   : > { %12332 = vmatmul.mubr.msk.bf16.gmra.mrb[8].mxu1 %vm6464_vm2, %v17360_v15  ;;  %v9418_v15 = vshrl.u32 %v17391_v39, 16 }
 0x4f2   : > { %12335 = vmatprep.mubr.msk.bf16.mxu1 %vm6464_vm2, %v17363_v3 }
 0x4f3   : > { %v9420_v1 = vrot.slane %v9418_v15, 4 }
 0x4f9   : > { %12336 = vmatmul.mubr.msk.bf16.gmra.mrb[12].mxu1 %vm6464_vm2, %v17366_v32  ;;  %v9416_v32 = vrot.slane %v9414_v18, 5 }
 0x4fa   : > { %12339 = vmatprep.mubr.msk.bf16.mxu1 %vm6464_vm2, %v17369_v36  ;;  %v9432_v36 = vshll.u32 %v9359_v45, 16 }
 0x4fb   : > { %v9421_v33 = vor.u32 %v9420_v1, %v9416_v32 }
 0x4fc   : > { %v9434_v8 = vrot.slane %v9432_v36, 5  ;;  %v13067_v36 = vld [vmem:[#allocation3 + $0xc0] sm:$0xff]  }
 0x4fd   : > { %v9422_v16 = vrot.slane %v9421_v33, 4 }
 0x501   : > { %12340 = vmatmul.mubr.msk.bf16.gmra.mrb[16].mxu1 %vm6464_vm2, %v17372_v5  ;;  %v17392_v5 = vld [vmem:[#allocation37_spill] sm:$0xff] }
 0x502   : > { %12343 = vmatprep.mubr.msk.bf16.mxu1 %vm6464_vm2, %v17375_v38  ;;  %v9438_v25 = vshll.u32 %v17392_v5, 16  ;;  %v9431_v38 = vrot.slane %v9429_v19, 4  ;;  %v9442_v48 = vshrl.u32 %v17392_v5, 16  ;;  %v17397_v5 = vld [vmem:[#allocation41_spill] sm:$0xff] }
 0x503   : > { %v9490_v33 = vshrl.u32 %v17397_v5, 16 }
 0x509   : > { %12344 = vmatmul.mubr.msk.bf16.gmra.mrb[20].mxu1 %vm6464_vm2, %v17378_v62  ;;  %v9362_v62 = vld [vmem:[#allocation3 + $0x30] sm:$0xf] }
 0x50a   : > { %12347 = vmatprep.mubr.msk.bf16.mxu1 %vm6464_vm2, %v17381_v23  ;;  %v17393_v23 = vld [vmem:[#allocation36_spill] sm:$0xff]  ;;  %v9453_v10 = vshrl.u32 %v9362_v62, 16  ;;  %v9456_v54 = vshll.u32 %v9362_v62, 16  ;;  %v17398_v62 = vld [vmem:[#allocation42_spill] sm:$0xff] }
 0x50b   : > { %v9424_v56 = vshll.u32 %v17393_v23, 16  ;;  %v16674_v23 = vld [vmem:[#allocation3 + $0xd4] sm:$0x1] }
 0x50c   : > { %v9458_v18 = vrot.slane %v9456_v54, 5  ;;  %v17399_v54 = vld [vmem:[#allocation47_spill] sm:$0xff] }
 0x511   : > { %12348 = vmatmul.mubr.msk.bf16.gmra.mrb[24].mxu1 %vm6464_vm2, %v17384_v24  ;;  %v16645_v24 = vrot.slane %v9438_v25, 5  ;;  %v9486_v25 = vshll.u32 %v17397_v5, 16 }
 0x512   : > { %12351 = vmatprep.mubr.msk.bf16.mxu1 %vm6464_vm2, %v17387_v17  ;;  %v9435_v17 = vor.u32 %v9434_v8, %v9431_v38  ;;  %v9368_v38 = vld [vmem:[#allocation3 + $0x48] sm:$0xf] }
 0x519   : > { %12352 = vmatmul.mubr.msk.bf16.gmra.mrb[28].mxu1 %vm6464_vm2, %v17390_v7  ;;  %v9462_v7 = vshll.u32 %v17394_v44, 16 }
 0x51a   : > { %12357 = vmatprep.mubr.msk.bf16.mxu1 %vm6464_vm2, %v13052_v40  ;;  %v9444_v40 = vrot.slane %v9442_v48, 4 }
 0x51b   : > { %v16657_v15 = vrot.slane %v9462_v7, 5  ;;  %v9538_v7 = vshrl.u32 %v17399_v54, 16 }
 0x51c   : > { %v9445_v39 = vor.u32 %v9444_v40, %v16645_v24  ;;  %v9371_v40 = vld [vmem:[#allocation3 + $0x54] sm:$0xf] }
 0x51e   : > { %v9446_v8 = vrot.slane %v9445_v39, 4 }
 0x521   : > { %12358 = vmatmul.mubr.msk.bf16.vlgmr.msra.gmra.mrb[0].mxu1 %vm6464_vm2, %v13054_v21  ;;  %v9466_v21 = vshrl.u32 %v17394_v44, 16  ;;  %v9534_v44 = vshll.u32 %v17399_v54, 16 }
 0x522   : > { %12390 = vmatpush3.bf16.msra.mxu1 %v13053_v4  ;;  %12361 = vmatprep.mubr.msk.bf16.mxu1 %vm6464_vm2, %v13055_v42  ;;  %v9356_v4 = vld [vmem:[#allocation3 + $0x18] sm:$0xf] }
 0x523   : > { %12423 = vmatprep.subr.bf16.mxu1 %v16627_v13  ;;  %v9405_v3 = vshrl.u32 %v9356_v4, 16  ;;  %v9408_v53 = vshll.u32 %v9356_v4, 16  ;;  %v16654_v4 = vrot.slane %v9435_v17, 4  ;;  %v9468_v45 = vrot.slane %v9466_v21, 4 }
 0x524   : > { %v10260_v17 = vrot.slane %v16674_v23, 5 }
 0x525   : > { %v9407_v49 = vrot.slane %v9405_v3, 4  ;;  %v9410_v28 = vrot.slane %v9408_v53, 5 }
 0x527   : > { %v9411_v35 = vor.u32 %v9410_v28, %v9407_v49 }
 0x529   : > { %12362 = vmatmul.mubr.msk.bf16.gmra.mrb[4].mxu1 %vm6464_vm2, %v13056_v59  ;;  %v9412_v42 = vrot.slane %v9411_v35, 4  ;;  %v9426_v59 = vrot.slane %v9424_v56, 5  ;;  %v16672_v35 = vld [vmem:[#allocation3 + $0xd0] sm:$0xf]  ;;  %v9469_v56 = vor.u32 %v9468_v45, %v16657_v15  ;;  %v9525_v45 = vshrl.u32 %v9371_v40, 16 }
 0x52a   : > { %12365 = vmatprep.mubr.msk.bf16.mxu1 %vm6464_vm2, %v13057_v52  ;;  %v17395_v52 = vld [vmem:[#allocation39_spill] sm:$0xff] }
 0x52b   : > { %v9417_v3 = vsel %vm13360_vm8, %v9412_v42, %v9416_v32  ;;  %v9441_v32 = vsel %vm13360_vm8, %v16654_v4, %v16645_v24 }
 0x531   : > { %12366 = vmatmul.mubr.msk.bf16.gmra.mrb[8].mxu1 %vm6464_vm2, %v13058_v12  ;;  %v9448_v12 = vshll.u32 %v17395_v52, 16  ;;  %v9492_v52 = vrot.slane %v9490_v33, 4 }
 0x532   : > { %12369 = vmatprep.mubr.msk.bf16.mxu1 %vm6464_vm2, %v13059_v61  ;;  %v9455_v61 = vrot.slane %v9453_v10, 4  ;;  %v10101_v10 = vld [vmem:[#allocation3 + $0xcc] sm:$0xe] }
 0x533   : > { %v16661_v53 = vrot.slane %v9448_v12, 5  ;;  %v11466_v21 = vrot.slane %v10101_v10, 9 }
 0x534   : > { %v9459_v48 = vor.u32 %v9458_v18, %v9455_v61  ;;  %v13068_v61 = vld [vmem:[#allocation3 + $0xcc] sm:$0xff]  }
 0x536   : > { %v9460_v33 = vrot.slane %v9459_v48, 4  ;;  %v17401_v48 = vld [vmem:[#allocation52_spill] sm:$0xff] }
 0x539   : > { %12370 = vmatmul.mubr.msk.bf16.gmra.mrb[12].mxu1 %vm6464_vm2, %v13060_v29  ;;  %v9365_v29 = vld [vmem:[#allocation3 + $0x3c] sm:$0xf] }
 0x53a   : > { %12373 = vmatprep.mubr.msk.bf16.mxu1 %vm6464_vm2, %v13061_v30  ;;  %v9427_v30 = vsel %vm13360_vm8, %v9422_v16, %v9426_v59  ;;  %v9477_v19 = vshrl.u32 %v9365_v29, 16  ;;  %v9480_v28 = vshll.u32 %v9365_v29, 16  ;;  %v10257_v16 = vrot.slane %v16672_v35, 5 }
 0x53b   : > { %v11418_v49 = vcombine.low %v9417_v3, %v9427_v30  ;;  %v16683_v59 = vrot.slane %v9486_v25, 5  ;;  %v9501_v29 = vshrl.u32 %v9368_v38, 16  ;;  %v9504_v30 = vshll.u32 %v9368_v38, 16 }
 0x53c   : > { %v9479_v24 = vrot.slane %v9477_v19, 4  ;;  %v9482_v42 = vrot.slane %v9480_v28, 5  ;;  %v10259_v12 = vrot.slane %v10257_v16, 4  ;;  %v16689_v39 = vsel %vm13747_vm15, %v11466_v21, %v10257_v16  ;;  %v9374_v28 = vld [vmem:[#allocation3 + $0x60] sm:$0xf]  ;;  %v17402_v21 = vld [vmem:[#allocation46_spill] sm:$0xff] }
 0x53d   : > { %v16695_v19 = vrot.slane %v9534_v44, 5  ;;  %v9451_v25 = vsel %vm13360_vm8, %v9446_v8, %v16661_v53  ;;  %v9470_v38 = vrot.slane %v9469_v56, 4  ;;  %v9506_v10 = vrot.slane %v9504_v30, 5 }
 0x53e   : > { %v16693_v3 = vsel %vm13747_vm15, %v10259_v12, %v10260_v17  ;;  %v9483_v26 = vor.u32 %v9482_v42, %v9479_v24  ;;  %v9527_v17 = vrot.slane %v9525_v45, 4  ;;  %v9549_v54 = vshrl.u32 %v9374_v28, 16 }
 0x53f   : > { %v11484_v5 = vcombine.low %v16689_v39, %v16693_v3  ;;  %v9552_v8 = vshll.u32 %v9374_v28, 16  ;;  %v9558_v56 = vshll.u32 %v17401_v48, 16  ;;  %v9562_v44 = vshrl.u32 %v17401_v48, 16  ;;  %v9377_v28 = vld [vmem:[#allocation3 + $0x6c] sm:$0xf] }
 0x540   : > { %v9465_v24 = vsel %vm13360_vm8, %v9460_v33, %v16657_v15  ;;  %v9520_v42 = vshll.u32 %v17402_v21, 16 }
 0x541   : > { %12374 = vmatmul.mubr.msk.bf16.gmra.mrb[16].mxu1 %vm6464_vm2, %v13062_v2  ;;  %v13066_v2 = vld [vmem:[#allocation3 + $0xb4] sm:$0xff]   ;;  %v9564_v15 = vrot.slane %v9562_v44, 4 }
 0x542   : > { %12377 = vmatprep.mubr.msk.bf16.mxu1 %vm6464_vm2, %v13063_v31  ;;  %v17396_v31 = vld [vmem:[#allocation40_spill] sm:$0xff]  ;;  %v9522_v48 = vrot.slane %v9520_v42, 5  ;;  %v17405_v44 = vld [vmem:[#allocation55_spill] sm:$0xff] }
 0x543   : > { %v9472_v1 = vshll.u32 %v17396_v31, 16 }
 0x545   : > { %v9474_v31 = vrot.slane %v9472_v1, 5  ;;  %v9493_v1 = vor.u32 %v9492_v52, %v16683_v59  ;;  %v9484_v52 = vrot.slane %v9483_v26, 4 }
 0x547   : > { %v9494_v12 = vrot.slane %v9493_v1, 4 }
 0x549   : > { %12378 = vmatmul.mubr.msk.bf16.gmra.mrb[20].mxu1 %vm6464_vm2, %v13064_v22  ;;  %v9510_v22 = vshll.u32 %v17398_v62, 16 }
 0x54a   : > { %12381 = vmatprep.mubr.msk.bf16.mxu1 %vm6464_vm2, %v13065_v46  ;;  %v9514_v46 = vshrl.u32 %v17398_v62, 16  ;;  %v17400_v62 = vld [vmem:[#allocation45_spill] sm:$0xff] }
 0x54b   : > { %v16685_v4 = vrot.slane %v9510_v22, 5  ;;  %v9496_v22 = vshll.u32 %v17400_v62, 16  ;;  %v16717_v62 = vrot.slane %v9558_v56, 5 }
 0x54c   : > { %v9516_v18 = vrot.slane %v9514_v46, 4  ;;  %v9503_v46 = vrot.slane %v9501_v29, 4  ;;  %v17403_v29 = vld [vmem:[#allocation50_spill] sm:$0xff] }
 0x54d   : > { %v9544_v30 = vshll.u32 %v17403_v29, 16  ;;  %v9565_v56 = vor.u32 %v9564_v15, %v16717_v62 }
 0x54e   : > { %v9517_v16 = vor.u32 %v9516_v18, %v16685_v4  ;;  %v9507_v18 = vor.u32 %v9506_v10, %v9503_v46  ;;  %v9573_v46 = vshrl.u32 %v9377_v28, 16  ;;  %v9576_v10 = vshll.u32 %v9377_v28, 16 }
 0x54f   : > { %v9546_v1 = vrot.slane %v9544_v30, 5 }
 0x550   : > { %v9518_v45 = vrot.slane %v9517_v16, 4  ;;  %v9380_v16 = vld [vmem:[#allocation3 + $0x78] sm:$0xf]  ;;  %v9575_v42 = vrot.slane %v9573_v46, 4  ;;  %v9630_v46 = vshll.u32 %v16302_v0, 16 }
 0x551   : > { %12382 = vmatmul.mubr.msk.bf16.gmra.mrb[24].mxu1 %vm6464_vm2, %v13066_v2  ;;  %v9528_v2 = vshll.u32 %v9371_v40, 16  ;;  %v9600_v21 = vshll.u32 %v9380_v16, 16 }
 0x552   : > { %12385 = vmatprep.mubr.msk.bf16.mxu1 %vm6464_vm2, %v13067_v36  ;;  %v9540_v36 = vrot.slane %v9538_v7, 4  ;;  %v11419_v7 = vcombine.low %v9441_v32, %v9451_v25  ;;  %v9554_v25 = vrot.slane %v9552_v8, 5 }
 0x553   : > { %v9530_v40 = vrot.slane %v9528_v2, 5 }
 0x554   : > { %v9541_v53 = vor.u32 %v9540_v36, %v16695_v19  ;;  %v9551_v36 = vrot.slane %v9549_v54, 4  ;;  %v9523_v54 = vsel %vm13360_vm8, %v9518_v45, %v9522_v48  ;;  %v9602_v48 = vrot.slane %v9600_v21, 5  ;;  %v17408_v21 = vld [vmem:[#allocation60_spill] sm:$0xff] }
 0x555   : > { %v9531_v2 = vor.u32 %v9530_v40, %v9527_v17  ;;  %v9508_v40 = vrot.slane %v9507_v18, 4 }
 0x556   : > { %v9542_v32 = vrot.slane %v9541_v53, 4 }
 0x557   : > { %v9532_v53 = vrot.slane %v9531_v2, 4  ;;  %v9513_v30 = vsel %vm13360_vm8, %v9508_v40, %v16685_v4  ;;  %v17407_v40 = vld [vmem:[#allocation63_spill] sm:$0xff] }
 0x558   : > { %v9547_v8 = vsel %vm13360_vm8, %v9542_v32, %v9546_v1  ;;  %v11422_v45 = vcombine.low %v9513_v30, %v9523_v54  ;;  %v9383_v32 = vld [vmem:[#allocation3 + $0x84] sm:$0xf]  ;;  %v9654_v54 = vshll.u32 %v17407_v40, 16 }
 0x559   : > { %12386 = vmatmul.mubr.msk.bf16.gmra.mrb[28].mxu1 %vm6464_vm2, %v13068_v61  ;;  %v9498_v61 = vrot.slane %v9496_v22, 5  ;;  %v9489_v22 = vsel %vm13360_vm8, %v9484_v52, %v16683_v59  ;;  %v9555_v59 = vor.u32 %v9554_v25, %v9551_v36  ;;  %v9578_v52 = vrot.slane %v9576_v10, 5 }
 0x55a   : > { %12391 = vmatprep.mubr.msk.bf16.mxu1 %vm6464_vm2, %v11418_v49  ;;  %v9475_v49 = vsel %vm13360_vm8, %v9470_v38, %v9474_v31  ;;  %v17404_v31 = vld [vmem:[#allocation56_spill] sm:$0xff]  ;;  %v9537_v18 = vsel %vm13360_vm8, %v9532_v53, %v16695_v19  ;;  %v9566_v25 = vrot.slane %v9565_v56, 4  ;;  %v9621_v19 = vshrl.u32 %v9383_v32, 16 }
 0x55b   : > { %v11420_v33 = vcombine.low %v9465_v24, %v9475_v49  ;;  %v9582_v38 = vshll.u32 %v17404_v31, 16  ;;  %v9586_v26 = vshrl.u32 %v17404_v31, 16  ;;  %v9499_v17 = vsel %vm13360_vm8, %v9494_v12, %v9498_v61 }
 0x55c   : > { %v9597_v49 = vshrl.u32 %v9380_v16, 16  ;;  %v9606_v12 = vshll.u32 %v16278_v14, 16  ;;  %v9610_v61 = vshrl.u32 %v16278_v14, 16  ;;  %v11421_v29 = vcombine.low %v9489_v22, %v9499_v17  ;;  %v9386_v14 = vld [vmem:[#allocation3 + $0x90] sm:$0xf] }
 0x55d   : > { %v16735_v24 = vrot.slane %v9582_v38, 5  ;;  %v11423_v2 = vcombine.low %v9537_v18, %v9547_v8  ;;  %v9556_v36 = vrot.slane %v9555_v59, 4  ;;  %v9579_v31 = vor.u32 %v9578_v52, %v9575_v42  ;;  %v17406_v38 = vld [vmem:[#allocation58_spill] sm:$0xff] }
 0x55e   : > { %v9592_v4 = vshll.u32 %v17406_v38, 16  ;;  %v9612_v22 = vrot.slane %v9610_v61, 4  ;;  %v9624_v1 = vshll.u32 %v9383_v32, 16  ;;  %v9634_v10 = vshrl.u32 %v16302_v0, 16 }
 0x55f   : > { %v9645_v16 = vshrl.u32 %v9386_v14, 16  ;;  %v9648_v17 = vshll.u32 %v9386_v14, 16  ;;  %v9658_v53 = vshrl.u32 %v17407_v40, 16  ;;  %v9561_v8 = vsel %vm13360_vm8, %v9556_v36, %v16717_v62 }
 0x560   : > { %v9616_v0 = vshll.u32 %v17408_v21, 16  ;;  %v9623_v42 = vrot.slane %v9621_v19, 4  ;;  %v9626_v52 = vrot.slane %v9624_v1, 5  ;;  %v9636_v61 = vrot.slane %v9634_v10, 4  ;;  %v17409_v1 = vld [vmem:[#allocation65_spill] sm:$0xff]  ;;  %v17410_v10 = vld [vmem:[#allocation70_spill] sm:$0xff] }
 0x561   : > { %12392 = vmatmul.mubr.msk.bf16.vlgmr.msra.gmra.mrb[0].mxu1 %vm6464_vm2, %v11419_v7  ;;  %v9568_v7 = vshll.u32 %v17405_v44, 16  ;;  %v9650_v30 = vrot.slane %v9648_v17, 5  ;;  %v16761_v18 = vrot.slane %v9654_v54, 5  ;;  %v9660_v62 = vrot.slane %v9658_v53, 4  ;;  %v9392_v17 = vld [vmem:[#allocation3 + $0xa8] sm:$0xf] }
 0x562   : > { %12424 = vmatpush3.bf16.msra.mxu1 %v16627_v13  ;;  %12395 = vmatprep.mubr.msk.bf16.mxu1 %vm6464_vm2, %v11420_v33  ;;  %v9588_v13 = vrot.slane %v9586_v26, 4  ;;  %v9599_v33 = vrot.slane %v9597_v49, 4  ;;  %v9608_v26 = vrot.slane %v9606_v12, 5  ;;  %v16759_v12 = vrot.slane %v9630_v46, 5  ;;  %v17411_v54 = vld [vmem:[#allocation69_spill] sm:$0xff] }
 0x563   : > { %v9570_v28 = vrot.slane %v9568_v7, 5  ;;  %v9580_v7 = vrot.slane %v9579_v31, 4  ;;  %v9661_v19 = vor.u32 %v9660_v62, %v16761_v18  ;;  %v9640_v46 = vshll.u32 %v17409_v1, 16 }
 0x564   : > { %v9589_v15 = vor.u32 %v9588_v13, %v16735_v24  ;;  %v9603_v44 = vor.u32 %v9602_v48, %v9599_v33  ;;  %v9594_v13 = vrot.slane %v9592_v4, 5  ;;  %v9613_v49 = vor.u32 %v9612_v22, %v9608_v26 }
 0x565   : > { %v9571_v59 = vsel %vm13360_vm8, %v9566_v25, %v9570_v28  ;;  %v9585_v25 = vsel %vm13360_vm8, %v9580_v7, %v16735_v24  ;;  %v9627_v33 = vor.u32 %v9626_v52, %v9623_v42  ;;  %v9637_v48 = vor.u32 %v9636_v61, %v16759_v12 }
 0x566   : > { %v9590_v56 = vrot.slane %v9589_v15, 4  ;;  %v11424_v36 = vcombine.low %v9561_v8, %v9571_v59  ;;  %v9604_v32 = vrot.slane %v9603_v44, 4  ;;  %v9614_v15 = vrot.slane %v9613_v49, 4 }
 0x567   : > { %v9618_v4 = vrot.slane %v9616_v0, 5  ;;  %v9678_v24 = vshll.u32 %v17410_v10, 16  ;;  %v9664_v53 = vshll.u32 %v17411_v54, 16  ;;  %v9702_v8 = vshll.u32 %v16363_v6, 16 }
 0x568   : > { %v9595_v28 = vsel %vm13360_vm8, %v9590_v56, %v9594_v13  ;;  %v9706_v59 = vshrl.u32 %v16363_v6, 16  ;;  %v9628_v56 = vrot.slane %v9627_v33, 4  ;;  %v9638_v44 = vrot.slane %v9637_v48, 4  ;;  %v9395_v6 = vld [vmem:[#allocation3 + $0xb4] sm:$0xf] }
 0x569   : > { %12396 = vmatmul.mubr.msk.bf16.gmra.mrb[4].mxu1 %vm6464_vm2, %v11421_v29  ;;  %v9647_v29 = vrot.slane %v9645_v16, 4  ;;  %v11425_v38 = vcombine.low %v9585_v25, %v9595_v28  ;;  %v9682_v16 = vshrl.u32 %v17410_v10, 16  ;;  %v9619_v40 = vsel %vm13360_vm8, %v9614_v15, %v9618_v4 }
 0x56a   : > { %12399 = vmatprep.mubr.msk.bf16.mxu1 %vm6464_vm2, %v11422_v45  ;;  %v9389_v45 = vld [vmem:[#allocation3 + $0x9c] sm:$0xf]  ;;  %v9662_v49 = vrot.slane %v9661_v19, 4  ;;  %v9693_v21 = vshrl.u32 %v9392_v17, 16  ;;  %v9696_v0 = vshll.u32 %v9392_v17, 16  ;;  %v9642_v52 = vrot.slane %v9640_v46, 5 }
 0x56b   : > { %v9669_v14 = vshrl.u32 %v9389_v45, 16  ;;  %v9672_v31 = vshll.u32 %v9389_v45, 16  ;;  %v9651_v22 = vor.u32 %v9650_v30, %v9647_v29  ;;  %v16782_v61 = vrot.slane %v9678_v24, 5  ;;  %v13174_v17 = vld [vmem:[#allocation3 + $0xb0] sm:$0x1] }
 0x56c   : > { %v9684_v29 = vrot.slane %v9682_v16, 4  ;;  %v9666_v30 = vrot.slane %v9664_v53, 5  ;;  %v16785_v62 = vrot.slane %v9702_v8, 5  ;;  %v9708_v45 = vrot.slane %v9706_v59, 4  ;;  %v9401_v8 = vld [vmem:[#allocation3 + $0xcc] sm:$0xf] }
 0x56d   : > { %v9671_v7 = vrot.slane %v9669_v14, 4  ;;  %v9652_v13 = vrot.slane %v9651_v22, 4  ;;  %v9643_v28 = vsel %vm13360_vm8, %v9638_v44, %v9642_v52  ;;  %v9688_v25 = vshll.u32 %v16355_v37, 16  ;;  %v9398_v22 = vld [vmem:[#allocation3 + $0xc0] sm:$0xf] }
 0x56e   : > { %v9667_v33 = vsel %vm13360_vm8, %v9662_v49, %v9666_v30  ;;  %v9695_v48 = vrot.slane %v9693_v21, 4  ;;  %v9698_v14 = vrot.slane %v9696_v0, 5  ;;  %v9730_v4 = vshrl.u32 %v16375_v43, 16 }
 0x56f   : > { %v9657_v15 = vsel %vm13360_vm8, %v9652_v13, %v16761_v18  ;;  %v9709_v19 = vor.u32 %v9708_v45, %v16785_v62  ;;  %v9720_v37 = vshll.u32 %v9395_v6, 16  ;;  %v9754_v18 = vshrl.u32 %v16387_v58, 16 }
 0x570   : > { %v11428_v46 = vcombine.low %v9657_v15, %v9667_v33  ;;  %v9690_v24 = vrot.slane %v9688_v25, 5  ;;  %v9699_v16 = vor.u32 %v9698_v14, %v9695_v48  ;;  %v9741_v54 = vshrl.u32 %v9398_v22, 16  ;;  %v13175_v15 = vld [vmem:[#allocation3 + $0xbc] sm:$0x1] }
 0x571   : > { %12400 = vmatmul.mubr.msk.bf16.gmra.mrb[8].mxu1 %vm6464_vm2, %v11423_v2  ;;  %v9609_v2 = vsel %vm13360_vm8, %v9604_v32, %v9608_v26  ;;  %v9674_v26 = vrot.slane %v9672_v31, 5  ;;  %v9685_v31 = vor.u32 %v9684_v29, %v16782_v61  ;;  %v9744_v53 = vshll.u32 %v9398_v22, 16  ;;  %v13176_v22 = vld [vmem:[#allocation3 + $0xc8] sm:$0x1] }
 0x572   : > { %12403 = vmatprep.mubr.msk.bf16.mxu1 %vm6464_vm2, %v11424_v36  ;;  %v11426_v42 = vcombine.low %v9609_v2, %v9619_v40  ;;  %v9633_v36 = vsel %vm13360_vm8, %v9628_v56, %v16759_v12  ;;  %v9726_v12 = vshll.u32 %v16375_v43, 16  ;;  %v9750_v2 = vshll.u32 %v16387_v58, 16 }
 0x573   : > { %v9675_v32 = vor.u32 %v9674_v26, %v9671_v7  ;;  %v11427_v1 = vcombine.low %v9633_v36, %v9643_v28  ;;  %v9712_v40 = vshll.u32 %v13174_v17, 16  ;;  %v9686_v59 = vrot.slane %v9685_v31, 4 }
 0x574   : > { %v9728_v56 = vrot.slane %v9726_v12, 5  ;;  %v9732_v44 = vrot.slane %v9730_v4, 4  ;;  %v9710_v7 = vrot.slane %v9709_v19, 4  ;;  %v9722_v26 = vrot.slane %v9720_v37, 5 }
 0x575   : > { %v9676_v10 = vrot.slane %v9675_v32, 4  ;;  %v9752_v13 = vrot.slane %v9750_v2, 5  ;;  %v9756_v58 = vrot.slane %v9754_v18, 4  ;;  %v9765_v49 = vshrl.u32 %v9401_v8, 16 }
 0x576   : > { %v9768_v21 = vshll.u32 %v9401_v8, 16  ;;  %v9774_v0 = vshll.u32 %v16672_v35, 16  ;;  %v9700_v52 = vrot.slane %v9699_v16, 4  ;;  %v9714_v29 = vrot.slane %v9712_v40, 5 }
 0x577   : > { %v9743_v30 = vrot.slane %v9741_v54, 4  ;;  %v9746_v45 = vrot.slane %v9744_v53, 5  ;;  %v9691_v36 = vsel %vm13360_vm8, %v9686_v59, %v9690_v24  ;;  %v9733_v28 = vor.u32 %v9732_v44, %v9728_v56 }
 0x578   : > { %v9715_v32 = vsel %vm13360_vm8, %v9710_v7, %v9714_v29  ;;  %v9736_v33 = vshll.u32 %v13175_v15, 16  ;;  %v9757_v48 = vor.u32 %v9756_v58, %v9752_v13  ;;  %v9770_v14 = vrot.slane %v9768_v21, 5  ;;  %v17413_v21 = vld [vmem:[#allocation44_spill] sm:$0xff]  ;;  %v17418_v29 = vld [vmem:[#allocation51_spill] sm:$0xff]  ;;  %v17427_v15 = vld [vmem:[#allocation62_spill] sm:$0xff] }
 0x579   : > { %12404 = vmatmul.mubr.msk.bf16.gmra.mrb[12].mxu1 %vm6464_vm2, %v11425_v38  ;;  %v9717_v38 = vshrl.u32 %v9395_v6, 16  ;;  %v9681_v6 = vsel %vm13360_vm8, %v9676_v10, %v16782_v61  ;;  %v9776_v31 = vrot.slane %v9774_v0, 5  ;;  %v9705_v61 = vsel %vm13360_vm8, %v9700_v52, %v16785_v62 }
 0x57a   : > { %12407 = vmatprep.mubr.msk.bf16.mxu1 %vm6464_vm2, %v11426_v42  ;;  %v9778_v42 = vshrl.u32 %v16672_v35, 16  ;;  %v9767_v35 = vrot.slane %v9765_v49, 4  ;;  %v11429_v12 = vcombine.low %v9681_v6, %v9691_v36  ;;  %v9747_v4 = vor.u32 %v9746_v45, %v9743_v30  ;;  %v17419_v30 = vld [vmem:[#allocation53_spill] sm:$0xff] }
 0x57b   : > { %v9719_v43 = vrot.slane %v9717_v38, 4  ;;  %v9760_v19 = vshll.u32 %v13176_v22, 16  ;;  %v11430_v37 = vcombine.low %v9705_v61, %v9715_v32  ;;  %v9734_v2 = vrot.slane %v9733_v28, 4  ;;  %v17422_v6 = vld [vmem:[#allocation57_spill] sm:$0xff]  ;;  %v17424_v28 = vld [vmem:[#allocation59_spill] sm:$0xff] }
 0x57c   : > { %v9780_v38 = vrot.slane %v9778_v42, 4  ;;  %v9738_v18 = vrot.slane %v9736_v33, 5  ;;  %v9771_v10 = vor.u32 %v9770_v14, %v9767_v35  ;;  %v9784_v16 = vshll.u32 %v16674_v23, 16  ;;  %v17416_v42 = vld [vmem:[#allocation49_spill] sm:$0xff]  ;;  %v17428_v33 = vld [vmem:[#allocation64_spill] sm:$0xff]  ;;  %v17430_v35 = vld [vmem:[#allocation66_spill] sm:$0xff] }
 0x57d   : > { %v9723_v25 = vor.u32 %v9722_v26, %v9719_v43  ;;  %v9748_v17 = vrot.slane %v9747_v4, 4  ;;  %v9762_v40 = vrot.slane %v9760_v19, 5  ;;  %v17420_v45 = vcombine.low %v17418_v29, %v17419_v30  ;;  %v17425_v32 = vld [vmem:[#allocation61_spill] sm:$0xff]  ;;  %v17431_v14 = vld [vmem:[#allocation67_spill] sm:$0xff]  ;;  %v17436_v4 = vld [vmem:[#allocation72_spill] sm:$0xff] }
 0x57e   : > { %v9781_v24 = vor.u32 %v9780_v38, %v9776_v31  ;;  %v9739_v62 = vsel %vm13360_vm8, %v9734_v2, %v9738_v18  ;;  %v9772_v8 = vrot.slane %v9771_v10, 4  ;;  %v9786_v43 = vrot.slane %v9784_v16, 5  ;;  %v17433_v38 = vld [vmem:[#allocation68_spill] sm:$0xff]  ;;  %v17438_v19 = vld [vmem:[#allocation73_spill] sm:$0xff]  ;;  %v17441_v18 = vld [vmem:[#allocation75_spill] sm:$0xff] }
 0x57f   : > { %v9753_v7 = vsel %vm13360_vm8, %v9748_v17, %v9752_v13  ;;  %v17415_v13 = vld [vmem:[#allocation48_spill] sm:$0xff]  ;;  %v17423_v36 = vcombine.low %v17421_v20, %v17422_v6  ;;  %v17437_v22 = vcombine.low %v16359_v51, %v17436_v4  ;;  %v17444_v51 = vcombine.low %v16418_v63, %v16422_v50 }
 0x580   : > { %v9782_v59 = vrot.slane %v9781_v24, 4  ;;  %v9777_v23 = vsel %vm13360_vm8, %v9772_v8, %v9776_v31  ;;  %v17417_v52 = vcombine.low %v17415_v13, %v17416_v42  ;;  %v17432_v31 = vcombine.low %v17430_v35, %v17431_v14 }
 0x581   : > { %12408 = vmatmul.mubr.msk.bf16.gmra.mrb[16].mxu1 %vm6464_vm2, %v11427_v1  ;;  %v9758_v1 = vrot.slane %v9757_v48, 4  ;;  %v17429_v48 = vcombine.low %v17427_v15, %v17428_v33 }
 0x582   : > { %12411 = vmatprep.mubr.msk.bf16.mxu1 %vm6464_vm2, %v11428_v46  ;;  %v9724_v46 = vrot.slane %v9723_v25, 4  ;;  %v9787_v58 = vsel %vm13360_vm8, %v9782_v59, %v9786_v43  ;;  %v17426_v25 = vcombine.low %v17424_v28, %v17425_v32 }
 0x583   : > { %v9763_v54 = vsel %vm13360_vm8, %v9758_v1, %v9762_v40  ;;  %v11433_v49 = vcombine.low %v9777_v23, %v9787_v58  ;;  %v17442_v1 = vcombine.low %v16391_v27, %v17441_v18  ;;  %v16904_v27 = vld [vmem:[%s17051_s4] ss:$0 sm:$0xff] }
 0x584   : > { %v9729_v53 = vsel %vm13360_vm8, %v9724_v46, %v9728_v56  ;;  %v11432_v26 = vcombine.low %v9753_v7, %v9763_v54  ;;  %v17412_v56 = vld [vmem:[#allocation43_spill] sm:$0xff]  ;;  %v17443_v46 = vcombine.low %v16399_v34, %v16406_v57  ;;  %v10599_v34 = vlaneseq }
 0x585   : > { %v11431_v44 = vcombine.low %v9729_v53, %v9739_v62  ;;  %v17414_v0 = vcombine.low %v17412_v56, %v17413_v21 }
 0x586   : > { %v10600_v41 = vand.u32 127, %v10599_v34 }
 0x588   : > { %vm10601_vm5 = vcmp.ge.s32.totalorder %v10600_v41, 27  ;;  %vm10602_vm6 = vcmp.lt.s32.totalorder %v10600_v41, 51 }
 0x589   : > { %12412 = vmatmul.mubr.msk.bf16.gmra.mrb[20].mxu1 %vm6464_vm2, %v11429_v12  ;;  %v17434_v12 = vld [vmem:[#allocation71_spill] sm:$0xff]  ;;  %vm16913_vm7 = vmand %vm10601_vm5, %vm10602_vm6 }
 0x58a   : > { %12415 = vmatprep.mubr.msk.bf16.mxu1 %vm6464_vm2, %v11430_v37  ;;  %v17435_v61 = vcombine.low %v17433_v38, %v17434_v12  ;;  %v17439_v37 = vld [vmem:[#allocation74_spill] sm:$0xff] }
 0x58b   : > { %v17440_v2 = vcombine.low %v17438_v19, %v17439_v37 }
 0x591   : > { %12416 = vmatmul.mubr.msk.bf16.gmra.mrb[24].mxu1 %vm6464_vm2, %v11431_v44 }
 0x592   : > { %12419 = vmatprep.mubr.msk.bf16.mxu1 %vm6464_vm2, %v11432_v26 }
 0x599   : > { %12420 = vmatmul.mubr.msk.bf16.gmra.mrb[28].mxu1 %vm6464_vm2, %v11433_v49 }
 0x59a   : > { %12425 = vmatprep.mubr.msk.bf16.mxu1 %vm6464_vm2, %v17414_v0 }
 0x5a1   : > { %12426 = vmatmul.mubr.msk.bf16.vlgmr.msra.gmra.mrb[0].mxu1 %vm6464_vm2, %v17417_v52 }
 0x5a2   : > { %12429 = vmatprep.mubr.msk.bf16.mxu1 %vm6464_vm2, %v17420_v45 }
 0x5a9   : > { %12430 = vmatmul.mubr.msk.bf16.gmra.mrb[4].mxu1 %vm6464_vm2, %v17423_v36 }
 0x5aa   : > { %12433 = vmatprep.mubr.msk.bf16.mxu1 %vm6464_vm2, %v17426_v25 }
 0x5b1   : > { %12434 = vmatmul.mubr.msk.bf16.gmra.mrb[8].mxu1 %vm6464_vm2, %v17429_v48 }
 0x5b2   : > { %12437 = vmatprep.mubr.msk.bf16.mxu1 %vm6464_vm2, %v17432_v31 }
 0x5b9   : > { %12438 = vmatmul.mubr.msk.bf16.gmra.mrb[12].mxu1 %vm6464_vm2, %v17435_v61 }
 0x5ba   : > { %12441 = vmatprep.mubr.msk.bf16.mxu1 %vm6464_vm2, %v17437_v22 }
 0x5c1   : > { %12442 = vmatmul.mubr.msk.bf16.gmra.mrb[16].mxu1 %vm6464_vm2, %v17440_v2 }
 0x5c2   : > { %12445 = vmatprep.mubr.msk.bf16.mxu1 %vm6464_vm2, %v17442_v1 }
 0x5c9   : > { %12446 = vmatmul.mubr.msk.bf16.gmra.mrb[20].mxu1 %vm6464_vm2, %v17443_v46 }
 0x5ca   : > { %12449 = vmatprep.mubr.msk.bf16.mxu1 %vm6464_vm2, %v17444_v51 }
 0x5d1   : > { %12450 = vmatmul.mubr.msk.bf16.gmra.mrb[24].mxu1 %vm6464_vm2, %v11482_v47 }
 0x5d2   : > { %12453 = vmatprep.mubr.msk.bf16.mxu1 %vm6464_vm2, %v11483_v11 }
 0x5d9   : > { %12454 = vmatmul.mubr.msk.bf16.gmra.mrb[28].mxu1 %vm6464_vm2, %v11484_v5 }
 0x674   : > { %v12427_v57 = vpop.f32.mrb[0].mxu1 }
 0x675   : > { %v10569_v63 = vadd.f32 %v12427_v57, %v16904_v27  ;;  %v10401_v50 = vpop.f32.mrb[1].mxu1 }
 0x676   : > { %v10567_v55 = vadd.f32 %v16904_v27, %v10401_v50  ;;  %v12428_v9 = vpop.f32.mrb[2].mxu1 }
 0x677   : > { %13070 = vtanh.f32 %v10569_v63  ;;  %v10570_v47 = vadd.f32 %v12428_v9, %v16904_v27  ;;  %v10404_v60 = vpop.f32.mrb[3].mxu1 }
 0x678   : > { %13072 = vtanh.f32 %v10567_v55  ;;  %v10568_v11 = vadd.f32 %v16904_v27, %v10404_v60 }
 0x679   : > { %13074 = vtanh.f32 %v10570_v47 }
 0x67a   : > { %13076 = vtanh.f32 %v10568_v11 }
 0x67c   : > { %v12431_v39 = vpop.f32.mrb[4].mxu1 }
 0x67d   : > { %v10573_v3 = vadd.f32 %v12431_v39, %v16904_v27  ;;  %v10417_v5 = vpop.f32.mrb[5].mxu1 }
 0x67e   : > { %v10571_v10 = vadd.f32 %v16904_v27, %v10417_v5  ;;  %v12432_v24 = vpop.f32.mrb[6].mxu1 }
 0x67f   : > { %13078 = vtanh.f32 %v10573_v3  ;;  %v10574_v17 = vadd.f32 %v12432_v24, %v16904_v27  ;;  %v10420_v40 = vpop.f32.mrb[7].mxu1 }
 0x680   : > { %13080 = vtanh.f32 %v10571_v10  ;;  %v10572_v62 = vadd.f32 %v16904_v27, %v10420_v40 }
 0x681   : > { %v13071_v54 = vpop.eup %13070  ;;  %13082 = vtanh.f32 %v10574_v17 }
 0x682   : > { %v13073_v53 = vpop.eup %13072  ;;  %v10638_v8 = vsel %vm16913_vm7, %v13071_v54, %v10569_v63  ;;  %13084 = vtanh.f32 %v10572_v62 }
 0x683   : > { %v13075_v59 = vpop.eup %13074  ;;  %10670 = vst [vmem:[%s16921_s23 + $0x10] sm:$0xff] %v10638_v8  ;;  %v10636_v43 = vsel %vm16913_vm7, %v13073_v53, %v10567_v55 }
 0x684   : > { %v13077_v44 = vpop.eup %13076  ;;  %10668 = vst [vmem:[%s16921_s23] sm:$0xff] %v10636_v43  ;;  %v10639_v7 = vsel %vm16913_vm7, %v13075_v59, %v10570_v47  ;;  %v12435_v26 = vpop.f32.mrb[8].mxu1 }
 0x685   : > { %10671 = vst [vmem:[%s16921_s23 + $0x18] sm:$0xff] %v10639_v7  ;;  %v10637_v23 = vsel %vm16913_vm7, %v13077_v44, %v10568_v11  ;;  %v10577_v58 = vadd.f32 %v12435_v26, %v16904_v27  ;;  %v10433_v49 = vpop.f32.mrb[9].mxu1 }
 0x686   : > { %10669 = vst [vmem:[%s16921_s23 + $0x8] sm:$0xff] %v10637_v23  ;;  %v10575_v56 = vadd.f32 %v16904_v27, %v10433_v49  ;;  %v12436_v21 = vpop.f32.mrb[10].mxu1 }
 0x687   : > { %13086 = vtanh.f32 %v10577_v58  ;;  %v10578_v0 = vadd.f32 %v12436_v21, %v16904_v27  ;;  %v10436_v13 = vpop.f32.mrb[11].mxu1 }
 0x688   : > { %13088 = vtanh.f32 %v10575_v56  ;;  %v10576_v42 = vadd.f32 %v16904_v27, %v10436_v13 }
 0x689   : > { %v13079_v52 = vpop.eup %13078  ;;  %13090 = vtanh.f32 %v10578_v0 }
 0x68a   : > { %v13081_v29 = vpop.eup %13080  ;;  %v10642_v30 = vsel %vm16913_vm7, %v13079_v52, %v10573_v3  ;;  %13092 = vtanh.f32 %v10576_v42 }
 0x68b   : > { %v13083_v45 = vpop.eup %13082  ;;  %10674 = vst [vmem:[%s16921_s23 + $0x30] sm:$0xff] %v10642_v30  ;;  %v10640_v20 = vsel %vm16913_vm7, %v13081_v29, %v10571_v10 }
 0x68c   : > { %v13085_v6 = vpop.eup %13084  ;;  %10672 = vst [vmem:[%s16921_s23 + $0x20] sm:$0xff] %v10640_v20  ;;  %v10643_v36 = vsel %vm16913_vm7, %v13083_v45, %v10574_v17  ;;  %v12439_v28 = vpop.f32.mrb[12].mxu1 }
 0x68d   : > { %10675 = vst [vmem:[%s16921_s23 + $0x38] sm:$0xff] %v10643_v36  ;;  %v10641_v32 = vsel %vm16913_vm7, %v13085_v6, %v10572_v62  ;;  %v10581_v25 = vadd.f32 %v12439_v28, %v16904_v27  ;;  %v10449_v15 = vpop.f32.mrb[13].mxu1 }
 0x68e   : > { %10673 = vst [vmem:[%s16921_s23 + $0x28] sm:$0xff] %v10641_v32  ;;  %v10579_v33 = vadd.f32 %v16904_v27, %v10449_v15  ;;  %v12440_v48 = vpop.f32.mrb[14].mxu1 }
 0x68f   : > { %13094 = vtanh.f32 %v10581_v25  ;;  %v10582_v35 = vadd.f32 %v12440_v48, %v16904_v27  ;;  %v10452_v14 = vpop.f32.mrb[15].mxu1 }
 0x690   : > { %13096 = vtanh.f32 %v10579_v33  ;;  %v10580_v31 = vadd.f32 %v16904_v27, %v10452_v14 }
 0x691   : > { %v13087_v38 = vpop.eup %13086  ;;  %13098 = vtanh.f32 %v10582_v35 }
 0x692   : > { %v13089_v12 = vpop.eup %13088  ;;  %v10646_v61 = vsel %vm16913_vm7, %v13087_v38, %v10577_v58  ;;  %13100 = vtanh.f32 %v10580_v31 }
 0x693   : > { %v13091_v4 = vpop.eup %13090  ;;  %10678 = vst [vmem:[%s16921_s23 + $0x50] sm:$0xff] %v10646_v61  ;;  %v10644_v22 = vsel %vm16913_vm7, %v13089_v12, %v10575_v56 }
 0x694   : > { %v13093_v19 = vpop.eup %13092  ;;  %10676 = vst [vmem:[%s16921_s23 + $0x40] sm:$0xff] %v10644_v22  ;;  %v10647_v37 = vsel %vm16913_vm7, %v13091_v4, %v10578_v0  ;;  %v12443_v2 = vpop.f32.mrb[16].mxu1 }
 0x695   : > { %10679 = vst [vmem:[%s16921_s23 + $0x58] sm:$0xff] %v10647_v37  ;;  %v10645_v18 = vsel %vm16913_vm7, %v13093_v19, %v10576_v42  ;;  %v10585_v1 = vadd.f32 %v12443_v2, %v16904_v27  ;;  %v10465_v46 = vpop.f32.mrb[17].mxu1 }
 0x696   : > { %10677 = vst [vmem:[%s16921_s23 + $0x48] sm:$0xff] %v10645_v18  ;;  %v10583_v51 = vadd.f32 %v16904_v27, %v10465_v46  ;;  %v12444_v57 = vpop.f32.mrb[18].mxu1 }
 0x697   : > { %13102 = vtanh.f32 %v10585_v1  ;;  %v10586_v34 = vadd.f32 %v12444_v57, %v16904_v27  ;;  %v10468_v63 = vpop.f32.mrb[19].mxu1 }
 0x698   : > { %13104 = vtanh.f32 %v10583_v51  ;;  %v10584_v50 = vadd.f32 %v16904_v27, %v10468_v63 }
 0x699   : > { %v13095_v55 = vpop.eup %13094  ;;  %13106 = vtanh.f32 %v10586_v34 }
 0x69a   : > { %v13097_v9 = vpop.eup %13096  ;;  %v10650_v47 = vsel %vm16913_vm7, %v13095_v55, %v10581_v25  ;;  %13108 = vtanh.f32 %v10584_v50 }
 0x69b   : > { %v13099_v60 = vpop.eup %13098  ;;  %10682 = vst [vmem:[%s16921_s23 + $0x70] sm:$0xff] %v10650_v47  ;;  %v10648_v41 = vsel %vm16913_vm7, %v13097_v9, %v10579_v33 }
 0x69c   : > { %v13101_v11 = vpop.eup %13100  ;;  %10680 = vst [vmem:[%s16921_s23 + $0x60] sm:$0xff] %v10648_v41  ;;  %v10651_v39 = vsel %vm16913_vm7, %v13099_v60, %v10582_v35  ;;  %v12447_v3 = vpop.f32.mrb[20].mxu1 }
 0x69d   : > { %10683 = vst [vmem:[%s16921_s23 + $0x78] sm:$0xff] %v10651_v39  ;;  %v10649_v5 = vsel %vm16913_vm7, %v13101_v11, %v10580_v31  ;;  %v10589_v10 = vadd.f32 %v12447_v3, %v16904_v27  ;;  %v10481_v24 = vpop.f32.mrb[21].mxu1 }
 0x69e   : > { %10681 = vst [vmem:[%s16921_s23 + $0x68] sm:$0xff] %v10649_v5  ;;  %v10587_v17 = vadd.f32 %v16904_v27, %v10481_v24  ;;  %v12448_v40 = vpop.f32.mrb[22].mxu1 }
 0x69f   : > { %13110 = vtanh.f32 %v10589_v10  ;;  %v10590_v62 = vadd.f32 %v12448_v40, %v16904_v27  ;;  %v10484_v54 = vpop.f32.mrb[23].mxu1 }
 0x6a0   : > { %13112 = vtanh.f32 %v10587_v17  ;;  %v10588_v53 = vadd.f32 %v16904_v27, %v10484_v54 }
 0x6a1   : > { %v13103_v8 = vpop.eup %13102  ;;  %13114 = vtanh.f32 %v10590_v62 }
 0x6a2   : > { %v13105_v59 = vpop.eup %13104  ;;  %v10654_v43 = vsel %vm16913_vm7, %v13103_v8, %v10585_v1  ;;  %13116 = vtanh.f32 %v10588_v53 }
 0x6a3   : > { %v13107_v44 = vpop.eup %13106  ;;  %10686 = vst [vmem:[%s16921_s23 + $0x90] sm:$0xff] %v10654_v43  ;;  %v10652_v7 = vsel %vm16913_vm7, %v13105_v59, %v10583_v51 }
 0x6a4   : > { %v13109_v26 = vpop.eup %13108  ;;  %10684 = vst [vmem:[%s16921_s23 + $0x80] sm:$0xff] %v10652_v7  ;;  %v10655_v23 = vsel %vm16913_vm7, %v13107_v44, %v10586_v34  ;;  %v12451_v58 = vpop.f32.mrb[24].mxu1 }
 0x6a5   : > { %10687 = vst [vmem:[%s16921_s23 + $0x98] sm:$0xff] %v10655_v23  ;;  %v10653_v49 = vsel %vm16913_vm7, %v13109_v26, %v10584_v50  ;;  %v10593_v56 = vadd.f32 %v12451_v58, %v16904_v27  ;;  %v10497_v21 = vpop.f32.mrb[25].mxu1 }
 0x6a6   : > { %10685 = vst [vmem:[%s16921_s23 + $0x88] sm:$0xff] %v10653_v49  ;;  %v10591_v0 = vadd.f32 %v16904_v27, %v10497_v21  ;;  %v12452_v13 = vpop.f32.mrb[26].mxu1 }
 0x6a7   : > { %13118 = vtanh.f32 %v10593_v56  ;;  %v10594_v42 = vadd.f32 %v12452_v13, %v16904_v27  ;;  %v10500_v52 = vpop.f32.mrb[27].mxu1 }
 0x6a8   : > { %13120 = vtanh.f32 %v10591_v0  ;;  %v10592_v29 = vadd.f32 %v16904_v27, %v10500_v52 }
 0x6a9   : > { %v13111_v30 = vpop.eup %13110  ;;  %13122 = vtanh.f32 %v10594_v42 }
 0x6aa   : > { %v13113_v45 = vpop.eup %13112  ;;  %v10658_v20 = vsel %vm16913_vm7, %v13111_v30, %v10589_v10  ;;  %13124 = vtanh.f32 %v10592_v29 }
 0x6ab   : > { %v13115_v6 = vpop.eup %13114  ;;  %10690 = vst [vmem:[%s16921_s23 + $0xb0] sm:$0xff] %v10658_v20  ;;  %v10656_v36 = vsel %vm16913_vm7, %v13113_v45, %v10587_v17 }
 0x6ac   : > { %v13117_v28 = vpop.eup %13116  ;;  %10688 = vst [vmem:[%s16921_s23 + $0xa0] sm:$0xff] %v10656_v36  ;;  %v10659_v32 = vsel %vm16913_vm7, %v13115_v6, %v10590_v62  ;;  %v12455_v25 = vpop.f32.mrb[28].mxu1 }
 0x6ad   : > { %10691 = vst [vmem:[%s16921_s23 + $0xb8] sm:$0xff] %v10659_v32  ;;  %v10657_v15 = vsel %vm16913_vm7, %v13117_v28, %v10588_v53  ;;  %v10597_v33 = vadd.f32 %v12455_v25, %v16904_v27  ;;  %v10513_v48 = vpop.f32.mrb[29].mxu1 }
 0x6ae   : > { %10689 = vst [vmem:[%s16921_s23 + $0xa8] sm:$0xff] %v10657_v15  ;;  %v10595_v35 = vadd.f32 %v16904_v27, %v10513_v48  ;;  %v12456_v14 = vpop.f32.mrb[30].mxu1 }
 0x6af   : > { %13126 = vtanh.f32 %v10597_v33  ;;  %v10598_v31 = vadd.f32 %v12456_v14, %v16904_v27  ;;  %v10516_v38 = vpop.f32.mrb[31].mxu1 }
 0x6b0   : > { %13128 = vtanh.f32 %v10595_v35  ;;  %v10596_v12 = vadd.f32 %v16904_v27, %v10516_v38 }
 0x6b1   : > { %v13119_v61 = vpop.eup %13118  ;;  %13130 = vtanh.f32 %v10598_v31 }
 0x6b2   : > { %v13121_v4 = vpop.eup %13120  ;;  %v10662_v22 = vsel %vm16913_vm7, %v13119_v61, %v10593_v56  ;;  %13132 = vtanh.f32 %v10596_v12 }
 0x6b3   : > { %v13123_v19 = vpop.eup %13122  ;;  %10694 = vst [vmem:[%s16921_s23 + $0xd0] sm:$0xff] %v10662_v22  ;;  %v10660_v37 = vsel %vm16913_vm7, %v13121_v4, %v10591_v0 }
 0x6b4   : > { %v13125_v2 = vpop.eup %13124  ;;  %10692 = vst [vmem:[%s16921_s23 + $0xc0] sm:$0xff] %v10660_v37  ;;  %v10663_v27 = vsel %vm16913_vm7, %v13123_v19, %v10594_v42 }
 0x6b5   : > { %10695 = vst [vmem:[%s16921_s23 + $0xd8] sm:$0xff] %v10663_v27  ;;  %v10661_v18 = vsel %vm16913_vm7, %v13125_v2, %v10592_v29 }
 0x6b6   : > { %10693 = vst [vmem:[%s16921_s23 + $0xc8] sm:$0xff] %v10661_v18 }
 0x6b9   : > { %v13127_v1 = vpop.eup %13126 }
 0x6ba   : > { %v13129_v46 = vpop.eup %13128  ;;  %v10666_v51 = vsel %vm16913_vm7, %v13127_v1, %v10597_v33 }
 0x6bb   : > { %v13131_v57 = vpop.eup %13130  ;;  %10698 = vst [vmem:[%s16921_s23 + $0xf0] sm:$0xff] %v10666_v51  ;;  %v10664_v34 = vsel %vm16913_vm7, %v13129_v46, %v10595_v35 }
 0x6bc   : > { %v13133_v63 = vpop.eup %13132  ;;  %10696 = vst [vmem:[%s16921_s23 + $0xe0] sm:$0xff] %v10664_v34  ;;  %v10667_v50 = vsel %vm16913_vm7, %v13131_v57, %v10598_v31 }
 0x6bd   : > { %10699 = vst [vmem:[%s16921_s23 + $0xf8] sm:$0xff] %v10667_v50  ;;  %v10665_v55 = vsel %vm16913_vm7, %v13133_v63, %v10596_v12 }
 0x6be   : > { %10697 = vst [vmem:[%s16921_s23 + $0xe8] sm:$0xff] %v10665_v55 }
 0x6bf PF: > { %s15_s18 = sadd.s32 1, %s13183_s18  }
 0x6c0   : > { %p12_p4 = scmp.ge.s32.totalorder %s15_s18, 4  }
 0x6c2   :  { %14 = sbr.rel (!%p12_p4) target bundleno = 1 (0x1), region = 90 }

</bundles_post_ra>
